<compile_context>
chip_gen: v7x
topology: tpu7x:2x2x1
jax: 0.10.0
libtpu: 0.0.40
codegen_flags: <defaults>
</compile_context>

<pallas_src>
import functools
import math

import jax
import jax.numpy as jnp
from jax.experimental import pallas as pl
from jax.experimental.pallas import tpu as pltpu

_EPS = 1e-5                               # PyTorch InstanceNorm2d default eps
_VMEM_LIMIT = 48 * 1024 * 1024            # conservative for v7x (64 MiB phys)
_TAPS3 = tuple((ky, kx) for ky in range(3) for kx in range(3))


# ----------------------------- Pallas kernels -----------------------------

def _tapconv_kernel(x_ref, w_ref, o_ref, *, shifts, ws, oh, ow, groups, norm,
                    act):
    """Tap-accumulated conv (+ optional InstanceNorm) (+ ReLU / tanh).

    x_ref: (1, Cin_eff, Lin)  bf16 flattened padded input (row stride = ws)
    w_ref: (T, R, Cin_eff)    bf16 per-tap weights, R = groups * Cout
    o_ref: (1, R, oh*ws)      output in "wide" layout (only cols < ow valid)
    """
    lw = oh * ws
    acc = None
    for t, s in enumerate(shifts):                    # in-kernel im2col:
        a = x_ref[0, :, pl.ds(s, lw)]                 # contiguous lane window
        p = jnp.dot(w_ref[t], a, preferred_element_type=jnp.float32)   # MXU
        acc = p if acc is None else acc + p

    if norm:
        r = acc.shape[0]
        c = r // groups
        y = acc.reshape(groups, c, lw)
        col = jax.lax.broadcasted_iota(jnp.int32, (1, 1, lw), 2) % ws
        mask = (col < ow).astype(jnp.float32)         # ignore pad columns
        inv_n = 1.0 / float(groups * oh * ow)
        s1 = jnp.sum(jnp.sum(y * mask, axis=2, keepdims=True),
                     axis=0, keepdims=True)
        mean = s1 * inv_n                             # (1, Cout, 1)
        xc = y - mean
        s2 = jnp.sum(jnp.sum(xc * xc * mask, axis=2, keepdims=True),
                     axis=0, keepdims=True)
        var = s2 * inv_n
        out = (xc * jax.lax.rsqrt(var + _EPS)).reshape(r, lw)
    else:
        out = acc

    if act == "relu":
        out = jnp.maximum(out, 0.0)
    elif act == "tanh":
        out = jnp.tanh(out)
    o_ref[0] = out.astype(o_ref.dtype)


def _resblock_kernel(xp_ref, w1_ref, w2_ref, o_ref, *, h, w):
    """Fused ResnetBlock: conv3x3+IN+ReLU -> (in-VMEM reflect pad) ->
    conv3x3+IN -> + residual.  One pallas_call, one HBM round trip per block.

    xp_ref: (1, C, (h+3)*(w+2)) bf16  reflect-padded x (flat, + slack row)
    w1/w2 : (9, C, C)          bf16  per-tap weights
    o_ref : (1, C, h*(w+2))    bf16  wide-layout block output
    """
    wp = w + 2
    lw = h * wp
    inv_n = 1.0 / float(h * w)

    col = jax.lax.broadcasted_iota(jnp.int32, (1, lw), 1) % wp
    mask = (col < w).astype(jnp.float32)

    # conv1 (input already reflect-padded by the wrapper)
    acc = None
    for t, (ky, kx) in enumerate(_TAPS3):
        a = xp_ref[0, :, pl.ds(ky * wp + kx, lw)]
        p = jnp.dot(w1_ref[t], a, preferred_element_type=jnp.float32)
        acc = p if acc is None else acc + p

    mean = jnp.sum(acc * mask, axis=1, keepdims=True) * inv_n
    xc = acc - mean
    var = jnp.sum(xc * xc * mask, axis=1, keepdims=True) * inv_n
    t1 = jnp.maximum(xc * jax.lax.rsqrt(var + _EPS), 0.0).astype(jnp.bfloat16)

    # Rebuild the reflect-padded intermediate in VMEM with lane shifts + selects
    # (pad=1 reflect only duplicates the 2nd row/col from each edge).
    def shift_right(x, s):
        return jnp.concatenate([x[:, :s], x[:, :-s]], axis=1)

    def shift_left1(x):
        return jnp.concatenate([x[:, 1:], x[:, -1:]], axis=1)

    mid = jnp.where(col == 0, shift_left1(t1),
                    jnp.where(col == w + 1, shift_right(t1, 3),
                              shift_right(t1, 1)))            # rows 1..h of tp
    top = mid[:, wp:2 * wp]                                   # tp row 0 == row 2
    bot = mid[:, (h - 2) * wp:(h - 1) * wp]                   # tp row h+1 == h-1
    tp = jnp.concatenate([top, mid, bot, bot], axis=1)        # + 1 slack row

    # conv2 over the in-VMEM padded intermediate
    acc2 = None
    for t, (ky, kx) in enumerate(_TAPS3):
        s = ky * wp + kx
        a2 = tp[:, s:s + lw]
        p2 = jnp.dot(w2_ref[t], a2, preferred_element_type=jnp.float32)
        acc2 = p2 if acc2 is None else acc2 + p2

    mean2 = jnp.sum(acc2 * mask, axis=1, keepdims=True) * inv_n
    xc2 = acc2 - mean2
    var2 = jnp.sum(xc2 * xc2 * mask, axis=1, keepdims=True) * inv_n
    y = xc2 * jax.lax.rsqrt(var2 + _EPS)

    res = xp_ref[0, :, pl.ds(wp + 1, lw)].astype(jnp.float32)  # residual slice
    o_ref[0] = (y + res).astype(o_ref.dtype)


# ----------------------------- kernel wrappers -----------------------------

def _compiler_params():
    return pltpu.CompilerParams(dimension_semantics=("parallel",),
                                vmem_limit_bytes=_VMEM_LIMIT)


def _tap_conv(xp, w, *, shifts, ws, oh, ow, groups, norm, act, out_dtype):
    n, cin_eff, lin = xp.shape
    t, r, _ = w.shape
    lw = oh * ws
    kern = functools.partial(_tapconv_kernel, shifts=shifts, ws=ws, oh=oh,
                             ow=ow, groups=groups, norm=norm, act=act)
    return pl.pallas_call(
        kern,
        out_shape=jax.ShapeDtypeStruct((n, r, lw), out_dtype),
        grid=(n,),
        in_specs=[pl.BlockSpec((1, cin_eff, lin), lambda i: (i, 0, 0)),
                  pl.BlockSpec((t, r, cin_eff), lambda i: (0, 0, 0))],
        out_specs=pl.BlockSpec((1, r, lw), lambda i: (i, 0, 0)),
        compiler_params=_compiler_params(),
    )(xp, w)


def _resblock_call(xp, w1, w2, *, h, w):
    n, c, lin = xp.shape
    lw = h * (w + 2)
    kern = functools.partial(_resblock_kernel, h=h, w=w)
    return pl.pallas_call(
        kern,
        out_shape=jax.ShapeDtypeStruct((n, c, lw), jnp.bfloat16),
        grid=(n,),
        in_specs=[pl.BlockSpec((1, c, lin), lambda i: (i, 0, 0)),
                  pl.BlockSpec((9, c, c), lambda i: (0, 0, 0)),
                  pl.BlockSpec((9, c, c), lambda i: (0, 0, 0))],
        out_specs=pl.BlockSpec((1, c, lw), lambda i: (i, 0, 0)),
        compiler_params=_compiler_params(),
    )(xp, w1, w2)


# ------------------------------- layer glue --------------------------------

def _flatten_with_slack(xp):
    """(N, C, Hp, Wp) -> (N, C, (Hp+1)*Wp): flat + one slack row (keeps every
    static tap slice in bounds; the slack never feeds valid outputs)."""
    n, c, hp, wp = xp.shape
    flat = xp.reshape(n, c, hp * wp)
    return jnp.concatenate([flat, jnp.zeros((n, c, wp), flat.dtype)], axis=-1)


def _wide_to_nchw(y, oh, ow, ws):
    n, r, _ = y.shape
    return y.reshape(n, r, oh, ws)[:, :, :, :ow]


def conv7_in_relu(x, w_taps):
    """ReflectionPad(3) + Conv7x7 (no bias: cancels in IN) + IN + ReLU."""
    n, _, h, w = x.shape
    xp = jnp.pad(x.astype(jnp.bfloat16), ((0, 0), (0, 0), (3, 3), (3, 3)),
                 mode="reflect")
    a = _flatten_with_slack(xp)
    ws = w + 6
    shifts = tuple(ky * ws + kx for ky in range(7) for kx in range(7))
    y = _tap_conv(a, w_taps, shifts=shifts, ws=ws, oh=h, ow=w, groups=1,
                  norm=True, act="relu", out_dtype=jnp.bfloat16)
    return _wide_to_nchw(y, h, w, ws)


def down_conv_in_relu(x, w_taps):
    """Conv3x3 stride 2 pad 1 + IN + ReLU, as a 4-tap conv over a phase-split
    (space-to-depth) zero-padded input (~1x bytes instead of 9x im2col)."""
    n, c, h, w = x.shape
    assert h % 2 == 0 and w % 2 == 0
    xpad = jnp.pad(x.astype(jnp.bfloat16), ((0, 0), (0, 0), (1, 1), (1, 1)))
    hh, wh = h // 2 + 1, w // 2 + 1
    phases = jnp.stack([xpad[:, :, py::2, px::2]
                        for py in range(2) for px in range(2)], axis=1)
    p = phases.reshape(n, 4 * c, hh, wh)
    a = _flatten_with_slack(p)
    shifts = tuple(dy * wh + dx for dy in range(2) for dx in range(2))
    y = _tap_conv(a, w_taps, shifts=shifts, ws=wh, oh=h // 2, ow=w // 2,
                  groups=1, norm=True, act="relu", out_dtype=jnp.bfloat16)
    return _wide_to_nchw(y, h // 2, w // 2, wh)


def resnet_block(x, w1, w2):
    n, c, h, w = x.shape
    assert h >= 2 and w >= 2
    xp = jnp.pad(x.astype(jnp.bfloat16), ((0, 0), (0, 0), (1, 1), (1, 1)),
                 mode="reflect")
    a = _flatten_with_slack(xp)
    y = _resblock_call(a, w1, w2, h=h, w=w)
    return _wide_to_nchw(y, h, w, w + 2)


def up_conv_in_relu(x, w_taps):
    """ConvTranspose2d(3, s=2, p=1, op=1) + IN + ReLU as a fused 4-phase
    sub-pixel conv (joint IN over the 4 phases inside the kernel)."""
    n, _, h, w = x.shape
    cout = w_taps.shape[1] // 4
    xq = jnp.pad(x.astype(jnp.bfloat16), ((0, 0), (0, 0), (0, 1), (0, 1)))
    a = _flatten_with_slack(xq)
    wq = w + 1
    shifts = tuple(dy * wq + dx for dy in range(2) for dx in range(2))
    y = _tap_conv(a, w_taps, shifts=shifts, ws=wq, oh=h, ow=w, groups=4,
                  norm=True, act="relu", out_dtype=jnp.bfloat16)
    # TODO(synk): fold this phase interleave into the next layer's tap indexing
    # to drop the XLA relayout (it is bf16 now, half the old cost).
    y = y.reshape(n, 2, 2, cout, h, wq)[:, :, :, :, :, :w]
    y = jnp.transpose(y, (0, 3, 4, 1, 5, 2))
    return y.reshape(n, cout, 2 * h, 2 * w)


def final_conv_tanh(x, w_taps):
    """ReflectionPad(3) + Conv7x7 + bias + Tanh.  The bias is folded into the
    weight through an appended constant-one input channel (no VMEM bias DMA)."""
    n, _, h, w = x.shape
    xp = jnp.pad(x.astype(jnp.bfloat16), ((0, 0), (0, 0), (3, 3), (3, 3)),
                 mode="reflect")
    ones = jnp.ones((n, 1, h + 6, w + 6), jnp.bfloat16)
    a = _flatten_with_slack(jnp.concatenate([xp, ones], axis=1))
    ws = w + 6
    shifts = tuple(ky * ws + kx for ky in range(7) for kx in range(7))
    y = _tap_conv(a, w_taps, shifts=shifts, ws=ws, oh=h, ow=w, groups=1,
                  norm=False, act="tanh", out_dtype=jnp.float32)
    return _wide_to_nchw(y, h, w, ws)


# ------------------------------- parameters --------------------------------

def _conv_taps(key, cout, cin, k):
    """Conv2d weight (Cout,Cin,k,k) -> per-tap (k*k, Cout, Cin) bf16.
    (Bias omitted: it feeds InstanceNorm(affine=False) and cancels.)"""
    bound = 1.0 / math.sqrt(cin * k * k)
    w = jax.random.uniform(key, (cout, cin, k, k), jnp.float32, -bound, bound)
    return jnp.transpose(w, (2, 3, 0, 1)).reshape(k * k, cout, cin).astype(
        jnp.bfloat16)


def _down_taps(key, cout, cin):
    """Stride-2 3x3 conv weight -> 4-tap weight (4, Cout, 4*Cin) over the
    phase-split input (columns ordered (py, px, cin); invalid taps are zero)."""
    bound = 1.0 / math.sqrt(cin * 9)
    w = jax.random.uniform(key, (cout, cin, 3, 3), jnp.float32, -bound, bound)
    wt = jnp.zeros((2, 2, cout, 2, 2, cin), jnp.float32)
    for dy in range(2):
        for dx in range(2):
            for py in range(2):
                for px in range(2):
                    ky, kx = 2 * dy + py, 2 * dx + px
                    if ky < 3 and kx < 3:
                        wt = wt.at[dy, dx, :, py, px, :].set(w[:, :, ky, kx])
    return wt.reshape(4, cout, 4 * cin).astype(jnp.bfloat16)


def _up_taps(key, cin, cout):
    """ConvTranspose2d weight (Cin,Cout,3,3) -> 4-tap sub-pixel weight
    (4, 4*Cout, Cin): taps (dy,dx), rows ordered (phase p=py*2+px, cout)."""
    bound = 1.0 / math.sqrt(cout * 9)
    w = jax.random.uniform(key, (cin, cout, 3, 3), jnp.float32, -bound, bound)
    wt = jnp.zeros((2, 2, 2, 2, cout, cin), jnp.float32)
    for dy in range(2):
        for dx in range(2):
            for py in range(2):
                for px in range(2):
                    ky, kx = py - 2 * dy + 1, px - 2 * dx + 1
                    if 0 <= ky < 3 and 0 <= kx < 3:
                        wt = wt.at[dy, dx, py, px].set(jnp.transpose(w[:, :, ky, kx]))
    return wt.reshape(4, 4 * cout, cin).astype(jnp.bfloat16)


def _final_taps(key, cout, cin, k=7):
    """Final conv: per-tap weight with the bias folded into an extra input
    column (consumed through a constant-one input channel on tap 0)."""
    kw, kb = jax.random.split(key)
    bound = 1.0 / math.sqrt(cin * k * k)
    w = jax.random.uniform(kw, (cout, cin, k, k), jnp.float32, -bound, bound)
    b = jax.random.uniform(kb, (cout,), jnp.float32, -bound, bound)
    taps = jnp.transpose(w, (2, 3, 0, 1)).reshape(k * k, cout, cin)
    extra = jnp.zeros((k * k, cout, 1), jnp.float32).at[0, :, 0].set(b)
    return jnp.concatenate([taps, extra], axis=2).astype(jnp.bfloat16)


def init_params(key, img_nc=3, output_nc=3, ngf=8, n_blocks=9):
    keys = jax.random.split(key, 6 + 2 * n_blocks)
    it = iter(keys)
    p = {}
    p["c0"] = _conv_taps(next(it), ngf, img_nc, 7)            # 7x7 input conv
    p["d0"] = _down_taps(next(it), ngf * 2, ngf)              # stride-2 down
    p["d1"] = _down_taps(next(it), ngf * 4, ngf * 2)          # stride-2 down
    p["blocks"] = [(_conv_taps(next(it), ngf * 4, ngf * 4, 3),
                    _conv_taps(next(it), ngf * 4, ngf * 4, 3))
                   for _ in range(n_blocks)]
    p["u0"] = _up_taps(next(it), ngf * 4, ngf * 2)            # stride-2 up
    p["u1"] = _up_taps(next(it), ngf * 2, ngf)                # stride-2 up
    p["cf"] = _final_taps(next(it), output_nc, ngf, 7)        # 7x7 output conv
    return p


# -------------------------------- forward ----------------------------------

def resnet9_forward(x_nchw, params):
    h = x_nchw.astype(jnp.float32)
    h = conv7_in_relu(h, params["c0"])                # pad3 + 7x7 + IN + ReLU
    h = down_conv_in_relu(h, params["d0"])            # stride-2 + IN + ReLU
    h = down_conv_in_relu(h, params["d1"])            # stride-2 + IN + ReLU
    for w1, w2 in params["blocks"]:                   # 9 fused resnet blocks
        h = resnet_block(h, w1, w2)
    h = up_conv_in_relu(h, params["u0"])              # x2 up + IN + ReLU
    h = up_conv_in_relu(h, params["u1"])              # x2 up + IN + ReLU
    return final_conv_tanh(h, params["cf"])           # pad3 + 7x7 + bias + tanh


if __name__ == "__main__":
    B, IMG_NC, OUT_NC, NGF, H, W, N_BLOCKS = 2, 3, 3, 8, 16, 16, 9

    key = jax.random.PRNGKey(0)
    k_params, k_in = jax.random.split(key)
    params = init_params(k_params, img_nc=IMG_NC, output_nc=OUT_NC,
                         ngf=NGF, n_blocks=N_BLOCKS)
    x = jax.random.normal(k_in, (B, IMG_NC, H, W), jnp.float32)

    fwd = jax.jit(resnet9_forward)
    out = fwd(x, params)
    jax.block_until_ready(out)

    assert out.shape == (B, OUT_NC, H, W), out.shape
    assert bool(jnp.all(jnp.isfinite(out)))
    assert bool(jnp.all(jnp.abs(out) <= 1.0 + 1e-3))
    print("KERNEL_OK")
</pallas_src>

<mosaic_0001>
module attributes {stable_mosaic.version = 11 : i64} {
  func.func @_tapconv_kernel(%arg0: i32, %arg1: memref<1x3x506xbf16, #tpu.memory_space<vmem>>, %arg2: memref<49x8x3xbf16, #tpu.memory_space<vmem>>, %arg3: memref<1x8x352xbf16, #tpu.memory_space<vmem>>) attributes {dimension_semantics = [#tpu.dimension_semantics<parallel>], iteration_bounds = array<i64: 2>, scalar_prefetch = 0 : i64, scratch_operands = 0 : i64, tpu.core_type = #tpu.core_type<tc>, window_params = [{transform_indices = @transform_0, window_bounds = array<i64: 1, 3, 506>}, {pipeline_mode = #tpu.pipeline_mode<synchronous>, transform_indices = @transform_1, window_bounds = array<i64: 49, 8, 3>}, {transform_indices = @transform_2, window_bounds = array<i64: 1, 8, 352>}]} {
    %c0 = arith.constant 0 : index
    %c0_0 = arith.constant 0 : index
    %c0_1 = arith.constant 0 : index
    %0 = vector.load %arg1[%c0, %c0_0, %c0_1] : memref<1x3x506xbf16, #tpu.memory_space<vmem>>, vector<1x3x352xbf16>
    %1 = vector.shape_cast %0 : vector<1x3x352xbf16> to vector<3x352xbf16>
    %c0_2 = arith.constant 0 : index
    %c0_3 = arith.constant 0 : index
    %c0_4 = arith.constant 0 : index
    %2 = vector.load %arg2[%c0_2, %c0_3, %c0_4] : memref<49x8x3xbf16, #tpu.memory_space<vmem>>, vector<1x8x3xbf16>
    %3 = vector.shape_cast %2 : vector<1x8x3xbf16> to vector<8x3xbf16>
    %cst = arith.constant dense<0.000000e+00> : vector<8x352xf32>
    %4 = tpu.matmul %3, %1, %cst {dimension_numbers = #tpu.dot_dimension_numbers<[1], [0], [0], [1], [0, 0, 1, 1], [], []>} : vector<8x3xbf16>, vector<3x352xbf16>, vector<8x352xf32> -> vector<8x352xf32>
    %c0_5 = arith.constant 0 : index
    %c0_6 = arith.constant 0 : index
    %c1 = arith.constant 1 : index
    %5 = vector.load %arg1[%c0_5, %c0_6, %c1] : memref<1x3x506xbf16, #tpu.memory_space<vmem>>, vector<1x3x352xbf16>
    %6 = vector.shape_cast %5 : vector<1x3x352xbf16> to vector<3x352xbf16>
    %c1_7 = arith.constant 1 : index
    %c0_8 = arith.constant 0 : index
    %c0_9 = arith.constant 0 : index
    %7 = vector.load %arg2[%c1_7, %c0_8, %c0_9] : memref<49x8x3xbf16, #tpu.memory_space<vmem>>, vector<1x8x3xbf16>
    %8 = vector.shape_cast %7 : vector<1x8x3xbf16> to vector<8x3xbf16>
    %cst_10 = arith.constant dense<0.000000e+00> : vector<8x352xf32>
    %9 = tpu.matmul %8, %6, %cst_10 {dimension_numbers = #tpu.dot_dimension_numbers<[1], [0], [0], [1], [0, 0, 1, 1], [], []>} : vector<8x3xbf16>, vector<3x352xbf16>, vector<8x352xf32> -> vector<8x352xf32>
    %10 = arith.addf %4, %9 : vector<8x352xf32>
    %c0_11 = arith.constant 0 : index
    %c0_12 = arith.constant 0 : index
    %c2 = arith.constant 2 : index
    %11 = vector.load %arg1[%c0_11, %c0_12, %c2] : memref<1x3x506xbf16, #tpu.memory_space<vmem>>, vector<1x3x352xbf16>
    %12 = vector.shape_cast %11 : vector<1x3x352xbf16> to vector<3x352xbf16>
    %c2_13 = arith.constant 2 : index
    %c0_14 = arith.constant 0 : index
    %c0_15 = arith.constant 0 : index
    %13 = vector.load %arg2[%c2_13, %c0_14, %c0_15] : memref<49x8x3xbf16, #tpu.memory_space<vmem>>, vector<1x8x3xbf16>
    %14 = vector.shape_cast %13 : vector<1x8x3xbf16> to vector<8x3xbf16>
    %cst_16 = arith.constant dense<0.000000e+00> : vector<8x352xf32>
    %15 = tpu.matmul %14, %12, %cst_16 {dimension_numbers = #tpu.dot_dimension_numbers<[1], [0], [0], [1], [0, 0, 1, 1], [], []>} : vector<8x3xbf16>, vector<3x352xbf16>, vector<8x352xf32> -> vector<8x352xf32>
    %16 = arith.addf %10, %15 : vector<8x352xf32>
    %c0_17 = arith.constant 0 : index
    %c0_18 = arith.constant 0 : index
    %c3 = arith.constant 3 : index
    %17 = vector.load %arg1[%c0_17, %c0_18, %c3] : memref<1x3x506xbf16, #tpu.memory_space<vmem>>, vector<1x3x352xbf16>
    %18 = vector.shape_cast %17 : vector<1x3x352xbf16> to vector<3x352xbf16>
    %c3_19 = arith.constant 3 : index
    %c0_20 = arith.constant 0 : index
    %c0_21 = arith.constant 0 : index
    %19 = vector.load %arg2[%c3_19, %c0_20, %c0_21] : memref<49x8x3xbf16, #tpu.memory_space<vmem>>, vector<1x8x3xbf16>
    %20 = vector.shape_cast %19 : vector<1x8x3xbf16> to vector<8x3xbf16>
    %cst_22 = arith.constant dense<0.000000e+00> : vector<8x352xf32>
    %21 = tpu.matmul %20, %18, %cst_22 {dimension_numbers = #tpu.dot_dimension_numbers<[1], [0], [0], [1], [0, 0, 1, 1], [], []>} : vector<8x3xbf16>, vector<3x352xbf16>, vector<8x352xf32> -> vector<8x352xf32>
    %22 = arith.addf %16, %21 : vector<8x352xf32>
    %c0_23 = arith.constant 0 : index
    %c0_24 = arith.constant 0 : index
    %c4 = arith.constant 4 : index
    %23 = vector.load %arg1[%c0_23, %c0_24, %c4] : memref<1x3x506xbf16, #tpu.memory_space<vmem>>, vector<1x3x352xbf16>
    %24 = vector.shape_cast %23 : vector<1x3x352xbf16> to vector<3x352xbf16>
    %c4_25 = arith.constant 4 : index
    %c0_26 = arith.constant 0 : index
    %c0_27 = arith.constant 0 : index
    %25 = vector.load %arg2[%c4_25, %c0_26, %c0_27] : memref<49x8x3xbf16, #tpu.memory_space<vmem>>, vector<1x8x3xbf16>
    %26 = vector.shape_cast %25 : vector<1x8x3xbf16> to vector<8x3xbf16>
    %cst_28 = arith.constant dense<0.000000e+00> : vector<8x352xf32>
    %27 = tpu.matmul %26, %24, %cst_28 {dimension_numbers = #tpu.dot_dimension_numbers<[1], [0], [0], [1], [0, 0, 1, 1], [], []>} : vector<8x3xbf16>, vector<3x352xbf16>, vector<8x352xf32> -> vector<8x352xf32>
    %28 = arith.addf %22, %27 : vector<8x352xf32>
    %c0_29 = arith.constant 0 : index
    %c0_30 = arith.constant 0 : index
    %c5 = arith.constant 5 : index
    %29 = vector.load %arg1[%c0_29, %c0_30, %c5] : memref<1x3x506xbf16, #tpu.memory_space<vmem>>, vector<1x3x352xbf16>
    %30 = vector.shape_cast %29 : vector<1x3x352xbf16> to vector<3x352xbf16>
    %c5_31 = arith.constant 5 : index
    %c0_32 = arith.constant 0 : index
    %c0_33 = arith.constant 0 : index
    %31 = vector.load %arg2[%c5_31, %c0_32, %c0_33] : memref<49x8x3xbf16, #tpu.memory_space<vmem>>, vector<1x8x3xbf16>
    %32 = vector.shape_cast %31 : vector<1x8x3xbf16> to vector<8x3xbf16>
    %cst_34 = arith.constant dense<0.000000e+00> : vector<8x352xf32>
    %33 = tpu.matmul %32, %30, %cst_34 {dimension_numbers = #tpu.dot_dimension_numbers<[1], [0], [0], [1], [0, 0, 1, 1], [], []>} : vector<8x3xbf16>, vector<3x352xbf16>, vector<8x352xf32> -> vector<8x352xf32>
    %34 = arith.addf %28, %33 : vector<8x352xf32>
    %c0_35 = arith.constant 0 : index
    %c0_36 = arith.constant 0 : index
    %c6 = arith.constant 6 : index
    %35 = vector.load %arg1[%c0_35, %c0_36, %c6] : memref<1x3x506xbf16, #tpu.memory_space<vmem>>, vector<1x3x352xbf16>
    %36 = vector.shape_cast %35 : vector<1x3x352xbf16> to vector<3x352xbf16>
    %c6_37 = arith.constant 6 : index
    %c0_38 = arith.constant 0 : index
    %c0_39 = arith.constant 0 : index
    %37 = vector.load %arg2[%c6_37, %c0_38, %c0_39] : memref<49x8x3xbf16, #tpu.memory_space<vmem>>, vector<1x8x3xbf16>
    %38 = vector.shape_cast %37 : vector<1x8x3xbf16> to vector<8x3xbf16>
    %cst_40 = arith.constant dense<0.000000e+00> : vector<8x352xf32>
    %39 = tpu.matmul %38, %36, %cst_40 {dimension_numbers = #tpu.dot_dimension_numbers<[1], [0], [0], [1], [0, 0, 1, 1], [], []>} : vector<8x3xbf16>, vector<3x352xbf16>, vector<8x352xf32> -> vector<8x352xf32>
    %40 = arith.addf %34, %39 : vector<8x352xf32>
    %c0_41 = arith.constant 0 : index
    %c0_42 = arith.constant 0 : index
    %c22 = arith.constant 22 : index
    %41 = vector.load %arg1[%c0_41, %c0_42, %c22] : memref<1x3x506xbf16, #tpu.memory_space<vmem>>, vector<1x3x352xbf16>
    %42 = vector.shape_cast %41 : vector<1x3x352xbf16> to vector<3x352xbf16>
    %c7 = arith.constant 7 : index
    %c0_43 = arith.constant 0 : index
    %c0_44 = arith.constant 0 : index
    %43 = vector.load %arg2[%c7, %c0_43, %c0_44] : memref<49x8x3xbf16, #tpu.memory_space<vmem>>, vector<1x8x3xbf16>
    %44 = vector.shape_cast %43 : vector<1x8x3xbf16> to vector<8x3xbf16>
    %cst_45 = arith.constant dense<0.000000e+00> : vector<8x352xf32>
    %45 = tpu.matmul %44, %42, %cst_45 {dimension_numbers = #tpu.dot_dimension_numbers<[1], [0], [0], [1], [0, 0, 1, 1], [], []>} : vector<8x3xbf16>, vector<3x352xbf16>, vector<8x352xf32> -> vector<8x352xf32>
    %46 = arith.addf %40, %45 : vector<8x352xf32>
    %c0_46 = arith.constant 0 : index
    %c0_47 = arith.constant 0 : index
    %c23 = arith.constant 23 : index
    %47 = vector.load %arg1[%c0_46, %c0_47, %c23] : memref<1x3x506xbf16, #tpu.memory_space<vmem>>, vector<1x3x352xbf16>
    %48 = vector.shape_cast %47 : vector<1x3x352xbf16> to vector<3x352xbf16>
    %c8 = arith.constant 8 : index
    %c0_48 = arith.constant 0 : index
    %c0_49 = arith.constant 0 : index
    %49 = vector.load %arg2[%c8, %c0_48, %c0_49] : memref<49x8x3xbf16, #tpu.memory_space<vmem>>, vector<1x8x3xbf16>
    %50 = vector.shape_cast %49 : vector<1x8x3xbf16> to vector<8x3xbf16>
    %cst_50 = arith.constant dense<0.000000e+00> : vector<8x352xf32>
    %51 = tpu.matmul %50, %48, %cst_50 {dimension_numbers = #tpu.dot_dimension_numbers<[1], [0], [0], [1], [0, 0, 1, 1], [], []>} : vector<8x3xbf16>, vector<3x352xbf16>, vector<8x352xf32> -> vector<8x352xf32>
    %52 = arith.addf %46, %51 : vector<8x352xf32>
    %c0_51 = arith.constant 0 : index
    %c0_52 = arith.constant 0 : index
    %c24 = arith.constant 24 : index
    %53 = vector.load %arg1[%c0_51, %c0_52, %c24] : memref<1x3x506xbf16, #tpu.memory_space<vmem>>, vector<1x3x352xbf16>
    %54 = vector.shape_cast %53 : vector<1x3x352xbf16> to vector<3x352xbf16>
    %c9 = arith.constant 9 : index
    %c0_53 = arith.constant 0 : index
    %c0_54 = arith.constant 0 : index
    %55 = vector.load %arg2[%c9, %c0_53, %c0_54] : memref<49x8x3xbf16, #tpu.memory_space<vmem>>, vector<1x8x3xbf16>
    %56 = vector.shape_cast %55 : vector<1x8x3xbf16> to vector<8x3xbf16>
    %cst_55 = arith.constant dense<0.000000e+00> : vector<8x352xf32>
    %57 = tpu.matmul %56, %54, %cst_55 {dimension_numbers = #tpu.dot_dimension_numbers<[1], [0], [0], [1], [0, 0, 1, 1], [], []>} : vector<8x3xbf16>, vector<3x352xbf16>, vector<8x352xf32> -> vector<8x352xf32>
    %58 = arith.addf %52, %57 : vector<8x352xf32>
    %c0_56 = arith.constant 0 : index
    %c0_57 = arith.constant 0 : index
    %c25 = arith.constant 25 : index
    %59 = vector.load %arg1[%c0_56, %c0_57, %c25] : memref<1x3x506xbf16, #tpu.memory_space<vmem>>, vector<1x3x352xbf16>
    %60 = vector.shape_cast %59 : vector<1x3x352xbf16> to vector<3x352xbf16>
    %c10 = arith.constant 10 : index
    %c0_58 = arith.constant 0 : index
    %c0_59 = arith.constant 0 : index
    %61 = vector.load %arg2[%c10, %c0_58, %c0_59] : memref<49x8x3xbf16, #tpu.memory_space<vmem>>, vector<1x8x3xbf16>
    %62 = vector.shape_cast %61 : vector<1x8x3xbf16> to vector<8x3xbf16>
    %cst_60 = arith.constant dense<0.000000e+00> : vector<8x352xf32>
    %63 = tpu.matmul %62, %60, %cst_60 {dimension_numbers = #tpu.dot_dimension_numbers<[1], [0], [0], [1], [0, 0, 1, 1], [], []>} : vector<8x3xbf16>, vector<3x352xbf16>, vector<8x352xf32> -> vector<8x352xf32>
    %64 = arith.addf %58, %63 : vector<8x352xf32>
    %c0_61 = arith.constant 0 : index
    %c0_62 = arith.constant 0 : index
    %c26 = arith.constant 26 : index
    %65 = vector.load %arg1[%c0_61, %c0_62, %c26] : memref<1x3x506xbf16, #tpu.memory_space<vmem>>, vector<1x3x352xbf16>
    %66 = vector.shape_cast %65 : vector<1x3x352xbf16> to vector<3x352xbf16>
    %c11 = arith.constant 11 : index
    %c0_63 = arith.constant 0 : index
    %c0_64 = arith.constant 0 : index
    %67 = vector.load %arg2[%c11, %c0_63, %c0_64] : memref<49x8x3xbf16, #tpu.memory_space<vmem>>, vector<1x8x3xbf16>
    %68 = vector.shape_cast %67 : vector<1x8x3xbf16> to vector<8x3xbf16>
    %cst_65 = arith.constant dense<0.000000e+00> : vector<8x352xf32>
    %69 = tpu.matmul %68, %66, %cst_65 {dimension_numbers = #tpu.dot_dimension_numbers<[1], [0], [0], [1], [0, 0, 1, 1], [], []>} : vector<8x3xbf16>, vector<3x352xbf16>, vector<8x352xf32> -> vector<8x352xf32>
    %70 = arith.addf %64, %69 : vector<8x352xf32>
    %c0_66 = arith.constant 0 : index
    %c0_67 = arith.constant 0 : index
    %c27 = arith.constant 27 : index
    %71 = vector.load %arg1[%c0_66, %c0_67, %c27] : memref<1x3x506xbf16, #tpu.memory_space<vmem>>, vector<1x3x352xbf16>
    %72 = vector.shape_cast %71 : vector<1x3x352xbf16> to vector<3x352xbf16>
    %c12 = arith.constant 12 : index
    %c0_68 = arith.constant 0 : index
    %c0_69 = arith.constant 0 : index
    %73 = vector.load %arg2[%c12, %c0_68, %c0_69] : memref<49x8x3xbf16, #tpu.memory_space<vmem>>, vector<1x8x3xbf16>
    %74 = vector.shape_cast %73 : vector<1x8x3xbf16> to vector<8x3xbf16>
    %cst_70 = arith.constant dense<0.000000e+00> : vector<8x352xf32>
    %75 = tpu.matmul %74, %72, %cst_70 {dimension_numbers = #tpu.dot_dimension_numbers<[1], [0], [0], [1], [0, 0, 1, 1], [], []>} : vector<8x3xbf16>, vector<3x352xbf16>, vector<8x352xf32> -> vector<8x352xf32>
    %76 = arith.addf %70, %75 : vector<8x352xf32>
    %c0_71 = arith.constant 0 : index
    %c0_72 = arith.constant 0 : index
    %c28 = arith.constant 28 : index
    %77 = vector.load %arg1[%c0_71, %c0_72, %c28] : memref<1x3x506xbf16, #tpu.memory_space<vmem>>, vector<1x3x352xbf16>
    %78 = vector.shape_cast %77 : vector<1x3x352xbf16> to vector<3x352xbf16>
    %c13 = arith.constant 13 : index
    %c0_73 = arith.constant 0 : index
    %c0_74 = arith.constant 0 : index
    %79 = vector.load %arg2[%c13, %c0_73, %c0_74] : memref<49x8x3xbf16, #tpu.memory_space<vmem>>, vector<1x8x3xbf16>
    %80 = vector.shape_cast %79 : vector<1x8x3xbf16> to vector<8x3xbf16>
    %cst_75 = arith.constant dense<0.000000e+00> : vector<8x352xf32>
    %81 = tpu.matmul %80, %78, %cst_75 {dimension_numbers = #tpu.dot_dimension_numbers<[1], [0], [0], [1], [0, 0, 1, 1], [], []>} : vector<8x3xbf16>, vector<3x352xbf16>, vector<8x352xf32> -> vector<8x352xf32>
    %82 = arith.addf %76, %81 : vector<8x352xf32>
    %c0_76 = arith.constant 0 : index
    %c0_77 = arith.constant 0 : index
    %c44 = arith.constant 44 : index
    %83 = vector.load %arg1[%c0_76, %c0_77, %c44] : memref<1x3x506xbf16, #tpu.memory_space<vmem>>, vector<1x3x352xbf16>
    %84 = vector.shape_cast %83 : vector<1x3x352xbf16> to vector<3x352xbf16>
    %c14 = arith.constant 14 : index
    %c0_78 = arith.constant 0 : index
    %c0_79 = arith.constant 0 : index
    %85 = vector.load %arg2[%c14, %c0_78, %c0_79] : memref<49x8x3xbf16, #tpu.memory_space<vmem>>, vector<1x8x3xbf16>
    %86 = vector.shape_cast %85 : vector<1x8x3xbf16> to vector<8x3xbf16>
    %cst_80 = arith.constant dense<0.000000e+00> : vector<8x352xf32>
    %87 = tpu.matmul %86, %84, %cst_80 {dimension_numbers = #tpu.dot_dimension_numbers<[1], [0], [0], [1], [0, 0, 1, 1], [], []>} : vector<8x3xbf16>, vector<3x352xbf16>, vector<8x352xf32> -> vector<8x352xf32>
    %88 = arith.addf %82, %87 : vector<8x352xf32>
    %c0_81 = arith.constant 0 : index
    %c0_82 = arith.constant 0 : index
    %c45 = arith.constant 45 : index
    %89 = vector.load %arg1[%c0_81, %c0_82, %c45] : memref<1x3x506xbf16, #tpu.memory_space<vmem>>, vector<1x3x352xbf16>
    %90 = vector.shape_cast %89 : vector<1x3x352xbf16> to vector<3x352xbf16>
    %c15 = arith.constant 15 : index
    %c0_83 = arith.constant 0 : index
    %c0_84 = arith.constant 0 : index
    %91 = vector.load %arg2[%c15, %c0_83, %c0_84] : memref<49x8x3xbf16, #tpu.memory_space<vmem>>, vector<1x8x3xbf16>
    %92 = vector.shape_cast %91 : vector<1x8x3xbf16> to vector<8x3xbf16>
    %cst_85 = arith.constant dense<0.000000e+00> : vector<8x352xf32>
    %93 = tpu.matmul %92, %90, %cst_85 {dimension_numbers = #tpu.dot_dimension_numbers<[1], [0], [0], [1], [0, 0, 1, 1], [], []>} : vector<8x3xbf16>, vector<3x352xbf16>, vector<8x352xf32> -> vector<8x352xf32>
    %94 = arith.addf %88, %93 : vector<8x352xf32>
    %c0_86 = arith.constant 0 : index
    %c0_87 = arith.constant 0 : index
    %c46 = arith.constant 46 : index
    %95 = vector.load %arg1[%c0_86, %c0_87, %c46] : memref<1x3x506xbf16, #tpu.memory_space<vmem>>, vector<1x3x352xbf16>
    %96 = vector.shape_cast %95 : vector<1x3x352xbf16> to vector<3x352xbf16>
    %c16 = arith.constant 16 : index
    %c0_88 = arith.constant 0 : index
    %c0_89 = arith.constant 0 : index
    %97 = vector.load %arg2[%c16, %c0_88, %c0_89] : memref<49x8x3xbf16, #tpu.memory_space<vmem>>, vector<1x8x3xbf16>
    %98 = vector.shape_cast %97 : vector<1x8x3xbf16> to vector<8x3xbf16>
    %cst_90 = arith.constant dense<0.000000e+00> : vector<8x352xf32>
    %99 = tpu.matmul %98, %96, %cst_90 {dimension_numbers = #tpu.dot_dimension_numbers<[1], [0], [0], [1], [0, 0, 1, 1], [], []>} : vector<8x3xbf16>, vector<3x352xbf16>, vector<8x352xf32> -> vector<8x352xf32>
    %100 = arith.addf %94, %99 : vector<8x352xf32>
    %c0_91 = arith.constant 0 : index
    %c0_92 = arith.constant 0 : index
    %c47 = arith.constant 47 : index
    %101 = vector.load %arg1[%c0_91, %c0_92, %c47] : memref<1x3x506xbf16, #tpu.memory_space<vmem>>, vector<1x3x352xbf16>
    %102 = vector.shape_cast %101 : vector<1x3x352xbf16> to vector<3x352xbf16>
    %c17 = arith.constant 17 : index
    %c0_93 = arith.constant 0 : index
    %c0_94 = arith.constant 0 : index
    %103 = vector.load %arg2[%c17, %c0_93, %c0_94] : memref<49x8x3xbf16, #tpu.memory_space<vmem>>, vector<1x8x3xbf16>
    %104 = vector.shape_cast %103 : vector<1x8x3xbf16> to vector<8x3xbf16>
    %cst_95 = arith.constant dense<0.000000e+00> : vector<8x352xf32>
    %105 = tpu.matmul %104, %102, %cst_95 {dimension_numbers = #tpu.dot_dimension_numbers<[1], [0], [0], [1], [0, 0, 1, 1], [], []>} : vector<8x3xbf16>, vector<3x352xbf16>, vector<8x352xf32> -> vector<8x352xf32>
    %106 = arith.addf %100, %105 : vector<8x352xf32>
    %c0_96 = arith.constant 0 : index
    %c0_97 = arith.constant 0 : index
    %c48 = arith.constant 48 : index
    %107 = vector.load %arg1[%c0_96, %c0_97, %c48] : memref<1x3x506xbf16, #tpu.memory_space<vmem>>, vector<1x3x352xbf16>
    %108 = vector.shape_cast %107 : vector<1x3x352xbf16> to vector<3x352xbf16>
    %c18 = arith.constant 18 : index
    %c0_98 = arith.constant 0 : index
    %c0_99 = arith.constant 0 : index
    %109 = vector.load %arg2[%c18, %c0_98, %c0_99] : memref<49x8x3xbf16, #tpu.memory_space<vmem>>, vector<1x8x3xbf16>
    %110 = vector.shape_cast %109 : vector<1x8x3xbf16> to vector<8x3xbf16>
    %cst_100 = arith.constant dense<0.000000e+00> : vector<8x352xf32>
    %111 = tpu.matmul %110, %108, %cst_100 {dimension_numbers = #tpu.dot_dimension_numbers<[1], [0], [0], [1], [0, 0, 1, 1], [], []>} : vector<8x3xbf16>, vector<3x352xbf16>, vector<8x352xf32> -> vector<8x352xf32>
    %112 = arith.addf %106, %111 : vector<8x352xf32>
    %c0_101 = arith.constant 0 : index
    %c0_102 = arith.constant 0 : index
    %c49 = arith.constant 49 : index
    %113 = vector.load %arg1[%c0_101, %c0_102, %c49] : memref<1x3x506xbf16, #tpu.memory_space<vmem>>, vector<1x3x352xbf16>
    %114 = vector.shape_cast %113 : vector<1x3x352xbf16> to vector<3x352xbf16>
    %c19 = arith.constant 19 : index
    %c0_103 = arith.constant 0 : index
    %c0_104 = arith.constant 0 : index
    %115 = vector.load %arg2[%c19, %c0_103, %c0_104] : memref<49x8x3xbf16, #tpu.memory_space<vmem>>, vector<1x8x3xbf16>
    %116 = vector.shape_cast %115 : vector<1x8x3xbf16> to vector<8x3xbf16>
    %cst_105 = arith.constant dense<0.000000e+00> : vector<8x352xf32>
    %117 = tpu.matmul %116, %114, %cst_105 {dimension_numbers = #tpu.dot_dimension_numbers<[1], [0], [0], [1], [0, 0, 1, 1], [], []>} : vector<8x3xbf16>, vector<3x352xbf16>, vector<8x352xf32> -> vector<8x352xf32>
    %118 = arith.addf %112, %117 : vector<8x352xf32>
    %c0_106 = arith.constant 0 : index
    %c0_107 = arith.constant 0 : index
    %c50 = arith.constant 50 : index
    %119 = vector.load %arg1[%c0_106, %c0_107, %c50] : memref<1x3x506xbf16, #tpu.memory_space<vmem>>, vector<1x3x352xbf16>
    %120 = vector.shape_cast %119 : vector<1x3x352xbf16> to vector<3x352xbf16>
    %c20 = arith.constant 20 : index
    %c0_108 = arith.constant 0 : index
    %c0_109 = arith.constant 0 : index
    %121 = vector.load %arg2[%c20, %c0_108, %c0_109] : memref<49x8x3xbf16, #tpu.memory_space<vmem>>, vector<1x8x3xbf16>
    %122 = vector.shape_cast %121 : vector<1x8x3xbf16> to vector<8x3xbf16>
    %cst_110 = arith.constant dense<0.000000e+00> : vector<8x352xf32>
    %123 = tpu.matmul %122, %120, %cst_110 {dimension_numbers = #tpu.dot_dimension_numbers<[1], [0], [0], [1], [0, 0, 1, 1], [], []>} : vector<8x3xbf16>, vector<3x352xbf16>, vector<8x352xf32> -> vector<8x352xf32>
    %124 = arith.addf %118, %123 : vector<8x352xf32>
    %c0_111 = arith.constant 0 : index
    %c0_112 = arith.constant 0 : index
    %c66 = arith.constant 66 : index
    %125 = vector.load %arg1[%c0_111, %c0_112, %c66] : memref<1x3x506xbf16, #tpu.memory_space<vmem>>, vector<1x3x352xbf16>
    %126 = vector.shape_cast %125 : vector<1x3x352xbf16> to vector<3x352xbf16>
    %c21 = arith.constant 21 : index
    %c0_113 = arith.constant 0 : index
    %c0_114 = arith.constant 0 : index
    %127 = vector.load %arg2[%c21, %c0_113, %c0_114] : memref<49x8x3xbf16, #tpu.memory_space<vmem>>, vector<1x8x3xbf16>
    %128 = vector.shape_cast %127 : vector<1x8x3xbf16> to vector<8x3xbf16>
    %cst_115 = arith.constant dense<0.000000e+00> : vector<8x352xf32>
    %129 = tpu.matmul %128, %126, %cst_115 {dimension_numbers = #tpu.dot_dimension_numbers<[1], [0], [0], [1], [0, 0, 1, 1], [], []>} : vector<8x3xbf16>, vector<3x352xbf16>, vector<8x352xf32> -> vector<8x352xf32>
    %130 = arith.addf %124, %129 : vector<8x352xf32>
    %c0_116 = arith.constant 0 : index
    %c0_117 = arith.constant 0 : index
    %c67 = arith.constant 67 : index
    %131 = vector.load %arg1[%c0_116, %c0_117, %c67] : memref<1x3x506xbf16, #tpu.memory_space<vmem>>, vector<1x3x352xbf16>
    %132 = vector.shape_cast %131 : vector<1x3x352xbf16> to vector<3x352xbf16>
    %c22_118 = arith.constant 22 : index
    %c0_119 = arith.constant 0 : index
    %c0_120 = arith.constant 0 : index
    %133 = vector.load %arg2[%c22_118, %c0_119, %c0_120] : memref<49x8x3xbf16, #tpu.memory_space<vmem>>, vector<1x8x3xbf16>
    %134 = vector.shape_cast %133 : vector<1x8x3xbf16> to vector<8x3xbf16>
    %cst_121 = arith.constant dense<0.000000e+00> : vector<8x352xf32>
    %135 = tpu.matmul %134, %132, %cst_121 {dimension_numbers = #tpu.dot_dimension_numbers<[1], [0], [0], [1], [0, 0, 1, 1], [], []>} : vector<8x3xbf16>, vector<3x352xbf16>, vector<8x352xf32> -> vector<8x352xf32>
    %136 = arith.addf %130, %135 : vector<8x352xf32>
    %c0_122 = arith.constant 0 : index
    %c0_123 = arith.constant 0 : index
    %c68 = arith.constant 68 : index
    %137 = vector.load %arg1[%c0_122, %c0_123, %c68] : memref<1x3x506xbf16, #tpu.memory_space<vmem>>, vector<1x3x352xbf16>
    %138 = vector.shape_cast %137 : vector<1x3x352xbf16> to vector<3x352xbf16>
    %c23_124 = arith.constant 23 : index
    %c0_125 = arith.constant 0 : index
    %c0_126 = arith.constant 0 : index
    %139 = vector.load %arg2[%c23_124, %c0_125, %c0_126] : memref<49x8x3xbf16, #tpu.memory_space<vmem>>, vector<1x8x3xbf16>
    %140 = vector.shape_cast %139 : vector<1x8x3xbf16> to vector<8x3xbf16>
    %cst_127 = arith.constant dense<0.000000e+00> : vector<8x352xf32>
    %141 = tpu.matmul %140, %138, %cst_127 {dimension_numbers = #tpu.dot_dimension_numbers<[1], [0], [0], [1], [0, 0, 1, 1], [], []>} : vector<8x3xbf16>, vector<3x352xbf16>, vector<8x352xf32> -> vector<8x352xf32>
    %142 = arith.addf %136, %141 : vector<8x352xf32>
    %c0_128 = arith.constant 0 : index
    %c0_129 = arith.constant 0 : index
    %c69 = arith.constant 69 : index
    %143 = vector.load %arg1[%c0_128, %c0_129, %c69] : memref<1x3x506xbf16, #tpu.memory_space<vmem>>, vector<1x3x352xbf16>
    %144 = vector.shape_cast %143 : vector<1x3x352xbf16> to vector<3x352xbf16>
    %c24_130 = arith.constant 24 : index
    %c0_131 = arith.constant 0 : index
    %c0_132 = arith.constant 0 : index
    %145 = vector.load %arg2[%c24_130, %c0_131, %c0_132] : memref<49x8x3xbf16, #tpu.memory_space<vmem>>, vector<1x8x3xbf16>
    %146 = vector.shape_cast %145 : vector<1x8x3xbf16> to vector<8x3xbf16>
    %cst_133 = arith.constant dense<0.000000e+00> : vector<8x352xf32>
    %147 = tpu.matmul %146, %144, %cst_133 {dimension_numbers = #tpu.dot_dimension_numbers<[1], [0], [0], [1], [0, 0, 1, 1], [], []>} : vector<8x3xbf16>, vector<3x352xbf16>, vector<8x352xf32> -> vector<8x352xf32>
    %148 = arith.addf %142, %147 : vector<8x352xf32>
    %c0_134 = arith.constant 0 : index
    %c0_135 = arith.constant 0 : index
    %c70 = arith.constant 70 : index
    %149 = vector.load %arg1[%c0_134, %c0_135, %c70] : memref<1x3x506xbf16, #tpu.memory_space<vmem>>, vector<1x3x352xbf16>
    %150 = vector.shape_cast %149 : vector<1x3x352xbf16> to vector<3x352xbf16>
    %c25_136 = arith.constant 25 : index
    %c0_137 = arith.constant 0 : index
    %c0_138 = arith.constant 0 : index
    %151 = vector.load %arg2[%c25_136, %c0_137, %c0_138] : memref<49x8x3xbf16, #tpu.memory_space<vmem>>, vector<1x8x3xbf16>
    %152 = vector.shape_cast %151 : vector<1x8x3xbf16> to vector<8x3xbf16>
    %cst_139 = arith.constant dense<0.000000e+00> : vector<8x352xf32>
    %153 = tpu.matmul %152, %150, %cst_139 {dimension_numbers = #tpu.dot_dimension_numbers<[1], [0], [0], [1], [0, 0, 1, 1], [], []>} : vector<8x3xbf16>, vector<3x352xbf16>, vector<8x352xf32> -> vector<8x352xf32>
    %154 = arith.addf %148, %153 : vector<8x352xf32>
    %c0_140 = arith.constant 0 : index
    %c0_141 = arith.constant 0 : index
    %c71 = arith.constant 71 : index
    %155 = vector.load %arg1[%c0_140, %c0_141, %c71] : memref<1x3x506xbf16, #tpu.memory_space<vmem>>, vector<1x3x352xbf16>
    %156 = vector.shape_cast %155 : vector<1x3x352xbf16> to vector<3x352xbf16>
    %c26_142 = arith.constant 26 : index
    %c0_143 = arith.constant 0 : index
    %c0_144 = arith.constant 0 : index
    %157 = vector.load %arg2[%c26_142, %c0_143, %c0_144] : memref<49x8x3xbf16, #tpu.memory_space<vmem>>, vector<1x8x3xbf16>
    %158 = vector.shape_cast %157 : vector<1x8x3xbf16> to vector<8x3xbf16>
    %cst_145 = arith.constant dense<0.000000e+00> : vector<8x352xf32>
    %159 = tpu.matmul %158, %156, %cst_145 {dimension_numbers = #tpu.dot_dimension_numbers<[1], [0], [0], [1], [0, 0, 1, 1], [], []>} : vector<8x3xbf16>, vector<3x352xbf16>, vector<8x352xf32> -> vector<8x352xf32>
    %160 = arith.addf %154, %159 : vector<8x352xf32>
    %c0_146 = arith.constant 0 : index
    %c0_147 = arith.constant 0 : index
    %c72 = arith.constant 72 : index
    %161 = vector.load %arg1[%c0_146, %c0_147, %c72] : memref<1x3x506xbf16, #tpu.memory_space<vmem>>, vector<1x3x352xbf16>
    %162 = vector.shape_cast %161 : vector<1x3x352xbf16> to vector<3x352xbf16>
    %c27_148 = arith.constant 27 : index
    %c0_149 = arith.constant 0 : index
    %c0_150 = arith.constant 0 : index
    %163 = vector.load %arg2[%c27_148, %c0_149, %c0_150] : memref<49x8x3xbf16, #tpu.memory_space<vmem>>, vector<1x8x3xbf16>
    %164 = vector.shape_cast %163 : vector<1x8x3xbf16> to vector<8x3xbf16>
    %cst_151 = arith.constant dense<0.000000e+00> : vector<8x352xf32>
    %165 = tpu.matmul %164, %162, %cst_151 {dimension_numbers = #tpu.dot_dimension_numbers<[1], [0], [0], [1], [0, 0, 1, 1], [], []>} : vector<8x3xbf16>, vector<3x352xbf16>, vector<8x352xf32> -> vector<8x352xf32>
    %166 = arith.addf %160, %165 : vector<8x352xf32>
    %c0_152 = arith.constant 0 : index
    %c0_153 = arith.constant 0 : index
    %c88 = arith.constant 88 : index
    %167 = vector.load %arg1[%c0_152, %c0_153, %c88] : memref<1x3x506xbf16, #tpu.memory_space<vmem>>, vector<1x3x352xbf16>
    %168 = vector.shape_cast %167 : vector<1x3x352xbf16> to vector<3x352xbf16>
    %c28_154 = arith.constant 28 : index
    %c0_155 = arith.constant 0 : index
    %c0_156 = arith.constant 0 : index
    %169 = vector.load %arg2[%c28_154, %c0_155, %c0_156] : memref<49x8x3xbf16, #tpu.memory_space<vmem>>, vector<1x8x3xbf16>
    %170 = vector.shape_cast %169 : vector<1x8x3xbf16> to vector<8x3xbf16>
    %cst_157 = arith.constant dense<0.000000e+00> : vector<8x352xf32>
    %171 = tpu.matmul %170, %168, %cst_157 {dimension_numbers = #tpu.dot_dimension_numbers<[1], [0], [0], [1], [0, 0, 1, 1], [], []>} : vector<8x3xbf16>, vector<3x352xbf16>, vector<8x352xf32> -> vector<8x352xf32>
    %172 = arith.addf %166, %171 : vector<8x352xf32>
    %c0_158 = arith.constant 0 : index
    %c0_159 = arith.constant 0 : index
    %c89 = arith.constant 89 : index
    %173 = vector.load %arg1[%c0_158, %c0_159, %c89] : memref<1x3x506xbf16, #tpu.memory_space<vmem>>, vector<1x3x352xbf16>
    %174 = vector.shape_cast %173 : vector<1x3x352xbf16> to vector<3x352xbf16>
    %c29 = arith.constant 29 : index
    %c0_160 = arith.constant 0 : index
    %c0_161 = arith.constant 0 : index
    %175 = vector.load %arg2[%c29, %c0_160, %c0_161] : memref<49x8x3xbf16, #tpu.memory_space<vmem>>, vector<1x8x3xbf16>
    %176 = vector.shape_cast %175 : vector<1x8x3xbf16> to vector<8x3xbf16>
    %cst_162 = arith.constant dense<0.000000e+00> : vector<8x352xf32>
    %177 = tpu.matmul %176, %174, %cst_162 {dimension_numbers = #tpu.dot_dimension_numbers<[1], [0], [0], [1], [0, 0, 1, 1], [], []>} : vector<8x3xbf16>, vector<3x352xbf16>, vector<8x352xf32> -> vector<8x352xf32>
    %178 = arith.addf %172, %177 : vector<8x352xf32>
    %c0_163 = arith.constant 0 : index
    %c0_164 = arith.constant 0 : index
    %c90 = arith.constant 90 : index
    %179 = vector.load %arg1[%c0_163, %c0_164, %c90] : memref<1x3x506xbf16, #tpu.memory_space<vmem>>, vector<1x3x352xbf16>
    %180 = vector.shape_cast %179 : vector<1x3x352xbf16> to vector<3x352xbf16>
    %c30 = arith.constant 30 : index
    %c0_165 = arith.constant 0 : index
    %c0_166 = arith.constant 0 : index
    %181 = vector.load %arg2[%c30, %c0_165, %c0_166] : memref<49x8x3xbf16, #tpu.memory_space<vmem>>, vector<1x8x3xbf16>
    %182 = vector.shape_cast %181 : vector<1x8x3xbf16> to vector<8x3xbf16>
    %cst_167 = arith.constant dense<0.000000e+00> : vector<8x352xf32>
    %183 = tpu.matmul %182, %180, %cst_167 {dimension_numbers = #tpu.dot_dimension_numbers<[1], [0], [0], [1], [0, 0, 1, 1], [], []>} : vector<8x3xbf16>, vector<3x352xbf16>, vector<8x352xf32> -> vector<8x352xf32>
    %184 = arith.addf %178, %183 : vector<8x352xf32>
    %c0_168 = arith.constant 0 : index
    %c0_169 = arith.constant 0 : index
    %c91 = arith.constant 91 : index
    %185 = vector.load %arg1[%c0_168, %c0_169, %c91] : memref<1x3x506xbf16, #tpu.memory_space<vmem>>, vector<1x3x352xbf16>
    %186 = vector.shape_cast %185 : vector<1x3x352xbf16> to vector<3x352xbf16>
    %c31 = arith.constant 31 : index
    %c0_170 = arith.constant 0 : index
    %c0_171 = arith.constant 0 : index
    %187 = vector.load %arg2[%c31, %c0_170, %c0_171] : memref<49x8x3xbf16, #tpu.memory_space<vmem>>, vector<1x8x3xbf16>
    %188 = vector.shape_cast %187 : vector<1x8x3xbf16> to vector<8x3xbf16>
    %cst_172 = arith.constant dense<0.000000e+00> : vector<8x352xf32>
    %189 = tpu.matmul %188, %186, %cst_172 {dimension_numbers = #tpu.dot_dimension_numbers<[1], [0], [0], [1], [0, 0, 1, 1], [], []>} : vector<8x3xbf16>, vector<3x352xbf16>, vector<8x352xf32> -> vector<8x352xf32>
    %190 = arith.addf %184, %189 : vector<8x352xf32>
    %c0_173 = arith.constant 0 : index
    %c0_174 = arith.constant 0 : index
    %c92 = arith.constant 92 : index
    %191 = vector.load %arg1[%c0_173, %c0_174, %c92] : memref<1x3x506xbf16, #tpu.memory_space<vmem>>, vector<1x3x352xbf16>
    %192 = vector.shape_cast %191 : vector<1x3x352xbf16> to vector<3x352xbf16>
    %c32 = arith.constant 32 : index
    %c0_175 = arith.constant 0 : index
    %c0_176 = arith.constant 0 : index
    %193 = vector.load %arg2[%c32, %c0_175, %c0_176] : memref<49x8x3xbf16, #tpu.memory_space<vmem>>, vector<1x8x3xbf16>
    %194 = vector.shape_cast %193 : vector<1x8x3xbf16> to vector<8x3xbf16>
    %cst_177 = arith.constant dense<0.000000e+00> : vector<8x352xf32>
    %195 = tpu.matmul %194, %192, %cst_177 {dimension_numbers = #tpu.dot_dimension_numbers<[1], [0], [0], [1], [0, 0, 1, 1], [], []>} : vector<8x3xbf16>, vector<3x352xbf16>, vector<8x352xf32> -> vector<8x352xf32>
    %196 = arith.addf %190, %195 : vector<8x352xf32>
    %c0_178 = arith.constant 0 : index
    %c0_179 = arith.constant 0 : index
    %c93 = arith.constant 93 : index
    %197 = vector.load %arg1[%c0_178, %c0_179, %c93] : memref<1x3x506xbf16, #tpu.memory_space<vmem>>, vector<1x3x352xbf16>
    %198 = vector.shape_cast %197 : vector<1x3x352xbf16> to vector<3x352xbf16>
    %c33 = arith.constant 33 : index
    %c0_180 = arith.constant 0 : index
    %c0_181 = arith.constant 0 : index
    %199 = vector.load %arg2[%c33, %c0_180, %c0_181] : memref<49x8x3xbf16, #tpu.memory_space<vmem>>, vector<1x8x3xbf16>
    %200 = vector.shape_cast %199 : vector<1x8x3xbf16> to vector<8x3xbf16>
    %cst_182 = arith.constant dense<0.000000e+00> : vector<8x352xf32>
    %201 = tpu.matmul %200, %198, %cst_182 {dimension_numbers = #tpu.dot_dimension_numbers<[1], [0], [0], [1], [0, 0, 1, 1], [], []>} : vector<8x3xbf16>, vector<3x352xbf16>, vector<8x352xf32> -> vector<8x352xf32>
    %202 = arith.addf %196, %201 : vector<8x352xf32>
    %c0_183 = arith.constant 0 : index
    %c0_184 = arith.constant 0 : index
    %c94 = arith.constant 94 : index
    %203 = vector.load %arg1[%c0_183, %c0_184, %c94] : memref<1x3x506xbf16, #tpu.memory_space<vmem>>, vector<1x3x352xbf16>
    %204 = vector.shape_cast %203 : vector<1x3x352xbf16> to vector<3x352xbf16>
    %c34 = arith.constant 34 : index
    %c0_185 = arith.constant 0 : index
    %c0_186 = arith.constant 0 : index
    %205 = vector.load %arg2[%c34, %c0_185, %c0_186] : memref<49x8x3xbf16, #tpu.memory_space<vmem>>, vector<1x8x3xbf16>
    %206 = vector.shape_cast %205 : vector<1x8x3xbf16> to vector<8x3xbf16>
    %cst_187 = arith.constant dense<0.000000e+00> : vector<8x352xf32>
    %207 = tpu.matmul %206, %204, %cst_187 {dimension_numbers = #tpu.dot_dimension_numbers<[1], [0], [0], [1], [0, 0, 1, 1], [], []>} : vector<8x3xbf16>, vector<3x352xbf16>, vector<8x352xf32> -> vector<8x352xf32>
    %208 = arith.addf %202, %207 : vector<8x352xf32>
    %c0_188 = arith.constant 0 : index
    %c0_189 = arith.constant 0 : index
    %c110 = arith.constant 110 : index
    %209 = vector.load %arg1[%c0_188, %c0_189, %c110] : memref<1x3x506xbf16, #tpu.memory_space<vmem>>, vector<1x3x352xbf16>
    %210 = vector.shape_cast %209 : vector<1x3x352xbf16> to vector<3x352xbf16>
    %c35 = arith.constant 35 : index
    %c0_190 = arith.constant 0 : index
    %c0_191 = arith.constant 0 : index
    %211 = vector.load %arg2[%c35, %c0_190, %c0_191] : memref<49x8x3xbf16, #tpu.memory_space<vmem>>, vector<1x8x3xbf16>
    %212 = vector.shape_cast %211 : vector<1x8x3xbf16> to vector<8x3xbf16>
    %cst_192 = arith.constant dense<0.000000e+00> : vector<8x352xf32>
    %213 = tpu.matmul %212, %210, %cst_192 {dimension_numbers = #tpu.dot_dimension_numbers<[1], [0], [0], [1], [0, 0, 1, 1], [], []>} : vector<8x3xbf16>, vector<3x352xbf16>, vector<8x352xf32> -> vector<8x352xf32>
    %214 = arith.addf %208, %213 : vector<8x352xf32>
    %c0_193 = arith.constant 0 : index
    %c0_194 = arith.constant 0 : index
    %c111 = arith.constant 111 : index
    %215 = vector.load %arg1[%c0_193, %c0_194, %c111] : memref<1x3x506xbf16, #tpu.memory_space<vmem>>, vector<1x3x352xbf16>
    %216 = vector.shape_cast %215 : vector<1x3x352xbf16> to vector<3x352xbf16>
    %c36 = arith.constant 36 : index
    %c0_195 = arith.constant 0 : index
    %c0_196 = arith.constant 0 : index
    %217 = vector.load %arg2[%c36, %c0_195, %c0_196] : memref<49x8x3xbf16, #tpu.memory_space<vmem>>, vector<1x8x3xbf16>
    %218 = vector.shape_cast %217 : vector<1x8x3xbf16> to vector<8x3xbf16>
    %cst_197 = arith.constant dense<0.000000e+00> : vector<8x352xf32>
    %219 = tpu.matmul %218, %216, %cst_197 {dimension_numbers = #tpu.dot_dimension_numbers<[1], [0], [0], [1], [0, 0, 1, 1], [], []>} : vector<8x3xbf16>, vector<3x352xbf16>, vector<8x352xf32> -> vector<8x352xf32>
    %220 = arith.addf %214, %219 : vector<8x352xf32>
    %c0_198 = arith.constant 0 : index
    %c0_199 = arith.constant 0 : index
    %c112 = arith.constant 112 : index
    %221 = vector.load %arg1[%c0_198, %c0_199, %c112] : memref<1x3x506xbf16, #tpu.memory_space<vmem>>, vector<1x3x352xbf16>
    %222 = vector.shape_cast %221 : vector<1x3x352xbf16> to vector<3x352xbf16>
    %c37 = arith.constant 37 : index
    %c0_200 = arith.constant 0 : index
    %c0_201 = arith.constant 0 : index
    %223 = vector.load %arg2[%c37, %c0_200, %c0_201] : memref<49x8x3xbf16, #tpu.memory_space<vmem>>, vector<1x8x3xbf16>
    %224 = vector.shape_cast %223 : vector<1x8x3xbf16> to vector<8x3xbf16>
    %cst_202 = arith.constant dense<0.000000e+00> : vector<8x352xf32>
    %225 = tpu.matmul %224, %222, %cst_202 {dimension_numbers = #tpu.dot_dimension_numbers<[1], [0], [0], [1], [0, 0, 1, 1], [], []>} : vector<8x3xbf16>, vector<3x352xbf16>, vector<8x352xf32> -> vector<8x352xf32>
    %226 = arith.addf %220, %225 : vector<8x352xf32>
    %c0_203 = arith.constant 0 : index
    %c0_204 = arith.constant 0 : index
    %c113 = arith.constant 113 : index
    %227 = vector.load %arg1[%c0_203, %c0_204, %c113] : memref<1x3x506xbf16, #tpu.memory_space<vmem>>, vector<1x3x352xbf16>
    %228 = vector.shape_cast %227 : vector<1x3x352xbf16> to vector<3x352xbf16>
    %c38 = arith.constant 38 : index
    %c0_205 = arith.constant 0 : index
    %c0_206 = arith.constant 0 : index
    %229 = vector.load %arg2[%c38, %c0_205, %c0_206] : memref<49x8x3xbf16, #tpu.memory_space<vmem>>, vector<1x8x3xbf16>
    %230 = vector.shape_cast %229 : vector<1x8x3xbf16> to vector<8x3xbf16>
    %cst_207 = arith.constant dense<0.000000e+00> : vector<8x352xf32>
    %231 = tpu.matmul %230, %228, %cst_207 {dimension_numbers = #tpu.dot_dimension_numbers<[1], [0], [0], [1], [0, 0, 1, 1], [], []>} : vector<8x3xbf16>, vector<3x352xbf16>, vector<8x352xf32> -> vector<8x352xf32>
    %232 = arith.addf %226, %231 : vector<8x352xf32>
    %c0_208 = arith.constant 0 : index
    %c0_209 = arith.constant 0 : index
    %c114 = arith.constant 114 : index
    %233 = vector.load %arg1[%c0_208, %c0_209, %c114] : memref<1x3x506xbf16, #tpu.memory_space<vmem>>, vector<1x3x352xbf16>
    %234 = vector.shape_cast %233 : vector<1x3x352xbf16> to vector<3x352xbf16>
    %c39 = arith.constant 39 : index
    %c0_210 = arith.constant 0 : index
    %c0_211 = arith.constant 0 : index
    %235 = vector.load %arg2[%c39, %c0_210, %c0_211] : memref<49x8x3xbf16, #tpu.memory_space<vmem>>, vector<1x8x3xbf16>
    %236 = vector.shape_cast %235 : vector<1x8x3xbf16> to vector<8x3xbf16>
    %cst_212 = arith.constant dense<0.000000e+00> : vector<8x352xf32>
    %237 = tpu.matmul %236, %234, %cst_212 {dimension_numbers = #tpu.dot_dimension_numbers<[1], [0], [0], [1], [0, 0, 1, 1], [], []>} : vector<8x3xbf16>, vector<3x352xbf16>, vector<8x352xf32> -> vector<8x352xf32>
    %238 = arith.addf %232, %237 : vector<8x352xf32>
    %c0_213 = arith.constant 0 : index
    %c0_214 = arith.constant 0 : index
    %c115 = arith.constant 115 : index
    %239 = vector.load %arg1[%c0_213, %c0_214, %c115] : memref<1x3x506xbf16, #tpu.memory_space<vmem>>, vector<1x3x352xbf16>
    %240 = vector.shape_cast %239 : vector<1x3x352xbf16> to vector<3x352xbf16>
    %c40 = arith.constant 40 : index
    %c0_215 = arith.constant 0 : index
    %c0_216 = arith.constant 0 : index
    %241 = vector.load %arg2[%c40, %c0_215, %c0_216] : memref<49x8x3xbf16, #tpu.memory_space<vmem>>, vector<1x8x3xbf16>
    %242 = vector.shape_cast %241 : vector<1x8x3xbf16> to vector<8x3xbf16>
    %cst_217 = arith.constant dense<0.000000e+00> : vector<8x352xf32>
    %243 = tpu.matmul %242, %240, %cst_217 {dimension_numbers = #tpu.dot_dimension_numbers<[1], [0], [0], [1], [0, 0, 1, 1], [], []>} : vector<8x3xbf16>, vector<3x352xbf16>, vector<8x352xf32> -> vector<8x352xf32>
    %244 = arith.addf %238, %243 : vector<8x352xf32>
    %c0_218 = arith.constant 0 : index
    %c0_219 = arith.constant 0 : index
    %c116 = arith.constant 116 : index
    %245 = vector.load %arg1[%c0_218, %c0_219, %c116] : memref<1x3x506xbf16, #tpu.memory_space<vmem>>, vector<1x3x352xbf16>
    %246 = vector.shape_cast %245 : vector<1x3x352xbf16> to vector<3x352xbf16>
    %c41 = arith.constant 41 : index
    %c0_220 = arith.constant 0 : index
    %c0_221 = arith.constant 0 : index
    %247 = vector.load %arg2[%c41, %c0_220, %c0_221] : memref<49x8x3xbf16, #tpu.memory_space<vmem>>, vector<1x8x3xbf16>
    %248 = vector.shape_cast %247 : vector<1x8x3xbf16> to vector<8x3xbf16>
    %cst_222 = arith.constant dense<0.000000e+00> : vector<8x352xf32>
    %249 = tpu.matmul %248, %246, %cst_222 {dimension_numbers = #tpu.dot_dimension_numbers<[1], [0], [0], [1], [0, 0, 1, 1], [], []>} : vector<8x3xbf16>, vector<3x352xbf16>, vector<8x352xf32> -> vector<8x352xf32>
    %250 = arith.addf %244, %249 : vector<8x352xf32>
    %c0_223 = arith.constant 0 : index
    %c0_224 = arith.constant 0 : index
    %c132 = arith.constant 132 : index
    %251 = vector.load %arg1[%c0_223, %c0_224, %c132] : memref<1x3x506xbf16, #tpu.memory_space<vmem>>, vector<1x3x352xbf16>
    %252 = vector.shape_cast %251 : vector<1x3x352xbf16> to vector<3x352xbf16>
    %c42 = arith.constant 42 : index
    %c0_225 = arith.constant 0 : index
    %c0_226 = arith.constant 0 : index
    %253 = vector.load %arg2[%c42, %c0_225, %c0_226] : memref<49x8x3xbf16, #tpu.memory_space<vmem>>, vector<1x8x3xbf16>
    %254 = vector.shape_cast %253 : vector<1x8x3xbf16> to vector<8x3xbf16>
    %cst_227 = arith.constant dense<0.000000e+00> : vector<8x352xf32>
    %255 = tpu.matmul %254, %252, %cst_227 {dimension_numbers = #tpu.dot_dimension_numbers<[1], [0], [0], [1], [0, 0, 1, 1], [], []>} : vector<8x3xbf16>, vector<3x352xbf16>, vector<8x352xf32> -> vector<8x352xf32>
    %256 = arith.addf %250, %255 : vector<8x352xf32>
    %c0_228 = arith.constant 0 : index
    %c0_229 = arith.constant 0 : index
    %c133 = arith.constant 133 : index
    %257 = vector.load %arg1[%c0_228, %c0_229, %c133] : memref<1x3x506xbf16, #tpu.memory_space<vmem>>, vector<1x3x352xbf16>
    %258 = vector.shape_cast %257 : vector<1x3x352xbf16> to vector<3x352xbf16>
    %c43 = arith.constant 43 : index
    %c0_230 = arith.constant 0 : index
    %c0_231 = arith.constant 0 : index
    %259 = vector.load %arg2[%c43, %c0_230, %c0_231] : memref<49x8x3xbf16, #tpu.memory_space<vmem>>, vector<1x8x3xbf16>
    %260 = vector.shape_cast %259 : vector<1x8x3xbf16> to vector<8x3xbf16>
    %cst_232 = arith.constant dense<0.000000e+00> : vector<8x352xf32>
    %261 = tpu.matmul %260, %258, %cst_232 {dimension_numbers = #tpu.dot_dimension_numbers<[1], [0], [0], [1], [0, 0, 1, 1], [], []>} : vector<8x3xbf16>, vector<3x352xbf16>, vector<8x352xf32> -> vector<8x352xf32>
    %262 = arith.addf %256, %261 : vector<8x352xf32>
    %c0_233 = arith.constant 0 : index
    %c0_234 = arith.constant 0 : index
    %c134 = arith.constant 134 : index
    %263 = vector.load %arg1[%c0_233, %c0_234, %c134] : memref<1x3x506xbf16, #tpu.memory_space<vmem>>, vector<1x3x352xbf16>
    %264 = vector.shape_cast %263 : vector<1x3x352xbf16> to vector<3x352xbf16>
    %c44_235 = arith.constant 44 : index
    %c0_236 = arith.constant 0 : index
    %c0_237 = arith.constant 0 : index
    %265 = vector.load %arg2[%c44_235, %c0_236, %c0_237] : memref<49x8x3xbf16, #tpu.memory_space<vmem>>, vector<1x8x3xbf16>
    %266 = vector.shape_cast %265 : vector<1x8x3xbf16> to vector<8x3xbf16>
    %cst_238 = arith.constant dense<0.000000e+00> : vector<8x352xf32>
    %267 = tpu.matmul %266, %264, %cst_238 {dimension_numbers = #tpu.dot_dimension_numbers<[1], [0], [0], [1], [0, 0, 1, 1], [], []>} : vector<8x3xbf16>, vector<3x352xbf16>, vector<8x352xf32> -> vector<8x352xf32>
    %268 = arith.addf %262, %267 : vector<8x352xf32>
    %c0_239 = arith.constant 0 : index
    %c0_240 = arith.constant 0 : index
    %c135 = arith.constant 135 : index
    %269 = vector.load %arg1[%c0_239, %c0_240, %c135] : memref<1x3x506xbf16, #tpu.memory_space<vmem>>, vector<1x3x352xbf16>
    %270 = vector.shape_cast %269 : vector<1x3x352xbf16> to vector<3x352xbf16>
    %c45_241 = arith.constant 45 : index
    %c0_242 = arith.constant 0 : index
    %c0_243 = arith.constant 0 : index
    %271 = vector.load %arg2[%c45_241, %c0_242, %c0_243] : memref<49x8x3xbf16, #tpu.memory_space<vmem>>, vector<1x8x3xbf16>
    %272 = vector.shape_cast %271 : vector<1x8x3xbf16> to vector<8x3xbf16>
    %cst_244 = arith.constant dense<0.000000e+00> : vector<8x352xf32>
    %273 = tpu.matmul %272, %270, %cst_244 {dimension_numbers = #tpu.dot_dimension_numbers<[1], [0], [0], [1], [0, 0, 1, 1], [], []>} : vector<8x3xbf16>, vector<3x352xbf16>, vector<8x352xf32> -> vector<8x352xf32>
    %274 = arith.addf %268, %273 : vector<8x352xf32>
    %c0_245 = arith.constant 0 : index
    %c0_246 = arith.constant 0 : index
    %c136 = arith.constant 136 : index
    %275 = vector.load %arg1[%c0_245, %c0_246, %c136] : memref<1x3x506xbf16, #tpu.memory_space<vmem>>, vector<1x3x352xbf16>
    %276 = vector.shape_cast %275 : vector<1x3x352xbf16> to vector<3x352xbf16>
    %c46_247 = arith.constant 46 : index
    %c0_248 = arith.constant 0 : index
    %c0_249 = arith.constant 0 : index
    %277 = vector.load %arg2[%c46_247, %c0_248, %c0_249] : memref<49x8x3xbf16, #tpu.memory_space<vmem>>, vector<1x8x3xbf16>
    %278 = vector.shape_cast %277 : vector<1x8x3xbf16> to vector<8x3xbf16>
    %cst_250 = arith.constant dense<0.000000e+00> : vector<8x352xf32>
    %279 = tpu.matmul %278, %276, %cst_250 {dimension_numbers = #tpu.dot_dimension_numbers<[1], [0], [0], [1], [0, 0, 1, 1], [], []>} : vector<8x3xbf16>, vector<3x352xbf16>, vector<8x352xf32> -> vector<8x352xf32>
    %280 = arith.addf %274, %279 : vector<8x352xf32>
    %c0_251 = arith.constant 0 : index
    %c0_252 = arith.constant 0 : index
    %c137 = arith.constant 137 : index
    %281 = vector.load %arg1[%c0_251, %c0_252, %c137] : memref<1x3x506xbf16, #tpu.memory_space<vmem>>, vector<1x3x352xbf16>
    %282 = vector.shape_cast %281 : vector<1x3x352xbf16> to vector<3x352xbf16>
    %c47_253 = arith.constant 47 : index
    %c0_254 = arith.constant 0 : index
    %c0_255 = arith.constant 0 : index
    %283 = vector.load %arg2[%c47_253, %c0_254, %c0_255] : memref<49x8x3xbf16, #tpu.memory_space<vmem>>, vector<1x8x3xbf16>
    %284 = vector.shape_cast %283 : vector<1x8x3xbf16> to vector<8x3xbf16>
    %cst_256 = arith.constant dense<0.000000e+00> : vector<8x352xf32>
    %285 = tpu.matmul %284, %282, %cst_256 {dimension_numbers = #tpu.dot_dimension_numbers<[1], [0], [0], [1], [0, 0, 1, 1], [], []>} : vector<8x3xbf16>, vector<3x352xbf16>, vector<8x352xf32> -> vector<8x352xf32>
    %286 = arith.addf %280, %285 : vector<8x352xf32>
    %c0_257 = arith.constant 0 : index
    %c0_258 = arith.constant 0 : index
    %c138 = arith.constant 138 : index
    %287 = vector.load %arg1[%c0_257, %c0_258, %c138] : memref<1x3x506xbf16, #tpu.memory_space<vmem>>, vector<1x3x352xbf16>
    %288 = vector.shape_cast %287 : vector<1x3x352xbf16> to vector<3x352xbf16>
    %c48_259 = arith.constant 48 : index
    %c0_260 = arith.constant 0 : index
    %c0_261 = arith.constant 0 : index
    %289 = vector.load %arg2[%c48_259, %c0_260, %c0_261] : memref<49x8x3xbf16, #tpu.memory_space<vmem>>, vector<1x8x3xbf16>
    %290 = vector.shape_cast %289 : vector<1x8x3xbf16> to vector<8x3xbf16>
    %cst_262 = arith.constant dense<0.000000e+00> : vector<8x352xf32>
    %291 = tpu.matmul %290, %288, %cst_262 {dimension_numbers = #tpu.dot_dimension_numbers<[1], [0], [0], [1], [0, 0, 1, 1], [], []>} : vector<8x3xbf16>, vector<3x352xbf16>, vector<8x352xf32> -> vector<8x352xf32>
    %292 = arith.addf %286, %291 : vector<8x352xf32>
    %293 = vector.shape_cast %292 : vector<8x352xf32> to vector<1x8x352xf32>
    %294 = tpu.iota {dimensions = array<i32: 2>} : vector<1x1x352xi32>
    %c22_i32 = arith.constant 22 : i32
    %c0_i32 = arith.constant 0 : i32
    %295 = arith.cmpi eq, %c22_i32, %c0_i32 : i32
    %c1_i32 = arith.constant 1 : i32
    %296 = arith.select %295, %c1_i32, %c22_i32 : i32
    %297 = vector.broadcast %296 : i32 to vector<1x1x352xi32>
    %298 = arith.remsi %294, %297 : vector<1x1x352xi32>
    %c0_i32_263 = arith.constant 0 : i32
    %299 = vector.broadcast %c0_i32_263 : i32 to vector<1x1x352xi32>
    %300 = arith.cmpi ne, %298, %299 : vector<1x1x352xi32>
    %c0_i32_264 = arith.constant 0 : i32
    %301 = vector.broadcast %c0_i32_264 : i32 to vector<1x1x352xi32>
    %302 = arith.cmpi slt, %298, %301 : vector<1x1x352xi32>
    %c0_i32_265 = arith.constant 0 : i32
    %303 = arith.cmpi slt, %296, %c0_i32_265 : i32
    %304 = vector.broadcast %303 : i1 to vector<1x1x352xi1>
    %305 = vector.broadcast %304 : vector<1x1x352xi1> to vector<1x1x352xi1>
    %306 = arith.xori %302, %305 : vector<1x1x352xi1>
    %307 = arith.andi %306, %300 : vector<1x1x352xi1>
    %308 = vector.broadcast %296 : i32 to vector<1x1x352xi32>
    %309 = arith.addi %298, %308 : vector<1x1x352xi32>
    %310 = arith.select %307, %309, %298 : vector<1x1x352xi1>, vector<1x1x352xi32>
    %c16_i32 = arith.constant 16 : i32
    %311 = vector.broadcast %c16_i32 : i32 to vector<1x1x352xi32>
    %312 = arith.cmpi slt, %310, %311 : vector<1x1x352xi32>
    %313 = arith.extui %312 : vector<1x1x352xi1> to vector<1x1x352xi32>
    %314 = arith.sitofp %313 : vector<1x1x352xi32> to vector<1x1x352xf32>
    %315 = vector.broadcast %314 : vector<1x1x352xf32> to vector<1x8x352xf32>
    %316 = arith.mulf %293, %315 : vector<1x8x352xf32>
    %cst_266 = arith.constant dense<0.000000e+00> : vector<1x8xf32>
    %317 = vector.multi_reduction <add>, %316, %cst_266 [2] : vector<1x8x352xf32> to vector<1x8xf32>
    %318 = vector.shape_cast %317 : vector<1x8xf32> to vector<1x8x1xf32>
    %cst_267 = arith.constant dense<0.000000e+00> : vector<8x1xf32>
    %319 = vector.multi_reduction <add>, %318, %cst_267 [0] : vector<1x8x1xf32> to vector<8x1xf32>
    %320 = vector.shape_cast %319 : vector<8x1xf32> to vector<1x8x1xf32>
    %cst_268 = arith.constant 3.906250e-03 : f32
    %321 = vector.broadcast %cst_268 : f32 to vector<1x8x1xf32>
    %322 = arith.mulf %320, %321 : vector<1x8x1xf32>
    %323 = vector.broadcast %322 : vector<1x8x1xf32> to vector<1x8x352xf32>
    %324 = arith.subf %293, %323 : vector<1x8x352xf32>
    %325 = arith.mulf %324, %324 : vector<1x8x352xf32>
    %326 = vector.broadcast %314 : vector<1x1x352xf32> to vector<1x8x352xf32>
    %327 = arith.mulf %325, %326 : vector<1x8x352xf32>
    %cst_269 = arith.constant dense<0.000000e+00> : vector<1x8xf32>
    %328 = vector.multi_reduction <add>, %327, %cst_269 [2] : vector<1x8x352xf32> to vector<1x8xf32>
    %329 = vector.shape_cast %328 : vector<1x8xf32> to vector<1x8x1xf32>
    %cst_270 = arith.constant dense<0.000000e+00> : vector<8x1xf32>
    %330 = vector.multi_reduction <add>, %329, %cst_270 [0] : vector<1x8x1xf32> to vector<8x1xf32>
    %331 = vector.shape_cast %330 : vector<8x1xf32> to vector<1x8x1xf32>
    %cst_271 = arith.constant 3.906250e-03 : f32
    %332 = vector.broadcast %cst_271 : f32 to vector<1x8x1xf32>
    %333 = arith.mulf %331, %332 : vector<1x8x1xf32>
    %cst_272 = arith.constant 9.99999974E-6 : f32
    %334 = vector.broadcast %cst_272 : f32 to vector<1x8x1xf32>
    %335 = arith.addf %333, %334 : vector<1x8x1xf32>
    %336 = math.rsqrt %335 : vector<1x8x1xf32>
    %337 = vector.broadcast %336 : vector<1x8x1xf32> to vector<1x8x352xf32>
    %338 = arith.mulf %324, %337 : vector<1x8x352xf32>
    %339 = vector.shape_cast %338 : vector<1x8x352xf32> to vector<8x352xf32>
    %cst_273 = arith.constant 0.000000e+00 : f32
    %340 = vector.broadcast %cst_273 : f32 to vector<8x352xf32>
    %341 = arith.maximumf %339, %340 : vector<8x352xf32>
    %342 = arith.truncf %341 : vector<8x352xf32> to vector<8x352xbf16>
    %c0_274 = arith.constant 0 : index
    %c0_275 = arith.constant 0 : index
    %c0_276 = arith.constant 0 : index
    %343 = vector.load %arg3[%c0_274, %c0_275, %c0_276] : memref<1x8x352xbf16, #tpu.memory_space<vmem>>, vector<1x8x352xbf16>
    %344 = vector.shape_cast %343 : vector<1x8x352xbf16> to vector<8x352xbf16>
    %345 = vector.shape_cast %342 : vector<8x352xbf16> to vector<1x8x352xbf16>
    tpu.vector_store %arg3[%c0_274, %c0_275, %c0_276], %345 {strides = array<i32>} : memref<1x8x352xbf16, #tpu.memory_space<vmem>>, vector<1x8x352xbf16>,
    return
  }
  func.func @transform_0(%arg0: i32) -> (i32, i32, i32) {
    %c0_i32 = arith.constant 0 : i32
    %c0_i32_0 = arith.constant 0 : i32
    %c0_i32_1 = arith.constant 0 : i32
    return %arg0, %c0_i32, %c0_i32_0 : i32, i32, i32
  }
  func.func @transform_1(%arg0: i32) -> (i32, i32, i32) {
    %c0_i32 = arith.constant 0 : i32
    %c0_i32_0 = arith.constant 0 : i32
    %c0_i32_1 = arith.constant 0 : i32
    %c0_i32_2 = arith.constant 0 : i32
    return %c0_i32, %c0_i32_0, %c0_i32_1 : i32, i32, i32
  }
  func.func @transform_2(%arg0: i32) -> (i32, i32, i32) {
    %c0_i32 = arith.constant 0 : i32
    %c0_i32_0 = arith.constant 0 : i32
    %c0_i32_1 = arith.constant 0 : i32
    return %arg0, %c0_i32, %c0_i32_0 : i32, i32, i32
  }
}

module attributes {stable_mosaic.version = 11 : i64} {
  func.func @_tapconv_kernel(%arg0: i32, %arg1: memref<1x32x90xbf16, #tpu.memory_space<vmem>>, %arg2: memref<4x16x32xbf16, #tpu.memory_space<vmem>>, %arg3: memref<1x16x72xbf16, #tpu.memory_space<vmem>>) attributes {dimension_semantics = [#tpu.dimension_semantics<parallel>], iteration_bounds = array<i64: 2>, scalar_prefetch = 0 : i64, scratch_operands = 0 : i64, tpu.core_type = #tpu.core_type<tc>, window_params = [{transform_indices = @transform_0, window_bounds = array<i64: 1, 32, 90>}, {pipeline_mode = #tpu.pipeline_mode<synchronous>, transform_indices = @transform_1, window_bounds = array<i64: 4, 16, 32>}, {transform_indices = @transform_2, window_bounds = array<i64: 1, 16, 72>}]} {
    %c0 = arith.constant 0 : index
    %c0_0 = arith.constant 0 : index
    %c0_1 = arith.constant 0 : index
    %0 = vector.load %arg1[%c0, %c0_0, %c0_1] : memref<1x32x90xbf16, #tpu.memory_space<vmem>>, vector<1x32x72xbf16>
    %1 = vector.shape_cast %0 : vector<1x32x72xbf16> to vector<32x72xbf16>
    %c0_2 = arith.constant 0 : index
    %c0_3 = arith.constant 0 : index
    %c0_4 = arith.constant 0 : index
    %2 = vector.load %arg2[%c0_2, %c0_3, %c0_4] : memref<4x16x32xbf16, #tpu.memory_space<vmem>>, vector<1x16x32xbf16>
    %3 = vector.shape_cast %2 : vector<1x16x32xbf16> to vector<16x32xbf16>
    %cst = arith.constant dense<0.000000e+00> : vector<16x72xf32>
    %4 = tpu.matmul %3, %1, %cst {dimension_numbers = #tpu.dot_dimension_numbers<[1], [0], [0], [1], [0, 0, 1, 1], [], []>} : vector<16x32xbf16>, vector<32x72xbf16>, vector<16x72xf32> -> vector<16x72xf32>
    %c0_5 = arith.constant 0 : index
    %c0_6 = arith.constant 0 : index
    %c1 = arith.constant 1 : index
    %5 = vector.load %arg1[%c0_5, %c0_6, %c1] : memref<1x32x90xbf16, #tpu.memory_space<vmem>>, vector<1x32x72xbf16>
    %6 = vector.shape_cast %5 : vector<1x32x72xbf16> to vector<32x72xbf16>
    %c1_7 = arith.constant 1 : index
    %c0_8 = arith.constant 0 : index
    %c0_9 = arith.constant 0 : index
    %7 = vector.load %arg2[%c1_7, %c0_8, %c0_9] : memref<4x16x32xbf16, #tpu.memory_space<vmem>>, vector<1x16x32xbf16>
    %8 = vector.shape_cast %7 : vector<1x16x32xbf16> to vector<16x32xbf16>
    %cst_10 = arith.constant dense<0.000000e+00> : vector<16x72xf32>
    %9 = tpu.matmul %8, %6, %cst_10 {dimension_numbers = #tpu.dot_dimension_numbers<[1], [0], [0], [1], [0, 0, 1, 1], [], []>} : vector<16x32xbf16>, vector<32x72xbf16>, vector<16x72xf32> -> vector<16x72xf32>
    %10 = arith.addf %4, %9 : vector<16x72xf32>
    %c0_11 = arith.constant 0 : index
    %c0_12 = arith.constant 0 : index
    %c9 = arith.constant 9 : index
    %11 = vector.load %arg1[%c0_11, %c0_12, %c9] : memref<1x32x90xbf16, #tpu.memory_space<vmem>>, vector<1x32x72xbf16>
    %12 = vector.shape_cast %11 : vector<1x32x72xbf16> to vector<32x72xbf16>
    %c2 = arith.constant 2 : index
    %c0_13 = arith.constant 0 : index
    %c0_14 = arith.constant 0 : index
    %13 = vector.load %arg2[%c2, %c0_13, %c0_14] : memref<4x16x32xbf16, #tpu.memory_space<vmem>>, vector<1x16x32xbf16>
    %14 = vector.shape_cast %13 : vector<1x16x32xbf16> to vector<16x32xbf16>
    %cst_15 = arith.constant dense<0.000000e+00> : vector<16x72xf32>
    %15 = tpu.matmul %14, %12, %cst_15 {dimension_numbers = #tpu.dot_dimension_numbers<[1], [0], [0], [1], [0, 0, 1, 1], [], []>} : vector<16x32xbf16>, vector<32x72xbf16>, vector<16x72xf32> -> vector<16x72xf32>
    %16 = arith.addf %10, %15 : vector<16x72xf32>
    %c0_16 = arith.constant 0 : index
    %c0_17 = arith.constant 0 : index
    %c10 = arith.constant 10 : index
    %17 = vector.load %arg1[%c0_16, %c0_17, %c10] : memref<1x32x90xbf16, #tpu.memory_space<vmem>>, vector<1x32x72xbf16>
    %18 = vector.shape_cast %17 : vector<1x32x72xbf16> to vector<32x72xbf16>
    %c3 = arith.constant 3 : index
    %c0_18 = arith.constant 0 : index
    %c0_19 = arith.constant 0 : index
    %19 = vector.load %arg2[%c3, %c0_18, %c0_19] : memref<4x16x32xbf16, #tpu.memory_space<vmem>>, vector<1x16x32xbf16>
    %20 = vector.shape_cast %19 : vector<1x16x32xbf16> to vector<16x32xbf16>
    %cst_20 = arith.constant dense<0.000000e+00> : vector<16x72xf32>
    %21 = tpu.matmul %20, %18, %cst_20 {dimension_numbers = #tpu.dot_dimension_numbers<[1], [0], [0], [1], [0, 0, 1, 1], [], []>} : vector<16x32xbf16>, vector<32x72xbf16>, vector<16x72xf32> -> vector<16x72xf32>
    %22 = arith.addf %16, %21 : vector<16x72xf32>
    %23 = vector.shape_cast %22 : vector<16x72xf32> to vector<1x16x72xf32>
    %24 = tpu.iota {dimensions = array<i32: 2>} : vector<1x1x72xi32>
    %c9_i32 = arith.constant 9 : i32
    %c0_i32 = arith.constant 0 : i32
    %25 = arith.cmpi eq, %c9_i32, %c0_i32 : i32
    %c1_i32 = arith.constant 1 : i32
    %26 = arith.select %25, %c1_i32, %c9_i32 : i32
    %27 = vector.broadcast %26 : i32 to vector<1x1x72xi32>
    %28 = arith.remsi %24, %27 : vector<1x1x72xi32>
    %c0_i32_21 = arith.constant 0 : i32
    %29 = vector.broadcast %c0_i32_21 : i32 to vector<1x1x72xi32>
    %30 = arith.cmpi ne, %28, %29 : vector<1x1x72xi32>
    %c0_i32_22 = arith.constant 0 : i32
    %31 = vector.broadcast %c0_i32_22 : i32 to vector<1x1x72xi32>
    %32 = arith.cmpi slt, %28, %31 : vector<1x1x72xi32>
    %c0_i32_23 = arith.constant 0 : i32
    %33 = arith.cmpi slt, %26, %c0_i32_23 : i32
    %34 = vector.broadcast %33 : i1 to vector<1x1x72xi1>
    %35 = vector.broadcast %34 : vector<1x1x72xi1> to vector<1x1x72xi1>
    %36 = arith.xori %32, %35 : vector<1x1x72xi1>
    %37 = arith.andi %36, %30 : vector<1x1x72xi1>
    %38 = vector.broadcast %26 : i32 to vector<1x1x72xi32>
    %39 = arith.addi %28, %38 : vector<1x1x72xi32>
    %40 = arith.select %37, %39, %28 : vector<1x1x72xi1>, vector<1x1x72xi32>
    %c8_i32 = arith.constant 8 : i32
    %41 = vector.broadcast %c8_i32 : i32 to vector<1x1x72xi32>
    %42 = arith.cmpi slt, %40, %41 : vector<1x1x72xi32>
    %43 = arith.extui %42 : vector<1x1x72xi1> to vector<1x1x72xi32>
    %44 = arith.sitofp %43 : vector<1x1x72xi32> to vector<1x1x72xf32>
    %45 = vector.broadcast %44 : vector<1x1x72xf32> to vector<1x16x72xf32>
    %46 = arith.mulf %23, %45 : vector<1x16x72xf32>
    %cst_24 = arith.constant dense<0.000000e+00> : vector<1x16xf32>
    %47 = vector.multi_reduction <add>, %46, %cst_24 [2] : vector<1x16x72xf32> to vector<1x16xf32>
    %48 = vector.shape_cast %47 : vector<1x16xf32> to vector<1x16x1xf32>
    %cst_25 = arith.constant dense<0.000000e+00> : vector<16x1xf32>
    %49 = vector.multi_reduction <add>, %48, %cst_25 [0] : vector<1x16x1xf32> to vector<16x1xf32>
    %50 = vector.shape_cast %49 : vector<16x1xf32> to vector<1x16x1xf32>
    %cst_26 = arith.constant 1.562500e-02 : f32
    %51 = vector.broadcast %cst_26 : f32 to vector<1x16x1xf32>
    %52 = arith.mulf %50, %51 : vector<1x16x1xf32>
    %53 = vector.broadcast %52 : vector<1x16x1xf32> to vector<1x16x72xf32>
    %54 = arith.subf %23, %53 : vector<1x16x72xf32>
    %55 = arith.mulf %54, %54 : vector<1x16x72xf32>
    %56 = vector.broadcast %44 : vector<1x1x72xf32> to vector<1x16x72xf32>
    %57 = arith.mulf %55, %56 : vector<1x16x72xf32>
    %cst_27 = arith.constant dense<0.000000e+00> : vector<1x16xf32>
    %58 = vector.multi_reduction <add>, %57, %cst_27 [2] : vector<1x16x72xf32> to vector<1x16xf32>
    %59 = vector.shape_cast %58 : vector<1x16xf32> to vector<1x16x1xf32>
    %cst_28 = arith.constant dense<0.000000e+00> : vector<16x1xf32>
    %60 = vector.multi_reduction <add>, %59, %cst_28 [0] : vector<1x16x1xf32> to vector<16x1xf32>
    %61 = vector.shape_cast %60 : vector<16x1xf32> to vector<1x16x1xf32>
    %cst_29 = arith.constant 1.562500e-02 : f32
    %62 = vector.broadcast %cst_29 : f32 to vector<1x16x1xf32>
    %63 = arith.mulf %61, %62 : vector<1x16x1xf32>
    %cst_30 = arith.constant 9.99999974E-6 : f32
    %64 = vector.broadcast %cst_30 : f32 to vector<1x16x1xf32>
    %65 = arith.addf %63, %64 : vector<1x16x1xf32>
    %66 = math.rsqrt %65 : vector<1x16x1xf32>
    %67 = vector.broadcast %66 : vector<1x16x1xf32> to vector<1x16x72xf32>
    %68 = arith.mulf %54, %67 : vector<1x16x72xf32>
    %69 = vector.shape_cast %68 : vector<1x16x72xf32> to vector<16x72xf32>
    %cst_31 = arith.constant 0.000000e+00 : f32
    %70 = vector.broadcast %cst_31 : f32 to vector<16x72xf32>
    %71 = arith.maximumf %69, %70 : vector<16x72xf32>
    %72 = arith.truncf %71 : vector<16x72xf32> to vector<16x72xbf16>
    %c0_32 = arith.constant 0 : index
    %c0_33 = arith.constant 0 : index
    %c0_34 = arith.constant 0 : index
    %73 = vector.load %arg3[%c0_32, %c0_33, %c0_34] : memref<1x16x72xbf16, #tpu.memory_space<vmem>>, vector<1x16x72xbf16>
    %74 = vector.shape_cast %73 : vector<1x16x72xbf16> to vector<16x72xbf16>
    %75 = vector.shape_cast %72 : vector<16x72xbf16> to vector<1x16x72xbf16>
    tpu.vector_store %arg3[%c0_32, %c0_33, %c0_34], %75 {strides = array<i32>} : memref<1x16x72xbf16, #tpu.memory_space<vmem>>, vector<1x16x72xbf16>,
    return
  }
  func.func @transform_0(%arg0: i32) -> (i32, i32, i32) {
    %c0_i32 = arith.constant 0 : i32
    %c0_i32_0 = arith.constant 0 : i32
    %c0_i32_1 = arith.constant 0 : i32
    return %arg0, %c0_i32, %c0_i32_0 : i32, i32, i32
  }
  func.func @transform_1(%arg0: i32) -> (i32, i32, i32) {
    %c0_i32 = arith.constant 0 : i32
    %c0_i32_0 = arith.constant 0 : i32
    %c0_i32_1 = arith.constant 0 : i32
    %c0_i32_2 = arith.constant 0 : i32
    return %c0_i32, %c0_i32_0, %c0_i32_1 : i32, i32, i32
  }
  func.func @transform_2(%arg0: i32) -> (i32, i32, i32) {
    %c0_i32 = arith.constant 0 : i32
    %c0_i32_0 = arith.constant 0 : i32
    %c0_i32_1 = arith.constant 0 : i32
    return %arg0, %c0_i32, %c0_i32_0 : i32, i32, i32
  }
}

module attributes {stable_mosaic.version = 11 : i64} {
  func.func @_tapconv_kernel(%arg0: i32, %arg1: memref<1x64x30xbf16, #tpu.memory_space<vmem>>, %arg2: memref<4x32x64xbf16, #tpu.memory_space<vmem>>, %arg3: memref<1x32x20xbf16, #tpu.memory_space<vmem>>) attributes {dimension_semantics = [#tpu.dimension_semantics<parallel>], iteration_bounds = array<i64: 2>, scalar_prefetch = 0 : i64, scratch_operands = 0 : i64, tpu.core_type = #tpu.core_type<tc>, window_params = [{transform_indices = @transform_0, window_bounds = array<i64: 1, 64, 30>}, {pipeline_mode = #tpu.pipeline_mode<synchronous>, transform_indices = @transform_1, window_bounds = array<i64: 4, 32, 64>}, {transform_indices = @transform_2, window_bounds = array<i64: 1, 32, 20>}]} {
    %c0 = arith.constant 0 : index
    %c0_0 = arith.constant 0 : index
    %c0_1 = arith.constant 0 : index
    %0 = vector.load %arg1[%c0, %c0_0, %c0_1] : memref<1x64x30xbf16, #tpu.memory_space<vmem>>, vector<1x64x20xbf16>
    %1 = vector.shape_cast %0 : vector<1x64x20xbf16> to vector<64x20xbf16>
    %c0_2 = arith.constant 0 : index
    %c0_3 = arith.constant 0 : index
    %c0_4 = arith.constant 0 : index
    %2 = vector.load %arg2[%c0_2, %c0_3, %c0_4] : memref<4x32x64xbf16, #tpu.memory_space<vmem>>, vector<1x32x64xbf16>
    %3 = vector.shape_cast %2 : vector<1x32x64xbf16> to vector<32x64xbf16>
    %cst = arith.constant dense<0.000000e+00> : vector<32x20xf32>
    %4 = tpu.matmul %3, %1, %cst {dimension_numbers = #tpu.dot_dimension_numbers<[1], [0], [0], [1], [0, 0, 1, 1], [], []>} : vector<32x64xbf16>, vector<64x20xbf16>, vector<32x20xf32> -> vector<32x20xf32>
    %c0_5 = arith.constant 0 : index
    %c0_6 = arith.constant 0 : index
    %c1 = arith.constant 1 : index
    %5 = vector.load %arg1[%c0_5, %c0_6, %c1] : memref<1x64x30xbf16, #tpu.memory_space<vmem>>, vector<1x64x20xbf16>
    %6 = vector.shape_cast %5 : vector<1x64x20xbf16> to vector<64x20xbf16>
    %c1_7 = arith.constant 1 : index
    %c0_8 = arith.constant 0 : index
    %c0_9 = arith.constant 0 : index
    %7 = vector.load %arg2[%c1_7, %c0_8, %c0_9] : memref<4x32x64xbf16, #tpu.memory_space<vmem>>, vector<1x32x64xbf16>
    %8 = vector.shape_cast %7 : vector<1x32x64xbf16> to vector<32x64xbf16>
    %cst_10 = arith.constant dense<0.000000e+00> : vector<32x20xf32>
    %9 = tpu.matmul %8, %6, %cst_10 {dimension_numbers = #tpu.dot_dimension_numbers<[1], [0], [0], [1], [0, 0, 1, 1], [], []>} : vector<32x64xbf16>, vector<64x20xbf16>, vector<32x20xf32> -> vector<32x20xf32>
    %10 = arith.addf %4, %9 : vector<32x20xf32>
    %c0_11 = arith.constant 0 : index
    %c0_12 = arith.constant 0 : index
    %c5 = arith.constant 5 : index
    %11 = vector.load %arg1[%c0_11, %c0_12, %c5] : memref<1x64x30xbf16, #tpu.memory_space<vmem>>, vector<1x64x20xbf16>
    %12 = vector.shape_cast %11 : vector<1x64x20xbf16> to vector<64x20xbf16>
    %c2 = arith.constant 2 : index
    %c0_13 = arith.constant 0 : index
    %c0_14 = arith.constant 0 : index
    %13 = vector.load %arg2[%c2, %c0_13, %c0_14] : memref<4x32x64xbf16, #tpu.memory_space<vmem>>, vector<1x32x64xbf16>
    %14 = vector.shape_cast %13 : vector<1x32x64xbf16> to vector<32x64xbf16>
    %cst_15 = arith.constant dense<0.000000e+00> : vector<32x20xf32>
    %15 = tpu.matmul %14, %12, %cst_15 {dimension_numbers = #tpu.dot_dimension_numbers<[1], [0], [0], [1], [0, 0, 1, 1], [], []>} : vector<32x64xbf16>, vector<64x20xbf16>, vector<32x20xf32> -> vector<32x20xf32>
    %16 = arith.addf %10, %15 : vector<32x20xf32>
    %c0_16 = arith.constant 0 : index
    %c0_17 = arith.constant 0 : index
    %c6 = arith.constant 6 : index
    %17 = vector.load %arg1[%c0_16, %c0_17, %c6] : memref<1x64x30xbf16, #tpu.memory_space<vmem>>, vector<1x64x20xbf16>
    %18 = vector.shape_cast %17 : vector<1x64x20xbf16> to vector<64x20xbf16>
    %c3 = arith.constant 3 : index
    %c0_18 = arith.constant 0 : index
    %c0_19 = arith.constant 0 : index
    %19 = vector.load %arg2[%c3, %c0_18, %c0_19] : memref<4x32x64xbf16, #tpu.memory_space<vmem>>, vector<1x32x64xbf16>
    %20 = vector.shape_cast %19 : vector<1x32x64xbf16> to vector<32x64xbf16>
    %cst_20 = arith.constant dense<0.000000e+00> : vector<32x20xf32>
    %21 = tpu.matmul %20, %18, %cst_20 {dimension_numbers = #tpu.dot_dimension_numbers<[1], [0], [0], [1], [0, 0, 1, 1], [], []>} : vector<32x64xbf16>, vector<64x20xbf16>, vector<32x20xf32> -> vector<32x20xf32>
    %22 = arith.addf %16, %21 : vector<32x20xf32>
    %23 = vector.shape_cast %22 : vector<32x20xf32> to vector<1x32x20xf32>
    %24 = tpu.iota {dimensions = array<i32: 2>} : vector<1x1x20xi32>
    %c5_i32 = arith.constant 5 : i32
    %c0_i32 = arith.constant 0 : i32
    %25 = arith.cmpi eq, %c5_i32, %c0_i32 : i32
    %c1_i32 = arith.constant 1 : i32
    %26 = arith.select %25, %c1_i32, %c5_i32 : i32
    %27 = vector.broadcast %26 : i32 to vector<1x1x20xi32>
    %28 = arith.remsi %24, %27 : vector<1x1x20xi32>
    %c0_i32_21 = arith.constant 0 : i32
    %29 = vector.broadcast %c0_i32_21 : i32 to vector<1x1x20xi32>
    %30 = arith.cmpi ne, %28, %29 : vector<1x1x20xi32>
    %c0_i32_22 = arith.constant 0 : i32
    %31 = vector.broadcast %c0_i32_22 : i32 to vector<1x1x20xi32>
    %32 = arith.cmpi slt, %28, %31 : vector<1x1x20xi32>
    %c0_i32_23 = arith.constant 0 : i32
    %33 = arith.cmpi slt, %26, %c0_i32_23 : i32
    %34 = vector.broadcast %33 : i1 to vector<1x1x20xi1>
    %35 = vector.broadcast %34 : vector<1x1x20xi1> to vector<1x1x20xi1>
    %36 = arith.xori %32, %35 : vector<1x1x20xi1>
    %37 = arith.andi %36, %30 : vector<1x1x20xi1>
    %38 = vector.broadcast %26 : i32 to vector<1x1x20xi32>
    %39 = arith.addi %28, %38 : vector<1x1x20xi32>
    %40 = arith.select %37, %39, %28 : vector<1x1x20xi1>, vector<1x1x20xi32>
    %c4_i32 = arith.constant 4 : i32
    %41 = vector.broadcast %c4_i32 : i32 to vector<1x1x20xi32>
    %42 = arith.cmpi slt, %40, %41 : vector<1x1x20xi32>
    %43 = arith.extui %42 : vector<1x1x20xi1> to vector<1x1x20xi32>
    %44 = arith.sitofp %43 : vector<1x1x20xi32> to vector<1x1x20xf32>
    %45 = vector.broadcast %44 : vector<1x1x20xf32> to vector<1x32x20xf32>
    %46 = arith.mulf %23, %45 : vector<1x32x20xf32>
    %cst_24 = arith.constant dense<0.000000e+00> : vector<1x32xf32>
    %47 = vector.multi_reduction <add>, %46, %cst_24 [2] : vector<1x32x20xf32> to vector<1x32xf32>
    %48 = vector.shape_cast %47 : vector<1x32xf32> to vector<1x32x1xf32>
    %cst_25 = arith.constant dense<0.000000e+00> : vector<32x1xf32>
    %49 = vector.multi_reduction <add>, %48, %cst_25 [0] : vector<1x32x1xf32> to vector<32x1xf32>
    %50 = vector.shape_cast %49 : vector<32x1xf32> to vector<1x32x1xf32>
    %cst_26 = arith.constant 6.250000e-02 : f32
    %51 = vector.broadcast %cst_26 : f32 to vector<1x32x1xf32>
    %52 = arith.mulf %50, %51 : vector<1x32x1xf32>
    %53 = vector.broadcast %52 : vector<1x32x1xf32> to vector<1x32x20xf32>
    %54 = arith.subf %23, %53 : vector<1x32x20xf32>
    %55 = arith.mulf %54, %54 : vector<1x32x20xf32>
    %56 = vector.broadcast %44 : vector<1x1x20xf32> to vector<1x32x20xf32>
    %57 = arith.mulf %55, %56 : vector<1x32x20xf32>
    %cst_27 = arith.constant dense<0.000000e+00> : vector<1x32xf32>
    %58 = vector.multi_reduction <add>, %57, %cst_27 [2] : vector<1x32x20xf32> to vector<1x32xf32>
    %59 = vector.shape_cast %58 : vector<1x32xf32> to vector<1x32x1xf32>
    %cst_28 = arith.constant dense<0.000000e+00> : vector<32x1xf32>
    %60 = vector.multi_reduction <add>, %59, %cst_28 [0] : vector<1x32x1xf32> to vector<32x1xf32>
    %61 = vector.shape_cast %60 : vector<32x1xf32> to vector<1x32x1xf32>
    %cst_29 = arith.constant 6.250000e-02 : f32
    %62 = vector.broadcast %cst_29 : f32 to vector<1x32x1xf32>
    %63 = arith.mulf %61, %62 : vector<1x32x1xf32>
    %cst_30 = arith.constant 9.99999974E-6 : f32
    %64 = vector.broadcast %cst_30 : f32 to vector<1x32x1xf32>
    %65 = arith.addf %63, %64 : vector<1x32x1xf32>
    %66 = math.rsqrt %65 : vector<1x32x1xf32>
    %67 = vector.broadcast %66 : vector<1x32x1xf32> to vector<1x32x20xf32>
    %68 = arith.mulf %54, %67 : vector<1x32x20xf32>
    %69 = vector.shape_cast %68 : vector<1x32x20xf32> to vector<32x20xf32>
    %cst_31 = arith.constant 0.000000e+00 : f32
    %70 = vector.broadcast %cst_31 : f32 to vector<32x20xf32>
    %71 = arith.maximumf %69, %70 : vector<32x20xf32>
    %72 = arith.truncf %71 : vector<32x20xf32> to vector<32x20xbf16>
    %c0_32 = arith.constant 0 : index
    %c0_33 = arith.constant 0 : index
    %c0_34 = arith.constant 0 : index
    %73 = vector.load %arg3[%c0_32, %c0_33, %c0_34] : memref<1x32x20xbf16, #tpu.memory_space<vmem>>, vector<1x32x20xbf16>
    %74 = vector.shape_cast %73 : vector<1x32x20xbf16> to vector<32x20xbf16>
    %75 = vector.shape_cast %72 : vector<32x20xbf16> to vector<1x32x20xbf16>
    tpu.vector_store %arg3[%c0_32, %c0_33, %c0_34], %75 {strides = array<i32>} : memref<1x32x20xbf16, #tpu.memory_space<vmem>>, vector<1x32x20xbf16>,
    return
  }
  func.func @transform_0(%arg0: i32) -> (i32, i32, i32) {
    %c0_i32 = arith.constant 0 : i32
    %c0_i32_0 = arith.constant 0 : i32
    %c0_i32_1 = arith.constant 0 : i32
    return %arg0, %c0_i32, %c0_i32_0 : i32, i32, i32
  }
  func.func @transform_1(%arg0: i32) -> (i32, i32, i32) {
    %c0_i32 = arith.constant 0 : i32
    %c0_i32_0 = arith.constant 0 : i32
    %c0_i32_1 = arith.constant 0 : i32
    %c0_i32_2 = arith.constant 0 : i32
    return %c0_i32, %c0_i32_0, %c0_i32_1 : i32, i32, i32
  }
  func.func @transform_2(%arg0: i32) -> (i32, i32, i32) {
    %c0_i32 = arith.constant 0 : i32
    %c0_i32_0 = arith.constant 0 : i32
    %c0_i32_1 = arith.constant 0 : i32
    return %arg0, %c0_i32, %c0_i32_0 : i32, i32, i32
  }
}

module attributes {stable_mosaic.version = 11 : i64} {
  func.func @_resblock_kernel(%arg0: i32, %arg1: memref<1x32x42xbf16, #tpu.memory_space<vmem>>, %arg2: memref<9x32x32xbf16, #tpu.memory_space<vmem>>, %arg3: memref<9x32x32xbf16, #tpu.memory_space<vmem>>, %arg4: memref<1x32x24xbf16, #tpu.memory_space<vmem>>) attributes {dimension_semantics = [#tpu.dimension_semantics<parallel>], iteration_bounds = array<i64: 2>, scalar_prefetch = 0 : i64, scratch_operands = 0 : i64, tpu.core_type = #tpu.core_type<tc>, window_params = [{transform_indices = @transform_0, window_bounds = array<i64: 1, 32, 42>}, {pipeline_mode = #tpu.pipeline_mode<synchronous>, transform_indices = @transform_1, window_bounds = array<i64: 9, 32, 32>}, {pipeline_mode = #tpu.pipeline_mode<synchronous>, transform_indices = @transform_2, window_bounds = array<i64: 9, 32, 32>}, {transform_indices = @transform_3, window_bounds = array<i64: 1, 32, 24>}]} {
    %0 = tpu.iota {dimensions = array<i32: 1>} : vector<1x24xi32>
    %c6_i32 = arith.constant 6 : i32
    %c0_i32 = arith.constant 0 : i32
    %1 = arith.cmpi eq, %c6_i32, %c0_i32 : i32
    %c1_i32 = arith.constant 1 : i32
    %2 = arith.select %1, %c1_i32, %c6_i32 : i32
    %3 = vector.broadcast %2 : i32 to vector<1x24xi32>
    %4 = arith.remsi %0, %3 : vector<1x24xi32>
    %c0_i32_0 = arith.constant 0 : i32
    %5 = vector.broadcast %c0_i32_0 : i32 to vector<1x24xi32>
    %6 = arith.cmpi ne, %4, %5 : vector<1x24xi32>
    %c0_i32_1 = arith.constant 0 : i32
    %7 = vector.broadcast %c0_i32_1 : i32 to vector<1x24xi32>
    %8 = arith.cmpi slt, %4, %7 : vector<1x24xi32>
    %c0_i32_2 = arith.constant 0 : i32
    %9 = arith.cmpi slt, %2, %c0_i32_2 : i32
    %10 = vector.broadcast %9 : i1 to vector<1x24xi1>
    %11 = vector.broadcast %10 : vector<1x24xi1> to vector<1x24xi1>
    %12 = arith.xori %8, %11 : vector<1x24xi1>
    %13 = arith.andi %12, %6 : vector<1x24xi1>
    %14 = vector.broadcast %2 : i32 to vector<1x24xi32>
    %15 = arith.addi %4, %14 : vector<1x24xi32>
    %16 = arith.select %13, %15, %4 : vector<1x24xi1>, vector<1x24xi32>
    %c4_i32 = arith.constant 4 : i32
    %17 = vector.broadcast %c4_i32 : i32 to vector<1x24xi32>
    %18 = arith.cmpi slt, %16, %17 : vector<1x24xi32>
    %19 = arith.extui %18 : vector<1x24xi1> to vector<1x24xi32>
    %20 = arith.sitofp %19 : vector<1x24xi32> to vector<1x24xf32>
    %c0 = arith.constant 0 : index
    %c0_3 = arith.constant 0 : index
    %c0_4 = arith.constant 0 : index
    %21 = vector.load %arg1[%c0, %c0_3, %c0_4] : memref<1x32x42xbf16, #tpu.memory_space<vmem>>, vector<1x32x24xbf16>
    %22 = vector.shape_cast %21 : vector<1x32x24xbf16> to vector<32x24xbf16>
    %c0_5 = arith.constant 0 : index
    %c0_6 = arith.constant 0 : index
    %c0_7 = arith.constant 0 : index
    %23 = vector.load %arg2[%c0_5, %c0_6, %c0_7] : memref<9x32x32xbf16, #tpu.memory_space<vmem>>, vector<1x32x32xbf16>
    %24 = vector.shape_cast %23 : vector<1x32x32xbf16> to vector<32x32xbf16>
    %cst = arith.constant dense<0.000000e+00> : vector<32x24xf32>
    %25 = tpu.matmul %24, %22, %cst {dimension_numbers = #tpu.dot_dimension_numbers<[1], [0], [0], [1], [0, 0, 1, 1], [], []>} : vector<32x32xbf16>, vector<32x24xbf16>, vector<32x24xf32> -> vector<32x24xf32>
    %c0_8 = arith.constant 0 : index
    %c0_9 = arith.constant 0 : index
    %c1 = arith.constant 1 : index
    %26 = vector.load %arg1[%c0_8, %c0_9, %c1] : memref<1x32x42xbf16, #tpu.memory_space<vmem>>, vector<1x32x24xbf16>
    %27 = vector.shape_cast %26 : vector<1x32x24xbf16> to vector<32x24xbf16>
    %c1_10 = arith.constant 1 : index
    %c0_11 = arith.constant 0 : index
    %c0_12 = arith.constant 0 : index
    %28 = vector.load %arg2[%c1_10, %c0_11, %c0_12] : memref<9x32x32xbf16, #tpu.memory_space<vmem>>, vector<1x32x32xbf16>
    %29 = vector.shape_cast %28 : vector<1x32x32xbf16> to vector<32x32xbf16>
    %cst_13 = arith.constant dense<0.000000e+00> : vector<32x24xf32>
    %30 = tpu.matmul %29, %27, %cst_13 {dimension_numbers = #tpu.dot_dimension_numbers<[1], [0], [0], [1], [0, 0, 1, 1], [], []>} : vector<32x32xbf16>, vector<32x24xbf16>, vector<32x24xf32> -> vector<32x24xf32>
    %31 = arith.addf %25, %30 : vector<32x24xf32>
    %c0_14 = arith.constant 0 : index
    %c0_15 = arith.constant 0 : index
    %c2 = arith.constant 2 : index
    %32 = vector.load %arg1[%c0_14, %c0_15, %c2] : memref<1x32x42xbf16, #tpu.memory_space<vmem>>, vector<1x32x24xbf16>
    %33 = vector.shape_cast %32 : vector<1x32x24xbf16> to vector<32x24xbf16>
    %c2_16 = arith.constant 2 : index
    %c0_17 = arith.constant 0 : index
    %c0_18 = arith.constant 0 : index
    %34 = vector.load %arg2[%c2_16, %c0_17, %c0_18] : memref<9x32x32xbf16, #tpu.memory_space<vmem>>, vector<1x32x32xbf16>
    %35 = vector.shape_cast %34 : vector<1x32x32xbf16> to vector<32x32xbf16>
    %cst_19 = arith.constant dense<0.000000e+00> : vector<32x24xf32>
    %36 = tpu.matmul %35, %33, %cst_19 {dimension_numbers = #tpu.dot_dimension_numbers<[1], [0], [0], [1], [0, 0, 1, 1], [], []>} : vector<32x32xbf16>, vector<32x24xbf16>, vector<32x24xf32> -> vector<32x24xf32>
    %37 = arith.addf %31, %36 : vector<32x24xf32>
    %c0_20 = arith.constant 0 : index
    %c0_21 = arith.constant 0 : index
    %c6 = arith.constant 6 : index
    %38 = vector.load %arg1[%c0_20, %c0_21, %c6] : memref<1x32x42xbf16, #tpu.memory_space<vmem>>, vector<1x32x24xbf16>
    %39 = vector.shape_cast %38 : vector<1x32x24xbf16> to vector<32x24xbf16>
    %c3 = arith.constant 3 : index
    %c0_22 = arith.constant 0 : index
    %c0_23 = arith.constant 0 : index
    %40 = vector.load %arg2[%c3, %c0_22, %c0_23] : memref<9x32x32xbf16, #tpu.memory_space<vmem>>, vector<1x32x32xbf16>
    %41 = vector.shape_cast %40 : vector<1x32x32xbf16> to vector<32x32xbf16>
    %cst_24 = arith.constant dense<0.000000e+00> : vector<32x24xf32>
    %42 = tpu.matmul %41, %39, %cst_24 {dimension_numbers = #tpu.dot_dimension_numbers<[1], [0], [0], [1], [0, 0, 1, 1], [], []>} : vector<32x32xbf16>, vector<32x24xbf16>, vector<32x24xf32> -> vector<32x24xf32>
    %43 = arith.addf %37, %42 : vector<32x24xf32>
    %c0_25 = arith.constant 0 : index
    %c0_26 = arith.constant 0 : index
    %c7 = arith.constant 7 : index
    %44 = vector.load %arg1[%c0_25, %c0_26, %c7] : memref<1x32x42xbf16, #tpu.memory_space<vmem>>, vector<1x32x24xbf16>
    %45 = vector.shape_cast %44 : vector<1x32x24xbf16> to vector<32x24xbf16>
    %c4 = arith.constant 4 : index
    %c0_27 = arith.constant 0 : index
    %c0_28 = arith.constant 0 : index
    %46 = vector.load %arg2[%c4, %c0_27, %c0_28] : memref<9x32x32xbf16, #tpu.memory_space<vmem>>, vector<1x32x32xbf16>
    %47 = vector.shape_cast %46 : vector<1x32x32xbf16> to vector<32x32xbf16>
    %cst_29 = arith.constant dense<0.000000e+00> : vector<32x24xf32>
    %48 = tpu.matmul %47, %45, %cst_29 {dimension_numbers = #tpu.dot_dimension_numbers<[1], [0], [0], [1], [0, 0, 1, 1], [], []>} : vector<32x32xbf16>, vector<32x24xbf16>, vector<32x24xf32> -> vector<32x24xf32>
    %49 = arith.addf %43, %48 : vector<32x24xf32>
    %c0_30 = arith.constant 0 : index
    %c0_31 = arith.constant 0 : index
    %c8 = arith.constant 8 : index
    %50 = vector.load %arg1[%c0_30, %c0_31, %c8] : memref<1x32x42xbf16, #tpu.memory_space<vmem>>, vector<1x32x24xbf16>
    %51 = vector.shape_cast %50 : vector<1x32x24xbf16> to vector<32x24xbf16>
    %c5 = arith.constant 5 : index
    %c0_32 = arith.constant 0 : index
    %c0_33 = arith.constant 0 : index
    %52 = vector.load %arg2[%c5, %c0_32, %c0_33] : memref<9x32x32xbf16, #tpu.memory_space<vmem>>, vector<1x32x32xbf16>
    %53 = vector.shape_cast %52 : vector<1x32x32xbf16> to vector<32x32xbf16>
    %cst_34 = arith.constant dense<0.000000e+00> : vector<32x24xf32>
    %54 = tpu.matmul %53, %51, %cst_34 {dimension_numbers = #tpu.dot_dimension_numbers<[1], [0], [0], [1], [0, 0, 1, 1], [], []>} : vector<32x32xbf16>, vector<32x24xbf16>, vector<32x24xf32> -> vector<32x24xf32>
    %55 = arith.addf %49, %54 : vector<32x24xf32>
    %c0_35 = arith.constant 0 : index
    %c0_36 = arith.constant 0 : index
    %c12 = arith.constant 12 : index
    %56 = vector.load %arg1[%c0_35, %c0_36, %c12] : memref<1x32x42xbf16, #tpu.memory_space<vmem>>, vector<1x32x24xbf16>
    %57 = vector.shape_cast %56 : vector<1x32x24xbf16> to vector<32x24xbf16>
    %c6_37 = arith.constant 6 : index
    %c0_38 = arith.constant 0 : index
    %c0_39 = arith.constant 0 : index
    %58 = vector.load %arg2[%c6_37, %c0_38, %c0_39] : memref<9x32x32xbf16, #tpu.memory_space<vmem>>, vector<1x32x32xbf16>
    %59 = vector.shape_cast %58 : vector<1x32x32xbf16> to vector<32x32xbf16>
    %cst_40 = arith.constant dense<0.000000e+00> : vector<32x24xf32>
    %60 = tpu.matmul %59, %57, %cst_40 {dimension_numbers = #tpu.dot_dimension_numbers<[1], [0], [0], [1], [0, 0, 1, 1], [], []>} : vector<32x32xbf16>, vector<32x24xbf16>, vector<32x24xf32> -> vector<32x24xf32>
    %61 = arith.addf %55, %60 : vector<32x24xf32>
    %c0_41 = arith.constant 0 : index
    %c0_42 = arith.constant 0 : index
    %c13 = arith.constant 13 : index
    %62 = vector.load %arg1[%c0_41, %c0_42, %c13] : memref<1x32x42xbf16, #tpu.memory_space<vmem>>, vector<1x32x24xbf16>
    %63 = vector.shape_cast %62 : vector<1x32x24xbf16> to vector<32x24xbf16>
    %c7_43 = arith.constant 7 : index
    %c0_44 = arith.constant 0 : index
    %c0_45 = arith.constant 0 : index
    %64 = vector.load %arg2[%c7_43, %c0_44, %c0_45] : memref<9x32x32xbf16, #tpu.memory_space<vmem>>, vector<1x32x32xbf16>
    %65 = vector.shape_cast %64 : vector<1x32x32xbf16> to vector<32x32xbf16>
    %cst_46 = arith.constant dense<0.000000e+00> : vector<32x24xf32>
    %66 = tpu.matmul %65, %63, %cst_46 {dimension_numbers = #tpu.dot_dimension_numbers<[1], [0], [0], [1], [0, 0, 1, 1], [], []>} : vector<32x32xbf16>, vector<32x24xbf16>, vector<32x24xf32> -> vector<32x24xf32>
    %67 = arith.addf %61, %66 : vector<32x24xf32>
    %c0_47 = arith.constant 0 : index
    %c0_48 = arith.constant 0 : index
    %c14 = arith.constant 14 : index
    %68 = vector.load %arg1[%c0_47, %c0_48, %c14] : memref<1x32x42xbf16, #tpu.memory_space<vmem>>, vector<1x32x24xbf16>
    %69 = vector.shape_cast %68 : vector<1x32x24xbf16> to vector<32x24xbf16>
    %c8_49 = arith.constant 8 : index
    %c0_50 = arith.constant 0 : index
    %c0_51 = arith.constant 0 : index
    %70 = vector.load %arg2[%c8_49, %c0_50, %c0_51] : memref<9x32x32xbf16, #tpu.memory_space<vmem>>, vector<1x32x32xbf16>
    %71 = vector.shape_cast %70 : vector<1x32x32xbf16> to vector<32x32xbf16>
    %cst_52 = arith.constant dense<0.000000e+00> : vector<32x24xf32>
    %72 = tpu.matmul %71, %69, %cst_52 {dimension_numbers = #tpu.dot_dimension_numbers<[1], [0], [0], [1], [0, 0, 1, 1], [], []>} : vector<32x32xbf16>, vector<32x24xbf16>, vector<32x24xf32> -> vector<32x24xf32>
    %73 = arith.addf %67, %72 : vector<32x24xf32>
    %74 = vector.broadcast %20 : vector<1x24xf32> to vector<32x24xf32>
    %75 = arith.mulf %73, %74 : vector<32x24xf32>
    %cst_53 = arith.constant dense<0.000000e+00> : vector<32xf32>
    %76 = vector.multi_reduction <add>, %75, %cst_53 [1] : vector<32x24xf32> to vector<32xf32>
    %77 = vector.shape_cast %76 : vector<32xf32> to vector<32x1xf32>
    %cst_54 = arith.constant 6.250000e-02 : f32
    %78 = vector.broadcast %cst_54 : f32 to vector<32x1xf32>
    %79 = arith.mulf %77, %78 : vector<32x1xf32>
    %80 = vector.broadcast %79 : vector<32x1xf32> to vector<32x24xf32>
    %81 = arith.subf %73, %80 : vector<32x24xf32>
    %82 = arith.mulf %81, %81 : vector<32x24xf32>
    %83 = vector.broadcast %20 : vector<1x24xf32> to vector<32x24xf32>
    %84 = arith.mulf %82, %83 : vector<32x24xf32>
    %cst_55 = arith.constant dense<0.000000e+00> : vector<32xf32>
    %85 = vector.multi_reduction <add>, %84, %cst_55 [1] : vector<32x24xf32> to vector<32xf32>
    %86 = vector.shape_cast %85 : vector<32xf32> to vector<32x1xf32>
    %cst_56 = arith.constant 6.250000e-02 : f32
    %87 = vector.broadcast %cst_56 : f32 to vector<32x1xf32>
    %88 = arith.mulf %86, %87 : vector<32x1xf32>
    %cst_57 = arith.constant 9.99999974E-6 : f32
    %89 = vector.broadcast %cst_57 : f32 to vector<32x1xf32>
    %90 = arith.addf %88, %89 : vector<32x1xf32>
    %91 = math.rsqrt %90 : vector<32x1xf32>
    %92 = vector.broadcast %91 : vector<32x1xf32> to vector<32x24xf32>
    %93 = arith.mulf %81, %92 : vector<32x24xf32>
    %cst_58 = arith.constant 0.000000e+00 : f32
    %94 = vector.broadcast %cst_58 : f32 to vector<32x24xf32>
    %95 = arith.maximumf %93, %94 : vector<32x24xf32>
    %96 = arith.truncf %95 : vector<32x24xf32> to vector<32x24xbf16>
    %c0_i32_59 = arith.constant 0 : i32
    %97 = vector.broadcast %c0_i32_59 : i32 to vector<1x24xi32>
    %98 = arith.cmpi eq, %16, %97 : vector<1x24xi32>
    %99 = vector.extract_strided_slice %96 {offsets = [0, 1], sizes = [32, 23], strides = [1, 1]} : vector<32x24xbf16> to vector<32x23xbf16>
    %100 = vector.extract_strided_slice %96 {offsets = [0, 23], sizes = [32, 1], strides = [1, 1]} : vector<32x24xbf16> to vector<32x1xbf16>
    %101 = tpu.concatenate %99, %100 in 1 : vector<32x23xbf16>, vector<32x1xbf16> -> vector<32x24xbf16>
    %c5_i32 = arith.constant 5 : i32
    %102 = vector.broadcast %c5_i32 : i32 to vector<1x24xi32>
    %103 = arith.cmpi eq, %16, %102 : vector<1x24xi32>
    %104 = vector.extract_strided_slice %96 {offsets = [0, 0], sizes = [32, 3], strides = [1, 1]} : vector<32x24xbf16> to vector<32x3xbf16>
    %105 = vector.extract_strided_slice %96 {offsets = [0, 0], sizes = [32, 21], strides = [1, 1]} : vector<32x24xbf16> to vector<32x21xbf16>
    %106 = tpu.concatenate %104, %105 in 1 : vector<32x3xbf16>, vector<32x21xbf16> -> vector<32x24xbf16>
    %107 = vector.extract_strided_slice %96 {offsets = [0, 0], sizes = [32, 1], strides = [1, 1]} : vector<32x24xbf16> to vector<32x1xbf16>
    %108 = vector.extract_strided_slice %96 {offsets = [0, 0], sizes = [32, 23], strides = [1, 1]} : vector<32x24xbf16> to vector<32x23xbf16>
    %109 = tpu.concatenate %107, %108 in 1 : vector<32x1xbf16>, vector<32x23xbf16> -> vector<32x24xbf16>
    %110 = vector.shape_cast %103 : vector<1x24xi1> to vector<1x24xi1>
    %111 = vector.broadcast %110 : vector<1x24xi1> to vector<32x24xi1>
    %112 = arith.select %111, %106, %109 : vector<32x24xi1>, vector<32x24xbf16>
    %113 = vector.shape_cast %98 : vector<1x24xi1> to vector<1x24xi1>
    %114 = vector.broadcast %113 : vector<1x24xi1> to vector<32x24xi1>
    %115 = arith.select %114, %101, %112 : vector<32x24xi1>, vector<32x24xbf16>
    %116 = vector.extract_strided_slice %115 {offsets = [0, 6], sizes = [32, 6], strides = [1, 1]} : vector<32x24xbf16> to vector<32x6xbf16>
    %117 = vector.extract_strided_slice %115 {offsets = [0, 12], sizes = [32, 6], strides = [1, 1]} : vector<32x24xbf16> to vector<32x6xbf16>
    %118 = tpu.concatenate %116, %115, %117, %117 in 1 : vector<32x6xbf16>, vector<32x24xbf16>, vector<32x6xbf16>, vector<32x6xbf16> -> vector<32x42xbf16>
    %119 = vector.extract_strided_slice %118 {offsets = [0, 0], sizes = [32, 24], strides = [1, 1]} : vector<32x42xbf16> to vector<32x24xbf16>
    %c0_60 = arith.constant 0 : index
    %c0_61 = arith.constant 0 : index
    %c0_62 = arith.constant 0 : index
    %120 = vector.load %arg3[%c0_60, %c0_61, %c0_62] : memref<9x32x32xbf16, #tpu.memory_space<vmem>>, vector<1x32x32xbf16>
    %121 = vector.shape_cast %120 : vector<1x32x32xbf16> to vector<32x32xbf16>
    %cst_63 = arith.constant dense<0.000000e+00> : vector<32x24xf32>
    %122 = tpu.matmul %121, %119, %cst_63 {dimension_numbers = #tpu.dot_dimension_numbers<[1], [0], [0], [1], [0, 0, 1, 1], [], []>} : vector<32x32xbf16>, vector<32x24xbf16>, vector<32x24xf32> -> vector<32x24xf32>
    %123 = vector.extract_strided_slice %118 {offsets = [0, 1], sizes = [32, 24], strides = [1, 1]} : vector<32x42xbf16> to vector<32x24xbf16>
    %c1_64 = arith.constant 1 : index
    %c0_65 = arith.constant 0 : index
    %c0_66 = arith.constant 0 : index
    %124 = vector.load %arg3[%c1_64, %c0_65, %c0_66] : memref<9x32x32xbf16, #tpu.memory_space<vmem>>, vector<1x32x32xbf16>
    %125 = vector.shape_cast %124 : vector<1x32x32xbf16> to vector<32x32xbf16>
    %cst_67 = arith.constant dense<0.000000e+00> : vector<32x24xf32>
    %126 = tpu.matmul %125, %123, %cst_67 {dimension_numbers = #tpu.dot_dimension_numbers<[1], [0], [0], [1], [0, 0, 1, 1], [], []>} : vector<32x32xbf16>, vector<32x24xbf16>, vector<32x24xf32> -> vector<32x24xf32>
    %127 = arith.addf %122, %126 : vector<32x24xf32>
    %128 = vector.extract_strided_slice %118 {offsets = [0, 2], sizes = [32, 24], strides = [1, 1]} : vector<32x42xbf16> to vector<32x24xbf16>
    %c2_68 = arith.constant 2 : index
    %c0_69 = arith.constant 0 : index
    %c0_70 = arith.constant 0 : index
    %129 = vector.load %arg3[%c2_68, %c0_69, %c0_70] : memref<9x32x32xbf16, #tpu.memory_space<vmem>>, vector<1x32x32xbf16>
    %130 = vector.shape_cast %129 : vector<1x32x32xbf16> to vector<32x32xbf16>
    %cst_71 = arith.constant dense<0.000000e+00> : vector<32x24xf32>
    %131 = tpu.matmul %130, %128, %cst_71 {dimension_numbers = #tpu.dot_dimension_numbers<[1], [0], [0], [1], [0, 0, 1, 1], [], []>} : vector<32x32xbf16>, vector<32x24xbf16>, vector<32x24xf32> -> vector<32x24xf32>
    %132 = arith.addf %127, %131 : vector<32x24xf32>
    %133 = vector.extract_strided_slice %118 {offsets = [0, 6], sizes = [32, 24], strides = [1, 1]} : vector<32x42xbf16> to vector<32x24xbf16>
    %c3_72 = arith.constant 3 : index
    %c0_73 = arith.constant 0 : index
    %c0_74 = arith.constant 0 : index
    %134 = vector.load %arg3[%c3_72, %c0_73, %c0_74] : memref<9x32x32xbf16, #tpu.memory_space<vmem>>, vector<1x32x32xbf16>
    %135 = vector.shape_cast %134 : vector<1x32x32xbf16> to vector<32x32xbf16>
    %cst_75 = arith.constant dense<0.000000e+00> : vector<32x24xf32>
    %136 = tpu.matmul %135, %133, %cst_75 {dimension_numbers = #tpu.dot_dimension_numbers<[1], [0], [0], [1], [0, 0, 1, 1], [], []>} : vector<32x32xbf16>, vector<32x24xbf16>, vector<32x24xf32> -> vector<32x24xf32>
    %137 = arith.addf %132, %136 : vector<32x24xf32>
    %138 = vector.extract_strided_slice %118 {offsets = [0, 7], sizes = [32, 24], strides = [1, 1]} : vector<32x42xbf16> to vector<32x24xbf16>
    %c4_76 = arith.constant 4 : index
    %c0_77 = arith.constant 0 : index
    %c0_78 = arith.constant 0 : index
    %139 = vector.load %arg3[%c4_76, %c0_77, %c0_78] : memref<9x32x32xbf16, #tpu.memory_space<vmem>>, vector<1x32x32xbf16>
    %140 = vector.shape_cast %139 : vector<1x32x32xbf16> to vector<32x32xbf16>
    %cst_79 = arith.constant dense<0.000000e+00> : vector<32x24xf32>
    %141 = tpu.matmul %140, %138, %cst_79 {dimension_numbers = #tpu.dot_dimension_numbers<[1], [0], [0], [1], [0, 0, 1, 1], [], []>} : vector<32x32xbf16>, vector<32x24xbf16>, vector<32x24xf32> -> vector<32x24xf32>
    %142 = arith.addf %137, %141 : vector<32x24xf32>
    %143 = vector.extract_strided_slice %118 {offsets = [0, 8], sizes = [32, 24], strides = [1, 1]} : vector<32x42xbf16> to vector<32x24xbf16>
    %c5_80 = arith.constant 5 : index
    %c0_81 = arith.constant 0 : index
    %c0_82 = arith.constant 0 : index
    %144 = vector.load %arg3[%c5_80, %c0_81, %c0_82] : memref<9x32x32xbf16, #tpu.memory_space<vmem>>, vector<1x32x32xbf16>
    %145 = vector.shape_cast %144 : vector<1x32x32xbf16> to vector<32x32xbf16>
    %cst_83 = arith.constant dense<0.000000e+00> : vector<32x24xf32>
    %146 = tpu.matmul %145, %143, %cst_83 {dimension_numbers = #tpu.dot_dimension_numbers<[1], [0], [0], [1], [0, 0, 1, 1], [], []>} : vector<32x32xbf16>, vector<32x24xbf16>, vector<32x24xf32> -> vector<32x24xf32>
    %147 = arith.addf %142, %146 : vector<32x24xf32>
    %148 = vector.extract_strided_slice %118 {offsets = [0, 12], sizes = [32, 24], strides = [1, 1]} : vector<32x42xbf16> to vector<32x24xbf16>
    %c6_84 = arith.constant 6 : index
    %c0_85 = arith.constant 0 : index
    %c0_86 = arith.constant 0 : index
    %149 = vector.load %arg3[%c6_84, %c0_85, %c0_86] : memref<9x32x32xbf16, #tpu.memory_space<vmem>>, vector<1x32x32xbf16>
    %150 = vector.shape_cast %149 : vector<1x32x32xbf16> to vector<32x32xbf16>
    %cst_87 = arith.constant dense<0.000000e+00> : vector<32x24xf32>
    %151 = tpu.matmul %150, %148, %cst_87 {dimension_numbers = #tpu.dot_dimension_numbers<[1], [0], [0], [1], [0, 0, 1, 1], [], []>} : vector<32x32xbf16>, vector<32x24xbf16>, vector<32x24xf32> -> vector<32x24xf32>
    %152 = arith.addf %147, %151 : vector<32x24xf32>
    %153 = vector.extract_strided_slice %118 {offsets = [0, 13], sizes = [32, 24], strides = [1, 1]} : vector<32x42xbf16> to vector<32x24xbf16>
    %c7_88 = arith.constant 7 : index
    %c0_89 = arith.constant 0 : index
    %c0_90 = arith.constant 0 : index
    %154 = vector.load %arg3[%c7_88, %c0_89, %c0_90] : memref<9x32x32xbf16, #tpu.memory_space<vmem>>, vector<1x32x32xbf16>
    %155 = vector.shape_cast %154 : vector<1x32x32xbf16> to vector<32x32xbf16>
    %cst_91 = arith.constant dense<0.000000e+00> : vector<32x24xf32>
    %156 = tpu.matmul %155, %153, %cst_91 {dimension_numbers = #tpu.dot_dimension_numbers<[1], [0], [0], [1], [0, 0, 1, 1], [], []>} : vector<32x32xbf16>, vector<32x24xbf16>, vector<32x24xf32> -> vector<32x24xf32>
    %157 = arith.addf %152, %156 : vector<32x24xf32>
    %158 = vector.extract_strided_slice %118 {offsets = [0, 14], sizes = [32, 24], strides = [1, 1]} : vector<32x42xbf16> to vector<32x24xbf16>
    %c8_92 = arith.constant 8 : index
    %c0_93 = arith.constant 0 : index
    %c0_94 = arith.constant 0 : index
    %159 = vector.load %arg3[%c8_92, %c0_93, %c0_94] : memref<9x32x32xbf16, #tpu.memory_space<vmem>>, vector<1x32x32xbf16>
    %160 = vector.shape_cast %159 : vector<1x32x32xbf16> to vector<32x32xbf16>
    %cst_95 = arith.constant dense<0.000000e+00> : vector<32x24xf32>
    %161 = tpu.matmul %160, %158, %cst_95 {dimension_numbers = #tpu.dot_dimension_numbers<[1], [0], [0], [1], [0, 0, 1, 1], [], []>} : vector<32x32xbf16>, vector<32x24xbf16>, vector<32x24xf32> -> vector<32x24xf32>
    %162 = arith.addf %157, %161 : vector<32x24xf32>
    %163 = vector.broadcast %20 : vector<1x24xf32> to vector<32x24xf32>
    %164 = arith.mulf %162, %163 : vector<32x24xf32>
    %cst_96 = arith.constant dense<0.000000e+00> : vector<32xf32>
    %165 = vector.multi_reduction <add>, %164, %cst_96 [1] : vector<32x24xf32> to vector<32xf32>
    %166 = vector.shape_cast %165 : vector<32xf32> to vector<32x1xf32>
    %cst_97 = arith.constant 6.250000e-02 : f32
    %167 = vector.broadcast %cst_97 : f32 to vector<32x1xf32>
    %168 = arith.mulf %166, %167 : vector<32x1xf32>
    %169 = vector.broadcast %168 : vector<32x1xf32> to vector<32x24xf32>
    %170 = arith.subf %162, %169 : vector<32x24xf32>
    %171 = arith.mulf %170, %170 : vector<32x24xf32>
    %172 = vector.broadcast %20 : vector<1x24xf32> to vector<32x24xf32>
    %173 = arith.mulf %171, %172 : vector<32x24xf32>
    %cst_98 = arith.constant dense<0.000000e+00> : vector<32xf32>
    %174 = vector.multi_reduction <add>, %173, %cst_98 [1] : vector<32x24xf32> to vector<32xf32>
    %175 = vector.shape_cast %174 : vector<32xf32> to vector<32x1xf32>
    %cst_99 = arith.constant 6.250000e-02 : f32
    %176 = vector.broadcast %cst_99 : f32 to vector<32x1xf32>
    %177 = arith.mulf %175, %176 : vector<32x1xf32>
    %cst_100 = arith.constant 9.99999974E-6 : f32
    %178 = vector.broadcast %cst_100 : f32 to vector<32x1xf32>
    %179 = arith.addf %177, %178 : vector<32x1xf32>
    %180 = math.rsqrt %179 : vector<32x1xf32>
    %181 = vector.broadcast %180 : vector<32x1xf32> to vector<32x24xf32>
    %182 = arith.mulf %170, %181 : vector<32x24xf32>
    %c0_101 = arith.constant 0 : index
    %c0_102 = arith.constant 0 : index
    %c7_103 = arith.constant 7 : index
    %183 = vector.load %arg1[%c0_101, %c0_102, %c7_103] : memref<1x32x42xbf16, #tpu.memory_space<vmem>>, vector<1x32x24xbf16>
    %184 = vector.shape_cast %183 : vector<1x32x24xbf16> to vector<32x24xbf16>
    %185 = arith.extf %184 : vector<32x24xbf16> to vector<32x24xf32>
    %186 = arith.addf %182, %185 : vector<32x24xf32>
    %187 = arith.truncf %186 : vector<32x24xf32> to vector<32x24xbf16>
    %c0_104 = arith.constant 0 : index
    %c0_105 = arith.constant 0 : index
    %c0_106 = arith.constant 0 : index
    %188 = vector.load %arg4[%c0_104, %c0_105, %c0_106] : memref<1x32x24xbf16, #tpu.memory_space<vmem>>, vector<1x32x24xbf16>
    %189 = vector.shape_cast %188 : vector<1x32x24xbf16> to vector<32x24xbf16>
    %190 = vector.shape_cast %187 : vector<32x24xbf16> to vector<1x32x24xbf16>
    tpu.vector_store %arg4[%c0_104, %c0_105, %c0_106], %190 {strides = array<i32>} : memref<1x32x24xbf16, #tpu.memory_space<vmem>>, vector<1x32x24xbf16>,
    return
  }
  func.func @transform_0(%arg0: i32) -> (i32, i32, i32) {
    %c0_i32 = arith.constant 0 : i32
    %c0_i32_0 = arith.constant 0 : i32
    %c0_i32_1 = arith.constant 0 : i32
    return %arg0, %c0_i32, %c0_i32_0 : i32, i32, i32
  }
  func.func @transform_1(%arg0: i32) -> (i32, i32, i32) {
    %c0_i32 = arith.constant 0 : i32
    %c0_i32_0 = arith.constant 0 : i32
    %c0_i32_1 = arith.constant 0 : i32
    %c0_i32_2 = arith.constant 0 : i32
    return %c0_i32, %c0_i32_0, %c0_i32_1 : i32, i32, i32
  }
  func.func @transform_2(%arg0: i32) -> (i32, i32, i32) {
    %c0_i32 = arith.constant 0 : i32
    %c0_i32_0 = arith.constant 0 : i32
    %c0_i32_1 = arith.constant 0 : i32
    %c0_i32_2 = arith.constant 0 : i32
    return %c0_i32, %c0_i32_0, %c0_i32_1 : i32, i32, i32
  }
  func.func @transform_3(%arg0: i32) -> (i32, i32, i32) {
    %c0_i32 = arith.constant 0 : i32
    %c0_i32_0 = arith.constant 0 : i32
    %c0_i32_1 = arith.constant 0 : i32
    return %arg0, %c0_i32, %c0_i32_0 : i32, i32, i32
  }
}

module attributes {stable_mosaic.version = 11 : i64} {
  func.func @_tapconv_kernel(%arg0: i32, %arg1: memref<1x32x30xbf16, #tpu.memory_space<vmem>>, %arg2: memref<4x64x32xbf16, #tpu.memory_space<vmem>>, %arg3: memref<1x64x20xbf16, #tpu.memory_space<vmem>>) attributes {dimension_semantics = [#tpu.dimension_semantics<parallel>], iteration_bounds = array<i64: 2>, scalar_prefetch = 0 : i64, scratch_operands = 0 : i64, tpu.core_type = #tpu.core_type<tc>, window_params = [{transform_indices = @transform_0, window_bounds = array<i64: 1, 32, 30>}, {pipeline_mode = #tpu.pipeline_mode<synchronous>, transform_indices = @transform_1, window_bounds = array<i64: 4, 64, 32>}, {transform_indices = @transform_2, window_bounds = array<i64: 1, 64, 20>}]} {
    %c0 = arith.constant 0 : index
    %c0_0 = arith.constant 0 : index
    %c0_1 = arith.constant 0 : index
    %0 = vector.load %arg1[%c0, %c0_0, %c0_1] : memref<1x32x30xbf16, #tpu.memory_space<vmem>>, vector<1x32x20xbf16>
    %1 = vector.shape_cast %0 : vector<1x32x20xbf16> to vector<32x20xbf16>
    %c0_2 = arith.constant 0 : index
    %c0_3 = arith.constant 0 : index
    %c0_4 = arith.constant 0 : index
    %2 = vector.load %arg2[%c0_2, %c0_3, %c0_4] : memref<4x64x32xbf16, #tpu.memory_space<vmem>>, vector<1x64x32xbf16>
    %3 = vector.shape_cast %2 : vector<1x64x32xbf16> to vector<64x32xbf16>
    %cst = arith.constant dense<0.000000e+00> : vector<64x20xf32>
    %4 = tpu.matmul %3, %1, %cst {dimension_numbers = #tpu.dot_dimension_numbers<[1], [0], [0], [1], [0, 0, 1, 1], [], []>} : vector<64x32xbf16>, vector<32x20xbf16>, vector<64x20xf32> -> vector<64x20xf32>
    %c0_5 = arith.constant 0 : index
    %c0_6 = arith.constant 0 : index
    %c1 = arith.constant 1 : index
    %5 = vector.load %arg1[%c0_5, %c0_6, %c1] : memref<1x32x30xbf16, #tpu.memory_space<vmem>>, vector<1x32x20xbf16>
    %6 = vector.shape_cast %5 : vector<1x32x20xbf16> to vector<32x20xbf16>
    %c1_7 = arith.constant 1 : index
    %c0_8 = arith.constant 0 : index
    %c0_9 = arith.constant 0 : index
    %7 = vector.load %arg2[%c1_7, %c0_8, %c0_9] : memref<4x64x32xbf16, #tpu.memory_space<vmem>>, vector<1x64x32xbf16>
    %8 = vector.shape_cast %7 : vector<1x64x32xbf16> to vector<64x32xbf16>
    %cst_10 = arith.constant dense<0.000000e+00> : vector<64x20xf32>
    %9 = tpu.matmul %8, %6, %cst_10 {dimension_numbers = #tpu.dot_dimension_numbers<[1], [0], [0], [1], [0, 0, 1, 1], [], []>} : vector<64x32xbf16>, vector<32x20xbf16>, vector<64x20xf32> -> vector<64x20xf32>
    %10 = arith.addf %4, %9 : vector<64x20xf32>
    %c0_11 = arith.constant 0 : index
    %c0_12 = arith.constant 0 : index
    %c5 = arith.constant 5 : index
    %11 = vector.load %arg1[%c0_11, %c0_12, %c5] : memref<1x32x30xbf16, #tpu.memory_space<vmem>>, vector<1x32x20xbf16>
    %12 = vector.shape_cast %11 : vector<1x32x20xbf16> to vector<32x20xbf16>
    %c2 = arith.constant 2 : index
    %c0_13 = arith.constant 0 : index
    %c0_14 = arith.constant 0 : index
    %13 = vector.load %arg2[%c2, %c0_13, %c0_14] : memref<4x64x32xbf16, #tpu.memory_space<vmem>>, vector<1x64x32xbf16>
    %14 = vector.shape_cast %13 : vector<1x64x32xbf16> to vector<64x32xbf16>
    %cst_15 = arith.constant dense<0.000000e+00> : vector<64x20xf32>
    %15 = tpu.matmul %14, %12, %cst_15 {dimension_numbers = #tpu.dot_dimension_numbers<[1], [0], [0], [1], [0, 0, 1, 1], [], []>} : vector<64x32xbf16>, vector<32x20xbf16>, vector<64x20xf32> -> vector<64x20xf32>
    %16 = arith.addf %10, %15 : vector<64x20xf32>
    %c0_16 = arith.constant 0 : index
    %c0_17 = arith.constant 0 : index
    %c6 = arith.constant 6 : index
    %17 = vector.load %arg1[%c0_16, %c0_17, %c6] : memref<1x32x30xbf16, #tpu.memory_space<vmem>>, vector<1x32x20xbf16>
    %18 = vector.shape_cast %17 : vector<1x32x20xbf16> to vector<32x20xbf16>
    %c3 = arith.constant 3 : index
    %c0_18 = arith.constant 0 : index
    %c0_19 = arith.constant 0 : index
    %19 = vector.load %arg2[%c3, %c0_18, %c0_19] : memref<4x64x32xbf16, #tpu.memory_space<vmem>>, vector<1x64x32xbf16>
    %20 = vector.shape_cast %19 : vector<1x64x32xbf16> to vector<64x32xbf16>
    %cst_20 = arith.constant dense<0.000000e+00> : vector<64x20xf32>
    %21 = tpu.matmul %20, %18, %cst_20 {dimension_numbers = #tpu.dot_dimension_numbers<[1], [0], [0], [1], [0, 0, 1, 1], [], []>} : vector<64x32xbf16>, vector<32x20xbf16>, vector<64x20xf32> -> vector<64x20xf32>
    %22 = arith.addf %16, %21 : vector<64x20xf32>
    %23 = vector.shape_cast %22 : vector<64x20xf32> to vector<4x16x20xf32>
    %24 = tpu.iota {dimensions = array<i32: 2>} : vector<1x1x20xi32>
    %c5_i32 = arith.constant 5 : i32
    %c0_i32 = arith.constant 0 : i32
    %25 = arith.cmpi eq, %c5_i32, %c0_i32 : i32
    %c1_i32 = arith.constant 1 : i32
    %26 = arith.select %25, %c1_i32, %c5_i32 : i32
    %27 = vector.broadcast %26 : i32 to vector<1x1x20xi32>
    %28 = arith.remsi %24, %27 : vector<1x1x20xi32>
    %c0_i32_21 = arith.constant 0 : i32
    %29 = vector.broadcast %c0_i32_21 : i32 to vector<1x1x20xi32>
    %30 = arith.cmpi ne, %28, %29 : vector<1x1x20xi32>
    %c0_i32_22 = arith.constant 0 : i32
    %31 = vector.broadcast %c0_i32_22 : i32 to vector<1x1x20xi32>
    %32 = arith.cmpi slt, %28, %31 : vector<1x1x20xi32>
    %c0_i32_23 = arith.constant 0 : i32
    %33 = arith.cmpi slt, %26, %c0_i32_23 : i32
    %34 = vector.broadcast %33 : i1 to vector<1x1x20xi1>
    %35 = vector.broadcast %34 : vector<1x1x20xi1> to vector<1x1x20xi1>
    %36 = arith.xori %32, %35 : vector<1x1x20xi1>
    %37 = arith.andi %36, %30 : vector<1x1x20xi1>
    %38 = vector.broadcast %26 : i32 to vector<1x1x20xi32>
    %39 = arith.addi %28, %38 : vector<1x1x20xi32>
    %40 = arith.select %37, %39, %28 : vector<1x1x20xi1>, vector<1x1x20xi32>
    %c4_i32 = arith.constant 4 : i32
    %41 = vector.broadcast %c4_i32 : i32 to vector<1x1x20xi32>
    %42 = arith.cmpi slt, %40, %41 : vector<1x1x20xi32>
    %43 = arith.extui %42 : vector<1x1x20xi1> to vector<1x1x20xi32>
    %44 = arith.sitofp %43 : vector<1x1x20xi32> to vector<1x1x20xf32>
    %45 = vector.broadcast %44 : vector<1x1x20xf32> to vector<4x16x20xf32>
    %46 = arith.mulf %23, %45 : vector<4x16x20xf32>
    %cst_24 = arith.constant dense<0.000000e+00> : vector<4x16xf32>
    %47 = vector.multi_reduction <add>, %46, %cst_24 [2] : vector<4x16x20xf32> to vector<4x16xf32>
    %48 = vector.shape_cast %47 : vector<4x16xf32> to vector<4x16x1xf32>
    %cst_25 = arith.constant dense<0.000000e+00> : vector<16x1xf32>
    %49 = vector.multi_reduction <add>, %48, %cst_25 [0] : vector<4x16x1xf32> to vector<16x1xf32>
    %50 = vector.shape_cast %49 : vector<16x1xf32> to vector<1x16x1xf32>
    %cst_26 = arith.constant 1.562500e-02 : f32
    %51 = vector.broadcast %cst_26 : f32 to vector<1x16x1xf32>
    %52 = arith.mulf %50, %51 : vector<1x16x1xf32>
    %53 = vector.broadcast %52 : vector<1x16x1xf32> to vector<4x16x20xf32>
    %54 = arith.subf %23, %53 : vector<4x16x20xf32>
    %55 = arith.mulf %54, %54 : vector<4x16x20xf32>
    %56 = vector.broadcast %44 : vector<1x1x20xf32> to vector<4x16x20xf32>
    %57 = arith.mulf %55, %56 : vector<4x16x20xf32>
    %cst_27 = arith.constant dense<0.000000e+00> : vector<4x16xf32>
    %58 = vector.multi_reduction <add>, %57, %cst_27 [2] : vector<4x16x20xf32> to vector<4x16xf32>
    %59 = vector.shape_cast %58 : vector<4x16xf32> to vector<4x16x1xf32>
    %cst_28 = arith.constant dense<0.000000e+00> : vector<16x1xf32>
    %60 = vector.multi_reduction <add>, %59, %cst_28 [0] : vector<4x16x1xf32> to vector<16x1xf32>
    %61 = vector.shape_cast %60 : vector<16x1xf32> to vector<1x16x1xf32>
    %cst_29 = arith.constant 1.562500e-02 : f32
    %62 = vector.broadcast %cst_29 : f32 to vector<1x16x1xf32>
    %63 = arith.mulf %61, %62 : vector<1x16x1xf32>
    %cst_30 = arith.constant 9.99999974E-6 : f32
    %64 = vector.broadcast %cst_30 : f32 to vector<1x16x1xf32>
    %65 = arith.addf %63, %64 : vector<1x16x1xf32>
    %66 = math.rsqrt %65 : vector<1x16x1xf32>
    %67 = vector.broadcast %66 : vector<1x16x1xf32> to vector<4x16x20xf32>
    %68 = arith.mulf %54, %67 : vector<4x16x20xf32>
    %69 = vector.shape_cast %68 : vector<4x16x20xf32> to vector<64x20xf32>
    %cst_31 = arith.constant 0.000000e+00 : f32
    %70 = vector.broadcast %cst_31 : f32 to vector<64x20xf32>
    %71 = arith.maximumf %69, %70 : vector<64x20xf32>
    %72 = arith.truncf %71 : vector<64x20xf32> to vector<64x20xbf16>
    %c0_32 = arith.constant 0 : index
    %c0_33 = arith.constant 0 : index
    %c0_34 = arith.constant 0 : index
    %73 = vector.load %arg3[%c0_32, %c0_33, %c0_34] : memref<1x64x20xbf16, #tpu.memory_space<vmem>>, vector<1x64x20xbf16>
    %74 = vector.shape_cast %73 : vector<1x64x20xbf16> to vector<64x20xbf16>
    %75 = vector.shape_cast %72 : vector<64x20xbf16> to vector<1x64x20xbf16>
    tpu.vector_store %arg3[%c0_32, %c0_33, %c0_34], %75 {strides = array<i32>} : memref<1x64x20xbf16, #tpu.memory_space<vmem>>, vector<1x64x20xbf16>,
    return
  }
  func.func @transform_0(%arg0: i32) -> (i32, i32, i32) {
    %c0_i32 = arith.constant 0 : i32
    %c0_i32_0 = arith.constant 0 : i32
    %c0_i32_1 = arith.constant 0 : i32
    return %arg0, %c0_i32, %c0_i32_0 : i32, i32, i32
  }
  func.func @transform_1(%arg0: i32) -> (i32, i32, i32) {
    %c0_i32 = arith.constant 0 : i32
    %c0_i32_0 = arith.constant 0 : i32
    %c0_i32_1 = arith.constant 0 : i32
    %c0_i32_2 = arith.constant 0 : i32
    return %c0_i32, %c0_i32_0, %c0_i32_1 : i32, i32, i32
  }
  func.func @transform_2(%arg0: i32) -> (i32, i32, i32) {
    %c0_i32 = arith.constant 0 : i32
    %c0_i32_0 = arith.constant 0 : i32
    %c0_i32_1 = arith.constant 0 : i32
    return %arg0, %c0_i32, %c0_i32_0 : i32, i32, i32
  }
}

module attributes {stable_mosaic.version = 11 : i64} {
  func.func @_tapconv_kernel(%arg0: i32, %arg1: memref<1x16x90xbf16, #tpu.memory_space<vmem>>, %arg2: memref<4x32x16xbf16, #tpu.memory_space<vmem>>, %arg3: memref<1x32x72xbf16, #tpu.memory_space<vmem>>) attributes {dimension_semantics = [#tpu.dimension_semantics<parallel>], iteration_bounds = array<i64: 2>, scalar_prefetch = 0 : i64, scratch_operands = 0 : i64, tpu.core_type = #tpu.core_type<tc>, window_params = [{transform_indices = @transform_0, window_bounds = array<i64: 1, 16, 90>}, {pipeline_mode = #tpu.pipeline_mode<synchronous>, transform_indices = @transform_1, window_bounds = array<i64: 4, 32, 16>}, {transform_indices = @transform_2, window_bounds = array<i64: 1, 32, 72>}]} {
    %c0 = arith.constant 0 : index
    %c0_0 = arith.constant 0 : index
    %c0_1 = arith.constant 0 : index
    %0 = vector.load %arg1[%c0, %c0_0, %c0_1] : memref<1x16x90xbf16, #tpu.memory_space<vmem>>, vector<1x16x72xbf16>
    %1 = vector.shape_cast %0 : vector<1x16x72xbf16> to vector<16x72xbf16>
    %c0_2 = arith.constant 0 : index
    %c0_3 = arith.constant 0 : index
    %c0_4 = arith.constant 0 : index
    %2 = vector.load %arg2[%c0_2, %c0_3, %c0_4] : memref<4x32x16xbf16, #tpu.memory_space<vmem>>, vector<1x32x16xbf16>
    %3 = vector.shape_cast %2 : vector<1x32x16xbf16> to vector<32x16xbf16>
    %cst = arith.constant dense<0.000000e+00> : vector<32x72xf32>
    %4 = tpu.matmul %3, %1, %cst {dimension_numbers = #tpu.dot_dimension_numbers<[1], [0], [0], [1], [0, 0, 1, 1], [], []>} : vector<32x16xbf16>, vector<16x72xbf16>, vector<32x72xf32> -> vector<32x72xf32>
    %c0_5 = arith.constant 0 : index
    %c0_6 = arith.constant 0 : index
    %c1 = arith.constant 1 : index
    %5 = vector.load %arg1[%c0_5, %c0_6, %c1] : memref<1x16x90xbf16, #tpu.memory_space<vmem>>, vector<1x16x72xbf16>
    %6 = vector.shape_cast %5 : vector<1x16x72xbf16> to vector<16x72xbf16>
    %c1_7 = arith.constant 1 : index
    %c0_8 = arith.constant 0 : index
    %c0_9 = arith.constant 0 : index
    %7 = vector.load %arg2[%c1_7, %c0_8, %c0_9] : memref<4x32x16xbf16, #tpu.memory_space<vmem>>, vector<1x32x16xbf16>
    %8 = vector.shape_cast %7 : vector<1x32x16xbf16> to vector<32x16xbf16>
    %cst_10 = arith.constant dense<0.000000e+00> : vector<32x72xf32>
    %9 = tpu.matmul %8, %6, %cst_10 {dimension_numbers = #tpu.dot_dimension_numbers<[1], [0], [0], [1], [0, 0, 1, 1], [], []>} : vector<32x16xbf16>, vector<16x72xbf16>, vector<32x72xf32> -> vector<32x72xf32>
    %10 = arith.addf %4, %9 : vector<32x72xf32>
    %c0_11 = arith.constant 0 : index
    %c0_12 = arith.constant 0 : index
    %c9 = arith.constant 9 : index
    %11 = vector.load %arg1[%c0_11, %c0_12, %c9] : memref<1x16x90xbf16, #tpu.memory_space<vmem>>, vector<1x16x72xbf16>
    %12 = vector.shape_cast %11 : vector<1x16x72xbf16> to vector<16x72xbf16>
    %c2 = arith.constant 2 : index
    %c0_13 = arith.constant 0 : index
    %c0_14 = arith.constant 0 : index
    %13 = vector.load %arg2[%c2, %c0_13, %c0_14] : memref<4x32x16xbf16, #tpu.memory_space<vmem>>, vector<1x32x16xbf16>
    %14 = vector.shape_cast %13 : vector<1x32x16xbf16> to vector<32x16xbf16>
    %cst_15 = arith.constant dense<0.000000e+00> : vector<32x72xf32>
    %15 = tpu.matmul %14, %12, %cst_15 {dimension_numbers = #tpu.dot_dimension_numbers<[1], [0], [0], [1], [0, 0, 1, 1], [], []>} : vector<32x16xbf16>, vector<16x72xbf16>, vector<32x72xf32> -> vector<32x72xf32>
    %16 = arith.addf %10, %15 : vector<32x72xf32>
    %c0_16 = arith.constant 0 : index
    %c0_17 = arith.constant 0 : index
    %c10 = arith.constant 10 : index
    %17 = vector.load %arg1[%c0_16, %c0_17, %c10] : memref<1x16x90xbf16, #tpu.memory_space<vmem>>, vector<1x16x72xbf16>
    %18 = vector.shape_cast %17 : vector<1x16x72xbf16> to vector<16x72xbf16>
    %c3 = arith.constant 3 : index
    %c0_18 = arith.constant 0 : index
    %c0_19 = arith.constant 0 : index
    %19 = vector.load %arg2[%c3, %c0_18, %c0_19] : memref<4x32x16xbf16, #tpu.memory_space<vmem>>, vector<1x32x16xbf16>
    %20 = vector.shape_cast %19 : vector<1x32x16xbf16> to vector<32x16xbf16>
    %cst_20 = arith.constant dense<0.000000e+00> : vector<32x72xf32>
    %21 = tpu.matmul %20, %18, %cst_20 {dimension_numbers = #tpu.dot_dimension_numbers<[1], [0], [0], [1], [0, 0, 1, 1], [], []>} : vector<32x16xbf16>, vector<16x72xbf16>, vector<32x72xf32> -> vector<32x72xf32>
    %22 = arith.addf %16, %21 : vector<32x72xf32>
    %23 = vector.shape_cast %22 : vector<32x72xf32> to vector<4x8x72xf32>
    %24 = tpu.iota {dimensions = array<i32: 2>} : vector<1x1x72xi32>
    %c9_i32 = arith.constant 9 : i32
    %c0_i32 = arith.constant 0 : i32
    %25 = arith.cmpi eq, %c9_i32, %c0_i32 : i32
    %c1_i32 = arith.constant 1 : i32
    %26 = arith.select %25, %c1_i32, %c9_i32 : i32
    %27 = vector.broadcast %26 : i32 to vector<1x1x72xi32>
    %28 = arith.remsi %24, %27 : vector<1x1x72xi32>
    %c0_i32_21 = arith.constant 0 : i32
    %29 = vector.broadcast %c0_i32_21 : i32 to vector<1x1x72xi32>
    %30 = arith.cmpi ne, %28, %29 : vector<1x1x72xi32>
    %c0_i32_22 = arith.constant 0 : i32
    %31 = vector.broadcast %c0_i32_22 : i32 to vector<1x1x72xi32>
    %32 = arith.cmpi slt, %28, %31 : vector<1x1x72xi32>
    %c0_i32_23 = arith.constant 0 : i32
    %33 = arith.cmpi slt, %26, %c0_i32_23 : i32
    %34 = vector.broadcast %33 : i1 to vector<1x1x72xi1>
    %35 = vector.broadcast %34 : vector<1x1x72xi1> to vector<1x1x72xi1>
    %36 = arith.xori %32, %35 : vector<1x1x72xi1>
    %37 = arith.andi %36, %30 : vector<1x1x72xi1>
    %38 = vector.broadcast %26 : i32 to vector<1x1x72xi32>
    %39 = arith.addi %28, %38 : vector<1x1x72xi32>
    %40 = arith.select %37, %39, %28 : vector<1x1x72xi1>, vector<1x1x72xi32>
    %c8_i32 = arith.constant 8 : i32
    %41 = vector.broadcast %c8_i32 : i32 to vector<1x1x72xi32>
    %42 = arith.cmpi slt, %40, %41 : vector<1x1x72xi32>
    %43 = arith.extui %42 : vector<1x1x72xi1> to vector<1x1x72xi32>
    %44 = arith.sitofp %43 : vector<1x1x72xi32> to vector<1x1x72xf32>
    %45 = vector.broadcast %44 : vector<1x1x72xf32> to vector<4x8x72xf32>
    %46 = arith.mulf %23, %45 : vector<4x8x72xf32>
    %cst_24 = arith.constant dense<0.000000e+00> : vector<4x8xf32>
    %47 = vector.multi_reduction <add>, %46, %cst_24 [2] : vector<4x8x72xf32> to vector<4x8xf32>
    %48 = vector.shape_cast %47 : vector<4x8xf32> to vector<4x8x1xf32>
    %cst_25 = arith.constant dense<0.000000e+00> : vector<8x1xf32>
    %49 = vector.multi_reduction <add>, %48, %cst_25 [0] : vector<4x8x1xf32> to vector<8x1xf32>
    %50 = vector.shape_cast %49 : vector<8x1xf32> to vector<1x8x1xf32>
    %cst_26 = arith.constant 3.906250e-03 : f32
    %51 = vector.broadcast %cst_26 : f32 to vector<1x8x1xf32>
    %52 = arith.mulf %50, %51 : vector<1x8x1xf32>
    %53 = vector.broadcast %52 : vector<1x8x1xf32> to vector<4x8x72xf32>
    %54 = arith.subf %23, %53 : vector<4x8x72xf32>
    %55 = arith.mulf %54, %54 : vector<4x8x72xf32>
    %56 = vector.broadcast %44 : vector<1x1x72xf32> to vector<4x8x72xf32>
    %57 = arith.mulf %55, %56 : vector<4x8x72xf32>
    %cst_27 = arith.constant dense<0.000000e+00> : vector<4x8xf32>
    %58 = vector.multi_reduction <add>, %57, %cst_27 [2] : vector<4x8x72xf32> to vector<4x8xf32>
    %59 = vector.shape_cast %58 : vector<4x8xf32> to vector<4x8x1xf32>
    %cst_28 = arith.constant dense<0.000000e+00> : vector<8x1xf32>
    %60 = vector.multi_reduction <add>, %59, %cst_28 [0] : vector<4x8x1xf32> to vector<8x1xf32>
    %61 = vector.shape_cast %60 : vector<8x1xf32> to vector<1x8x1xf32>
    %cst_29 = arith.constant 3.906250e-03 : f32
    %62 = vector.broadcast %cst_29 : f32 to vector<1x8x1xf32>
    %63 = arith.mulf %61, %62 : vector<1x8x1xf32>
    %cst_30 = arith.constant 9.99999974E-6 : f32
    %64 = vector.broadcast %cst_30 : f32 to vector<1x8x1xf32>
    %65 = arith.addf %63, %64 : vector<1x8x1xf32>
    %66 = math.rsqrt %65 : vector<1x8x1xf32>
    %67 = vector.broadcast %66 : vector<1x8x1xf32> to vector<4x8x72xf32>
    %68 = arith.mulf %54, %67 : vector<4x8x72xf32>
    %69 = vector.shape_cast %68 : vector<4x8x72xf32> to vector<32x72xf32>
    %cst_31 = arith.constant 0.000000e+00 : f32
    %70 = vector.broadcast %cst_31 : f32 to vector<32x72xf32>
    %71 = arith.maximumf %69, %70 : vector<32x72xf32>
    %72 = arith.truncf %71 : vector<32x72xf32> to vector<32x72xbf16>
    %c0_32 = arith.constant 0 : index
    %c0_33 = arith.constant 0 : index
    %c0_34 = arith.constant 0 : index
    %73 = vector.load %arg3[%c0_32, %c0_33, %c0_34] : memref<1x32x72xbf16, #tpu.memory_space<vmem>>, vector<1x32x72xbf16>
    %74 = vector.shape_cast %73 : vector<1x32x72xbf16> to vector<32x72xbf16>
    %75 = vector.shape_cast %72 : vector<32x72xbf16> to vector<1x32x72xbf16>
    tpu.vector_store %arg3[%c0_32, %c0_33, %c0_34], %75 {strides = array<i32>} : memref<1x32x72xbf16, #tpu.memory_space<vmem>>, vector<1x32x72xbf16>,
    return
  }
  func.func @transform_0(%arg0: i32) -> (i32, i32, i32) {
    %c0_i32 = arith.constant 0 : i32
    %c0_i32_0 = arith.constant 0 : i32
    %c0_i32_1 = arith.constant 0 : i32
    return %arg0, %c0_i32, %c0_i32_0 : i32, i32, i32
  }
  func.func @transform_1(%arg0: i32) -> (i32, i32, i32) {
    %c0_i32 = arith.constant 0 : i32
    %c0_i32_0 = arith.constant 0 : i32
    %c0_i32_1 = arith.constant 0 : i32
    %c0_i32_2 = arith.constant 0 : i32
    return %c0_i32, %c0_i32_0, %c0_i32_1 : i32, i32, i32
  }
  func.func @transform_2(%arg0: i32) -> (i32, i32, i32) {
    %c0_i32 = arith.constant 0 : i32
    %c0_i32_0 = arith.constant 0 : i32
    %c0_i32_1 = arith.constant 0 : i32
    return %arg0, %c0_i32, %c0_i32_0 : i32, i32, i32
  }
}

module attributes {stable_mosaic.version = 11 : i64} {
  func.func @_tapconv_kernel(%arg0: i32, %arg1: memref<1x9x506xbf16, #tpu.memory_space<vmem>>, %arg2: memref<49x3x9xbf16, #tpu.memory_space<vmem>>, %arg3: memref<1x3x352xf32, #tpu.memory_space<vmem>>) attributes {dimension_semantics = [#tpu.dimension_semantics<parallel>], iteration_bounds = array<i64: 2>, scalar_prefetch = 0 : i64, scratch_operands = 0 : i64, tpu.core_type = #tpu.core_type<tc>, window_params = [{transform_indices = @transform_0, window_bounds = array<i64: 1, 9, 506>}, {pipeline_mode = #tpu.pipeline_mode<synchronous>, transform_indices = @transform_1, window_bounds = array<i64: 49, 3, 9>}, {transform_indices = @transform_2, window_bounds = array<i64: 1, 3, 352>}]} {
    %c0 = arith.constant 0 : index
    %c0_0 = arith.constant 0 : index
    %c0_1 = arith.constant 0 : index
    %0 = vector.load %arg1[%c0, %c0_0, %c0_1] : memref<1x9x506xbf16, #tpu.memory_space<vmem>>, vector<1x9x352xbf16>
    %1 = vector.shape_cast %0 : vector<1x9x352xbf16> to vector<9x352xbf16>
    %c0_2 = arith.constant 0 : index
    %c0_3 = arith.constant 0 : index
    %c0_4 = arith.constant 0 : index
    %2 = vector.load %arg2[%c0_2, %c0_3, %c0_4] : memref<49x3x9xbf16, #tpu.memory_space<vmem>>, vector<1x3x9xbf16>
    %3 = vector.shape_cast %2 : vector<1x3x9xbf16> to vector<3x9xbf16>
    %cst = arith.constant dense<0.000000e+00> : vector<3x352xf32>
    %4 = tpu.matmul %3, %1, %cst {dimension_numbers = #tpu.dot_dimension_numbers<[1], [0], [0], [1], [0, 0, 1, 1], [], []>} : vector<3x9xbf16>, vector<9x352xbf16>, vector<3x352xf32> -> vector<3x352xf32>
    %c0_5 = arith.constant 0 : index
    %c0_6 = arith.constant 0 : index
    %c1 = arith.constant 1 : index
    %5 = vector.load %arg1[%c0_5, %c0_6, %c1] : memref<1x9x506xbf16, #tpu.memory_space<vmem>>, vector<1x9x352xbf16>
    %6 = vector.shape_cast %5 : vector<1x9x352xbf16> to vector<9x352xbf16>
    %c1_7 = arith.constant 1 : index
    %c0_8 = arith.constant 0 : index
    %c0_9 = arith.constant 0 : index
    %7 = vector.load %arg2[%c1_7, %c0_8, %c0_9] : memref<49x3x9xbf16, #tpu.memory_space<vmem>>, vector<1x3x9xbf16>
    %8 = vector.shape_cast %7 : vector<1x3x9xbf16> to vector<3x9xbf16>
    %cst_10 = arith.constant dense<0.000000e+00> : vector<3x352xf32>
    %9 = tpu.matmul %8, %6, %cst_10 {dimension_numbers = #tpu.dot_dimension_numbers<[1], [0], [0], [1], [0, 0, 1, 1], [], []>} : vector<3x9xbf16>, vector<9x352xbf16>, vector<3x352xf32> -> vector<3x352xf32>
    %10 = arith.addf %4, %9 : vector<3x352xf32>
    %c0_11 = arith.constant 0 : index
    %c0_12 = arith.constant 0 : index
    %c2 = arith.constant 2 : index
    %11 = vector.load %arg1[%c0_11, %c0_12, %c2] : memref<1x9x506xbf16, #tpu.memory_space<vmem>>, vector<1x9x352xbf16>
    %12 = vector.shape_cast %11 : vector<1x9x352xbf16> to vector<9x352xbf16>
    %c2_13 = arith.constant 2 : index
    %c0_14 = arith.constant 0 : index
    %c0_15 = arith.constant 0 : index
    %13 = vector.load %arg2[%c2_13, %c0_14, %c0_15] : memref<49x3x9xbf16, #tpu.memory_space<vmem>>, vector<1x3x9xbf16>
    %14 = vector.shape_cast %13 : vector<1x3x9xbf16> to vector<3x9xbf16>
    %cst_16 = arith.constant dense<0.000000e+00> : vector<3x352xf32>
    %15 = tpu.matmul %14, %12, %cst_16 {dimension_numbers = #tpu.dot_dimension_numbers<[1], [0], [0], [1], [0, 0, 1, 1], [], []>} : vector<3x9xbf16>, vector<9x352xbf16>, vector<3x352xf32> -> vector<3x352xf32>
    %16 = arith.addf %10, %15 : vector<3x352xf32>
    %c0_17 = arith.constant 0 : index
    %c0_18 = arith.constant 0 : index
    %c3 = arith.constant 3 : index
    %17 = vector.load %arg1[%c0_17, %c0_18, %c3] : memref<1x9x506xbf16, #tpu.memory_space<vmem>>, vector<1x9x352xbf16>
    %18 = vector.shape_cast %17 : vector<1x9x352xbf16> to vector<9x352xbf16>
    %c3_19 = arith.constant 3 : index
    %c0_20 = arith.constant 0 : index
    %c0_21 = arith.constant 0 : index
    %19 = vector.load %arg2[%c3_19, %c0_20, %c0_21] : memref<49x3x9xbf16, #tpu.memory_space<vmem>>, vector<1x3x9xbf16>
    %20 = vector.shape_cast %19 : vector<1x3x9xbf16> to vector<3x9xbf16>
    %cst_22 = arith.constant dense<0.000000e+00> : vector<3x352xf32>
    %21 = tpu.matmul %20, %18, %cst_22 {dimension_numbers = #tpu.dot_dimension_numbers<[1], [0], [0], [1], [0, 0, 1, 1], [], []>} : vector<3x9xbf16>, vector<9x352xbf16>, vector<3x352xf32> -> vector<3x352xf32>
    %22 = arith.addf %16, %21 : vector<3x352xf32>
    %c0_23 = arith.constant 0 : index
    %c0_24 = arith.constant 0 : index
    %c4 = arith.constant 4 : index
    %23 = vector.load %arg1[%c0_23, %c0_24, %c4] : memref<1x9x506xbf16, #tpu.memory_space<vmem>>, vector<1x9x352xbf16>
    %24 = vector.shape_cast %23 : vector<1x9x352xbf16> to vector<9x352xbf16>
    %c4_25 = arith.constant 4 : index
    %c0_26 = arith.constant 0 : index
    %c0_27 = arith.constant 0 : index
    %25 = vector.load %arg2[%c4_25, %c0_26, %c0_27] : memref<49x3x9xbf16, #tpu.memory_space<vmem>>, vector<1x3x9xbf16>
    %26 = vector.shape_cast %25 : vector<1x3x9xbf16> to vector<3x9xbf16>
    %cst_28 = arith.constant dense<0.000000e+00> : vector<3x352xf32>
    %27 = tpu.matmul %26, %24, %cst_28 {dimension_numbers = #tpu.dot_dimension_numbers<[1], [0], [0], [1], [0, 0, 1, 1], [], []>} : vector<3x9xbf16>, vector<9x352xbf16>, vector<3x352xf32> -> vector<3x352xf32>
    %28 = arith.addf %22, %27 : vector<3x352xf32>
    %c0_29 = arith.constant 0 : index
    %c0_30 = arith.constant 0 : index
    %c5 = arith.constant 5 : index
    %29 = vector.load %arg1[%c0_29, %c0_30, %c5] : memref<1x9x506xbf16, #tpu.memory_space<vmem>>, vector<1x9x352xbf16>
    %30 = vector.shape_cast %29 : vector<1x9x352xbf16> to vector<9x352xbf16>
    %c5_31 = arith.constant 5 : index
    %c0_32 = arith.constant 0 : index
    %c0_33 = arith.constant 0 : index
    %31 = vector.load %arg2[%c5_31, %c0_32, %c0_33] : memref<49x3x9xbf16, #tpu.memory_space<vmem>>, vector<1x3x9xbf16>
    %32 = vector.shape_cast %31 : vector<1x3x9xbf16> to vector<3x9xbf16>
    %cst_34 = arith.constant dense<0.000000e+00> : vector<3x352xf32>
    %33 = tpu.matmul %32, %30, %cst_34 {dimension_numbers = #tpu.dot_dimension_numbers<[1], [0], [0], [1], [0, 0, 1, 1], [], []>} : vector<3x9xbf16>, vector<9x352xbf16>, vector<3x352xf32> -> vector<3x352xf32>
    %34 = arith.addf %28, %33 : vector<3x352xf32>
    %c0_35 = arith.constant 0 : index
    %c0_36 = arith.constant 0 : index
    %c6 = arith.constant 6 : index
    %35 = vector.load %arg1[%c0_35, %c0_36, %c6] : memref<1x9x506xbf16, #tpu.memory_space<vmem>>, vector<1x9x352xbf16>
    %36 = vector.shape_cast %35 : vector<1x9x352xbf16> to vector<9x352xbf16>
    %c6_37 = arith.constant 6 : index
    %c0_38 = arith.constant 0 : index
    %c0_39 = arith.constant 0 : index
    %37 = vector.load %arg2[%c6_37, %c0_38, %c0_39] : memref<49x3x9xbf16, #tpu.memory_space<vmem>>, vector<1x3x9xbf16>
    %38 = vector.shape_cast %37 : vector<1x3x9xbf16> to vector<3x9xbf16>
    %cst_40 = arith.constant dense<0.000000e+00> : vector<3x352xf32>
    %39 = tpu.matmul %38, %36, %cst_40 {dimension_numbers = #tpu.dot_dimension_numbers<[1], [0], [0], [1], [0, 0, 1, 1], [], []>} : vector<3x9xbf16>, vector<9x352xbf16>, vector<3x352xf32> -> vector<3x352xf32>
    %40 = arith.addf %34, %39 : vector<3x352xf32>
    %c0_41 = arith.constant 0 : index
    %c0_42 = arith.constant 0 : index
    %c22 = arith.constant 22 : index
    %41 = vector.load %arg1[%c0_41, %c0_42, %c22] : memref<1x9x506xbf16, #tpu.memory_space<vmem>>, vector<1x9x352xbf16>
    %42 = vector.shape_cast %41 : vector<1x9x352xbf16> to vector<9x352xbf16>
    %c7 = arith.constant 7 : index
    %c0_43 = arith.constant 0 : index
    %c0_44 = arith.constant 0 : index
    %43 = vector.load %arg2[%c7, %c0_43, %c0_44] : memref<49x3x9xbf16, #tpu.memory_space<vmem>>, vector<1x3x9xbf16>
    %44 = vector.shape_cast %43 : vector<1x3x9xbf16> to vector<3x9xbf16>
    %cst_45 = arith.constant dense<0.000000e+00> : vector<3x352xf32>
    %45 = tpu.matmul %44, %42, %cst_45 {dimension_numbers = #tpu.dot_dimension_numbers<[1], [0], [0], [1], [0, 0, 1, 1], [], []>} : vector<3x9xbf16>, vector<9x352xbf16>, vector<3x352xf32> -> vector<3x352xf32>
    %46 = arith.addf %40, %45 : vector<3x352xf32>
    %c0_46 = arith.constant 0 : index
    %c0_47 = arith.constant 0 : index
    %c23 = arith.constant 23 : index
    %47 = vector.load %arg1[%c0_46, %c0_47, %c23] : memref<1x9x506xbf16, #tpu.memory_space<vmem>>, vector<1x9x352xbf16>
    %48 = vector.shape_cast %47 : vector<1x9x352xbf16> to vector<9x352xbf16>
    %c8 = arith.constant 8 : index
    %c0_48 = arith.constant 0 : index
    %c0_49 = arith.constant 0 : index
    %49 = vector.load %arg2[%c8, %c0_48, %c0_49] : memref<49x3x9xbf16, #tpu.memory_space<vmem>>, vector<1x3x9xbf16>
    %50 = vector.shape_cast %49 : vector<1x3x9xbf16> to vector<3x9xbf16>
    %cst_50 = arith.constant dense<0.000000e+00> : vector<3x352xf32>
    %51 = tpu.matmul %50, %48, %cst_50 {dimension_numbers = #tpu.dot_dimension_numbers<[1], [0], [0], [1], [0, 0, 1, 1], [], []>} : vector<3x9xbf16>, vector<9x352xbf16>, vector<3x352xf32> -> vector<3x352xf32>
    %52 = arith.addf %46, %51 : vector<3x352xf32>
    %c0_51 = arith.constant 0 : index
    %c0_52 = arith.constant 0 : index
    %c24 = arith.constant 24 : index
    %53 = vector.load %arg1[%c0_51, %c0_52, %c24] : memref<1x9x506xbf16, #tpu.memory_space<vmem>>, vector<1x9x352xbf16>
    %54 = vector.shape_cast %53 : vector<1x9x352xbf16> to vector<9x352xbf16>
    %c9 = arith.constant 9 : index
    %c0_53 = arith.constant 0 : index
    %c0_54 = arith.constant 0 : index
    %55 = vector.load %arg2[%c9, %c0_53, %c0_54] : memref<49x3x9xbf16, #tpu.memory_space<vmem>>, vector<1x3x9xbf16>
    %56 = vector.shape_cast %55 : vector<1x3x9xbf16> to vector<3x9xbf16>
    %cst_55 = arith.constant dense<0.000000e+00> : vector<3x352xf32>
    %57 = tpu.matmul %56, %54, %cst_55 {dimension_numbers = #tpu.dot_dimension_numbers<[1], [0], [0], [1], [0, 0, 1, 1], [], []>} : vector<3x9xbf16>, vector<9x352xbf16>, vector<3x352xf32> -> vector<3x352xf32>
    %58 = arith.addf %52, %57 : vector<3x352xf32>
    %c0_56 = arith.constant 0 : index
    %c0_57 = arith.constant 0 : index
    %c25 = arith.constant 25 : index
    %59 = vector.load %arg1[%c0_56, %c0_57, %c25] : memref<1x9x506xbf16, #tpu.memory_space<vmem>>, vector<1x9x352xbf16>
    %60 = vector.shape_cast %59 : vector<1x9x352xbf16> to vector<9x352xbf16>
    %c10 = arith.constant 10 : index
    %c0_58 = arith.constant 0 : index
    %c0_59 = arith.constant 0 : index
    %61 = vector.load %arg2[%c10, %c0_58, %c0_59] : memref<49x3x9xbf16, #tpu.memory_space<vmem>>, vector<1x3x9xbf16>
    %62 = vector.shape_cast %61 : vector<1x3x9xbf16> to vector<3x9xbf16>
    %cst_60 = arith.constant dense<0.000000e+00> : vector<3x352xf32>
    %63 = tpu.matmul %62, %60, %cst_60 {dimension_numbers = #tpu.dot_dimension_numbers<[1], [0], [0], [1], [0, 0, 1, 1], [], []>} : vector<3x9xbf16>, vector<9x352xbf16>, vector<3x352xf32> -> vector<3x352xf32>
    %64 = arith.addf %58, %63 : vector<3x352xf32>
    %c0_61 = arith.constant 0 : index
    %c0_62 = arith.constant 0 : index
    %c26 = arith.constant 26 : index
    %65 = vector.load %arg1[%c0_61, %c0_62, %c26] : memref<1x9x506xbf16, #tpu.memory_space<vmem>>, vector<1x9x352xbf16>
    %66 = vector.shape_cast %65 : vector<1x9x352xbf16> to vector<9x352xbf16>
    %c11 = arith.constant 11 : index
    %c0_63 = arith.constant 0 : index
    %c0_64 = arith.constant 0 : index
    %67 = vector.load %arg2[%c11, %c0_63, %c0_64] : memref<49x3x9xbf16, #tpu.memory_space<vmem>>, vector<1x3x9xbf16>
    %68 = vector.shape_cast %67 : vector<1x3x9xbf16> to vector<3x9xbf16>
    %cst_65 = arith.constant dense<0.000000e+00> : vector<3x352xf32>
    %69 = tpu.matmul %68, %66, %cst_65 {dimension_numbers = #tpu.dot_dimension_numbers<[1], [0], [0], [1], [0, 0, 1, 1], [], []>} : vector<3x9xbf16>, vector<9x352xbf16>, vector<3x352xf32> -> vector<3x352xf32>
    %70 = arith.addf %64, %69 : vector<3x352xf32>
    %c0_66 = arith.constant 0 : index
    %c0_67 = arith.constant 0 : index
    %c27 = arith.constant 27 : index
    %71 = vector.load %arg1[%c0_66, %c0_67, %c27] : memref<1x9x506xbf16, #tpu.memory_space<vmem>>, vector<1x9x352xbf16>
    %72 = vector.shape_cast %71 : vector<1x9x352xbf16> to vector<9x352xbf16>
    %c12 = arith.constant 12 : index
    %c0_68 = arith.constant 0 : index
    %c0_69 = arith.constant 0 : index
    %73 = vector.load %arg2[%c12, %c0_68, %c0_69] : memref<49x3x9xbf16, #tpu.memory_space<vmem>>, vector<1x3x9xbf16>
    %74 = vector.shape_cast %73 : vector<1x3x9xbf16> to vector<3x9xbf16>
    %cst_70 = arith.constant dense<0.000000e+00> : vector<3x352xf32>
    %75 = tpu.matmul %74, %72, %cst_70 {dimension_numbers = #tpu.dot_dimension_numbers<[1], [0], [0], [1], [0, 0, 1, 1], [], []>} : vector<3x9xbf16>, vector<9x352xbf16>, vector<3x352xf32> -> vector<3x352xf32>
    %76 = arith.addf %70, %75 : vector<3x352xf32>
    %c0_71 = arith.constant 0 : index
    %c0_72 = arith.constant 0 : index
    %c28 = arith.constant 28 : index
    %77 = vector.load %arg1[%c0_71, %c0_72, %c28] : memref<1x9x506xbf16, #tpu.memory_space<vmem>>, vector<1x9x352xbf16>
    %78 = vector.shape_cast %77 : vector<1x9x352xbf16> to vector<9x352xbf16>
    %c13 = arith.constant 13 : index
    %c0_73 = arith.constant 0 : index
    %c0_74 = arith.constant 0 : index
    %79 = vector.load %arg2[%c13, %c0_73, %c0_74] : memref<49x3x9xbf16, #tpu.memory_space<vmem>>, vector<1x3x9xbf16>
    %80 = vector.shape_cast %79 : vector<1x3x9xbf16> to vector<3x9xbf16>
    %cst_75 = arith.constant dense<0.000000e+00> : vector<3x352xf32>
    %81 = tpu.matmul %80, %78, %cst_75 {dimension_numbers = #tpu.dot_dimension_numbers<[1], [0], [0], [1], [0, 0, 1, 1], [], []>} : vector<3x9xbf16>, vector<9x352xbf16>, vector<3x352xf32> -> vector<3x352xf32>
    %82 = arith.addf %76, %81 : vector<3x352xf32>
    %c0_76 = arith.constant 0 : index
    %c0_77 = arith.constant 0 : index
    %c44 = arith.constant 44 : index
    %83 = vector.load %arg1[%c0_76, %c0_77, %c44] : memref<1x9x506xbf16, #tpu.memory_space<vmem>>, vector<1x9x352xbf16>
    %84 = vector.shape_cast %83 : vector<1x9x352xbf16> to vector<9x352xbf16>
    %c14 = arith.constant 14 : index
    %c0_78 = arith.constant 0 : index
    %c0_79 = arith.constant 0 : index
    %85 = vector.load %arg2[%c14, %c0_78, %c0_79] : memref<49x3x9xbf16, #tpu.memory_space<vmem>>, vector<1x3x9xbf16>
    %86 = vector.shape_cast %85 : vector<1x3x9xbf16> to vector<3x9xbf16>
    %cst_80 = arith.constant dense<0.000000e+00> : vector<3x352xf32>
    %87 = tpu.matmul %86, %84, %cst_80 {dimension_numbers = #tpu.dot_dimension_numbers<[1], [0], [0], [1], [0, 0, 1, 1], [], []>} : vector<3x9xbf16>, vector<9x352xbf16>, vector<3x352xf32> -> vector<3x352xf32>
    %88 = arith.addf %82, %87 : vector<3x352xf32>
    %c0_81 = arith.constant 0 : index
    %c0_82 = arith.constant 0 : index
    %c45 = arith.constant 45 : index
    %89 = vector.load %arg1[%c0_81, %c0_82, %c45] : memref<1x9x506xbf16, #tpu.memory_space<vmem>>, vector<1x9x352xbf16>
    %90 = vector.shape_cast %89 : vector<1x9x352xbf16> to vector<9x352xbf16>
    %c15 = arith.constant 15 : index
    %c0_83 = arith.constant 0 : index
    %c0_84 = arith.constant 0 : index
    %91 = vector.load %arg2[%c15, %c0_83, %c0_84] : memref<49x3x9xbf16, #tpu.memory_space<vmem>>, vector<1x3x9xbf16>
    %92 = vector.shape_cast %91 : vector<1x3x9xbf16> to vector<3x9xbf16>
    %cst_85 = arith.constant dense<0.000000e+00> : vector<3x352xf32>
    %93 = tpu.matmul %92, %90, %cst_85 {dimension_numbers = #tpu.dot_dimension_numbers<[1], [0], [0], [1], [0, 0, 1, 1], [], []>} : vector<3x9xbf16>, vector<9x352xbf16>, vector<3x352xf32> -> vector<3x352xf32>
    %94 = arith.addf %88, %93 : vector<3x352xf32>
    %c0_86 = arith.constant 0 : index
    %c0_87 = arith.constant 0 : index
    %c46 = arith.constant 46 : index
    %95 = vector.load %arg1[%c0_86, %c0_87, %c46] : memref<1x9x506xbf16, #tpu.memory_space<vmem>>, vector<1x9x352xbf16>
    %96 = vector.shape_cast %95 : vector<1x9x352xbf16> to vector<9x352xbf16>
    %c16 = arith.constant 16 : index
    %c0_88 = arith.constant 0 : index
    %c0_89 = arith.constant 0 : index
    %97 = vector.load %arg2[%c16, %c0_88, %c0_89] : memref<49x3x9xbf16, #tpu.memory_space<vmem>>, vector<1x3x9xbf16>
    %98 = vector.shape_cast %97 : vector<1x3x9xbf16> to vector<3x9xbf16>
    %cst_90 = arith.constant dense<0.000000e+00> : vector<3x352xf32>
    %99 = tpu.matmul %98, %96, %cst_90 {dimension_numbers = #tpu.dot_dimension_numbers<[1], [0], [0], [1], [0, 0, 1, 1], [], []>} : vector<3x9xbf16>, vector<9x352xbf16>, vector<3x352xf32> -> vector<3x352xf32>
    %100 = arith.addf %94, %99 : vector<3x352xf32>
    %c0_91 = arith.constant 0 : index
    %c0_92 = arith.constant 0 : index
    %c47 = arith.constant 47 : index
    %101 = vector.load %arg1[%c0_91, %c0_92, %c47] : memref<1x9x506xbf16, #tpu.memory_space<vmem>>, vector<1x9x352xbf16>
    %102 = vector.shape_cast %101 : vector<1x9x352xbf16> to vector<9x352xbf16>
    %c17 = arith.constant 17 : index
    %c0_93 = arith.constant 0 : index
    %c0_94 = arith.constant 0 : index
    %103 = vector.load %arg2[%c17, %c0_93, %c0_94] : memref<49x3x9xbf16, #tpu.memory_space<vmem>>, vector<1x3x9xbf16>
    %104 = vector.shape_cast %103 : vector<1x3x9xbf16> to vector<3x9xbf16>
    %cst_95 = arith.constant dense<0.000000e+00> : vector<3x352xf32>
    %105 = tpu.matmul %104, %102, %cst_95 {dimension_numbers = #tpu.dot_dimension_numbers<[1], [0], [0], [1], [0, 0, 1, 1], [], []>} : vector<3x9xbf16>, vector<9x352xbf16>, vector<3x352xf32> -> vector<3x352xf32>
    %106 = arith.addf %100, %105 : vector<3x352xf32>
    %c0_96 = arith.constant 0 : index
    %c0_97 = arith.constant 0 : index
    %c48 = arith.constant 48 : index
    %107 = vector.load %arg1[%c0_96, %c0_97, %c48] : memref<1x9x506xbf16, #tpu.memory_space<vmem>>, vector<1x9x352xbf16>
    %108 = vector.shape_cast %107 : vector<1x9x352xbf16> to vector<9x352xbf16>
    %c18 = arith.constant 18 : index
    %c0_98 = arith.constant 0 : index
    %c0_99 = arith.constant 0 : index
    %109 = vector.load %arg2[%c18, %c0_98, %c0_99] : memref<49x3x9xbf16, #tpu.memory_space<vmem>>, vector<1x3x9xbf16>
    %110 = vector.shape_cast %109 : vector<1x3x9xbf16> to vector<3x9xbf16>
    %cst_100 = arith.constant dense<0.000000e+00> : vector<3x352xf32>
    %111 = tpu.matmul %110, %108, %cst_100 {dimension_numbers = #tpu.dot_dimension_numbers<[1], [0], [0], [1], [0, 0, 1, 1], [], []>} : vector<3x9xbf16>, vector<9x352xbf16>, vector<3x352xf32> -> vector<3x352xf32>
    %112 = arith.addf %106, %111 : vector<3x352xf32>
    %c0_101 = arith.constant 0 : index
    %c0_102 = arith.constant 0 : index
    %c49 = arith.constant 49 : index
    %113 = vector.load %arg1[%c0_101, %c0_102, %c49] : memref<1x9x506xbf16, #tpu.memory_space<vmem>>, vector<1x9x352xbf16>
    %114 = vector.shape_cast %113 : vector<1x9x352xbf16> to vector<9x352xbf16>
    %c19 = arith.constant 19 : index
    %c0_103 = arith.constant 0 : index
    %c0_104 = arith.constant 0 : index
    %115 = vector.load %arg2[%c19, %c0_103, %c0_104] : memref<49x3x9xbf16, #tpu.memory_space<vmem>>, vector<1x3x9xbf16>
    %116 = vector.shape_cast %115 : vector<1x3x9xbf16> to vector<3x9xbf16>
    %cst_105 = arith.constant dense<0.000000e+00> : vector<3x352xf32>
    %117 = tpu.matmul %116, %114, %cst_105 {dimension_numbers = #tpu.dot_dimension_numbers<[1], [0], [0], [1], [0, 0, 1, 1], [], []>} : vector<3x9xbf16>, vector<9x352xbf16>, vector<3x352xf32> -> vector<3x352xf32>
    %118 = arith.addf %112, %117 : vector<3x352xf32>
    %c0_106 = arith.constant 0 : index
    %c0_107 = arith.constant 0 : index
    %c50 = arith.constant 50 : index
    %119 = vector.load %arg1[%c0_106, %c0_107, %c50] : memref<1x9x506xbf16, #tpu.memory_space<vmem>>, vector<1x9x352xbf16>
    %120 = vector.shape_cast %119 : vector<1x9x352xbf16> to vector<9x352xbf16>
    %c20 = arith.constant 20 : index
    %c0_108 = arith.constant 0 : index
    %c0_109 = arith.constant 0 : index
    %121 = vector.load %arg2[%c20, %c0_108, %c0_109] : memref<49x3x9xbf16, #tpu.memory_space<vmem>>, vector<1x3x9xbf16>
    %122 = vector.shape_cast %121 : vector<1x3x9xbf16> to vector<3x9xbf16>
    %cst_110 = arith.constant dense<0.000000e+00> : vector<3x352xf32>
    %123 = tpu.matmul %122, %120, %cst_110 {dimension_numbers = #tpu.dot_dimension_numbers<[1], [0], [0], [1], [0, 0, 1, 1], [], []>} : vector<3x9xbf16>, vector<9x352xbf16>, vector<3x352xf32> -> vector<3x352xf32>
    %124 = arith.addf %118, %123 : vector<3x352xf32>
    %c0_111 = arith.constant 0 : index
    %c0_112 = arith.constant 0 : index
    %c66 = arith.constant 66 : index
    %125 = vector.load %arg1[%c0_111, %c0_112, %c66] : memref<1x9x506xbf16, #tpu.memory_space<vmem>>, vector<1x9x352xbf16>
    %126 = vector.shape_cast %125 : vector<1x9x352xbf16> to vector<9x352xbf16>
    %c21 = arith.constant 21 : index
    %c0_113 = arith.constant 0 : index
    %c0_114 = arith.constant 0 : index
    %127 = vector.load %arg2[%c21, %c0_113, %c0_114] : memref<49x3x9xbf16, #tpu.memory_space<vmem>>, vector<1x3x9xbf16>
    %128 = vector.shape_cast %127 : vector<1x3x9xbf16> to vector<3x9xbf16>
    %cst_115 = arith.constant dense<0.000000e+00> : vector<3x352xf32>
    %129 = tpu.matmul %128, %126, %cst_115 {dimension_numbers = #tpu.dot_dimension_numbers<[1], [0], [0], [1], [0, 0, 1, 1], [], []>} : vector<3x9xbf16>, vector<9x352xbf16>, vector<3x352xf32> -> vector<3x352xf32>
    %130 = arith.addf %124, %129 : vector<3x352xf32>
    %c0_116 = arith.constant 0 : index
    %c0_117 = arith.constant 0 : index
    %c67 = arith.constant 67 : index
    %131 = vector.load %arg1[%c0_116, %c0_117, %c67] : memref<1x9x506xbf16, #tpu.memory_space<vmem>>, vector<1x9x352xbf16>
    %132 = vector.shape_cast %131 : vector<1x9x352xbf16> to vector<9x352xbf16>
    %c22_118 = arith.constant 22 : index
    %c0_119 = arith.constant 0 : index
    %c0_120 = arith.constant 0 : index
    %133 = vector.load %arg2[%c22_118, %c0_119, %c0_120] : memref<49x3x9xbf16, #tpu.memory_space<vmem>>, vector<1x3x9xbf16>
    %134 = vector.shape_cast %133 : vector<1x3x9xbf16> to vector<3x9xbf16>
    %cst_121 = arith.constant dense<0.000000e+00> : vector<3x352xf32>
    %135 = tpu.matmul %134, %132, %cst_121 {dimension_numbers = #tpu.dot_dimension_numbers<[1], [0], [0], [1], [0, 0, 1, 1], [], []>} : vector<3x9xbf16>, vector<9x352xbf16>, vector<3x352xf32> -> vector<3x352xf32>
    %136 = arith.addf %130, %135 : vector<3x352xf32>
    %c0_122 = arith.constant 0 : index
    %c0_123 = arith.constant 0 : index
    %c68 = arith.constant 68 : index
    %137 = vector.load %arg1[%c0_122, %c0_123, %c68] : memref<1x9x506xbf16, #tpu.memory_space<vmem>>, vector<1x9x352xbf16>
    %138 = vector.shape_cast %137 : vector<1x9x352xbf16> to vector<9x352xbf16>
    %c23_124 = arith.constant 23 : index
    %c0_125 = arith.constant 0 : index
    %c0_126 = arith.constant 0 : index
    %139 = vector.load %arg2[%c23_124, %c0_125, %c0_126] : memref<49x3x9xbf16, #tpu.memory_space<vmem>>, vector<1x3x9xbf16>
    %140 = vector.shape_cast %139 : vector<1x3x9xbf16> to vector<3x9xbf16>
    %cst_127 = arith.constant dense<0.000000e+00> : vector<3x352xf32>
    %141 = tpu.matmul %140, %138, %cst_127 {dimension_numbers = #tpu.dot_dimension_numbers<[1], [0], [0], [1], [0, 0, 1, 1], [], []>} : vector<3x9xbf16>, vector<9x352xbf16>, vector<3x352xf32> -> vector<3x352xf32>
    %142 = arith.addf %136, %141 : vector<3x352xf32>
    %c0_128 = arith.constant 0 : index
    %c0_129 = arith.constant 0 : index
    %c69 = arith.constant 69 : index
    %143 = vector.load %arg1[%c0_128, %c0_129, %c69] : memref<1x9x506xbf16, #tpu.memory_space<vmem>>, vector<1x9x352xbf16>
    %144 = vector.shape_cast %143 : vector<1x9x352xbf16> to vector<9x352xbf16>
    %c24_130 = arith.constant 24 : index
    %c0_131 = arith.constant 0 : index
    %c0_132 = arith.constant 0 : index
    %145 = vector.load %arg2[%c24_130, %c0_131, %c0_132] : memref<49x3x9xbf16, #tpu.memory_space<vmem>>, vector<1x3x9xbf16>
    %146 = vector.shape_cast %145 : vector<1x3x9xbf16> to vector<3x9xbf16>
    %cst_133 = arith.constant dense<0.000000e+00> : vector<3x352xf32>
    %147 = tpu.matmul %146, %144, %cst_133 {dimension_numbers = #tpu.dot_dimension_numbers<[1], [0], [0], [1], [0, 0, 1, 1], [], []>} : vector<3x9xbf16>, vector<9x352xbf16>, vector<3x352xf32> -> vector<3x352xf32>
    %148 = arith.addf %142, %147 : vector<3x352xf32>
    %c0_134 = arith.constant 0 : index
    %c0_135 = arith.constant 0 : index
    %c70 = arith.constant 70 : index
    %149 = vector.load %arg1[%c0_134, %c0_135, %c70] : memref<1x9x506xbf16, #tpu.memory_space<vmem>>, vector<1x9x352xbf16>
    %150 = vector.shape_cast %149 : vector<1x9x352xbf16> to vector<9x352xbf16>
    %c25_136 = arith.constant 25 : index
    %c0_137 = arith.constant 0 : index
    %c0_138 = arith.constant 0 : index
    %151 = vector.load %arg2[%c25_136, %c0_137, %c0_138] : memref<49x3x9xbf16, #tpu.memory_space<vmem>>, vector<1x3x9xbf16>
    %152 = vector.shape_cast %151 : vector<1x3x9xbf16> to vector<3x9xbf16>
    %cst_139 = arith.constant dense<0.000000e+00> : vector<3x352xf32>
    %153 = tpu.matmul %152, %150, %cst_139 {dimension_numbers = #tpu.dot_dimension_numbers<[1], [0], [0], [1], [0, 0, 1, 1], [], []>} : vector<3x9xbf16>, vector<9x352xbf16>, vector<3x352xf32> -> vector<3x352xf32>
    %154 = arith.addf %148, %153 : vector<3x352xf32>
    %c0_140 = arith.constant 0 : index
    %c0_141 = arith.constant 0 : index
    %c71 = arith.constant 71 : index
    %155 = vector.load %arg1[%c0_140, %c0_141, %c71] : memref<1x9x506xbf16, #tpu.memory_space<vmem>>, vector<1x9x352xbf16>
    %156 = vector.shape_cast %155 : vector<1x9x352xbf16> to vector<9x352xbf16>
    %c26_142 = arith.constant 26 : index
    %c0_143 = arith.constant 0 : index
    %c0_144 = arith.constant 0 : index
    %157 = vector.load %arg2[%c26_142, %c0_143, %c0_144] : memref<49x3x9xbf16, #tpu.memory_space<vmem>>, vector<1x3x9xbf16>
    %158 = vector.shape_cast %157 : vector<1x3x9xbf16> to vector<3x9xbf16>
    %cst_145 = arith.constant dense<0.000000e+00> : vector<3x352xf32>
    %159 = tpu.matmul %158, %156, %cst_145 {dimension_numbers = #tpu.dot_dimension_numbers<[1], [0], [0], [1], [0, 0, 1, 1], [], []>} : vector<3x9xbf16>, vector<9x352xbf16>, vector<3x352xf32> -> vector<3x352xf32>
    %160 = arith.addf %154, %159 : vector<3x352xf32>
    %c0_146 = arith.constant 0 : index
    %c0_147 = arith.constant 0 : index
    %c72 = arith.constant 72 : index
    %161 = vector.load %arg1[%c0_146, %c0_147, %c72] : memref<1x9x506xbf16, #tpu.memory_space<vmem>>, vector<1x9x352xbf16>
    %162 = vector.shape_cast %161 : vector<1x9x352xbf16> to vector<9x352xbf16>
    %c27_148 = arith.constant 27 : index
    %c0_149 = arith.constant 0 : index
    %c0_150 = arith.constant 0 : index
    %163 = vector.load %arg2[%c27_148, %c0_149, %c0_150] : memref<49x3x9xbf16, #tpu.memory_space<vmem>>, vector<1x3x9xbf16>
    %164 = vector.shape_cast %163 : vector<1x3x9xbf16> to vector<3x9xbf16>
    %cst_151 = arith.constant dense<0.000000e+00> : vector<3x352xf32>
    %165 = tpu.matmul %164, %162, %cst_151 {dimension_numbers = #tpu.dot_dimension_numbers<[1], [0], [0], [1], [0, 0, 1, 1], [], []>} : vector<3x9xbf16>, vector<9x352xbf16>, vector<3x352xf32> -> vector<3x352xf32>
    %166 = arith.addf %160, %165 : vector<3x352xf32>
    %c0_152 = arith.constant 0 : index
    %c0_153 = arith.constant 0 : index
    %c88 = arith.constant 88 : index
    %167 = vector.load %arg1[%c0_152, %c0_153, %c88] : memref<1x9x506xbf16, #tpu.memory_space<vmem>>, vector<1x9x352xbf16>
    %168 = vector.shape_cast %167 : vector<1x9x352xbf16> to vector<9x352xbf16>
    %c28_154 = arith.constant 28 : index
    %c0_155 = arith.constant 0 : index
    %c0_156 = arith.constant 0 : index
    %169 = vector.load %arg2[%c28_154, %c0_155, %c0_156] : memref<49x3x9xbf16, #tpu.memory_space<vmem>>, vector<1x3x9xbf16>
    %170 = vector.shape_cast %169 : vector<1x3x9xbf16> to vector<3x9xbf16>
    %cst_157 = arith.constant dense<0.000000e+00> : vector<3x352xf32>
    %171 = tpu.matmul %170, %168, %cst_157 {dimension_numbers = #tpu.dot_dimension_numbers<[1], [0], [0], [1], [0, 0, 1, 1], [], []>} : vector<3x9xbf16>, vector<9x352xbf16>, vector<3x352xf32> -> vector<3x352xf32>
    %172 = arith.addf %166, %171 : vector<3x352xf32>
    %c0_158 = arith.constant 0 : index
    %c0_159 = arith.constant 0 : index
    %c89 = arith.constant 89 : index
    %173 = vector.load %arg1[%c0_158, %c0_159, %c89] : memref<1x9x506xbf16, #tpu.memory_space<vmem>>, vector<1x9x352xbf16>
    %174 = vector.shape_cast %173 : vector<1x9x352xbf16> to vector<9x352xbf16>
    %c29 = arith.constant 29 : index
    %c0_160 = arith.constant 0 : index
    %c0_161 = arith.constant 0 : index
    %175 = vector.load %arg2[%c29, %c0_160, %c0_161] : memref<49x3x9xbf16, #tpu.memory_space<vmem>>, vector<1x3x9xbf16>
    %176 = vector.shape_cast %175 : vector<1x3x9xbf16> to vector<3x9xbf16>
    %cst_162 = arith.constant dense<0.000000e+00> : vector<3x352xf32>
    %177 = tpu.matmul %176, %174, %cst_162 {dimension_numbers = #tpu.dot_dimension_numbers<[1], [0], [0], [1], [0, 0, 1, 1], [], []>} : vector<3x9xbf16>, vector<9x352xbf16>, vector<3x352xf32> -> vector<3x352xf32>
    %178 = arith.addf %172, %177 : vector<3x352xf32>
    %c0_163 = arith.constant 0 : index
    %c0_164 = arith.constant 0 : index
    %c90 = arith.constant 90 : index
    %179 = vector.load %arg1[%c0_163, %c0_164, %c90] : memref<1x9x506xbf16, #tpu.memory_space<vmem>>, vector<1x9x352xbf16>
    %180 = vector.shape_cast %179 : vector<1x9x352xbf16> to vector<9x352xbf16>
    %c30 = arith.constant 30 : index
    %c0_165 = arith.constant 0 : index
    %c0_166 = arith.constant 0 : index
    %181 = vector.load %arg2[%c30, %c0_165, %c0_166] : memref<49x3x9xbf16, #tpu.memory_space<vmem>>, vector<1x3x9xbf16>
    %182 = vector.shape_cast %181 : vector<1x3x9xbf16> to vector<3x9xbf16>
    %cst_167 = arith.constant dense<0.000000e+00> : vector<3x352xf32>
    %183 = tpu.matmul %182, %180, %cst_167 {dimension_numbers = #tpu.dot_dimension_numbers<[1], [0], [0], [1], [0, 0, 1, 1], [], []>} : vector<3x9xbf16>, vector<9x352xbf16>, vector<3x352xf32> -> vector<3x352xf32>
    %184 = arith.addf %178, %183 : vector<3x352xf32>
    %c0_168 = arith.constant 0 : index
    %c0_169 = arith.constant 0 : index
    %c91 = arith.constant 91 : index
    %185 = vector.load %arg1[%c0_168, %c0_169, %c91] : memref<1x9x506xbf16, #tpu.memory_space<vmem>>, vector<1x9x352xbf16>
    %186 = vector.shape_cast %185 : vector<1x9x352xbf16> to vector<9x352xbf16>
    %c31 = arith.constant 31 : index
    %c0_170 = arith.constant 0 : index
    %c0_171 = arith.constant 0 : index
    %187 = vector.load %arg2[%c31, %c0_170, %c0_171] : memref<49x3x9xbf16, #tpu.memory_space<vmem>>, vector<1x3x9xbf16>
    %188 = vector.shape_cast %187 : vector<1x3x9xbf16> to vector<3x9xbf16>
    %cst_172 = arith.constant dense<0.000000e+00> : vector<3x352xf32>
    %189 = tpu.matmul %188, %186, %cst_172 {dimension_numbers = #tpu.dot_dimension_numbers<[1], [0], [0], [1], [0, 0, 1, 1], [], []>} : vector<3x9xbf16>, vector<9x352xbf16>, vector<3x352xf32> -> vector<3x352xf32>
    %190 = arith.addf %184, %189 : vector<3x352xf32>
    %c0_173 = arith.constant 0 : index
    %c0_174 = arith.constant 0 : index
    %c92 = arith.constant 92 : index
    %191 = vector.load %arg1[%c0_173, %c0_174, %c92] : memref<1x9x506xbf16, #tpu.memory_space<vmem>>, vector<1x9x352xbf16>
    %192 = vector.shape_cast %191 : vector<1x9x352xbf16> to vector<9x352xbf16>
    %c32 = arith.constant 32 : index
    %c0_175 = arith.constant 0 : index
    %c0_176 = arith.constant 0 : index
    %193 = vector.load %arg2[%c32, %c0_175, %c0_176] : memref<49x3x9xbf16, #tpu.memory_space<vmem>>, vector<1x3x9xbf16>
    %194 = vector.shape_cast %193 : vector<1x3x9xbf16> to vector<3x9xbf16>
    %cst_177 = arith.constant dense<0.000000e+00> : vector<3x352xf32>
    %195 = tpu.matmul %194, %192, %cst_177 {dimension_numbers = #tpu.dot_dimension_numbers<[1], [0], [0], [1], [0, 0, 1, 1], [], []>} : vector<3x9xbf16>, vector<9x352xbf16>, vector<3x352xf32> -> vector<3x352xf32>
    %196 = arith.addf %190, %195 : vector<3x352xf32>
    %c0_178 = arith.constant 0 : index
    %c0_179 = arith.constant 0 : index
    %c93 = arith.constant 93 : index
    %197 = vector.load %arg1[%c0_178, %c0_179, %c93] : memref<1x9x506xbf16, #tpu.memory_space<vmem>>, vector<1x9x352xbf16>
    %198 = vector.shape_cast %197 : vector<1x9x352xbf16> to vector<9x352xbf16>
    %c33 = arith.constant 33 : index
    %c0_180 = arith.constant 0 : index
    %c0_181 = arith.constant 0 : index
    %199 = vector.load %arg2[%c33, %c0_180, %c0_181] : memref<49x3x9xbf16, #tpu.memory_space<vmem>>, vector<1x3x9xbf16>
    %200 = vector.shape_cast %199 : vector<1x3x9xbf16> to vector<3x9xbf16>
    %cst_182 = arith.constant dense<0.000000e+00> : vector<3x352xf32>
    %201 = tpu.matmul %200, %198, %cst_182 {dimension_numbers = #tpu.dot_dimension_numbers<[1], [0], [0], [1], [0, 0, 1, 1], [], []>} : vector<3x9xbf16>, vector<9x352xbf16>, vector<3x352xf32> -> vector<3x352xf32>
    %202 = arith.addf %196, %201 : vector<3x352xf32>
    %c0_183 = arith.constant 0 : index
    %c0_184 = arith.constant 0 : index
    %c94 = arith.constant 94 : index
    %203 = vector.load %arg1[%c0_183, %c0_184, %c94] : memref<1x9x506xbf16, #tpu.memory_space<vmem>>, vector<1x9x352xbf16>
    %204 = vector.shape_cast %203 : vector<1x9x352xbf16> to vector<9x352xbf16>
    %c34 = arith.constant 34 : index
    %c0_185 = arith.constant 0 : index
    %c0_186 = arith.constant 0 : index
    %205 = vector.load %arg2[%c34, %c0_185, %c0_186] : memref<49x3x9xbf16, #tpu.memory_space<vmem>>, vector<1x3x9xbf16>
    %206 = vector.shape_cast %205 : vector<1x3x9xbf16> to vector<3x9xbf16>
    %cst_187 = arith.constant dense<0.000000e+00> : vector<3x352xf32>
    %207 = tpu.matmul %206, %204, %cst_187 {dimension_numbers = #tpu.dot_dimension_numbers<[1], [0], [0], [1], [0, 0, 1, 1], [], []>} : vector<3x9xbf16>, vector<9x352xbf16>, vector<3x352xf32> -> vector<3x352xf32>
    %208 = arith.addf %202, %207 : vector<3x352xf32>
    %c0_188 = arith.constant 0 : index
    %c0_189 = arith.constant 0 : index
    %c110 = arith.constant 110 : index
    %209 = vector.load %arg1[%c0_188, %c0_189, %c110] : memref<1x9x506xbf16, #tpu.memory_space<vmem>>, vector<1x9x352xbf16>
    %210 = vector.shape_cast %209 : vector<1x9x352xbf16> to vector<9x352xbf16>
    %c35 = arith.constant 35 : index
    %c0_190 = arith.constant 0 : index
    %c0_191 = arith.constant 0 : index
    %211 = vector.load %arg2[%c35, %c0_190, %c0_191] : memref<49x3x9xbf16, #tpu.memory_space<vmem>>, vector<1x3x9xbf16>
    %212 = vector.shape_cast %211 : vector<1x3x9xbf16> to vector<3x9xbf16>
    %cst_192 = arith.constant dense<0.000000e+00> : vector<3x352xf32>
    %213 = tpu.matmul %212, %210, %cst_192 {dimension_numbers = #tpu.dot_dimension_numbers<[1], [0], [0], [1], [0, 0, 1, 1], [], []>} : vector<3x9xbf16>, vector<9x352xbf16>, vector<3x352xf32> -> vector<3x352xf32>
    %214 = arith.addf %208, %213 : vector<3x352xf32>
    %c0_193 = arith.constant 0 : index
    %c0_194 = arith.constant 0 : index
    %c111 = arith.constant 111 : index
    %215 = vector.load %arg1[%c0_193, %c0_194, %c111] : memref<1x9x506xbf16, #tpu.memory_space<vmem>>, vector<1x9x352xbf16>
    %216 = vector.shape_cast %215 : vector<1x9x352xbf16> to vector<9x352xbf16>
    %c36 = arith.constant 36 : index
    %c0_195 = arith.constant 0 : index
    %c0_196 = arith.constant 0 : index
    %217 = vector.load %arg2[%c36, %c0_195, %c0_196] : memref<49x3x9xbf16, #tpu.memory_space<vmem>>, vector<1x3x9xbf16>
    %218 = vector.shape_cast %217 : vector<1x3x9xbf16> to vector<3x9xbf16>
    %cst_197 = arith.constant dense<0.000000e+00> : vector<3x352xf32>
    %219 = tpu.matmul %218, %216, %cst_197 {dimension_numbers = #tpu.dot_dimension_numbers<[1], [0], [0], [1], [0, 0, 1, 1], [], []>} : vector<3x9xbf16>, vector<9x352xbf16>, vector<3x352xf32> -> vector<3x352xf32>
    %220 = arith.addf %214, %219 : vector<3x352xf32>
    %c0_198 = arith.constant 0 : index
    %c0_199 = arith.constant 0 : index
    %c112 = arith.constant 112 : index
    %221 = vector.load %arg1[%c0_198, %c0_199, %c112] : memref<1x9x506xbf16, #tpu.memory_space<vmem>>, vector<1x9x352xbf16>
    %222 = vector.shape_cast %221 : vector<1x9x352xbf16> to vector<9x352xbf16>
    %c37 = arith.constant 37 : index
    %c0_200 = arith.constant 0 : index
    %c0_201 = arith.constant 0 : index
    %223 = vector.load %arg2[%c37, %c0_200, %c0_201] : memref<49x3x9xbf16, #tpu.memory_space<vmem>>, vector<1x3x9xbf16>
    %224 = vector.shape_cast %223 : vector<1x3x9xbf16> to vector<3x9xbf16>
    %cst_202 = arith.constant dense<0.000000e+00> : vector<3x352xf32>
    %225 = tpu.matmul %224, %222, %cst_202 {dimension_numbers = #tpu.dot_dimension_numbers<[1], [0], [0], [1], [0, 0, 1, 1], [], []>} : vector<3x9xbf16>, vector<9x352xbf16>, vector<3x352xf32> -> vector<3x352xf32>
    %226 = arith.addf %220, %225 : vector<3x352xf32>
    %c0_203 = arith.constant 0 : index
    %c0_204 = arith.constant 0 : index
    %c113 = arith.constant 113 : index
    %227 = vector.load %arg1[%c0_203, %c0_204, %c113] : memref<1x9x506xbf16, #tpu.memory_space<vmem>>, vector<1x9x352xbf16>
    %228 = vector.shape_cast %227 : vector<1x9x352xbf16> to vector<9x352xbf16>
    %c38 = arith.constant 38 : index
    %c0_205 = arith.constant 0 : index
    %c0_206 = arith.constant 0 : index
    %229 = vector.load %arg2[%c38, %c0_205, %c0_206] : memref<49x3x9xbf16, #tpu.memory_space<vmem>>, vector<1x3x9xbf16>
    %230 = vector.shape_cast %229 : vector<1x3x9xbf16> to vector<3x9xbf16>
    %cst_207 = arith.constant dense<0.000000e+00> : vector<3x352xf32>
    %231 = tpu.matmul %230, %228, %cst_207 {dimension_numbers = #tpu.dot_dimension_numbers<[1], [0], [0], [1], [0, 0, 1, 1], [], []>} : vector<3x9xbf16>, vector<9x352xbf16>, vector<3x352xf32> -> vector<3x352xf32>
    %232 = arith.addf %226, %231 : vector<3x352xf32>
    %c0_208 = arith.constant 0 : index
    %c0_209 = arith.constant 0 : index
    %c114 = arith.constant 114 : index
    %233 = vector.load %arg1[%c0_208, %c0_209, %c114] : memref<1x9x506xbf16, #tpu.memory_space<vmem>>, vector<1x9x352xbf16>
    %234 = vector.shape_cast %233 : vector<1x9x352xbf16> to vector<9x352xbf16>
    %c39 = arith.constant 39 : index
    %c0_210 = arith.constant 0 : index
    %c0_211 = arith.constant 0 : index
    %235 = vector.load %arg2[%c39, %c0_210, %c0_211] : memref<49x3x9xbf16, #tpu.memory_space<vmem>>, vector<1x3x9xbf16>
    %236 = vector.shape_cast %235 : vector<1x3x9xbf16> to vector<3x9xbf16>
    %cst_212 = arith.constant dense<0.000000e+00> : vector<3x352xf32>
    %237 = tpu.matmul %236, %234, %cst_212 {dimension_numbers = #tpu.dot_dimension_numbers<[1], [0], [0], [1], [0, 0, 1, 1], [], []>} : vector<3x9xbf16>, vector<9x352xbf16>, vector<3x352xf32> -> vector<3x352xf32>
    %238 = arith.addf %232, %237 : vector<3x352xf32>
    %c0_213 = arith.constant 0 : index
    %c0_214 = arith.constant 0 : index
    %c115 = arith.constant 115 : index
    %239 = vector.load %arg1[%c0_213, %c0_214, %c115] : memref<1x9x506xbf16, #tpu.memory_space<vmem>>, vector<1x9x352xbf16>
    %240 = vector.shape_cast %239 : vector<1x9x352xbf16> to vector<9x352xbf16>
    %c40 = arith.constant 40 : index
    %c0_215 = arith.constant 0 : index
    %c0_216 = arith.constant 0 : index
    %241 = vector.load %arg2[%c40, %c0_215, %c0_216] : memref<49x3x9xbf16, #tpu.memory_space<vmem>>, vector<1x3x9xbf16>
    %242 = vector.shape_cast %241 : vector<1x3x9xbf16> to vector<3x9xbf16>
    %cst_217 = arith.constant dense<0.000000e+00> : vector<3x352xf32>
    %243 = tpu.matmul %242, %240, %cst_217 {dimension_numbers = #tpu.dot_dimension_numbers<[1], [0], [0], [1], [0, 0, 1, 1], [], []>} : vector<3x9xbf16>, vector<9x352xbf16>, vector<3x352xf32> -> vector<3x352xf32>
    %244 = arith.addf %238, %243 : vector<3x352xf32>
    %c0_218 = arith.constant 0 : index
    %c0_219 = arith.constant 0 : index
    %c116 = arith.constant 116 : index
    %245 = vector.load %arg1[%c0_218, %c0_219, %c116] : memref<1x9x506xbf16, #tpu.memory_space<vmem>>, vector<1x9x352xbf16>
    %246 = vector.shape_cast %245 : vector<1x9x352xbf16> to vector<9x352xbf16>
    %c41 = arith.constant 41 : index
    %c0_220 = arith.constant 0 : index
    %c0_221 = arith.constant 0 : index
    %247 = vector.load %arg2[%c41, %c0_220, %c0_221] : memref<49x3x9xbf16, #tpu.memory_space<vmem>>, vector<1x3x9xbf16>
    %248 = vector.shape_cast %247 : vector<1x3x9xbf16> to vector<3x9xbf16>
    %cst_222 = arith.constant dense<0.000000e+00> : vector<3x352xf32>
    %249 = tpu.matmul %248, %246, %cst_222 {dimension_numbers = #tpu.dot_dimension_numbers<[1], [0], [0], [1], [0, 0, 1, 1], [], []>} : vector<3x9xbf16>, vector<9x352xbf16>, vector<3x352xf32> -> vector<3x352xf32>
    %250 = arith.addf %244, %249 : vector<3x352xf32>
    %c0_223 = arith.constant 0 : index
    %c0_224 = arith.constant 0 : index
    %c132 = arith.constant 132 : index
    %251 = vector.load %arg1[%c0_223, %c0_224, %c132] : memref<1x9x506xbf16, #tpu.memory_space<vmem>>, vector<1x9x352xbf16>
    %252 = vector.shape_cast %251 : vector<1x9x352xbf16> to vector<9x352xbf16>
    %c42 = arith.constant 42 : index
    %c0_225 = arith.constant 0 : index
    %c0_226 = arith.constant 0 : index
    %253 = vector.load %arg2[%c42, %c0_225, %c0_226] : memref<49x3x9xbf16, #tpu.memory_space<vmem>>, vector<1x3x9xbf16>
    %254 = vector.shape_cast %253 : vector<1x3x9xbf16> to vector<3x9xbf16>
    %cst_227 = arith.constant dense<0.000000e+00> : vector<3x352xf32>
    %255 = tpu.matmul %254, %252, %cst_227 {dimension_numbers = #tpu.dot_dimension_numbers<[1], [0], [0], [1], [0, 0, 1, 1], [], []>} : vector<3x9xbf16>, vector<9x352xbf16>, vector<3x352xf32> -> vector<3x352xf32>
    %256 = arith.addf %250, %255 : vector<3x352xf32>
    %c0_228 = arith.constant 0 : index
    %c0_229 = arith.constant 0 : index
    %c133 = arith.constant 133 : index
    %257 = vector.load %arg1[%c0_228, %c0_229, %c133] : memref<1x9x506xbf16, #tpu.memory_space<vmem>>, vector<1x9x352xbf16>
    %258 = vector.shape_cast %257 : vector<1x9x352xbf16> to vector<9x352xbf16>
    %c43 = arith.constant 43 : index
    %c0_230 = arith.constant 0 : index
    %c0_231 = arith.constant 0 : index
    %259 = vector.load %arg2[%c43, %c0_230, %c0_231] : memref<49x3x9xbf16, #tpu.memory_space<vmem>>, vector<1x3x9xbf16>
    %260 = vector.shape_cast %259 : vector<1x3x9xbf16> to vector<3x9xbf16>
    %cst_232 = arith.constant dense<0.000000e+00> : vector<3x352xf32>
    %261 = tpu.matmul %260, %258, %cst_232 {dimension_numbers = #tpu.dot_dimension_numbers<[1], [0], [0], [1], [0, 0, 1, 1], [], []>} : vector<3x9xbf16>, vector<9x352xbf16>, vector<3x352xf32> -> vector<3x352xf32>
    %262 = arith.addf %256, %261 : vector<3x352xf32>
    %c0_233 = arith.constant 0 : index
    %c0_234 = arith.constant 0 : index
    %c134 = arith.constant 134 : index
    %263 = vector.load %arg1[%c0_233, %c0_234, %c134] : memref<1x9x506xbf16, #tpu.memory_space<vmem>>, vector<1x9x352xbf16>
    %264 = vector.shape_cast %263 : vector<1x9x352xbf16> to vector<9x352xbf16>
    %c44_235 = arith.constant 44 : index
    %c0_236 = arith.constant 0 : index
    %c0_237 = arith.constant 0 : index
    %265 = vector.load %arg2[%c44_235, %c0_236, %c0_237] : memref<49x3x9xbf16, #tpu.memory_space<vmem>>, vector<1x3x9xbf16>
    %266 = vector.shape_cast %265 : vector<1x3x9xbf16> to vector<3x9xbf16>
    %cst_238 = arith.constant dense<0.000000e+00> : vector<3x352xf32>
    %267 = tpu.matmul %266, %264, %cst_238 {dimension_numbers = #tpu.dot_dimension_numbers<[1], [0], [0], [1], [0, 0, 1, 1], [], []>} : vector<3x9xbf16>, vector<9x352xbf16>, vector<3x352xf32> -> vector<3x352xf32>
    %268 = arith.addf %262, %267 : vector<3x352xf32>
    %c0_239 = arith.constant 0 : index
    %c0_240 = arith.constant 0 : index
    %c135 = arith.constant 135 : index
    %269 = vector.load %arg1[%c0_239, %c0_240, %c135] : memref<1x9x506xbf16, #tpu.memory_space<vmem>>, vector<1x9x352xbf16>
    %270 = vector.shape_cast %269 : vector<1x9x352xbf16> to vector<9x352xbf16>
    %c45_241 = arith.constant 45 : index
    %c0_242 = arith.constant 0 : index
    %c0_243 = arith.constant 0 : index
    %271 = vector.load %arg2[%c45_241, %c0_242, %c0_243] : memref<49x3x9xbf16, #tpu.memory_space<vmem>>, vector<1x3x9xbf16>
    %272 = vector.shape_cast %271 : vector<1x3x9xbf16> to vector<3x9xbf16>
    %cst_244 = arith.constant dense<0.000000e+00> : vector<3x352xf32>
    %273 = tpu.matmul %272, %270, %cst_244 {dimension_numbers = #tpu.dot_dimension_numbers<[1], [0], [0], [1], [0, 0, 1, 1], [], []>} : vector<3x9xbf16>, vector<9x352xbf16>, vector<3x352xf32> -> vector<3x352xf32>
    %274 = arith.addf %268, %273 : vector<3x352xf32>
    %c0_245 = arith.constant 0 : index
    %c0_246 = arith.constant 0 : index
    %c136 = arith.constant 136 : index
    %275 = vector.load %arg1[%c0_245, %c0_246, %c136] : memref<1x9x506xbf16, #tpu.memory_space<vmem>>, vector<1x9x352xbf16>
    %276 = vector.shape_cast %275 : vector<1x9x352xbf16> to vector<9x352xbf16>
    %c46_247 = arith.constant 46 : index
    %c0_248 = arith.constant 0 : index
    %c0_249 = arith.constant 0 : index
    %277 = vector.load %arg2[%c46_247, %c0_248, %c0_249] : memref<49x3x9xbf16, #tpu.memory_space<vmem>>, vector<1x3x9xbf16>
    %278 = vector.shape_cast %277 : vector<1x3x9xbf16> to vector<3x9xbf16>
    %cst_250 = arith.constant dense<0.000000e+00> : vector<3x352xf32>
    %279 = tpu.matmul %278, %276, %cst_250 {dimension_numbers = #tpu.dot_dimension_numbers<[1], [0], [0], [1], [0, 0, 1, 1], [], []>} : vector<3x9xbf16>, vector<9x352xbf16>, vector<3x352xf32> -> vector<3x352xf32>
    %280 = arith.addf %274, %279 : vector<3x352xf32>
    %c0_251 = arith.constant 0 : index
    %c0_252 = arith.constant 0 : index
    %c137 = arith.constant 137 : index
    %281 = vector.load %arg1[%c0_251, %c0_252, %c137] : memref<1x9x506xbf16, #tpu.memory_space<vmem>>, vector<1x9x352xbf16>
    %282 = vector.shape_cast %281 : vector<1x9x352xbf16> to vector<9x352xbf16>
    %c47_253 = arith.constant 47 : index
    %c0_254 = arith.constant 0 : index
    %c0_255 = arith.constant 0 : index
    %283 = vector.load %arg2[%c47_253, %c0_254, %c0_255] : memref<49x3x9xbf16, #tpu.memory_space<vmem>>, vector<1x3x9xbf16>
    %284 = vector.shape_cast %283 : vector<1x3x9xbf16> to vector<3x9xbf16>
    %cst_256 = arith.constant dense<0.000000e+00> : vector<3x352xf32>
    %285 = tpu.matmul %284, %282, %cst_256 {dimension_numbers = #tpu.dot_dimension_numbers<[1], [0], [0], [1], [0, 0, 1, 1], [], []>} : vector<3x9xbf16>, vector<9x352xbf16>, vector<3x352xf32> -> vector<3x352xf32>
    %286 = arith.addf %280, %285 : vector<3x352xf32>
    %c0_257 = arith.constant 0 : index
    %c0_258 = arith.constant 0 : index
    %c138 = arith.constant 138 : index
    %287 = vector.load %arg1[%c0_257, %c0_258, %c138] : memref<1x9x506xbf16, #tpu.memory_space<vmem>>, vector<1x9x352xbf16>
    %288 = vector.shape_cast %287 : vector<1x9x352xbf16> to vector<9x352xbf16>
    %c48_259 = arith.constant 48 : index
    %c0_260 = arith.constant 0 : index
    %c0_261 = arith.constant 0 : index
    %289 = vector.load %arg2[%c48_259, %c0_260, %c0_261] : memref<49x3x9xbf16, #tpu.memory_space<vmem>>, vector<1x3x9xbf16>
    %290 = vector.shape_cast %289 : vector<1x3x9xbf16> to vector<3x9xbf16>
    %cst_262 = arith.constant dense<0.000000e+00> : vector<3x352xf32>
    %291 = tpu.matmul %290, %288, %cst_262 {dimension_numbers = #tpu.dot_dimension_numbers<[1], [0], [0], [1], [0, 0, 1, 1], [], []>} : vector<3x9xbf16>, vector<9x352xbf16>, vector<3x352xf32> -> vector<3x352xf32>
    %292 = arith.addf %286, %291 : vector<3x352xf32>
    %293 = math.tanh %292 : vector<3x352xf32>
    %c0_263 = arith.constant 0 : index
    %c0_264 = arith.constant 0 : index
    %c0_265 = arith.constant 0 : index
    %294 = vector.load %arg3[%c0_263, %c0_264, %c0_265] : memref<1x3x352xf32, #tpu.memory_space<vmem>>, vector<1x3x352xf32>
    %295 = vector.shape_cast %294 : vector<1x3x352xf32> to vector<3x352xf32>
    %296 = vector.shape_cast %293 : vector<3x352xf32> to vector<1x3x352xf32>
    tpu.vector_store %arg3[%c0_263, %c0_264, %c0_265], %296 {strides = array<i32>} : memref<1x3x352xf32, #tpu.memory_space<vmem>>, vector<1x3x352xf32>,
    return
  }
  func.func @transform_0(%arg0: i32) -> (i32, i32, i32) {
    %c0_i32 = arith.constant 0 : i32
    %c0_i32_0 = arith.constant 0 : i32
    %c0_i32_1 = arith.constant 0 : i32
    return %arg0, %c0_i32, %c0_i32_0 : i32, i32, i32
  }
  func.func @transform_1(%arg0: i32) -> (i32, i32, i32) {
    %c0_i32 = arith.constant 0 : i32
    %c0_i32_0 = arith.constant 0 : i32
    %c0_i32_1 = arith.constant 0 : i32
    %c0_i32_2 = arith.constant 0 : i32
    return %c0_i32, %c0_i32_0, %c0_i32_1 : i32, i32, i32
  }
  func.func @transform_2(%arg0: i32) -> (i32, i32, i32) {
    %c0_i32 = arith.constant 0 : i32
    %c0_i32_0 = arith.constant 0 : i32
    %c0_i32_1 = arith.constant 0 : i32
    return %arg0, %c0_i32, %c0_i32_0 : i32, i32, i32
  }
}

</mosaic_0001>

<bundles_post_ra>
// kernel: resnet9_forward.16
= control target key start
LH: loop header
LB: loop body
LE: loop exit
PB: predicated region body
PF: predicated region fallthrough
CT: control target
= control target key end

     0   :  { %s656_s9 = smov 0   ;;  %s718_s0 = inlined_call_operand.vmem [shape: bf16[2,32,90], index: 0, kind: input, shape index: {}]   ;;  %s719_s1 = inlined_call_operand.vmem [shape: bf16[4,16,32], index: 1, kind: input, shape index: {}]   ;;  %s720_s2 = inlined_call_operand.vmem [shape: bf16[2,16,72], index: 2, kind: output, shape index: {}]  }
   0x1 LB: > { %s515_s10 = sadd.s32 4294967295, %s634_s9   ;;  %p519_p0 = scmp.ge.s32.totalorder %s634_s9, 1  ;;  %s634_s9 = sphi %s656_s9, %s12_s9  }
   0x2   : > { %p112_p1 = scmp.lt.s32.totalorder %s634_s9, 3 }
   0x4   : > { %p113_p2 = pnand %p519_p0, %p112_p1 }
   0x5   : > { %p134_p3 = scmp.lt.s32.totalorder (!%p113_p2), %s515_s10, 1  ;;  %v636_v0 = vmov (!%p113_p2), 0.0   ;;  %vm637_vm0 = vmmov (!%p113_p2), 0   ;;  %s638_s15 = smov (!%p113_p2), 127   ;;  %v620_v6 = vld [vmem:[%s719_s1 + $0x8] sm:$0xff] (!%p113_p2)   ;;  %vm175_vm1 = vcmask (!%p113_p2), 261120   ;;  %v391_v13 = vlaneseq (!%p113_p2) }
   0x6   : > { %116 = sbr.rel (%p113_p2) target bundleno = 691 (0x2b3), region = 28  ;;  %561 = vmatprep.subr.bf16.mxu1 (!%p113_p2), %v636_v0  ;;  %577 = vmatprep.subr.bf16.mxu0 (!%p113_p2), %v636_v0  ;;  %s639_s16 = smov (!%p113_p2), 119   ;;  %v621_v8 = vld [vmem:[%s719_s1 + $0x10] sm:$0xff] (!%p113_p2)   ;;  %v622_v11 = vld [vmem:[%s719_s1] sm:$0xff] (!%p113_p2)   ;;  %v623_v12 = vld [vmem:[%s719_s1 + $0x18] sm:$0xff] (!%p113_p2)   ;;  %vm414_vm6 = vcmask (!%p113_p2), 588800  }
   0x7   : > { %565 = vmatprep.mubr.msk.bf16.mxu1 (!%p113_p2), %vm637_vm0, %v636_v0  ;;  %581 = vmatprep.mubr.msk.bf16.mxu0 (!%p113_p2), %vm637_vm0, %v636_v0  ;;  %s640_s17 = smov (!%p113_p2), 118   ;;  %v392_v14 = vand.u32 (!%p113_p2), 127, %v391_v13  ;;  %vm457_vm7 = vcmask (!%p113_p2), 584704  }
   0x9   : > { %v702_v15 = vmul.u32.u64.low (!%p113_p2), 3817748708, %v392_v14  ;;  %v703_v16 = vmul.u32.u64.high 3817748708, %v392_v14, %v702_v15 }
   0xb   : > { %v399_v17 = vshrl.u32 (!%p113_p2), %v703_v16, 3 }
   0xd   : > { %s722_s10 = smov (!%p134_p3, %s515_s10), 1  ;;  %v400_v18 = vmul.u32 9, %v399_v17 }
   0xe   : > { %s545_s11 = sshll.u32 %s722_s10, 4  ;;  %s546_s26 = sshll.u32 %s722_s10, 3 }
   0xf   : > { %s138_s14 = scalar_lea.vmem %s718_s0, %s545_s11  ;;  %v401_v19 = vsub.s32 %v392_v14, %v400_v18  ;;  %s143_s29 = scalar_lea.vmem %s720_s2, %s546_s26 }
  0x10   : > { %v618_v1 = vld [vmem:[%s138_s14] sm:$0xff]   ;;  %v619_v2 = vld [vmem:[%s138_s14 + $0x8] sm:$0xff]  }
  0x11   : > { %169 = vrot.lane.b32.xlu0 %v618_v1, %s638_s15  ;;  %171 = vrot.lane.b32.xlu1 %v619_v2, %s638_s15  ;;  %vm404_vm2 = vcmp.ne.s32.totalorder %v401_v19, 0  ;;  %vm405_vm3 = vcmp.lt.s32.totalorder %v401_v19, 0  ;;  %v407_v20 = vadd.s32 9, %v401_v19 }
  0x12   : > { %vm406_vm4 = vmand %vm405_vm3, %vm404_vm2 }
  0x13   : > { %v408_v21 = vsel %vm406_vm4, %v407_v20, %v401_v19 }
  0x14   : > { %vm409_vm5 = vcmp.lt.s32.totalorder %v408_v21, 8 }
  0x15   : > { %279 = vrot.lane.b32.xlu0 %v618_v1, %s639_s16  ;;  %281 = vrot.lane.b32.xlu1 %v619_v2, %s639_s16  ;;  %v540_v27 = vsel %vm409_vm5, 1.0, %v636_v0 }
  0x19   : > { %339 = vrot.lane.b32.xlu0 %v618_v1, %s640_s17  ;;  %341 = vrot.lane.b32.xlu1 %v619_v2, %s640_s17 }
  0x83   : > { %v170_v3 = vpop.permute.xlu0 %169  ;;  %v172_v4 = vpop.permute.xlu1 %171 }
  0x84   : > { %562 = vmatpush3.bf16.msra.mxu1 %v170_v3 }
  0x85   : > { %563 = vmatprep.subr.bf16.mxu1 %v636_v0 }
  0x87   : > { %v280_v5 = vpop.permute.xlu0 %279  ;;  %v282_v7 = vpop.permute.xlu1 %281 }
  0x88   : > { %564 = vmatpush3.bf16.msra.mxu1 %v172_v4  ;;  %578 = vmatpush3.bf16.msra.mxu0 %v280_v5 }
  0x89   : > { %579 = vmatprep.subr.bf16.mxu0 %v636_v0  ;;  %569 = vmatprep.subr.bf16.mxu1 %v636_v0 }
  0x8b   : > { %566 = vmatmul.mubr.msk.bf16.vlgmr.msra.gmra.mrb[0].mxu1 %vm175_vm1, %v620_v6  ;;  %v340_v9 = vpop.permute.xlu0 %339  ;;  %v342_v10 = vpop.permute.xlu1 %341 }
  0x8c   : > { %580 = vmatpush3.bf16.msra.mxu0 %v282_v7  ;;  %570 = vmatpush3.bf16.msra.mxu1 %v618_v1 }
  0x8d   : > { %585 = vmatprep.subr.bf16.mxu0 %v636_v0  ;;  %571 = vmatprep.subr.bf16.mxu1 %v636_v0 }
  0x8e   : > { %573 = vmatprep.mubr.msk.bf16.mxu1 %vm637_vm0, %v636_v0 }
  0x8f   : > { %582 = vmatmul.mubr.msk.bf16.vlgmr.msra.gmra.mrb[0].mxu0 %vm175_vm1, %v621_v8 }
  0x90   : > { %586 = vmatpush3.bf16.msra.mxu0 %v340_v9  ;;  %572 = vmatpush3.bf16.msra.mxu1 %v619_v2 }
  0x91   : > { %587 = vmatprep.subr.bf16.mxu0 %v636_v0  ;;  %589 = vmatprep.mubr.msk.bf16.mxu0 %vm637_vm0, %v636_v0 }
  0x94   : > { %588 = vmatpush3.bf16.msra.mxu0 %v342_v10 }
  0x97   : > { %574 = vmatmul.mubr.msk.bf16.vlgmr.msra.gmra.mrb[0].mxu1 %vm175_vm1, %v622_v11 }
  0x9b   : > { %590 = vmatmul.mubr.msk.bf16.vlgmr.msra.gmra.mrb[0].mxu0 %vm175_vm1, %v623_v12 }
 0x16a   : > { %v264_v22 = vpop.f32.mrb[0].mxu1 }
 0x16b   : > { %v575_v23 = vpop.f32.mrb[1].mxu1 }
 0x16c   : > { %v267_v24 = vpop.f32.mrb[2].mxu1 }
 0x16d   : > { %v576_v25 = vpop.f32.mrb[3].mxu1 }
 0x16e   : > { %v382_v26 = vpop.f32.mrb[0].mxu0 }
 0x16f   : > { %v593_v28 = vadd.f32 %v382_v26, %v264_v22  ;;  %v591_v29 = vpop.f32.mrb[1].mxu0 }
 0x170   : > { %v385_v30 = vpop.f32.mrb[2].mxu0 }
 0x171   : > { %v594_v31 = vadd.f32 %v385_v30, %v267_v24  ;;  %v592_v32 = vpop.f32.mrb[3].mxu0  ;;  %v412_v33 = vmul.f32 %v593_v28, %v540_v27 }
 0x173   : > { %v415_v34 = vsel %vm414_vm6, %v412_v33, 0.0  ;;  %v413_v35 = vmul.f32 %v594_v31, %v540_v27 }
 0x174   : > { %416 = vadd.xlane.f32.xlu0 %v415_v34 }
 0x175   : > { %v418_v36 = vsel %vm414_vm6, %v413_v35, 0.0 }
 0x176   : > { %419 = vadd.xlane.f32.xlu1 %v418_v36 }
 0x201   : > { %v417_v37 = vpop.xlane.xlu0 %416 }
 0x202   : > { %v423_v38 = vmul.f32 0.015625, %v417_v37 }
 0x203   : > { %v420_v39 = vpop.xlane.xlu1 %419 }
 0x204   : > { %v425_v40 = vsub.f32 %v593_v28, %v423_v38  ;;  %v424_v41 = vmul.f32 0.015625, %v420_v39 }
 0x206   : > { %v426_v42 = vsub.f32 %v594_v31, %v424_v41  ;;  %v427_v43 = vmul.f32 %v425_v40, %v425_v40 }
 0x208   : > { %v428_v44 = vmul.f32 %v426_v42, %v426_v42  ;;  %v429_v45 = vmul.f32 %v540_v27, %v427_v43 }
 0x20a   : > { %v431_v46 = vsel %vm414_vm6, %v429_v45, 0.0  ;;  %v430_v47 = vmul.f32 %v540_v27, %v428_v44 }
 0x20b   : > { %432 = vadd.xlane.f32.xlu0 %v431_v46 }
 0x20c   : > { %v434_v48 = vsel %vm414_vm6, %v430_v47, 0.0 }
 0x20f   : > { %435 = vadd.xlane.f32.xlu0 %v434_v48 }
 0x298   : > { %v433_v49 = vpop.xlane.xlu0 %432 }
 0x299   : > { %v439_v50 = vmul.f32 0.015625, %v433_v49 }
 0x29b   : > { %v441_v51 = vadd.f32 1e-05, %v439_v50 }
 0x29c   : > { %v436_v52 = vpop.xlane.xlu0 %435 }
 0x29d   : > { %624 = vrsqrt.f32 %v441_v51  ;;  %v440_v53 = vmul.f32 0.015625, %v436_v52 }
 0x29f   : > { %v442_v54 = vadd.f32 1e-05, %v440_v53 }
 0x2a1   : > { %626 = vrsqrt.f32 %v442_v54 }
 0x2a7   : > { %v625_v55 = vpop.eup %624 }
 0x2a8   : > { %v445_v56 = vmul.f32 %v625_v55, %v425_v40 }
 0x2aa   : > { %v447_v57 = vmax.f32 %v445_v56, 0.0 }
 0x2ab   : > { %v627_v58 = vpop.eup %626 }
 0x2ac   : > { %v547_v59 = vpack.c.bf16 %v447_v57, %v447_v57  ;;  %v446_v60 = vmul.f32 %v627_v58, %v426_v42 }
 0x2ae   : > { %458 = vst.msk [vmem:[%s143_s29] sm:$0xf] %vm457_vm7, %v547_v59  ;;  %v448_v61 = vmax.f32 %v446_v60, 0.0 }
 0x2b0   : > { %v548_v62 = vpack.c.bf16 %v448_v61, %v448_v61 }
 0x2b2   : > { %459 = vst.msk [vmem:[%s143_s29 + $0x4] sm:$0xf] %vm457_vm7, %v548_v62 }
 0x2b3 PF: > { %s12_s9 = sadd.s32 1, %s634_s9  }
 0x2b4   : > { %p9_p4 = scmp.ge.s32.totalorder %s12_s9, 4  }
 0x2b6   :  { %11 = sbr.rel (!%p9_p4) target bundleno = 1 (0x1), region = 61 }

// kernel: resnet9_forward.15
= control target key start
LH: loop header
LB: loop body
LE: loop exit
PB: predicated region body
PF: predicated region fallthrough
CT: control target
= control target key end

     0   :  { %s7619_s9 = smov 0   ;;  %s8613_s0 = inlined_call_operand.vmem [shape: bf16[2,3,506], index: 0, kind: input, shape index: {}]   ;;  %s8614_s1 = inlined_call_operand.vmem [shape: bf16[49,8,3], index: 1, kind: input, shape index: {}]   ;;  %s8615_s2 = inlined_call_operand.vmem [shape: bf16[2,8,352], index: 2, kind: output, shape index: {}]  }
   0x1 LB: > { %s6517_s10 = sadd.s32 4294967295, %s7552_s9   ;;  %p6521_p0 = scmp.ge.s32.totalorder %s7552_s9, 1  ;;  %s7552_s9 = sphi %s7619_s9, %s12_s9  }
   0x2   : > { %p112_p1 = scmp.lt.s32.totalorder %s7552_s9, 3 }
   0x4   : > { %p113_p2 = pnand %p6521_p0, %p112_p1 }
   0x5   : > { %p134_p3 = scmp.lt.s32.totalorder (!%p113_p2), %s6517_s10, 1  ;;  %v154_v0 = vlaneseq (!%p113_p2)  ;;  %v7554_v1 = vmov (!%p113_p2), 1983009808   ;;  %v7555_v4 = vmov (!%p113_p2), 0.0   ;;  %vm7556_vm0 = vmmov (!%p113_p2), 0   ;;  %s7557_s15 = smov (!%p113_p2), 127  }
   0x6   : > { %116 = sbr.rel (%p113_p2) target bundleno = 1260 (0x4ec), region = 28  ;;  %v152_v2 = vunpack.c.l.s4 (!%p113_p2), %v7554_v1  ;;  %6779 = vmatprep.subr.bf16.mxu1 (!%p113_p2), %v7555_v4  ;;  %6781 = vmatprep.mubr.msk.bf16.mxu1 (!%p113_p2), %vm7556_vm0, %v7555_v4  ;;  %s7558_s16 = smov (!%p113_p2), 126   ;;  %v7559_v23 = vmov (!%p113_p2), 0   ;;  %vm179_vm1 = vcmask (!%p113_p2), 1040384   ;;  %vm180_vm2 = vcmask (!%p113_p2), 1041408  }
   0x7   : > { %v155_v3 = vshrl.u32 (!%p113_p2), %v154_v0, 7  ;;  %224 = vmatprep.mubr.bf16.mxu0 (!%p113_p2), %v7559_v23  ;;  %s7560_s17 = smov (!%p113_p2), 125   ;;  %s7561_s18 = smov (!%p113_p2), 124   ;;  %vm172_vm3 = vcmask (!%p113_p2), 1039360   ;;  %vm392_vm4 = vcmask (!%p113_p2), 1031168   ;;  %vm175_vm5 = vcmask (!%p113_p2), 23552  }
   0x8   : > { %v153_v5 = vunpack.c.0.s8 (!%p113_p2), %v152_v2  ;;  %s7562_s19 = smov (!%p113_p2), 123   ;;  %s7563_s20 = smov (!%p113_p2), 122   ;;  %vm517_vm6 = vcmask (!%p113_p2), 1022976   ;;  %vm642_vm7 = vcmask (!%p113_p2), 1014784   ;;  %vm767_vm8 = vcmask (!%p113_p2), 1006592  }
   0x9   : > { %s7564_s21 = smov (!%p113_p2), 106   ;;  %s7565_s22 = smov (!%p113_p2), 105   ;;  %vm892_vm9 = vcmask (!%p113_p2), 998400   ;;  %vm1017_vm10 = vcmask (!%p113_p2), 867328   ;;  %vm1142_vm11 = vcmask (!%p113_p2), 859136   ;;  %vm1267_vm12 = vcmask (!%p113_p2), 850944  }
   0xa   : > { %v7637_v6 = vsub.s32 (!%p113_p2), %v153_v5, %v155_v3  ;;  %s7566_s23 = smov (!%p113_p2), 104   ;;  %s7567_s24 = smov (!%p113_p2), 103   ;;  %vm1392_vm13 = vcmask (!%p113_p2), 842752   ;;  %vm1517_vm14 = vcmask (!%p113_p2), 834560   ;;  %vm1642_vm15 = vcmask (!%p113_p2), 826368  }
   0xb   : > { %s7568_s25 = smov (!%p113_p2), 102   ;;  %s7569_s26 = smov (!%p113_p2), 101  }
   0xc   : > { %s7570_s27 = smov (!%p113_p2), 100   ;;  %s7571_s28 = smov (!%p113_p2), 84  }
   0xd   : > { %s8617_s10 = smov (!%p134_p3, %s6517_s10), 1  ;;  %s7572_s29 = smov 83  }
   0xe   : > { %s6678_s11 = sshll.u32 %s8617_s10, 3  ;;  %s7573_s30 = smov 82  }
   0xf   : > { %s7635_s14 = scalar_lea.vmem %s8613_s0, %s6678_s11  ;;  %s7574_s3 = smov 81  }
  0x10   : > { %v145_v7 = vld [vmem:[%s7635_s14] sm:$0x3f]  ;;  %s7575_s4 = smov 80   ;;  %s7576_s5 = smov 79  }
  0x11   : > { %v366_v8 = vld [vmem:[%s7635_s14] sm:$0x3f]  ;;  %v7644_v9 = vrot.slane %v145_v7, %v7637_v6  ;;  %v150_v10 = vcombine.high %v145_v7, %v145_v7  ;;  %s7578_s8 = smov 78   ;;  %s7579_s13 = smov 62  }
  0x12   : > { %v377_v11 = vrot.slane %v366_v8, %v7637_v6  ;;  %v370_v15 = vcombine.high %v366_v8, %v366_v8  ;;  %v491_v16 = vld [vmem:[%s7635_s14] sm:$0x3f]  ;;  %s7586_s6 = smov 40   ;;  %s7587_s11 = smov 39  }
  0x13   : > { %166 = vrot.lane.b32.xlu1 %v7644_v9, %s7557_s15  ;;  %v7650_v12 = vcombine.high %v7644_v9, %v7644_v9  ;;  %v7654_v14 = vrot.slane %v150_v10, %v7637_v6  ;;  %v495_v17 = vcombine.high %v491_v16, %v491_v16  ;;  %v616_v18 = vld [vmem:[%s7635_s14] sm:$0x3f]  ;;  %v502_v20 = vrot.slane %v491_v16, %v7637_v6  ;;  %s7601_s12 = smov 120  }
  0x14   : > { %v385_v13 = vcombine.high %v377_v11, %v377_v11  ;;  %v384_v19 = vrot.slane %v370_v15, %v7637_v6  ;;  %v627_v22 = vrot.slane %v616_v18, %v7637_v6  ;;  %v620_v26 = vcombine.high %v616_v18, %v616_v18  ;;  %v741_v27 = vld [vmem:[%s7635_s14] sm:$0x3f] }
  0x15   : > { %168 = vrot.lane.b32.xlu0 %v7650_v12, %s7557_s15  ;;  %v509_v21 = vrot.slane %v495_v17, %v7637_v6  ;;  %v510_v24 = vcombine.high %v502_v20, %v502_v20  ;;  %v745_v28 = vcombine.high %v741_v27, %v741_v27  ;;  %v866_v29 = vld [vmem:[%s7635_s14] sm:$0x3f]  ;;  %v752_v31 = vrot.slane %v741_v27, %v7637_v6 }
  0x16   : > { %v635_v25 = vcombine.high %v627_v22, %v627_v22  ;;  %v634_v30 = vrot.slane %v620_v26, %v7637_v6  ;;  %v877_v33 = vrot.slane %v866_v29, %v7637_v6  ;;  %v870_v36 = vcombine.high %v866_v29, %v866_v29  ;;  %v991_v37 = vld [vmem:[%s7635_s14] sm:$0x3f] }
  0x17   : > { %388 = vrot.lane.b32.xlu1 %v385_v13, %s7558_s16  ;;  %v759_v32 = vrot.slane %v745_v28, %v7637_v6  ;;  %v760_v34 = vcombine.high %v752_v31, %v752_v31  ;;  %v995_v38 = vcombine.high %v991_v37, %v991_v37  ;;  %v1116_v39 = vld [vmem:[%s7635_s14] sm:$0x3f]  ;;  %v1002_v41 = vrot.slane %v991_v37, %v7637_v6 }
  0x18   : > { %v885_v35 = vcombine.high %v877_v33, %v877_v33  ;;  %v884_v40 = vrot.slane %v870_v36, %v7637_v6  ;;  %v1127_v43 = vrot.slane %v1116_v39, %v7637_v6  ;;  %v1120_v46 = vcombine.high %v1116_v39, %v1116_v39  ;;  %v1241_v47 = vld [vmem:[%s7635_s14] sm:$0x3f] }
  0x19   : > { %170 = vrot.lane.b32.xlu0 %v7654_v14, %s7557_s15  ;;  %v1009_v42 = vrot.slane %v995_v38, %v7637_v6  ;;  %v1010_v44 = vcombine.high %v1002_v41, %v1002_v41  ;;  %v1245_v48 = vcombine.high %v1241_v47, %v1241_v47  ;;  %v1366_v49 = vld [vmem:[%s7635_s14] sm:$0x3f]  ;;  %v1252_v51 = vrot.slane %v1241_v47, %v7637_v6  ;;  %s7588_s15 = smov 38  }
  0x1a   : > { %v1135_v45 = vcombine.high %v1127_v43, %v1127_v43  ;;  %v1134_v50 = vrot.slane %v1120_v46, %v7637_v6  ;;  %v1377_v53 = vrot.slane %v1366_v49, %v7637_v6  ;;  %v1370_v56 = vcombine.high %v1366_v49, %v1366_v49  ;;  %v1491_v57 = vld [vmem:[%s7635_s14] sm:$0x3f] }
  0x1b   : > { %386 = vrot.lane.b32.xlu1 %v377_v11, %s7558_s16  ;;  %v1259_v52 = vrot.slane %v1245_v48, %v7637_v6  ;;  %v1260_v54 = vcombine.high %v1252_v51, %v1252_v51  ;;  %v1495_v58 = vcombine.high %v1491_v57, %v1491_v57  ;;  %v1616_v59 = vld [vmem:[%s7635_s14] sm:$0x3f]  ;;  %v1502_v61 = vrot.slane %v1491_v57, %v7637_v6 }
  0x1c   : > { %v1385_v55 = vcombine.high %v1377_v53, %v1377_v53  ;;  %v1384_v60 = vrot.slane %v1370_v56, %v7637_v6  ;;  %v1627_v63 = vrot.slane %v1616_v59, %v7637_v6  ;;  %v1620_v3 = vcombine.high %v1616_v59, %v1616_v59  ;;  %v1741_v5 = vld [vmem:[%s7635_s14] sm:$0x3f] }
  0x1d   : > { %390 = vrot.lane.b32.xlu0 %v384_v19, %s7558_s16  ;;  %v1509_v62 = vrot.slane %v1495_v58, %v7637_v6  ;;  %v1510_v1 = vcombine.high %v1502_v61, %v1502_v61  ;;  %v1745_v7 = vcombine.high %v1741_v5, %v1741_v5  ;;  %v1866_v8 = vld [vmem:[%s7635_s14] sm:$0xff]  ;;  %v1752_v11 = vrot.slane %v1741_v5, %v7637_v6  ;;  %s7602_s16 = smov 119  }
  0x1e   : > { %v1635_v2 = vcombine.high %v1627_v63, %v1627_v63  ;;  %v1634_v10 = vrot.slane %v1620_v3, %v7637_v6  ;;  %v7703_v15 = vrot.slane %v1866_v8, %v7637_v6  ;;  %v1870_v18 = vcombine.high %v1866_v8, %v1866_v8  ;;  %v6525_v36 = vld [vmem:[%s8614_s1 + $0x4] sm:$0xf] }
  0x1f   : > { %515 = vrot.lane.b32.xlu1 %v509_v21, %s7560_s17  ;;  %v1759_v13 = vrot.slane %v1745_v7, %v7637_v6  ;;  %v1760_v16 = vcombine.high %v1752_v11, %v1752_v11 }
  0x20   : > { %v7707_v17 = vcombine.high %v7703_v15, %v7703_v15  ;;  %v7711_v19 = vrot.slane %v1870_v18, %v7637_v6 }
  0x21   : > { %513 = vrot.lane.b32.xlu0 %v510_v24, %s7560_s17 }
  0x23   : > { %638 = vrot.lane.b32.xlu1 %v635_v25, %s7561_s18 }
  0x25   : > { %511 = vrot.lane.b32.xlu0 %v502_v20, %s7560_s17  ;;  %v7717_v20 = vcombine.high %v7711_v19, %v7711_v19  ;;  %s7580_s17 = smov 61  }
  0x27   : > { %636 = vrot.lane.b32.xlu1 %v627_v22, %s7561_s18  ;;  %v7577_v22 = vmov 65535  }
  0x28   : > { %v181_v24 = vsel %vm179_vm1, 4294967295, %v7577_v22  ;;  %vm1767_vm1 = vcmask 818176  }
  0x29   : > { %640 = vrot.lane.b32.xlu0 %v634_v30, %s7561_s18  ;;  %v7738_v26 = vsel %vm180_vm2, %v181_v24, 0  ;;  %vm1895_vm2 = vcmask 687104  }
  0x2a   : > { %v277_v37 = vand.u32 %v7738_v26, %v7644_v9 }
  0x2b   : > { %765 = vrot.lane.b32.xlu1 %v759_v32, %s7562_s19 }
  0x2d   : > { %763 = vrot.lane.b32.xlu0 %v760_v34, %s7562_s19  ;;  %v283_v34 = vand.u32 %v7738_v26, %v7654_v14 }
  0x2f   : > { %888 = vrot.lane.b32.xlu1 %v885_v35, %s7563_s20 }
  0x31   : > { %761 = vrot.lane.b32.xlu0 %v752_v31, %s7562_s19  ;;  %v280_v31 = vand.u32 %v7738_v26, %v7650_v12 }
  0x33   : > { %886 = vrot.lane.b32.xlu1 %v877_v33, %s7563_s20 }
  0x35   : > { %890 = vrot.lane.b32.xlu0 %v884_v40, %s7563_s20 }
  0x37   : > { %1015 = vrot.lane.b32.xlu1 %v1009_v42, %s7564_s21 }
  0x39   : > { %1013 = vrot.lane.b32.xlu0 %v1010_v44, %s7564_s21 }
  0x3b   : > { %1138 = vrot.lane.b32.xlu1 %v1135_v45, %s7565_s22 }
  0x3d   : > { %1011 = vrot.lane.b32.xlu0 %v1002_v41, %s7564_s21  ;;  %s7581_s21 = smov 60  }
  0x3f   : > { %1136 = vrot.lane.b32.xlu1 %v1127_v43, %s7565_s22  ;;  %v146_v43 = vld [vmem:[%s8614_s1] sm:$0xf] }
  0x41   : > { %1140 = vrot.lane.b32.xlu0 %v1134_v50, %s7565_s22 }
  0x43   : > { %1265 = vrot.lane.b32.xlu1 %v1259_v52, %s7566_s23  ;;  %v6530_v52 = vld [vmem:[%s8614_s1 + $0x8] sm:$0xf] }
  0x45   : > { %1263 = vrot.lane.b32.xlu0 %v1260_v54, %s7566_s23 }
  0x47   : > { %1388 = vrot.lane.b32.xlu1 %v1385_v55, %s7567_s24 }
  0x49   : > { %1261 = vrot.lane.b32.xlu0 %v1252_v51, %s7566_s23 }
  0x4b   : > { %1386 = vrot.lane.b32.xlu1 %v1377_v53, %s7567_s24 }
  0x4d   : > { %1390 = vrot.lane.b32.xlu0 %v1384_v60, %s7567_s24  ;;  %s7582_s24 = smov 59  }
  0x4f   : > { %1515 = vrot.lane.b32.xlu1 %v1509_v62, %s7568_s25 }
  0x51   : > { %1513 = vrot.lane.b32.xlu0 %v1510_v1, %s7568_s25 }
  0x53   : > { %1638 = vrot.lane.b32.xlu1 %v1635_v2, %s7569_s26 }
  0x55   : > { %1511 = vrot.lane.b32.xlu0 %v1502_v61, %s7568_s25  ;;  %v6533_v61 = vld [vmem:[%s8614_s1 + $0xc] sm:$0xf] }
  0x57   : > { %1636 = vrot.lane.b32.xlu1 %v1627_v63, %s7569_s26 }
  0x59   : > { %1640 = vrot.lane.b32.xlu0 %v1634_v10, %s7569_s26  ;;  %v6536_v10 = vld [vmem:[%s8614_s1 + $0x10] sm:$0xf] }
  0x5b   : > { %1765 = vrot.lane.b32.xlu1 %v1759_v13, %s7570_s27 }
  0x5d   : > { %1763 = vrot.lane.b32.xlu0 %v1760_v16, %s7570_s27 }
  0x5f   : > { %1889 = vrot.lane.b32.xlu1 %v7707_v17, %s7571_s28 }
  0x61   : > { %1761 = vrot.lane.b32.xlu0 %v1752_v11, %s7570_s27  ;;  %s7583_s27 = smov 58  }
  0x63   : > { %1887 = vrot.lane.b32.xlu1 %v7703_v15, %s7571_s28 }
  0x65   : > { %1891 = vrot.lane.b32.xlu0 %v7711_v19, %s7571_s28 }
  0x67   : > { %2018 = vrot.lane.b32.xlu1 %v7707_v17, %s7572_s29 }
  0x69   : > { %1893 = vrot.lane.b32.xlu0 %v7717_v20, %s7571_s28 }
  0x6b   : > { %2016 = vrot.lane.b32.xlu1 %v7703_v15, %s7572_s29 }
  0x6d   : > { %2020 = vrot.lane.b32.xlu0 %v7711_v19, %s7572_s29 }
  0x6f   : > { %2147 = vrot.lane.b32.xlu1 %v7707_v17, %s7573_s30 }
  0x71   : > { %2022 = vrot.lane.b32.xlu0 %v7717_v20, %s7572_s29 }
  0x73   : > { %2145 = vrot.lane.b32.xlu1 %v7703_v15, %s7573_s30 }
  0x75   : > { %2149 = vrot.lane.b32.xlu0 %v7711_v19, %s7573_s30 }
  0x77   : > { %2276 = vrot.lane.b32.xlu1 %v7707_v17, %s7574_s3 }
  0x79   : > { %2151 = vrot.lane.b32.xlu0 %v7717_v20, %s7573_s30  ;;  %s7584_s30 = smov 57  }
  0x7b   : > { %2274 = vrot.lane.b32.xlu1 %v7703_v15, %s7574_s3 }
  0x7d   : > { %2278 = vrot.lane.b32.xlu0 %v7711_v19, %s7574_s3 }
  0x7f   : > { %2405 = vrot.lane.b32.xlu1 %v7707_v17, %s7575_s4 }
  0x81   : > { %2280 = vrot.lane.b32.xlu0 %v7717_v20, %s7574_s3  ;;  %s7593_s3 = smov 18  }
  0x83   : > { %2403 = vrot.lane.b32.xlu1 %v7703_v15, %s7575_s4 }
  0x85   : > { %2407 = vrot.lane.b32.xlu0 %v7711_v19, %s7575_s4  ;;  %v167_v25 = vpop.permute.xlu1 %166 }
  0x87   : > { %v169_v21 = vpop.permute.xlu0 %168  ;;  %2534 = vrot.lane.b32.xlu1 %v7707_v17, %s7576_s5 }
  0x88   : > { %v173_v28 = vsel %vm172_vm3, %v167_v25, %v169_v21 }
  0x89   : > { %2409 = vrot.lane.b32.xlu0 %v7717_v20, %s7575_s4  ;;  %v389_v33 = vpop.permute.xlu1 %388  ;;  %v184_v35 = vand.u32 %v7738_v26, %v173_v28 }
  0x8b   : > { %v171_v27 = vpop.permute.xlu0 %170  ;;  %2532 = vrot.lane.b32.xlu1 %v7703_v15, %s7576_s5 }
  0x8c   : > { %v190_v29 = vand.u32 %v7738_v26, %v171_v27  ;;  %v174_v30 = vsel %vm172_vm3, %v169_v21, %v171_v27  ;;  %v6539_v27 = vld [vmem:[%s8614_s1 + $0x14] sm:$0xf]  ;;  %vm2024_vm3 = vcmask 678912  }
  0x8d   : > { %v187_v32 = vand.u32 %v7738_v26, %v174_v30  ;;  %2536 = vrot.lane.b32.xlu0 %v7711_v19, %s7576_s5  ;;  %v387_v39 = vpop.permute.xlu1 %386 }
  0x8e   : > { %6780 = vmatpush3.bf16.msra.mxu1 %v190_v29  ;;  %v393_v40 = vsel %vm392_vm4, %v387_v39, %v389_v33 }
  0x8f   : > { %192 = vmatprep.subr.bf16.mxu0 %v187_v32  ;;  %6785 = vmatprep.subr.bf16.mxu1 %v7555_v4  ;;  %v391_v12 = vpop.permute.xlu0 %390  ;;  %v399_v45 = vand.u32 %v393_v40, %v7738_v26 }
  0x90   : > { %193 = vmatpush1.bf16.msra.mxu0 %v184_v35  ;;  %v394_v38 = vsel %vm392_vm4, %v389_v33, %v391_v12  ;;  %2663 = vrot.lane.b32.xlu1 %v7707_v17, %s7578_s8  ;;  %v405_v42 = vand.u32 %v391_v12, %v7738_v26  ;;  %vm2153_vm4 = vcmask 670720  }
  0x91   : > { %6782 = vmatmul.mubr.msk.bf16.vlgmr.msra.gmra.mrb[0].mxu1 %vm175_vm5, %v6525_v36  ;;  %285 = vmatprep.subr.bf16.mxu0 %v280_v31  ;;  %v402_v14 = vand.u32 %v394_v38, %v7738_v26  ;;  %v516_v9 = vpop.permute.xlu1 %515 }
  0x92   : > { %6786 = vmatpush3.bf16.msra.mxu1 %v283_v34  ;;  %6787 = vmatprep.mubr.msk.bf16.mxu1 %vm7556_vm0, %v7555_v4  ;;  %v530_v51 = vand.u32 %v516_v9, %v7738_v26 }
  0x93   : > { %6526 = vmatmul.mubr.msk.bf16.vlgmr.msra.gmra.mrb[0].mxu0 %vm175_vm5, %v6525_v36  ;;  %6791 = vmatprep.subr.bf16.mxu1 %v7555_v4  ;;  %v514_v41 = vpop.permute.xlu0 %513  ;;  %v6542_v36 = vld [vmem:[%s8614_s1 + $0x18] sm:$0xf] }
  0x94   : > { %286 = vmatpush1.bf16.msra.mxu0 %v277_v37  ;;  %317 = vmatprep.mubr.bf16.mxu0 %v7559_v23  ;;  %v519_v44 = vsel %vm517_vm6, %v514_v41, %v516_v9 }
  0x95   : > { %407 = vmatprep.subr.bf16.mxu0 %v402_v14  ;;  %2538 = vrot.lane.b32.xlu0 %v7717_v20, %s7576_s5  ;;  %v527_v46 = vand.u32 %v519_v44, %v7738_v26  ;;  %v639_v50 = vpop.permute.xlu1 %638  ;;  %s7585_s5 = smov 56  }
  0x96   : > { %2661 = vrot.lane.b32.xlu1 %v7703_v15, %s7578_s8 }
  0x97   : > { %v512_v47 = vpop.permute.xlu0 %511 }
  0x98   : > { %v518_v49 = vsel %vm517_vm6, %v512_v47, %v514_v41  ;;  %vm2282_vm6 = vcmask 662528  }
  0x99   : > { %2665 = vrot.lane.b32.xlu0 %v7711_v19, %s7578_s8  ;;  %v524_v54 = vand.u32 %v518_v49, %v7738_v26  ;;  %v637_v56 = vpop.permute.xlu1 %636 }
  0x9a   : > { %2792 = vrot.lane.b32.xlu1 %v7707_v17, %s7579_s13  ;;  %v643_v58 = vsel %vm642_vm7, %v637_v56, %v639_v50 }
  0x9b   : > { %v641_v48 = vpop.permute.xlu0 %640  ;;  %v649_v63 = vand.u32 %v643_v58, %v7738_v26 }
  0x9c   : > { %v644_v53 = vsel %vm642_vm7, %v639_v50, %v641_v48  ;;  %v655_v60 = vand.u32 %v641_v48, %v7738_v26 }
  0x9d   : > { %6788 = vmatmul.mubr.msk.bf16.vlgmr.msra.gmra.mrb[0].mxu1 %vm175_vm5, %v146_v43  ;;  %2667 = vrot.lane.b32.xlu0 %v7717_v20, %s7578_s8  ;;  %v652_v55 = vand.u32 %v644_v53, %v7738_v26  ;;  %v766_v57 = vpop.permute.xlu1 %765  ;;  %s7600_s8 = smov 121  }
  0x9e   : > { %6792 = vmatpush3.bf16.msra.mxu1 %v405_v42  ;;  %6793 = vmatprep.mubr.msk.bf16.mxu1 %vm7556_vm0, %v7555_v4  ;;  %v780_v8 = vand.u32 %v766_v57, %v7738_v26  ;;  %v6545_v42 = vld [vmem:[%s8614_s1 + $0x1c] sm:$0xf] }
  0x9f   : > { %6528 = vmatmul.mubr.msk.bf16.vlgmr.msra.gmra.mrb[0].mxu0 %vm175_vm5, %v146_v43  ;;  %6797 = vmatprep.subr.bf16.mxu1 %v7555_v4  ;;  %v764_v59 = vpop.permute.xlu0 %763 }
  0xa0   : > { %408 = vmatpush1.bf16.msra.mxu0 %v399_v45  ;;  %439 = vmatprep.mubr.bf16.mxu0 %v7559_v23  ;;  %v769_v62 = vsel %vm767_vm8, %v764_v59, %v766_v57 }
  0xa1   : > { %532 = vmatprep.subr.bf16.mxu0 %v527_v46  ;;  %2794 = vrot.lane.b32.xlu0 %v7711_v19, %s7579_s13  ;;  %v777_v1 = vand.u32 %v769_v62, %v7738_v26  ;;  %v889_v7 = vpop.permute.xlu1 %888 }
  0xa2   : > { %2790 = vrot.lane.b32.xlu1 %v7703_v15, %s7579_s13 }
  0xa3   : > { %v762_v2 = vpop.permute.xlu0 %761 }
  0xa4   : > { %v768_v5 = vsel %vm767_vm8, %v762_v2, %v764_v59 }
  0xa5   : > { %2796 = vrot.lane.b32.xlu0 %v7717_v20, %s7579_s13  ;;  %v774_v13 = vand.u32 %v768_v5, %v7738_v26  ;;  %v887_v18 = vpop.permute.xlu1 %886 }
  0xa6   : > { %2921 = vrot.lane.b32.xlu1 %v7707_v17, %s7580_s17  ;;  %v893_v22 = vsel %vm892_vm9, %v887_v18, %v889_v7 }
  0xa7   : > { %v891_v3 = vpop.permute.xlu0 %890  ;;  %v899_v29 = vand.u32 %v893_v22, %v7738_v26 }
  0xa8   : > { %v894_v11 = vsel %vm892_vm9, %v889_v7, %v891_v3  ;;  %v905_v25 = vand.u32 %v891_v3, %v7738_v26 }
  0xa9   : > { %6794 = vmatmul.mubr.msk.bf16.vlgmr.msra.gmra.mrb[0].mxu1 %vm175_vm5, %v6530_v52  ;;  %2923 = vrot.lane.b32.xlu0 %v7711_v19, %s7580_s17  ;;  %v902_v16 = vand.u32 %v894_v11, %v7738_v26  ;;  %v1016_v21 = vpop.permute.xlu1 %1015 }
  0xaa   : > { %6798 = vmatpush3.bf16.msra.mxu1 %v530_v51  ;;  %6799 = vmatprep.mubr.msk.bf16.mxu1 %vm7556_vm0, %v7555_v4  ;;  %v1030_v35 = vand.u32 %v1016_v21, %v7738_v26  ;;  %v6548_v51 = vld [vmem:[%s8614_s1 + $0x20] sm:$0xf] }
  0xab   : > { %6531 = vmatmul.mubr.msk.bf16.vlgmr.msra.gmra.mrb[0].mxu0 %vm175_vm5, %v6530_v52  ;;  %6803 = vmatprep.subr.bf16.mxu1 %v7555_v4  ;;  %v1014_v24 = vpop.permute.xlu0 %1013 }
  0xac   : > { %533 = vmatpush1.bf16.msra.mxu0 %v524_v54  ;;  %564 = vmatprep.mubr.bf16.mxu0 %v7559_v23  ;;  %v1019_v28 = vsel %vm1017_vm10, %v1014_v24, %v1016_v21 }
  0xad   : > { %657 = vmatprep.subr.bf16.mxu0 %v652_v55  ;;  %2919 = vrot.lane.b32.xlu1 %v7703_v15, %s7580_s17  ;;  %v1027_v30 = vand.u32 %v1019_v28, %v7738_v26  ;;  %v1139_v34 = vpop.permute.xlu1 %1138  ;;  %v6557_v28 = vld [vmem:[%s8614_s1 + $0x2c] sm:$0xf] }
  0xae   : > { %2925 = vrot.lane.b32.xlu0 %v7717_v20, %s7580_s17 }
  0xaf   : > { %v1012_v31 = vpop.permute.xlu0 %1011 }
  0xb0   : > { %v1018_v33 = vsel %vm1017_vm10, %v1012_v31, %v1014_v24  ;;  %vm2411_vm10 = vcmask 654336  }
  0xb1   : > { %3050 = vrot.lane.b32.xlu1 %v7707_v17, %s7581_s21  ;;  %v1024_v37 = vand.u32 %v1018_v33, %v7738_v26  ;;  %v1137_v14 = vpop.permute.xlu1 %1136 }
  0xb2   : > { %3052 = vrot.lane.b32.xlu0 %v7711_v19, %s7581_s21  ;;  %v1143_v9 = vsel %vm1142_vm11, %v1137_v14, %v1139_v34 }
  0xb3   : > { %v1141_v32 = vpop.permute.xlu0 %1140  ;;  %v1149_v44 = vand.u32 %v1143_v9, %v7738_v26 }
  0xb4   : > { %v1144_v12 = vsel %vm1142_vm11, %v1139_v34, %v1141_v32  ;;  %v1155_v41 = vand.u32 %v1141_v32, %v7738_v26  ;;  %vm2540_vm11 = vcmask 646144  }
  0xb5   : > { %6800 = vmatmul.mubr.msk.bf16.vlgmr.msra.gmra.mrb[0].mxu1 %vm175_vm5, %v6533_v61  ;;  %3048 = vrot.lane.b32.xlu1 %v7703_v15, %s7581_s21  ;;  %v1152_v38 = vand.u32 %v1144_v12, %v7738_v26  ;;  %v1266_v39 = vpop.permute.xlu1 %1265  ;;  %v6560_v12 = vld [vmem:[%s8614_s1 + $0x30] sm:$0xf] }
  0xb6   : > { %6804 = vmatpush3.bf16.msra.mxu1 %v655_v60  ;;  %6805 = vmatprep.mubr.msk.bf16.mxu1 %vm7556_vm0, %v7555_v4  ;;  %v1280_v50 = vand.u32 %v1266_v39, %v7738_v26  ;;  %v6551_v60 = vld [vmem:[%s8614_s1 + $0x24] sm:$0xf] }
  0xb7   : > { %6534 = vmatmul.mubr.msk.bf16.vlgmr.msra.gmra.mrb[0].mxu0 %vm175_vm5, %v6533_v61  ;;  %6809 = vmatprep.subr.bf16.mxu1 %v7555_v4  ;;  %v1264_v40 = vpop.permute.xlu0 %1263 }
  0xb8   : > { %658 = vmatpush1.bf16.msra.mxu0 %v649_v63  ;;  %689 = vmatprep.mubr.bf16.mxu0 %v7559_v23  ;;  %v1269_v43 = vsel %vm1267_vm12, %v1264_v40, %v1266_v39 }
  0xb9   : > { %782 = vmatprep.subr.bf16.mxu0 %v777_v1  ;;  %3054 = vrot.lane.b32.xlu0 %v7717_v20, %s7581_s21  ;;  %v1277_v45 = vand.u32 %v1269_v43, %v7738_v26  ;;  %v1389_v49 = vpop.permute.xlu1 %1388  ;;  %s7589_s21 = smov 37  }
  0xba   : > { %3179 = vrot.lane.b32.xlu1 %v7707_v17, %s7582_s24 }
  0xbb   : > { %v1262_v46 = vpop.permute.xlu0 %1261 }
  0xbc   : > { %v1268_v48 = vsel %vm1267_vm12, %v1262_v46, %v1264_v40  ;;  %vm2669_vm12 = vcmask 637952  }
  0xbd   : > { %3181 = vrot.lane.b32.xlu0 %v7711_v19, %s7582_s24  ;;  %v1274_v53 = vand.u32 %v1268_v48, %v7738_v26  ;;  %v1387_v55 = vpop.permute.xlu1 %1386 }
  0xbe   : > { %3177 = vrot.lane.b32.xlu1 %v7703_v15, %s7582_s24  ;;  %v1393_v57 = vsel %vm1392_vm13, %v1387_v55, %v1389_v49 }
  0xbf   : > { %v1391_v47 = vpop.permute.xlu0 %1390  ;;  %v1399_v62 = vand.u32 %v1393_v57, %v7738_v26 }
  0xc0   : > { %v1394_v52 = vsel %vm1392_vm13, %v1389_v49, %v1391_v47  ;;  %v1405_v59 = vand.u32 %v1391_v47, %v7738_v26  ;;  %vm2798_vm13 = vcmask 506880  }
  0xc1   : > { %6806 = vmatmul.mubr.msk.bf16.vlgmr.msra.gmra.mrb[0].mxu1 %vm175_vm5, %v6536_v10  ;;  %3183 = vrot.lane.b32.xlu0 %v7717_v20, %s7582_s24  ;;  %v1402_v54 = vand.u32 %v1394_v52, %v7738_v26  ;;  %v1516_v56 = vpop.permute.xlu1 %1515  ;;  %s7590_s24 = smov 36  }
  0xc2   : > { %6810 = vmatpush3.bf16.msra.mxu1 %v780_v8  ;;  %6811 = vmatprep.mubr.msk.bf16.mxu1 %vm7556_vm0, %v7555_v4 }
  0xc3   : > { %6537 = vmatmul.mubr.msk.bf16.vlgmr.msra.gmra.mrb[0].mxu0 %vm175_vm5, %v6536_v10  ;;  %6815 = vmatprep.subr.bf16.mxu1 %v7555_v4  ;;  %v1514_v58 = vpop.permute.xlu0 %1513  ;;  %v1530_v10 = vand.u32 %v1516_v56, %v7738_v26 }
  0xc4   : > { %783 = vmatpush1.bf16.msra.mxu0 %v774_v13  ;;  %814 = vmatprep.mubr.bf16.mxu0 %v7559_v23  ;;  %v1519_v61 = vsel %vm1517_vm14, %v1514_v58, %v1516_v56  ;;  %v6566_v56 = vld [vmem:[%s8614_s1 + $0x38] sm:$0xf] }
  0xc5   : > { %907 = vmatprep.subr.bf16.mxu0 %v902_v16  ;;  %3308 = vrot.lane.b32.xlu1 %v7707_v17, %s7583_s27  ;;  %v1527_v63 = vand.u32 %v1519_v61, %v7738_v26  ;;  %v1639_v5 = vpop.permute.xlu1 %1638 }
  0xc6   : > { %3310 = vrot.lane.b32.xlu0 %v7711_v19, %s7583_s27 }
  0xc7   : > { %v1512_v1 = vpop.permute.xlu0 %1511 }
  0xc8   : > { %v1518_v3 = vsel %vm1517_vm14, %v1512_v1, %v1514_v58  ;;  %vm2927_vm14 = vcmask 498688  }
  0xc9   : > { %3306 = vrot.lane.b32.xlu1 %v7703_v15, %s7583_s27  ;;  %v1524_v13 = vand.u32 %v1518_v3, %v7738_v26  ;;  %v1637_v18 = vpop.permute.xlu1 %1636  ;;  %v6569_v3 = vld [vmem:[%s8614_s1 + $0x3c] sm:$0xf] }
  0xca   : > { %3312 = vrot.lane.b32.xlu0 %v7717_v20, %s7583_s27  ;;  %v1643_v24 = vsel %vm1642_vm15, %v1637_v18, %v1639_v5  ;;  %s7591_s27 = smov 35  }
  0xcb   : > { %v1641_v2 = vpop.permute.xlu0 %1640 }
  0xcd   : > { %6812 = vmatmul.mubr.msk.bf16.vlgmr.msra.gmra.mrb[0].mxu1 %vm175_vm5, %v6539_v27  ;;  %3437 = vrot.lane.b32.xlu1 %v7707_v17, %s7584_s30  ;;  %v1766_v21 = vpop.permute.xlu1 %1765 }
  0xce   : > { %6816 = vmatpush3.bf16.msra.mxu1 %v905_v25  ;;  %6817 = vmatprep.mubr.msk.bf16.mxu1 %vm7556_vm0, %v7555_v4 }
  0xcf   : > { %6540 = vmatmul.mubr.msk.bf16.vlgmr.msra.gmra.mrb[0].mxu0 %vm175_vm5, %v6539_v27  ;;  %6821 = vmatprep.subr.bf16.mxu1 %v7555_v4  ;;  %v1764_v25 = vpop.permute.xlu0 %1763  ;;  %v1655_v27 = vand.u32 %v1641_v2, %v7738_v26 }
  0xd0   : > { %908 = vmatpush1.bf16.msra.mxu0 %v899_v29  ;;  %939 = vmatprep.mubr.bf16.mxu0 %v7559_v23  ;;  %v1769_v29 = vsel %vm1767_vm1, %v1764_v25, %v1766_v21 }
  0xd1   : > { %1032 = vmatprep.subr.bf16.mxu0 %v1027_v30  ;;  %3439 = vrot.lane.b32.xlu0 %v7711_v19, %s7584_s30  ;;  %v1649_v30 = vand.u32 %v1643_v24, %v7738_v26  ;;  %v1777_v31 = vand.u32 %v1769_v29, %v7738_v26 }
  0xd2   : > { %3435 = vrot.lane.b32.xlu1 %v7703_v15, %s7584_s30 }
  0xd3   : > { %v1762_v32 = vpop.permute.xlu0 %1761 }
  0xd4   : > { %v1768_v34 = vsel %vm1767_vm1, %v1762_v32, %v1764_v25  ;;  %v6572_v25 = vld [vmem:[%s8614_s1 + $0x40] sm:$0xf]  ;;  %vm3185_vm1 = vcmask 482304  }
  0xd5   : > { %3441 = vrot.lane.b32.xlu0 %v7717_v20, %s7584_s30  ;;  %s7592_s30 = smov 34  }
  0xd6   : > { %3566 = vrot.lane.b32.xlu1 %v7707_v17, %s7585_s5 }
  0xd7   : > { %v1892_v33 = vpop.permute.xlu0 %1891 }
  0xd9   : > { %6818 = vmatmul.mubr.msk.bf16.vlgmr.msra.gmra.mrb[0].mxu1 %vm175_vm5, %v6542_v36  ;;  %3568 = vrot.lane.b32.xlu0 %v7711_v19, %s7585_s5 }
  0xda   : > { %6822 = vmatpush3.bf16.msra.mxu1 %v1030_v35  ;;  %6823 = vmatprep.mubr.msk.bf16.mxu1 %vm7556_vm0, %v7555_v4  ;;  %v1890_v35 = vpop.permute.xlu1 %1889 }
  0xdb   : > { %6543 = vmatmul.mubr.msk.bf16.vlgmr.msra.gmra.mrb[0].mxu0 %vm175_vm5, %v6542_v36  ;;  %6827 = vmatprep.subr.bf16.mxu1 %v7555_v4  ;;  %v1780_v36 = vand.u32 %v1766_v21, %v7738_v26  ;;  %v1894_v39 = vpop.permute.xlu0 %1893 }
  0xdc   : > { %1033 = vmatpush1.bf16.msra.mxu0 %v1024_v37  ;;  %1064 = vmatprep.mubr.bf16.mxu0 %v7559_v23  ;;  %v1897_v37 = vsel %vm1895_vm2, %v1890_v35, %v1892_v33  ;;  %v1898_v40 = vsel %vm1895_vm2, %v1892_v33, %v1894_v39 }
  0xdd   : > { %1157 = vmatprep.subr.bf16.mxu0 %v1152_v38  ;;  %3564 = vrot.lane.b32.xlu1 %v7703_v15, %s7585_s5  ;;  %v1774_v38 = vand.u32 %v1768_v34, %v7738_v26  ;;  %v1906_v14 = vand.u32 %v1897_v37, %v7738_v26 }
  0xde   : > { %3570 = vrot.lane.b32.xlu0 %v7717_v20, %s7585_s5  ;;  %v1888_v9 = vpop.permute.xlu1 %1887 }
  0xe1   : > { %3695 = vrot.lane.b32.xlu1 %v7707_v17, %s7586_s6 }
  0xe2   : > { %3697 = vrot.lane.b32.xlu0 %v7711_v19, %s7586_s6  ;;  %v2019_v43 = vpop.permute.xlu1 %2018 }
  0xe5   : > { %6824 = vmatmul.mubr.msk.bf16.vlgmr.msra.gmra.mrb[0].mxu1 %vm175_vm5, %v6545_v42  ;;  %3693 = vrot.lane.b32.xlu1 %v7703_v15, %s7586_s6 }
  0xe6   : > { %6828 = vmatpush3.bf16.msra.mxu1 %v1155_v41  ;;  %6829 = vmatprep.mubr.msk.bf16.mxu1 %vm7556_vm0, %v7555_v4  ;;  %v2021_v41 = vpop.permute.xlu0 %2020 }
  0xe7   : > { %6546 = vmatmul.mubr.msk.bf16.vlgmr.msra.gmra.mrb[0].mxu0 %vm175_vm5, %v6545_v42  ;;  %6833 = vmatprep.subr.bf16.mxu1 %v7555_v4  ;;  %v1896_v42 = vsel %vm1895_vm2, %v1888_v9, %v1890_v35  ;;  %v2026_v46 = vsel %vm2024_vm3, %v2019_v43, %v2021_v41  ;;  %vm3314_vm2 = vcmask 474112  }
  0xe8   : > { %1158 = vmatpush1.bf16.msra.mxu0 %v1149_v44  ;;  %1189 = vmatprep.mubr.bf16.mxu0 %v7559_v23  ;;  %v1909_v44 = vand.u32 %v1898_v40, %v7738_v26  ;;  %v1903_v47 = vand.u32 %v1896_v42, %v7738_v26  ;;  %v2035_v48 = vand.u32 %v2026_v46, %v7738_v26 }
  0xe9   : > { %1282 = vmatprep.subr.bf16.mxu0 %v1277_v45  ;;  %3699 = vrot.lane.b32.xlu0 %v7717_v20, %s7586_s6  ;;  %v6563_v45 = vld [vmem:[%s8614_s1 + $0x34] sm:$0xf]  ;;  %s7594_s6 = smov 17  }
  0xea   : > { %3824 = vrot.lane.b32.xlu1 %v7707_v17, %s7587_s11  ;;  %v2023_v49 = vpop.permute.xlu0 %2022 }
  0xed   : > { %3826 = vrot.lane.b32.xlu0 %v7711_v19, %s7587_s11 }
  0xee   : > { %3822 = vrot.lane.b32.xlu1 %v7703_v15, %s7587_s11  ;;  %v2150_v52 = vpop.permute.xlu0 %2149 }
  0xf1   : > { %6830 = vmatmul.mubr.msk.bf16.vlgmr.msra.gmra.mrb[0].mxu1 %vm175_vm5, %v6548_v51  ;;  %3828 = vrot.lane.b32.xlu0 %v7717_v20, %s7587_s11  ;;  %s7595_s11 = smov 16  }
  0xf2   : > { %6834 = vmatpush3.bf16.msra.mxu1 %v1280_v50  ;;  %6835 = vmatprep.mubr.msk.bf16.mxu1 %vm7556_vm0, %v7555_v4  ;;  %v2017_v50 = vpop.permute.xlu1 %2016 }
  0xf3   : > { %6549 = vmatmul.mubr.msk.bf16.vlgmr.msra.gmra.mrb[0].mxu0 %vm175_vm5, %v6548_v51  ;;  %6839 = vmatprep.subr.bf16.mxu1 %v7555_v4  ;;  %v2027_v51 = vsel %vm2024_vm3, %v2021_v41, %v2023_v49 }
  0xf4   : > { %1283 = vmatpush1.bf16.msra.mxu0 %v1274_v53  ;;  %1314 = vmatprep.mubr.bf16.mxu0 %v7559_v23  ;;  %v2025_v53 = vsel %vm2024_vm3, %v2017_v50, %v2019_v43  ;;  %v2038_v55 = vand.u32 %v2027_v51, %v7738_v26  ;;  %vm3443_vm3 = vcmask 465920  }
  0xf5   : > { %1407 = vmatprep.subr.bf16.mxu0 %v1402_v54  ;;  %3953 = vrot.lane.b32.xlu1 %v7707_v17, %s7588_s15  ;;  %v2032_v58 = vand.u32 %v2025_v53, %v7738_v26 }
  0xf6   : > { %3955 = vrot.lane.b32.xlu0 %v7711_v19, %s7588_s15  ;;  %v2148_v54 = vpop.permute.xlu1 %2147 }
  0xf7   : > { %v2155_v57 = vsel %vm2153_vm4, %v2148_v54, %v2150_v52 }
  0xf9   : > { %3951 = vrot.lane.b32.xlu1 %v7703_v15, %s7588_s15 }
  0xfa   : > { %3957 = vrot.lane.b32.xlu0 %v7717_v20, %s7588_s15  ;;  %v2146_v61 = vpop.permute.xlu1 %2145  ;;  %s7596_s15 = smov 15  }
  0xfb   : > { %v2154_v1 = vsel %vm2153_vm4, %v2146_v61, %v2148_v54  ;;  %v5478_v61 = vld [vmem:[%s7635_s14 + $0x2] sm:$0x3f] }
  0xfd   : > { %6836 = vmatmul.mubr.msk.bf16.vlgmr.msra.gmra.mrb[0].mxu1 %vm175_vm5, %v6551_v60  ;;  %4082 = vrot.lane.b32.xlu1 %v7707_v17, %s7589_s21  ;;  %v4188_v17 = vld [vmem:[%s7635_s14] sm:$0xff] }
  0xfe   : > { %6840 = vmatpush3.bf16.msra.mxu1 %v1405_v59  ;;  %6841 = vmatprep.mubr.msk.bf16.mxu1 %vm7556_vm0, %v7555_v4  ;;  %v7944_v7 = vrot.slane %v4188_v17, %v7637_v6  ;;  %v4192_v8 = vcombine.high %v4188_v17, %v4188_v17  ;;  %v2164_v59 = vand.u32 %v2155_v57, %v7738_v26 }
  0xff   : > { %6552 = vmatmul.mubr.msk.bf16.vlgmr.msra.gmra.mrb[0].mxu0 %vm175_vm5, %v6551_v60  ;;  %6845 = vmatprep.subr.bf16.mxu1 %v7555_v4  ;;  %v2152_v60 = vpop.permute.xlu0 %2151 }
 0x100   : > { %1408 = vmatpush1.bf16.msra.mxu0 %v1399_v62  ;;  %1439 = vmatprep.mubr.bf16.mxu0 %v7559_v23  ;;  %v7953_v11 = vcombine.high %v7944_v7, %v7944_v7  ;;  %v7960_v16 = vrot.slane %v4192_v8, %v7637_v6  ;;  %v2156_v62 = vsel %vm2153_vm4, %v2150_v52, %v2152_v60  ;;  %vm3572_vm4 = vcmask 457728  }
 0x101   : > { %1532 = vmatprep.subr.bf16.mxu0 %v1527_v63  ;;  %4084 = vrot.lane.b32.xlu0 %v7711_v19, %s7589_s21  ;;  %v6554_v19 = vld [vmem:[%s8614_s1 + $0x28] sm:$0xf]  ;;  %v2167_v17 = vand.u32 %v2156_v62, %v7738_v26  ;;  %v2161_v8 = vand.u32 %v2154_v1, %v7738_v26  ;;  %v5489_v1 = vrot.slane %v5478_v61, %v7637_v6 }
 0x102   : > { %4080 = vrot.lane.b32.xlu1 %v7703_v15, %s7589_s21  ;;  %v1644_v15 = vsel %vm1642_vm15, %v1639_v5, %v1641_v2  ;;  %v7971_v22 = vcombine.high %v7960_v16, %v7960_v16  ;;  %v2277_v2 = vpop.permute.xlu1 %2276  ;;  %vm3056_vm15 = vcmask 490496  }
 0x103   : > { %v2279_v63 = vpop.permute.xlu0 %2278 }
 0x104   : > { %v2284_v5 = vsel %vm2282_vm6, %v2277_v2, %v2279_v63 }
 0x105   : > { %4086 = vrot.lane.b32.xlu0 %v7717_v20, %s7589_s21  ;;  %v1652_v20 = vand.u32 %v1644_v15, %v7738_v26  ;;  %s7597_s21 = smov 14  }
 0x106   : > { %4211 = vrot.lane.b32.xlu1 %v7953_v11, %s7590_s24  ;;  %v2275_v15 = vpop.permute.xlu1 %2274 }
 0x107   : > { %v2283_v18 = vsel %vm2282_vm6, %v2275_v15, %v2277_v2  ;;  %v5482_v15 = vcombine.high %v5478_v61, %v5478_v61 }
 0x109   : > { %6842 = vmatmul.mubr.msk.bf16.vlgmr.msra.gmra.mrb[0].mxu1 %vm175_vm5, %v6554_v19  ;;  %4213 = vrot.lane.b32.xlu0 %v7960_v16, %s7590_s24 }
 0x10a   : > { %6846 = vmatpush3.bf16.msra.mxu1 %v1530_v10  ;;  %6847 = vmatprep.mubr.msk.bf16.mxu1 %vm7556_vm0, %v7555_v4  ;;  %v2293_v10 = vand.u32 %v2284_v5, %v7738_v26  ;;  %v2406_v21 = vpop.permute.xlu1 %2405  ;;  %v5497_v5 = vcombine.high %v5489_v1, %v5489_v1 }
 0x10b   : > { %6555 = vmatmul.mubr.msk.bf16.vlgmr.msra.gmra.mrb[0].mxu0 %vm175_vm5, %v6554_v19  ;;  %6851 = vmatprep.subr.bf16.mxu1 %v7555_v4  ;;  %v2281_v19 = vpop.permute.xlu0 %2280 }
 0x10c   : > { %1533 = vmatpush1.bf16.msra.mxu0 %v1524_v13  ;;  %1564 = vmatprep.mubr.bf16.mxu0 %v7559_v23  ;;  %v2285_v13 = vsel %vm2282_vm6, %v2279_v63, %v2281_v19  ;;  %vm3701_vm6 = vcmask 326656  }
 0x10d   : > { %1657 = vmatprep.subr.bf16.mxu0 %v1652_v20  ;;  %4209 = vrot.lane.b32.xlu1 %v7944_v7, %s7590_s24  ;;  %v2296_v24 = vand.u32 %v2285_v13, %v7738_v26 }
 0x10e   : > { %4215 = vrot.lane.b32.xlu0 %v7971_v22, %s7590_s24  ;;  %s7598_s24 = smov 13  }
 0x10f   : > { %v2408_v20 = vpop.permute.xlu0 %2407 }
 0x111   : > { %4340 = vrot.lane.b32.xlu1 %v7953_v11, %s7591_s27 }
 0x112   : > { %4342 = vrot.lane.b32.xlu0 %v7960_v16, %s7591_s27 }
 0x115   : > { %6848 = vmatmul.mubr.msk.bf16.vlgmr.msra.gmra.mrb[0].mxu1 %vm175_vm5, %v6557_v28  ;;  %4338 = vrot.lane.b32.xlu1 %v7944_v7, %s7591_s27 }
 0x116   : > { %6852 = vmatpush3.bf16.msra.mxu1 %v1655_v27  ;;  %6853 = vmatprep.mubr.msk.bf16.mxu1 %vm7556_vm0, %v7555_v4  ;;  %v2413_v27 = vsel %vm2411_vm10, %v2406_v21, %v2408_v20 }
 0x117   : > { %6558 = vmatmul.mubr.msk.bf16.vlgmr.msra.gmra.mrb[0].mxu0 %vm175_vm5, %v6557_v28  ;;  %6857 = vmatprep.subr.bf16.mxu1 %v7555_v4  ;;  %v2290_v28 = vand.u32 %v2283_v18, %v7738_v26  ;;  %v2422_v29 = vand.u32 %v2413_v27, %v7738_v26  ;;  %v5496_v18 = vrot.slane %v5482_v15, %v7637_v6 }
 0x118   : > { %1658 = vmatpush1.bf16.msra.mxu0 %v1649_v30  ;;  %1689 = vmatprep.mubr.bf16.mxu0 %v7559_v23  ;;  %v2410_v30 = vpop.permute.xlu0 %2409 }
 0x119   : > { %1782 = vmatprep.subr.bf16.mxu0 %v1777_v31  ;;  %4344 = vrot.lane.b32.xlu0 %v7971_v22, %s7591_s27  ;;  %v2404_v31 = vpop.permute.xlu1 %2403  ;;  %v2414_v32 = vsel %vm2411_vm10, %v2408_v20, %v2410_v30  ;;  %s7599_s27 = smov 12  }
 0x11a   : > { %4469 = vrot.lane.b32.xlu1 %v7953_v11, %s7592_s30  ;;  %v2412_v34 = vsel %vm2411_vm10, %v2404_v31, %v2406_v21  ;;  %v5602_v21 = vld [vmem:[%s7635_s14 + $0x2] sm:$0x3f]  ;;  %vm3830_vm10 = vcmask 318464  }
 0x11b   : > { %v5613_v27 = vrot.slane %v5602_v21, %v7637_v6 }
 0x11c   : > { %v2537_v33 = vpop.permute.xlu0 %2536 }
 0x11d   : > { %4471 = vrot.lane.b32.xlu0 %v7960_v16, %s7592_s30  ;;  %v2535_v35 = vpop.permute.xlu1 %2534  ;;  %v5621_v31 = vcombine.high %v5613_v27, %v5613_v27 }
 0x11e   : > { %4467 = vrot.lane.b32.xlu1 %v7944_v7, %s7592_s30  ;;  %v2542_v37 = vsel %vm2540_vm11, %v2535_v35, %v2537_v33 }
 0x120   : > { %v2539_v39 = vpop.permute.xlu0 %2538 }
 0x121   : > { %6854 = vmatmul.mubr.msk.bf16.vlgmr.msra.gmra.mrb[0].mxu1 %vm175_vm5, %v6560_v12  ;;  %4473 = vrot.lane.b32.xlu0 %v7971_v22, %s7592_s30  ;;  %v2533_v9 = vpop.permute.xlu1 %2532  ;;  %v2543_v40 = vsel %vm2540_vm11, %v2537_v33, %v2539_v39 }
 0x122   : > { %6858 = vmatpush3.bf16.msra.mxu1 %v1780_v36  ;;  %6859 = vmatprep.mubr.msk.bf16.mxu1 %vm7556_vm0, %v7555_v4  ;;  %v2425_v36 = vand.u32 %v2414_v32, %v7738_v26  ;;  %v2541_v42 = vsel %vm2540_vm11, %v2533_v9, %v2535_v35  ;;  %vm3959_vm11 = vcmask 310272  }
 0x123   : > { %6561 = vmatmul.mubr.msk.bf16.vlgmr.msra.gmra.mrb[0].mxu0 %vm175_vm5, %v6560_v12  ;;  %6863 = vmatprep.subr.bf16.mxu1 %v7555_v4  ;;  %v6575_v12 = vld [vmem:[%s8614_s1 + $0x44] sm:$0xf] }
 0x124   : > { %1783 = vmatpush1.bf16.msra.mxu0 %v1774_v38  ;;  %1814 = vmatprep.mubr.bf16.mxu0 %v7559_v23  ;;  %v2419_v38 = vand.u32 %v2412_v34, %v7738_v26  ;;  %v2666_v41 = vpop.permute.xlu0 %2665 }
 0x125   : > { %1911 = vmatprep.subr.bf16.mxu0 %v1906_v14  ;;  %4598 = vrot.lane.b32.xlu1 %v7953_v11, %s7593_s3  ;;  %v2551_v14 = vand.u32 %v2542_v37, %v7738_v26  ;;  %v2664_v43 = vpop.permute.xlu1 %2663 }
 0x126   : > { %4600 = vrot.lane.b32.xlu0 %v7960_v16, %s7593_s3  ;;  %v2671_v46 = vsel %vm2669_vm12, %v2664_v43, %v2666_v41 }
 0x128   : > { %v2668_v49 = vpop.permute.xlu0 %2667 }
 0x129   : > { %4596 = vrot.lane.b32.xlu1 %v7944_v7, %s7593_s3  ;;  %v2662_v50 = vpop.permute.xlu1 %2661  ;;  %v2672_v51 = vsel %vm2669_vm12, %v2666_v41, %v2668_v49 }
 0x12a   : > { %4602 = vrot.lane.b32.xlu0 %v7971_v22, %s7593_s3  ;;  %v2670_v53 = vsel %vm2669_vm12, %v2662_v50, %v2664_v43  ;;  %vm4088_vm12 = vcmask 302080  }
 0x12c   : > { %v2795_v52 = vpop.permute.xlu0 %2794 }
 0x12d   : > { %6860 = vmatmul.mubr.msk.bf16.vlgmr.msra.gmra.mrb[0].mxu1 %vm175_vm5, %v6563_v45  ;;  %4727 = vrot.lane.b32.xlu1 %v7953_v11, %s7594_s6  ;;  %v2793_v54 = vpop.permute.xlu1 %2792 }
 0x12e   : > { %6864 = vmatpush3.bf16.msra.mxu1 %v1909_v44  ;;  %6865 = vmatprep.mubr.msk.bf16.mxu1 %vm7556_vm0, %v7555_v4  ;;  %v2554_v44 = vand.u32 %v2543_v40, %v7738_v26  ;;  %v2800_v57 = vsel %vm2798_vm13, %v2793_v54, %v2795_v52 }
 0x12f   : > { %6564 = vmatmul.mubr.msk.bf16.vlgmr.msra.gmra.mrb[0].mxu0 %vm175_vm5, %v6563_v45  ;;  %6869 = vmatprep.subr.bf16.mxu1 %v7555_v4  ;;  %v6578_v45 = vld [vmem:[%s8614_s1 + $0x48] sm:$0xf] }
 0x130   : > { %1912 = vmatpush1.bf16.msra.mxu0 %v1903_v47  ;;  %1943 = vmatprep.mubr.bf16.mxu0 %v7559_v23  ;;  %v2548_v47 = vand.u32 %v2541_v42, %v7738_v26  ;;  %v6590_v42 = vld [vmem:[%s8614_s1 + $0x58] sm:$0xf] }
 0x131   : > { %2040 = vmatprep.subr.bf16.mxu0 %v2035_v48  ;;  %4729 = vrot.lane.b32.xlu0 %v7960_v16, %s7594_s6  ;;  %v2680_v48 = vand.u32 %v2671_v46, %v7738_v26 }
 0x132   : > { %4725 = vrot.lane.b32.xlu1 %v7944_v7, %s7594_s6 }
 0x135   : > { %4731 = vrot.lane.b32.xlu0 %v7971_v22, %s7594_s6 }
 0x136   : > { %4856 = vrot.lane.b32.xlu1 %v7953_v11, %s7595_s11 }
 0x139   : > { %6866 = vmatmul.mubr.msk.bf16.vlgmr.msra.gmra.mrb[0].mxu1 %vm175_vm5, %v6566_v56  ;;  %4858 = vrot.lane.b32.xlu0 %v7960_v16, %s7595_s11 }
 0x13a   : > { %6870 = vmatpush3.bf16.msra.mxu1 %v2038_v55  ;;  %6871 = vmatprep.mubr.msk.bf16.mxu1 %vm7556_vm0, %v7555_v4  ;;  %v2683_v55 = vand.u32 %v2672_v51, %v7738_v26 }
 0x13b   : > { %6567 = vmatmul.mubr.msk.bf16.vlgmr.msra.gmra.mrb[0].mxu0 %vm175_vm5, %v6566_v56  ;;  %6875 = vmatprep.subr.bf16.mxu1 %v7555_v4  ;;  %v6581_v56 = vld [vmem:[%s8614_s1 + $0x4c] sm:$0xf] }
 0x13c   : > { %2041 = vmatpush1.bf16.msra.mxu0 %v2032_v58  ;;  %2072 = vmatprep.mubr.bf16.mxu0 %v7559_v23  ;;  %v2677_v58 = vand.u32 %v2670_v53, %v7738_v26  ;;  %v5850_v53 = vld [vmem:[%s7635_s14 + $0x2] sm:$0x3f] }
 0x13d   : > { %2169 = vmatprep.subr.bf16.mxu0 %v2164_v59  ;;  %4854 = vrot.lane.b32.xlu1 %v7944_v7, %s7595_s11  ;;  %v2809_v59 = vand.u32 %v2800_v57, %v7738_v26 }
 0x13e   : > { %4860 = vrot.lane.b32.xlu0 %v7971_v22, %s7595_s11  ;;  %s7457_s11 = smul.u32 12, %s8617_s10 }
 0x141   : > { %4985 = vrot.lane.b32.xlu1 %v7953_v11, %s7596_s15 }
 0x142   : > { %4987 = vrot.lane.b32.xlu0 %v7960_v16, %s7596_s15 }
 0x145   : > { %6872 = vmatmul.mubr.msk.bf16.vlgmr.msra.gmra.mrb[0].mxu1 %vm175_vm5, %v6569_v3  ;;  %4983 = vrot.lane.b32.xlu1 %v7944_v7, %s7596_s15 }
 0x146   : > { %6876 = vmatpush3.bf16.msra.mxu1 %v2167_v17  ;;  %6877 = vmatprep.mubr.msk.bf16.mxu1 %vm7556_vm0, %v7555_v4  ;;  %v6584_v17 = vld [vmem:[%s8614_s1 + $0x50] sm:$0xf] }
 0x147   : > { %6570 = vmatmul.mubr.msk.bf16.vlgmr.msra.gmra.mrb[0].mxu0 %vm175_vm5, %v6569_v3  ;;  %6881 = vmatprep.subr.bf16.mxu1 %v7555_v4 }
 0x148   : > { %2170 = vmatpush1.bf16.msra.mxu0 %v2161_v8  ;;  %2201 = vmatprep.mubr.bf16.mxu0 %v7559_v23 }
 0x149   : > { %2298 = vmatprep.subr.bf16.mxu0 %v2293_v10  ;;  %4989 = vrot.lane.b32.xlu0 %v7971_v22, %s7596_s15  ;;  %s143_s15 = scalar_lea.vmem %s8615_s2, %s7457_s11 }
 0x14a   : > { %5114 = vrot.lane.b32.xlu1 %v7953_v11, %s7597_s21 }
 0x14d   : > { %5116 = vrot.lane.b32.xlu0 %v7960_v16, %s7597_s21 }
 0x14e   : > { %5112 = vrot.lane.b32.xlu1 %v7944_v7, %s7597_s21 }
 0x151   : > { %6878 = vmatmul.mubr.msk.bf16.vlgmr.msra.gmra.mrb[0].mxu1 %vm175_vm5, %v6572_v25  ;;  %5118 = vrot.lane.b32.xlu0 %v7971_v22, %s7597_s21 }
 0x152   : > { %6882 = vmatpush3.bf16.msra.mxu1 %v2296_v24  ;;  %6883 = vmatprep.mubr.msk.bf16.mxu1 %vm7556_vm0, %v7555_v4 }
 0x153   : > { %6573 = vmatmul.mubr.msk.bf16.vlgmr.msra.gmra.mrb[0].mxu0 %vm175_vm5, %v6572_v25  ;;  %6887 = vmatprep.subr.bf16.mxu1 %v7555_v4 }
 0x154   : > { %2299 = vmatpush1.bf16.msra.mxu0 %v2290_v28  ;;  %2330 = vmatprep.mubr.bf16.mxu0 %v7559_v23 }
 0x155   : > { %2427 = vmatprep.subr.bf16.mxu0 %v2422_v29  ;;  %5243 = vrot.lane.b32.xlu1 %v7953_v11, %s7598_s24  ;;  %v6587_v29 = vld [vmem:[%s8614_s1 + $0x54] sm:$0xf] }
 0x156   : > { %5245 = vrot.lane.b32.xlu0 %v7960_v16, %s7598_s24 }
 0x159   : > { %5241 = vrot.lane.b32.xlu1 %v7944_v7, %s7598_s24 }
 0x15a   : > { %5247 = vrot.lane.b32.xlu0 %v7971_v22, %s7598_s24 }
 0x15d   : > { %6884 = vmatmul.mubr.msk.bf16.vlgmr.msra.gmra.mrb[0].mxu1 %vm175_vm5, %v6575_v12  ;;  %5372 = vrot.lane.b32.xlu1 %v7953_v11, %s7599_s27  ;;  %v2797_v11 = vpop.permute.xlu0 %2796 }
 0x15e   : > { %6888 = vmatpush3.bf16.msra.mxu1 %v2425_v36  ;;  %6889 = vmatprep.mubr.msk.bf16.mxu1 %vm7556_vm0, %v7555_v4  ;;  %v2801_v60 = vsel %vm2798_vm13, %v2795_v52, %v2797_v11  ;;  %v5606_v36 = vcombine.high %v5602_v21, %v5602_v21 }
 0x15f   : > { %6576 = vmatmul.mubr.msk.bf16.vlgmr.msra.gmra.mrb[0].mxu0 %vm175_vm5, %v6575_v12  ;;  %6893 = vmatprep.subr.bf16.mxu1 %v7555_v4  ;;  %v2812_v2 = vand.u32 %v2801_v60, %v7738_v26 }
 0x160   : > { %2428 = vmatpush1.bf16.msra.mxu0 %v2419_v38  ;;  %2459 = vmatprep.mubr.bf16.mxu0 %v7559_v23  ;;  %v5620_v38 = vrot.slane %v5606_v36, %v7637_v6 }
 0x161   : > { %2556 = vmatprep.subr.bf16.mxu0 %v2551_v14  ;;  %5374 = vrot.lane.b32.xlu0 %v7960_v16, %s7599_s27  ;;  %v2791_v16 = vpop.permute.xlu1 %2790  ;;  %v5726_v14 = vld [vmem:[%s7635_s14 + $0x2] sm:$0x3f] }
 0x162   : > { %5370 = vrot.lane.b32.xlu1 %v7944_v7, %s7599_s27  ;;  %v2924_v7 = vpop.permute.xlu0 %2923  ;;  %v2799_v62 = vsel %vm2798_vm13, %v2791_v16, %v2793_v54  ;;  %v5737_v40 = vrot.slane %v5726_v14, %v7637_v6  ;;  %v5730_v49 = vcombine.high %v5726_v14, %v5726_v14  ;;  %vm4217_vm13 = vcmask 293888  }
 0x164   : > { %v5744_v52 = vrot.slane %v5730_v49, %v7637_v6 }
 0x165   : > { %5376 = vrot.lane.b32.xlu0 %v7971_v22, %s7599_s27  ;;  %v2922_v63 = vpop.permute.xlu1 %2921  ;;  %v2806_v22 = vand.u32 %v2799_v62, %v7738_v26  ;;  %v5854_v62 = vcombine.high %v5850_v53, %v5850_v53 }
 0x166   : > { %v2929_v3 = vsel %vm2927_vm14, %v2922_v63, %v2924_v7  ;;  %5500 = vrot.lane.b32.xlu1 %v5497_v5, %s7561_s18  ;;  %v2926_v10 = vpop.permute.xlu0 %2925 }
 0x167   : > { %v2938_v8 = vand.u32 %v2929_v3, %v7738_v26  ;;  %v2930_v13 = vsel %vm2927_vm14, %v2924_v7, %v2926_v10  ;;  %v6596_v10 = vld [vmem:[%s8614_s1 + $0x60] sm:$0xf] }
 0x168   : > { %v2941_v28 = vand.u32 %v2930_v13, %v7738_v26 }
 0x169   : > { %6890 = vmatmul.mubr.msk.bf16.vlgmr.msra.gmra.mrb[0].mxu1 %vm175_vm5, %v6578_v45  ;;  %v2920_v19 = vpop.permute.xlu1 %2919  ;;  %5502 = vrot.lane.b32.xlu0 %v5496_v18, %s7561_s18 }
 0x16a   : > { %6894 = vmatpush3.bf16.msra.mxu1 %v2554_v44  ;;  %6895 = vmatprep.mubr.msk.bf16.mxu1 %vm7556_vm0, %v7555_v4  ;;  %v3053_v20 = vpop.permute.xlu0 %3052  ;;  %v2928_v24 = vsel %vm2927_vm14, %v2920_v19, %v2922_v63  ;;  %v5745_v44 = vcombine.high %v5737_v40, %v5737_v40  ;;  %vm4346_vm14 = vcmask 285696  }
 0x16b   : > { %6579 = vmatmul.mubr.msk.bf16.vlgmr.msra.gmra.mrb[0].mxu0 %vm175_vm5, %v6578_v45  ;;  %6899 = vmatprep.subr.bf16.mxu1 %v7555_v4  ;;  %v2935_v32 = vand.u32 %v2928_v24, %v7738_v26 }
 0x16c   : > { %2557 = vmatpush1.bf16.msra.mxu0 %v2548_v47  ;;  %2588 = vmatprep.mubr.bf16.mxu0 %v7559_v23 }
 0x16d   : > { %2685 = vmatprep.subr.bf16.mxu0 %v2680_v48  ;;  %5498 = vrot.lane.b32.xlu1 %v5489_v1, %s7561_s18  ;;  %v3051_v25 = vpop.permute.xlu1 %3050 }
 0x16e   : > { %v3058_v30 = vsel %vm3056_vm15, %v3051_v25, %v3053_v20  ;;  %5624 = vrot.lane.b32.xlu0 %v5621_v31, %s7562_s19  ;;  %v3055_v34 = vpop.permute.xlu0 %3054 }
 0x16f   : > { %v3067_v33 = vand.u32 %v3058_v30, %v7738_v26  ;;  %v3059_v12 = vsel %vm3056_vm15, %v3053_v20, %v3055_v34  ;;  %v6599_v34 = vld [vmem:[%s8614_s1 + $0x64] sm:$0xf] }
 0x170   : > { %v3070_v41 = vand.u32 %v3059_v12, %v7738_v26 }
 0x171   : > { %v3049_v35 = vpop.permute.xlu1 %3048  ;;  %5626 = vrot.lane.b32.xlu1 %v5620_v38, %s7562_s19 }
 0x172   : > { %5622 = vrot.lane.b32.xlu0 %v5613_v27, %s7562_s19  ;;  %v3182_v37 = vpop.permute.xlu0 %3181  ;;  %v3057_v39 = vsel %vm3056_vm15, %v3049_v35, %v3051_v25  ;;  %vm4475_vm15 = vcmask 277504  }
 0x173   : > { %v3064_v45 = vand.u32 %v3057_v39, %v7738_v26 }
 0x175   : > { %6896 = vmatmul.mubr.msk.bf16.vlgmr.msra.gmra.mrb[0].mxu1 %vm175_vm5, %v6581_v56  ;;  %v3180_v9 = vpop.permute.xlu1 %3179  ;;  %5748 = vrot.lane.b32.xlu1 %v5745_v44, %s7563_s20 }
 0x176   : > { %6900 = vmatpush3.bf16.msra.mxu1 %v2683_v55  ;;  %6901 = vmatprep.mubr.msk.bf16.mxu1 %vm7556_vm0, %v7555_v4  ;;  %v3187_v43 = vsel %vm3185_vm1, %v3180_v9, %v3182_v37  ;;  %v3184_v47 = vpop.permute.xlu0 %3183 }
 0x177   : > { %6582 = vmatmul.mubr.msk.bf16.vlgmr.msra.gmra.mrb[0].mxu0 %vm175_vm5, %v6581_v56  ;;  %6905 = vmatprep.subr.bf16.mxu1 %v7555_v4  ;;  %v3196_v46 = vand.u32 %v3187_v43, %v7738_v26  ;;  %v3188_v50 = vsel %vm3185_vm1, %v3182_v37, %v3184_v47  ;;  %v5861_v56 = vrot.slane %v5850_v53, %v7637_v6  ;;  %v6602_v47 = vld [vmem:[%s8614_s1 + $0x68] sm:$0xf] }
 0x178   : > { %2686 = vmatpush1.bf16.msra.mxu0 %v2677_v58  ;;  %2717 = vmatprep.mubr.bf16.mxu0 %v7559_v23  ;;  %v3199_v57 = vand.u32 %v3188_v50, %v7738_v26  ;;  %v6593_v58 = vld [vmem:[%s8614_s1 + $0x5c] sm:$0xf] }
 0x179   : > { %2814 = vmatprep.subr.bf16.mxu0 %v2809_v59  ;;  %v3178_v48 = vpop.permute.xlu1 %3177  ;;  %5746 = vrot.lane.b32.xlu1 %v5737_v40, %s7563_s20  ;;  %v5869_v11 = vcombine.high %v5861_v56, %v5861_v56 }
 0x17a   : > { %v3311_v51 = vpop.permute.xlu0 %3310  ;;  %v3186_v54 = vsel %vm3185_vm1, %v3178_v48, %v3180_v9  ;;  %5750 = vrot.lane.b32.xlu0 %v5744_v52, %s7563_s20  ;;  %vm4604_vm1 = vcmask 146432  }
 0x17b   : > { %v3193_v16 = vand.u32 %v3186_v54, %v7738_v26 }
 0x17d   : > { %v3309_v55 = vpop.permute.xlu1 %3308 }
 0x17e   : > { %v3316_v59 = vsel %vm3314_vm2, %v3309_v55, %v3311_v51  ;;  %5872 = vrot.lane.b32.xlu0 %v5869_v11, %s7600_s8  ;;  %v3313_v7 = vpop.permute.xlu0 %3312 }
 0x17f   : > { %v3325_v60 = vand.u32 %v3316_v59, %v7738_v26  ;;  %v3317_v63 = vsel %vm3314_vm2, %v3311_v51, %v3313_v7 }
 0x181   : > { %6902 = vmatmul.mubr.msk.bf16.vlgmr.msra.gmra.mrb[0].mxu1 %vm175_vm5, %v6584_v17  ;;  %v3307_v61 = vpop.permute.xlu1 %3306 }
 0x182   : > { %6906 = vmatpush3.bf16.msra.mxu1 %v2812_v2  ;;  %6907 = vmatprep.mubr.msk.bf16.mxu1 %vm7556_vm0, %v7555_v4  ;;  %v3440_v1 = vpop.permute.xlu0 %3439  ;;  %v5868_v2 = vrot.slane %v5854_v62, %v7637_v6  ;;  %v3315_v3 = vsel %vm3314_vm2, %v3307_v61, %v3309_v55  ;;  %vm4733_vm2 = vcmask 138240  }
 0x183   : > { %6585 = vmatmul.mubr.msk.bf16.vlgmr.msra.gmra.mrb[0].mxu0 %vm175_vm5, %v6584_v17  ;;  %6911 = vmatprep.subr.bf16.mxu1 %v7555_v4  ;;  %v5975_v17 = vld [vmem:[%s7635_s14 + $0x2] sm:$0x3f]  ;;  %v3322_v13 = vand.u32 %v3315_v3, %v7738_v26 }
 0x184   : > { %2815 = vmatpush1.bf16.msra.mxu0 %v2806_v22  ;;  %2846 = vmatprep.mubr.bf16.mxu0 %v7559_v23  ;;  %v5986_v22 = vrot.slane %v5975_v17, %v7637_v6  ;;  %v5979_v24 = vcombine.high %v5975_v17, %v5975_v17 }
 0x185   : > { %2943 = vmatprep.subr.bf16.mxu0 %v2938_v8  ;;  %5870 = vrot.lane.b32.xlu0 %v5861_v56, %s7600_s8  ;;  %v3438_v5 = vpop.permute.xlu1 %3437  ;;  %v3328_v8 = vand.u32 %v3317_v63, %v7738_v26 }
 0x186   : > { %5874 = vrot.lane.b32.xlu1 %v5868_v2, %s7600_s8  ;;  %v3445_v19 = vsel %vm3443_vm3, %v3438_v5, %v3440_v1  ;;  %v5994_v15 = vcombine.high %v5986_v22, %v5986_v22  ;;  %v3442_v18 = vpop.permute.xlu0 %3441 }
 0x187   : > { %v3454_v20 = vand.u32 %v3445_v19, %v7738_v26  ;;  %v3446_v25 = vsel %vm3443_vm3, %v3440_v1, %v3442_v18 }
 0x189   : > { %v3436_v21 = vpop.permute.xlu1 %3435 }
 0x18a   : > { %5997 = vrot.lane.b32.xlu1 %v5994_v15, %s7601_s12  ;;  %v3569_v27 = vpop.permute.xlu0 %3568  ;;  %v3444_v30 = vsel %vm3443_vm3, %v3436_v21, %v3438_v5  ;;  %v6608_v5 = vld [vmem:[%s8614_s1 + $0x70] sm:$0xf]  ;;  %vm4862_vm3 = vcmask 130048  }
 0x18b   : > { %v3451_v12 = vand.u32 %v3444_v30, %v7738_v26 }
 0x18d   : > { %6908 = vmatmul.mubr.msk.bf16.vlgmr.msra.gmra.mrb[0].mxu1 %vm175_vm5, %v6587_v29  ;;  %v3567_v31 = vpop.permute.xlu1 %3566 }
 0x18e   : > { %6912 = vmatpush3.bf16.msra.mxu1 %v2941_v28  ;;  %6913 = vmatprep.mubr.msk.bf16.mxu1 %vm7556_vm0, %v7555_v4  ;;  %v5993_v28 = vrot.slane %v5979_v24, %v7637_v6  ;;  %v3574_v35 = vsel %vm3572_vm4, %v3567_v31, %v3569_v27  ;;  %v3571_v38 = vpop.permute.xlu0 %3570 }
 0x18f   : > { %6588 = vmatmul.mubr.msk.bf16.vlgmr.msra.gmra.mrb[0].mxu0 %vm175_vm5, %v6587_v29  ;;  %6917 = vmatprep.subr.bf16.mxu1 %v7555_v4  ;;  %v6100_v29 = vld [vmem:[%s7635_s14 + $0x2] sm:$0x3f]  ;;  %v3583_v37 = vand.u32 %v3574_v35, %v7738_v26  ;;  %v3575_v9 = vsel %vm3572_vm4, %v3569_v27, %v3571_v38 }
 0x190   : > { %2944 = vmatpush1.bf16.msra.mxu0 %v2935_v32  ;;  %2975 = vmatprep.mubr.bf16.mxu0 %v7559_v23  ;;  %v6111_v32 = vrot.slane %v6100_v29, %v7637_v6  ;;  %v6104_v39 = vcombine.high %v6100_v29, %v6100_v29 }
 0x191   : > { %3072 = vmatprep.subr.bf16.mxu0 %v3067_v33  ;;  %5995 = vrot.lane.b32.xlu1 %v5986_v22, %s7601_s12  ;;  %v3457_v33 = vand.u32 %v3446_v25, %v7738_v26  ;;  %v3565_v14 = vpop.permute.xlu1 %3564  ;;  %v6611_v25 = vld [vmem:[%s8614_s1 + $0x74] sm:$0xf] }
 0x192   : > { %5999 = vrot.lane.b32.xlu0 %v5993_v28, %s7601_s12  ;;  %v6119_v36 = vcombine.high %v6111_v32, %v6111_v32  ;;  %v3698_v40 = vpop.permute.xlu0 %3697  ;;  %v3573_v43 = vsel %vm3572_vm4, %v3565_v14, %v3567_v31  ;;  %vm4991_vm4 = vcmask 121856  }
 0x193   : > { %v3580_v50 = vand.u32 %v3573_v43, %v7738_v26 }
 0x195   : > { %v3696_v44 = vpop.permute.xlu1 %3695 }
 0x196   : > { %6122 = vrot.lane.b32.xlu0 %v6119_v36, %s7602_s16  ;;  %v3703_v48 = vsel %vm3701_vm6, %v3696_v44, %v3698_v40  ;;  %v3700_v52 = vpop.permute.xlu0 %3699 }
 0x197   : > { %v3712_v51 = vand.u32 %v3703_v48, %v7738_v26  ;;  %v3704_v55 = vsel %vm3701_vm6, %v3698_v40, %v3700_v52 }
 0x198   : > { %v3715_v11 = vand.u32 %v3704_v55, %v7738_v26 }
 0x199   : > { %6914 = vmatmul.mubr.msk.bf16.vlgmr.msra.gmra.mrb[0].mxu1 %vm175_vm5, %v6590_v42  ;;  %v3694_v53 = vpop.permute.xlu1 %3693 }
 0x19a   : > { %6918 = vmatpush3.bf16.msra.mxu1 %v3070_v41  ;;  %6919 = vmatprep.mubr.msk.bf16.mxu1 %vm7556_vm0, %v7555_v4  ;;  %v6118_v41 = vrot.slane %v6104_v39, %v7637_v6  ;;  %v3827_v56 = vpop.permute.xlu0 %3826 }
 0x19b   : > { %6591 = vmatmul.mubr.msk.bf16.vlgmr.msra.gmra.mrb[0].mxu0 %vm175_vm5, %v6590_v42  ;;  %6923 = vmatprep.subr.bf16.mxu1 %v7555_v4  ;;  %v6225_v42 = vld [vmem:[%s7635_s14 + $0x2] sm:$0x3f]  ;;  %s7603_s14 = smov 118  }
 0x19c   : > { %3073 = vmatpush1.bf16.msra.mxu0 %v3064_v45  ;;  %3104 = vmatprep.mubr.bf16.mxu0 %v7559_v23  ;;  %v6236_v45 = vrot.slane %v6225_v42, %v7637_v6  ;;  %v6229_v54 = vcombine.high %v6225_v42, %v6225_v42 }
 0x19d   : > { %3201 = vmatprep.subr.bf16.mxu0 %v3196_v46  ;;  %6120 = vrot.lane.b32.xlu0 %v6111_v32, %s7602_s16  ;;  %v3586_v46 = vand.u32 %v3575_v9, %v7738_v26  ;;  %v3825_v59 = vpop.permute.xlu1 %3824 }
 0x19e   : > { %6124 = vrot.lane.b32.xlu1 %v6118_v41, %s7602_s16  ;;  %v6244_v49 = vcombine.high %v6236_v45, %v6236_v45 }
 0x1a1   : > { %v3823_v62 = vpop.permute.xlu1 %3822 }
 0x1a2   : > { %6247 = vrot.lane.b32.xlu1 %v6244_v49, %s7603_s14  ;;  %v3831_v2 = vsel %vm3830_vm10, %v3823_v62, %v3825_v59 }
 0x1a5   : > { %6920 = vmatmul.mubr.msk.bf16.vlgmr.msra.gmra.mrb[0].mxu1 %vm175_vm5, %v6593_v58  ;;  %v3954_v17 = vpop.permute.xlu1 %3953 }
 0x1a6   : > { %6924 = vmatpush3.bf16.msra.mxu1 %v3199_v57  ;;  %6925 = vmatprep.mubr.msk.bf16.mxu1 %vm7556_vm0, %v7555_v4  ;;  %v6243_v57 = vrot.slane %v6229_v54, %v7637_v6  ;;  %v3829_v6 = vpop.permute.xlu0 %3828 }
 0x1a7   : > { %6594 = vmatmul.mubr.msk.bf16.vlgmr.msra.gmra.mrb[0].mxu0 %vm175_vm5, %v6593_v58  ;;  %6929 = vmatprep.subr.bf16.mxu1 %v7555_v4  ;;  %v3702_v58 = vsel %vm3701_vm6, %v3694_v53, %v3696_v44  ;;  %v3833_v63 = vsel %vm3830_vm10, %v3827_v56, %v3829_v6  ;;  %vm5120_vm6 = vcmask 113664  }
 0x1a8   : > { %3202 = vmatpush1.bf16.msra.mxu0 %v3193_v16  ;;  %3233 = vmatprep.mubr.bf16.mxu0 %v7559_v23  ;;  %v6605_v16 = vld [vmem:[%s8614_s1 + $0x6c] sm:$0xf]  ;;  %v3709_v7 = vand.u32 %v3702_v58, %v7738_v26  ;;  %v3844_v3 = vand.u32 %v3833_v63, %v7738_v26  ;;  %v6623_v63 = vld [vmem:[%s8614_s1 + $0x84] sm:$0xf] }
 0x1a9   : > { %3330 = vmatprep.subr.bf16.mxu0 %v3325_v60  ;;  %6245 = vrot.lane.b32.xlu1 %v6236_v45, %s7603_s14  ;;  %v3832_v60 = vsel %vm3830_vm10, %v3825_v59, %v3827_v56  ;;  %v3952_v15 = vpop.permute.xlu1 %3951  ;;  %v6617_v45 = vld [vmem:[%s8614_s1 + $0x7c] sm:$0xf]  ;;  %v6620_v56 = vld [vmem:[%s8614_s1 + $0x80] sm:$0xf]  ;;  %vm5249_vm10 = vcmask 105472  }
 0x1aa   : > { %6249 = vrot.lane.b32.xlu0 %v6243_v57, %s7603_s14  ;;  %v3841_v61 = vand.u32 %v3832_v60, %v7738_v26  ;;  %v3956_v1 = vpop.permute.xlu0 %3955  ;;  %v3960_v18 = vsel %vm3959_vm11, %v3952_v15, %v3954_v17 }
 0x1ab   : > { %v3961_v22 = vsel %vm3959_vm11, %v3954_v17, %v3956_v1  ;;  %v3967_v28 = vand.u32 %v3960_v18, %v7738_v26 }
 0x1ad   : > { %v4083_v21 = vpop.permute.xlu1 %4082 }
 0x1ae   : > { %v3958_v19 = vpop.permute.xlu0 %3957 }
 0x1b1   : > { %6926 = vmatmul.mubr.msk.bf16.vlgmr.msra.gmra.mrb[0].mxu1 %vm175_vm5, %v6596_v10  ;;  %v4081_v31 = vpop.permute.xlu1 %4080 }
 0x1b2   : > { %6930 = vmatpush3.bf16.msra.mxu1 %v3328_v8  ;;  %6931 = vmatprep.mubr.msk.bf16.mxu1 %vm7556_vm0, %v7555_v4  ;;  %v3838_v8 = vand.u32 %v3831_v2, %v7738_v26 }
 0x1b3   : > { %6597 = vmatmul.mubr.msk.bf16.vlgmr.msra.gmra.mrb[0].mxu0 %vm175_vm5, %v6596_v10  ;;  %6935 = vmatprep.subr.bf16.mxu1 %v7555_v4  ;;  %v3970_v10 = vand.u32 %v3961_v22, %v7738_v26 }
 0x1b4   : > { %3331 = vmatpush1.bf16.msra.mxu0 %v3322_v13  ;;  %3362 = vmatprep.mubr.bf16.mxu0 %v7559_v23  ;;  %v3962_v13 = vsel %vm3959_vm11, %v3956_v1, %v3958_v19  ;;  %vm5378_vm11 = vcmask 97280  }
 0x1b5   : > { %3459 = vmatprep.subr.bf16.mxu0 %v3454_v20  ;;  %v4085_v20 = vpop.permute.xlu0 %4084  ;;  %v3973_v24 = vand.u32 %v3962_v13, %v7738_v26  ;;  %v4212_v35 = vpop.permute.xlu1 %4211  ;;  %v6626_v13 = vld [vmem:[%s8614_s1 + $0x88] sm:$0xf] }
 0x1b6   : > { %v4090_v27 = vsel %vm4088_vm12, %v4083_v21, %v4085_v20 }
 0x1b7   : > { %v4099_v29 = vand.u32 %v4090_v27, %v7738_v26 }
 0x1b9   : > { %v4087_v30 = vpop.permute.xlu0 %4086  ;;  %v4210_v9 = vpop.permute.xlu1 %4209 }
 0x1ba   : > { %v4091_v32 = vsel %vm4088_vm12, %v4085_v20, %v4087_v30  ;;  %v4218_v42 = vsel %vm4217_vm13, %v4210_v9, %v4212_v35 }
 0x1bb   : > { %v4102_v36 = vand.u32 %v4091_v32, %v7738_v26  ;;  %v6629_v32 = vld [vmem:[%s8614_s1 + $0x8c] sm:$0xf] }
 0x1bd   : > { %6932 = vmatmul.mubr.msk.bf16.vlgmr.msra.gmra.mrb[0].mxu1 %vm175_vm5, %v6599_v34  ;;  %v4341_v43 = vpop.permute.xlu1 %4340 }
 0x1be   : > { %6936 = vmatpush3.bf16.msra.mxu1 %v3457_v33  ;;  %6937 = vmatprep.mubr.msk.bf16.mxu1 %vm7556_vm0, %v7555_v4  ;;  %v4214_v33 = vpop.permute.xlu0 %4213 }
 0x1bf   : > { %6600 = vmatmul.mubr.msk.bf16.vlgmr.msra.gmra.mrb[0].mxu0 %vm175_vm5, %v6599_v34  ;;  %6941 = vmatprep.subr.bf16.mxu1 %v7555_v4  ;;  %v4089_v34 = vsel %vm4088_vm12, %v4081_v31, %v4083_v21  ;;  %vm6251_vm12 = vcmask 965632  }
 0x1c0   : > { %3460 = vmatpush1.bf16.msra.mxu0 %v3451_v12  ;;  %3491 = vmatprep.mubr.bf16.mxu0 %v7559_v23  ;;  %v6614_v12 = vld [vmem:[%s8614_s1 + $0x78] sm:$0xf]  ;;  %v4096_v38 = vand.u32 %v4089_v34, %v7738_v26 }
 0x1c1   : > { %3588 = vmatprep.subr.bf16.mxu0 %v3583_v37  ;;  %v4219_v37 = vsel %vm4217_vm13, %v4212_v35, %v4214_v33 }
 0x1c2   : > { %v4228_v14 = vand.u32 %v4219_v37, %v7738_v26  ;;  %v4216_v39 = vpop.permute.xlu0 %4215 }
 0x1c3   : > { %v4220_v40 = vsel %vm4217_vm13, %v4214_v33, %v4216_v39 }
 0x1c4   : > { %v4231_v44 = vand.u32 %v4220_v40, %v7738_v26  ;;  %v6632_v40 = vld [vmem:[%s8614_s1 + $0x90] sm:$0xf] }
 0x1c6   : > { %v4343_v41 = vpop.permute.xlu0 %4342 }
 0x1c9   : > { %6938 = vmatmul.mubr.msk.bf16.vlgmr.msra.gmra.mrb[0].mxu1 %vm175_vm5, %v6602_v47 }
 0x1ca   : > { %6942 = vmatpush3.bf16.msra.mxu1 %v3586_v46  ;;  %6943 = vmatprep.mubr.msk.bf16.mxu1 %vm7556_vm0, %v7555_v4  ;;  %v4348_v46 = vsel %vm4346_vm14, %v4341_v43, %v4343_v41  ;;  %v4345_v49 = vpop.permute.xlu0 %4344 }
 0x1cb   : > { %6603 = vmatmul.mubr.msk.bf16.vlgmr.msra.gmra.mrb[0].mxu0 %vm175_vm5, %v6602_v47  ;;  %6947 = vmatprep.subr.bf16.mxu1 %v7555_v4  ;;  %v4225_v47 = vand.u32 %v4218_v42, %v7738_v26  ;;  %v4357_v48 = vand.u32 %v4348_v46, %v7738_v26 }
 0x1cc   : > { %3589 = vmatpush1.bf16.msra.mxu0 %v3580_v50  ;;  %3620 = vmatprep.mubr.bf16.mxu0 %v7559_v23  ;;  %v4339_v50 = vpop.permute.xlu1 %4338 }
 0x1cd   : > { %3717 = vmatprep.subr.bf16.mxu0 %v3712_v51  ;;  %v4349_v51 = vsel %vm4346_vm14, %v4343_v41, %v4345_v49  ;;  %v4347_v53 = vsel %vm4346_vm14, %v4339_v50, %v4341_v43 }
 0x1ce   : > { %v4472_v52 = vpop.permute.xlu0 %4471  ;;  %v4360_v55 = vand.u32 %v4349_v51, %v7738_v26  ;;  %v4354_v58 = vand.u32 %v4347_v53, %v7738_v26  ;;  %v6635_v51 = vld [vmem:[%s8614_s1 + $0x94] sm:$0xf] }
 0x1d0   : > { %v4470_v54 = vpop.permute.xlu1 %4469 }
 0x1d1   : > { %v4477_v57 = vsel %vm4475_vm15, %v4470_v54, %v4472_v52 }
 0x1d2   : > { %v4486_v59 = vand.u32 %v4477_v57, %v7738_v26 }
 0x1d5   : > { %6944 = vmatmul.mubr.msk.bf16.vlgmr.msra.gmra.mrb[0].mxu1 %vm175_vm5, %v6605_v16 }
 0x1d6   : > { %6948 = vmatpush3.bf16.msra.mxu1 %v3715_v11  ;;  %6949 = vmatprep.mubr.msk.bf16.mxu1 %vm7556_vm0, %v7555_v4  ;;  %v4474_v11 = vpop.permute.xlu0 %4473 }
 0x1d7   : > { %6606 = vmatmul.mubr.msk.bf16.vlgmr.msra.gmra.mrb[0].mxu0 %vm175_vm5, %v6605_v16  ;;  %6953 = vmatprep.subr.bf16.mxu1 %v7555_v4  ;;  %v4468_v16 = vpop.permute.xlu1 %4467  ;;  %v4478_v60 = vsel %vm4475_vm15, %v4472_v52, %v4474_v11 }
 0x1d8   : > { %3718 = vmatpush1.bf16.msra.mxu0 %v3709_v7  ;;  %3749 = vmatprep.mubr.bf16.mxu0 %v7559_v23  ;;  %v4489_v62 = vand.u32 %v4478_v60, %v7738_v26  ;;  %v6638_v60 = vld [vmem:[%s8614_s1 + $0x98] sm:$0xf] }
 0x1d9   : > { %3846 = vmatprep.subr.bf16.mxu0 %v3841_v61  ;;  %v4476_v61 = vsel %vm4475_vm15, %v4468_v16, %v4470_v54 }
 0x1da   : > { %v4601_v7 = vpop.permute.xlu0 %4600  ;;  %v4483_v2 = vand.u32 %v4476_v61, %v7738_v26 }
 0x1db   : > { %v4599_v6 = vpop.permute.xlu1 %4598 }
 0x1dc   : > { %v4606_v1 = vsel %vm4604_vm1, %v4599_v6, %v4601_v7 }
 0x1dd   : > { %v4615_v17 = vand.u32 %v4606_v1, %v7738_v26 }
 0x1e1   : > { %6950 = vmatmul.mubr.msk.bf16.vlgmr.msra.gmra.mrb[0].mxu1 %vm175_vm5, %v6608_v5 }
 0x1e2   : > { %6954 = vmatpush3.bf16.msra.mxu1 %v3844_v3  ;;  %6955 = vmatprep.mubr.msk.bf16.mxu1 %vm7556_vm0, %v7555_v4  ;;  %v4603_v3 = vpop.permute.xlu0 %4602 }
 0x1e3   : > { %6609 = vmatmul.mubr.msk.bf16.vlgmr.msra.gmra.mrb[0].mxu0 %vm175_vm5, %v6608_v5  ;;  %6959 = vmatprep.subr.bf16.mxu1 %v7555_v4  ;;  %v4597_v5 = vpop.permute.xlu1 %4596  ;;  %v4607_v22 = vsel %vm4604_vm1, %v4601_v7, %v4603_v3 }
 0x1e4   : > { %3847 = vmatpush1.bf16.msra.mxu0 %v3838_v8  ;;  %3878 = vmatprep.mubr.bf16.mxu0 %v7559_v23  ;;  %v4618_v15 = vand.u32 %v4607_v22, %v7738_v26  ;;  %v6641_v22 = vld [vmem:[%s8614_s1 + $0x9c] sm:$0xf] }
 0x1e5   : > { %3975 = vmatprep.subr.bf16.mxu0 %v3970_v10  ;;  %v4605_v10 = vsel %vm4604_vm1, %v4597_v5, %v4599_v6 }
 0x1e6   : > { %v4730_v8 = vpop.permute.xlu0 %4729  ;;  %v4612_v18 = vand.u32 %v4605_v10, %v7738_v26 }
 0x1e7   : > { %v4728_v19 = vpop.permute.xlu1 %4727 }
 0x1e8   : > { %v4735_v20 = vsel %vm4733_vm2, %v4728_v19, %v4730_v8 }
 0x1e9   : > { %v4744_v21 = vand.u32 %v4735_v20, %v7738_v26 }
 0x1ed   : > { %6956 = vmatmul.mubr.msk.bf16.vlgmr.msra.gmra.mrb[0].mxu1 %vm175_vm5, %v6611_v25 }
 0x1ee   : > { %6960 = vmatpush3.bf16.msra.mxu1 %v3973_v24  ;;  %6961 = vmatprep.mubr.msk.bf16.mxu1 %vm7556_vm0, %v7555_v4  ;;  %v4732_v24 = vpop.permute.xlu0 %4731 }
 0x1ef   : > { %6612 = vmatmul.mubr.msk.bf16.vlgmr.msra.gmra.mrb[0].mxu0 %vm175_vm5, %v6611_v25  ;;  %6965 = vmatprep.subr.bf16.mxu1 %v7555_v4  ;;  %v4726_v25 = vpop.permute.xlu1 %4725  ;;  %v4736_v27 = vsel %vm4733_vm2, %v4730_v8, %v4732_v24 }
 0x1f0   : > { %3976 = vmatpush1.bf16.msra.mxu0 %v3967_v28  ;;  %4007 = vmatprep.mubr.bf16.mxu0 %v7559_v23  ;;  %v4747_v31 = vand.u32 %v4736_v27, %v7738_v26  ;;  %v6644_v27 = vld [vmem:[%s8614_s1 + $0xa0] sm:$0xf] }
 0x1f1   : > { %4104 = vmatprep.subr.bf16.mxu0 %v4099_v29  ;;  %v4734_v29 = vsel %vm4733_vm2, %v4726_v25, %v4728_v19 }
 0x1f2   : > { %v4859_v28 = vpop.permute.xlu0 %4858  ;;  %v4741_v34 = vand.u32 %v4734_v29, %v7738_v26 }
 0x1f3   : > { %v4857_v30 = vpop.permute.xlu1 %4856 }
 0x1f4   : > { %v4864_v33 = vsel %vm4862_vm3, %v4857_v30, %v4859_v28 }
 0x1f5   : > { %v4873_v35 = vand.u32 %v4864_v33, %v7738_v26 }
 0x1f9   : > { %6962 = vmatmul.mubr.msk.bf16.vlgmr.msra.gmra.mrb[0].mxu1 %vm175_vm5, %v6614_v12 }
 0x1fa   : > { %6966 = vmatpush3.bf16.msra.mxu1 %v4102_v36  ;;  %6967 = vmatprep.mubr.msk.bf16.mxu1 %vm7556_vm0, %v7555_v4  ;;  %v4861_v36 = vpop.permute.xlu0 %4860 }
 0x1fb   : > { %6615 = vmatmul.mubr.msk.bf16.vlgmr.msra.gmra.mrb[0].mxu0 %vm175_vm5, %v6614_v12  ;;  %6971 = vmatprep.subr.bf16.mxu1 %v7555_v4  ;;  %v4855_v12 = vpop.permute.xlu1 %4854  ;;  %v4865_v37 = vsel %vm4862_vm3, %v4859_v28, %v4861_v36  ;;  %v6647_v36 = vld [vmem:[%s8614_s1 + $0xa4] sm:$0xf] }
 0x1fc   : > { %4105 = vmatpush1.bf16.msra.mxu0 %v4096_v38  ;;  %4136 = vmatprep.mubr.bf16.mxu0 %v7559_v23  ;;  %v4876_v9 = vand.u32 %v4865_v37, %v7738_v26 }
 0x1fd   : > { %4233 = vmatprep.subr.bf16.mxu0 %v4228_v14  ;;  %v4863_v14 = vsel %vm4862_vm3, %v4855_v12, %v4857_v30 }
 0x1fe   : > { %v4988_v38 = vpop.permute.xlu0 %4987  ;;  %v4870_v42 = vand.u32 %v4863_v14, %v7738_v26 }
 0x1ff   : > { %v4986_v39 = vpop.permute.xlu1 %4985 }
 0x200   : > { %v4993_v41 = vsel %vm4991_vm4, %v4986_v39, %v4988_v38 }
 0x201   : > { %v5002_v43 = vand.u32 %v4993_v41, %v7738_v26 }
 0x205   : > { %6968 = vmatmul.mubr.msk.bf16.vlgmr.msra.gmra.mrb[0].mxu1 %vm175_vm5, %v6617_v45 }
 0x206   : > { %6972 = vmatpush3.bf16.msra.mxu1 %v4231_v44  ;;  %6973 = vmatprep.mubr.msk.bf16.mxu1 %vm7556_vm0, %v7555_v4  ;;  %v4990_v44 = vpop.permute.xlu0 %4989 }
 0x207   : > { %6618 = vmatmul.mubr.msk.bf16.vlgmr.msra.gmra.mrb[0].mxu0 %vm175_vm5, %v6617_v45  ;;  %6977 = vmatprep.subr.bf16.mxu1 %v7555_v4  ;;  %v4984_v45 = vpop.permute.xlu1 %4983  ;;  %v4994_v46 = vsel %vm4991_vm4, %v4988_v38, %v4990_v44 }
 0x208   : > { %4234 = vmatpush1.bf16.msra.mxu0 %v4225_v47  ;;  %4265 = vmatprep.mubr.bf16.mxu0 %v7559_v23  ;;  %v5005_v50 = vand.u32 %v4994_v46, %v7738_v26 }
 0x209   : > { %4362 = vmatprep.subr.bf16.mxu0 %v4357_v48  ;;  %v4992_v48 = vsel %vm4991_vm4, %v4984_v45, %v4986_v39 }
 0x20a   : > { %v5117_v47 = vpop.permute.xlu0 %5116  ;;  %v4999_v53 = vand.u32 %v4992_v48, %v7738_v26 }
 0x20b   : > { %v5115_v49 = vpop.permute.xlu1 %5114 }
 0x20c   : > { %v5122_v52 = vsel %vm5120_vm6, %v5115_v49, %v5117_v47 }
 0x20d   : > { %v5131_v54 = vand.u32 %v5122_v52, %v7738_v26 }
 0x211   : > { %6974 = vmatmul.mubr.msk.bf16.vlgmr.msra.gmra.mrb[0].mxu1 %vm175_vm5, %v6620_v56 }
 0x212   : > { %6978 = vmatpush3.bf16.msra.mxu1 %v4360_v55  ;;  %6979 = vmatprep.mubr.msk.bf16.mxu1 %vm7556_vm0, %v7555_v4  ;;  %v5119_v55 = vpop.permute.xlu0 %5118 }
 0x213   : > { %6621 = vmatmul.mubr.msk.bf16.vlgmr.msra.gmra.mrb[0].mxu0 %vm175_vm5, %v6620_v56  ;;  %6983 = vmatprep.subr.bf16.mxu1 %v7555_v4  ;;  %v5113_v56 = vpop.permute.xlu1 %5112  ;;  %v5123_v57 = vsel %vm5120_vm6, %v5117_v47, %v5119_v55 }
 0x214   : > { %4363 = vmatpush1.bf16.msra.mxu0 %v4354_v58  ;;  %4394 = vmatprep.mubr.bf16.mxu0 %v7559_v23  ;;  %v5134_v16 = vand.u32 %v5123_v57, %v7738_v26 }
 0x215   : > { %4491 = vmatprep.subr.bf16.mxu0 %v4486_v59  ;;  %v5121_v59 = vsel %vm5120_vm6, %v5113_v56, %v5115_v49 }
 0x216   : > { %v5246_v58 = vpop.permute.xlu0 %5245  ;;  %v5128_v61 = vand.u32 %v5121_v59, %v7738_v26 }
 0x217   : > { %v5244_v11 = vpop.permute.xlu1 %5243 }
 0x218   : > { %v5251_v7 = vsel %vm5249_vm10, %v5244_v11, %v5246_v58 }
 0x219   : > { %v5260_v6 = vand.u32 %v5251_v7, %v7738_v26 }
 0x21d   : > { %6980 = vmatmul.mubr.msk.bf16.vlgmr.msra.gmra.mrb[0].mxu1 %vm175_vm5, %v6623_v63 }
 0x21e   : > { %6984 = vmatpush3.bf16.msra.mxu1 %v4489_v62  ;;  %6985 = vmatprep.mubr.msk.bf16.mxu1 %vm7556_vm0, %v7555_v4  ;;  %v5248_v62 = vpop.permute.xlu0 %5247 }
 0x21f   : > { %6624 = vmatmul.mubr.msk.bf16.vlgmr.msra.gmra.mrb[0].mxu0 %vm175_vm5, %v6623_v63  ;;  %6989 = vmatprep.subr.bf16.mxu1 %v7555_v4  ;;  %v5242_v63 = vpop.permute.xlu1 %5241  ;;  %v5252_v1 = vsel %vm5249_vm10, %v5246_v58, %v5248_v62 }
 0x220   : > { %4492 = vmatpush1.bf16.msra.mxu0 %v4483_v2  ;;  %4523 = vmatprep.mubr.bf16.mxu0 %v7559_v23  ;;  %v5263_v5 = vand.u32 %v5252_v1, %v7738_v26 }
 0x221   : > { %4620 = vmatprep.subr.bf16.mxu0 %v4615_v17  ;;  %v5250_v17 = vsel %vm5249_vm10, %v5242_v63, %v5244_v11  ;;  %v6656_v11 = vld [vmem:[%s8614_s1 + $0xb0] sm:$0xf] }
 0x222   : > { %v5375_v2 = vpop.permute.xlu0 %5374  ;;  %v5257_v10 = vand.u32 %v5250_v17, %v7738_v26 }
 0x223   : > { %v5373_v3 = vpop.permute.xlu1 %5372 }
 0x224   : > { %v5380_v8 = vsel %vm5378_vm11, %v5373_v3, %v5375_v2 }
 0x225   : > { %v5389_v19 = vand.u32 %v5380_v8, %v7738_v26 }
 0x229   : > { %6986 = vmatmul.mubr.msk.bf16.vlgmr.msra.gmra.mrb[0].mxu1 %vm175_vm5, %v6626_v13 }
 0x22a   : > { %6990 = vmatpush3.bf16.msra.mxu1 %v4618_v15  ;;  %6991 = vmatprep.mubr.msk.bf16.mxu1 %vm7556_vm0, %v7555_v4  ;;  %v5377_v15 = vpop.permute.xlu0 %5376 }
 0x22b   : > { %6627 = vmatmul.mubr.msk.bf16.vlgmr.msra.gmra.mrb[0].mxu0 %vm175_vm5, %v6626_v13  ;;  %6995 = vmatprep.subr.bf16.mxu1 %v7555_v4  ;;  %v5371_v13 = vpop.permute.xlu1 %5370  ;;  %v5381_v20 = vsel %vm5378_vm11, %v5375_v2, %v5377_v15  ;;  %v6659_v2 = vld [vmem:[%s8614_s1 + $0xb4] sm:$0xf] }
 0x22c   : > { %4621 = vmatpush1.bf16.msra.mxu0 %v4612_v18  ;;  %4652 = vmatprep.mubr.bf16.mxu0 %v7559_v23  ;;  %v5392_v25 = vand.u32 %v5381_v20, %v7738_v26 }
 0x22d   : > { %4749 = vmatprep.subr.bf16.mxu0 %v4744_v21  ;;  %v5379_v21 = vsel %vm5378_vm11, %v5371_v13, %v5373_v3  ;;  %v6662_v13 = vld [vmem:[%s8614_s1 + $0xb8] sm:$0xf] }
 0x22e   : > { %v5503_v18 = vpop.permute.xlu0 %5502  ;;  %v5386_v29 = vand.u32 %v5379_v21, %v7738_v26 }
 0x22f   : > { %v5501_v24 = vpop.permute.xlu1 %5500 }
 0x230   : > { %v5505_v28 = vsel %vm642_vm7, %v5501_v24, %v5503_v18 }
 0x231   : > { %v5513_v30 = vand.u32 %v5505_v28, %v7738_v26  ;;  %v6665_v28 = vld [vmem:[%s8614_s1 + $0xbc] sm:$0xf] }
 0x235   : > { %6992 = vmatmul.mubr.msk.bf16.vlgmr.msra.gmra.mrb[0].mxu1 %vm175_vm5, %v6629_v32 }
 0x236   : > { %6996 = vmatpush3.bf16.msra.mxu1 %v4747_v31  ;;  %6997 = vmatprep.mubr.msk.bf16.mxu1 %vm7556_vm0, %v7555_v4  ;;  %v5499_v31 = vpop.permute.xlu1 %5498 }
 0x237   : > { %6630 = vmatmul.mubr.msk.bf16.vlgmr.msra.gmra.mrb[0].mxu0 %vm175_vm5, %v6629_v32  ;;  %7001 = vmatprep.subr.bf16.mxu1 %v7555_v4  ;;  %v5504_v33 = vsel %vm642_vm7, %v5499_v31, %v5501_v24  ;;  %vm5876_vm7 = vcmask 990208  }
 0x238   : > { %4750 = vmatpush1.bf16.msra.mxu0 %v4741_v34  ;;  %4781 = vmatprep.mubr.bf16.mxu0 %v7559_v23  ;;  %v5625_v34 = vpop.permute.xlu0 %5624  ;;  %v5510_v37 = vand.u32 %v5504_v33, %v7738_v26 }
 0x239   : > { %4878 = vmatprep.subr.bf16.mxu0 %v4873_v35  ;;  %v5516_v35 = vand.u32 %v5503_v18, %v7738_v26 }
 0x23a   : > { %v5627_v32 = vpop.permute.xlu1 %5626 }
 0x23b   : > { %v5629_v12 = vsel %vm767_vm8, %v5625_v34, %v5627_v32  ;;  %v5640_v41 = vand.u32 %v5627_v32, %v7738_v26 }
 0x23c   : > { %v5637_v38 = vand.u32 %v5629_v12, %v7738_v26  ;;  %v5623_v14 = vpop.permute.xlu0 %5622 }
 0x240   : > { %v5751_v39 = vpop.permute.xlu0 %5750 }
 0x241   : > { %6998 = vmatmul.mubr.msk.bf16.vlgmr.msra.gmra.mrb[0].mxu1 %vm175_vm5, %v6632_v40 }
 0x242   : > { %7002 = vmatpush3.bf16.msra.mxu1 %v4876_v9  ;;  %7003 = vmatprep.mubr.msk.bf16.mxu1 %vm7556_vm0, %v7555_v4  ;;  %v5628_v9 = vsel %vm767_vm8, %v5623_v14, %v5625_v34  ;;  %vm6001_vm8 = vcmask 982016  }
 0x243   : > { %6633 = vmatmul.mubr.msk.bf16.vlgmr.msra.gmra.mrb[0].mxu0 %vm175_vm5, %v6632_v40  ;;  %7007 = vmatprep.subr.bf16.mxu1 %v7555_v4  ;;  %v5749_v40 = vpop.permute.xlu1 %5748  ;;  %v5634_v44 = vand.u32 %v5628_v9, %v7738_v26 }
 0x244   : > { %4879 = vmatpush1.bf16.msra.mxu0 %v4870_v42  ;;  %4910 = vmatprep.mubr.bf16.mxu0 %v7559_v23  ;;  %v6650_v42 = vld [vmem:[%s8614_s1 + $0xa8] sm:$0xf]  ;;  %v5873_v49 = vpop.permute.xlu0 %5872 }
 0x245   : > { %5007 = vmatprep.subr.bf16.mxu0 %v5002_v43  ;;  %v5753_v43 = vsel %vm892_vm9, %v5749_v40, %v5751_v39 }
 0x246   : > { %v5761_v45 = vand.u32 %v5753_v43, %v7738_v26 }
 0x247   : > { %v5747_v46 = vpop.permute.xlu1 %5746 }
 0x248   : > { %v5752_v48 = vsel %vm892_vm9, %v5747_v46, %v5749_v40  ;;  %v5871_v55 = vpop.permute.xlu0 %5870  ;;  %vm6126_vm9 = vcmask 973824  }
 0x249   : > { %v5877_v57 = vsel %vm5876_vm7, %v5871_v55, %v5873_v49 }
 0x24b   : > { %v5875_v47 = vpop.permute.xlu1 %5874 }
 0x24c   : > { %v5878_v52 = vsel %vm5876_vm7, %v5873_v49, %v5875_v47  ;;  %v6000_v56 = vpop.permute.xlu0 %5999  ;;  %v5889_v59 = vand.u32 %v5875_v47, %v7738_v26  ;;  %vm6415_vm7 = vcmask 785408  }
 0x24d   : > { %7004 = vmatmul.mubr.msk.bf16.vlgmr.msra.gmra.mrb[0].mxu1 %vm175_vm5, %v6635_v51  ;;  %v6014_v1 = vand.u32 %v6000_v56, %v7738_v26 }
 0x24e   : > { %7008 = vmatpush3.bf16.msra.mxu1 %v5005_v50  ;;  %7009 = vmatprep.mubr.msk.bf16.mxu1 %vm7556_vm0, %v7555_v4  ;;  %v5764_v50 = vand.u32 %v5751_v39, %v7738_v26 }
 0x24f   : > { %6636 = vmatmul.mubr.msk.bf16.vlgmr.msra.gmra.mrb[0].mxu0 %vm175_vm5, %v6635_v51  ;;  %7013 = vmatprep.subr.bf16.mxu1 %v7555_v4  ;;  %v6653_v51 = vld [vmem:[%s8614_s1 + $0xac] sm:$0xf]  ;;  %v5998_v58 = vpop.permute.xlu1 %5997 }
 0x250   : > { %5008 = vmatpush1.bf16.msra.mxu0 %v4999_v53  ;;  %5039 = vmatprep.mubr.bf16.mxu0 %v7559_v23  ;;  %v5758_v53 = vand.u32 %v5752_v48, %v7738_v26  ;;  %v6123_v63 = vpop.permute.xlu0 %6122 }
 0x251   : > { %5136 = vmatprep.subr.bf16.mxu0 %v5131_v54  ;;  %v5886_v54 = vand.u32 %v5878_v52, %v7738_v26 }
 0x259   : > { %7010 = vmatmul.mubr.msk.bf16.vlgmr.msra.gmra.mrb[0].mxu1 %vm175_vm5, %v6638_v60 }
 0x25a   : > { %7014 = vmatpush3.bf16.msra.mxu1 %v5134_v16  ;;  %7015 = vmatprep.mubr.msk.bf16.mxu1 %vm7556_vm0, %v7555_v4  ;;  %v6003_v16 = vsel %vm6001_vm8, %v5998_v58, %v6000_v56 }
 0x25b   : > { %6639 = vmatmul.mubr.msk.bf16.vlgmr.msra.gmra.mrb[0].mxu0 %vm175_vm5, %v6638_v60  ;;  %7019 = vmatprep.subr.bf16.mxu1 %v7555_v4  ;;  %v5883_v60 = vand.u32 %v5877_v57, %v7738_v26  ;;  %v6011_v7 = vand.u32 %v6003_v16, %v7738_v26 }
 0x25c   : > { %5137 = vmatpush1.bf16.msra.mxu0 %v5128_v61  ;;  %5168 = vmatprep.mubr.bf16.mxu0 %v7559_v23  ;;  %v5996_v61 = vpop.permute.xlu1 %5995 }
 0x25d   : > { %5265 = vmatprep.subr.bf16.mxu0 %v5260_v6  ;;  %v6002_v62 = vsel %vm6001_vm8, %v5996_v61, %v5998_v58  ;;  %vm6460_vm8 = vcmask 781312  }
 0x25e   : > { %v6008_v3 = vand.u32 %v6002_v62, %v7738_v26 }
 0x260   : > { %v6125_v6 = vpop.permute.xlu1 %6124 }
 0x261   : > { %v6128_v17 = vsel %vm6126_vm9, %v6123_v63, %v6125_v6  ;;  %v6139_v15 = vand.u32 %v6125_v6, %v7738_v26 }
 0x265   : > { %7016 = vmatmul.mubr.msk.bf16.vlgmr.msra.gmra.mrb[0].mxu1 %vm175_vm5, %v6641_v22 }
 0x266   : > { %7020 = vmatpush3.bf16.msra.mxu1 %v5263_v5  ;;  %7021 = vmatprep.mubr.msk.bf16.mxu1 %vm7556_vm0, %v7555_v4  ;;  %v6136_v5 = vand.u32 %v6128_v17, %v7738_v26 }
 0x267   : > { %6642 = vmatmul.mubr.msk.bf16.vlgmr.msra.gmra.mrb[0].mxu0 %vm175_vm5, %v6641_v22  ;;  %7025 = vmatprep.subr.bf16.mxu1 %v7555_v4  ;;  %v6121_v22 = vpop.permute.xlu0 %6120 }
 0x268   : > { %5266 = vmatpush1.bf16.msra.mxu0 %v5257_v10  ;;  %5297 = vmatprep.mubr.bf16.mxu0 %v7559_v23  ;;  %v6127_v10 = vsel %vm6126_vm9, %v6121_v22, %v6123_v63 }
 0x269   : > { %5394 = vmatprep.subr.bf16.mxu0 %v5389_v19  ;;  %v6248_v19 = vpop.permute.xlu1 %6247  ;;  %v6133_v18 = vand.u32 %v6127_v10, %v7738_v26 }
 0x26b   : > { %v6250_v8 = vpop.permute.xlu0 %6249 }
 0x26c   : > { %v6253_v20 = vsel %vm6251_vm12, %v6248_v19, %v6250_v8 }
 0x26d   : > { %v6261_v21 = vand.u32 %v6253_v20, %v7738_v26  ;;  %v6246_v24 = vpop.permute.xlu1 %6245 }
 0x271   : > { %7022 = vmatmul.mubr.msk.bf16.vlgmr.msra.gmra.mrb[0].mxu1 %vm175_vm5, %v6644_v27 }
 0x272   : > { %7026 = vmatpush3.bf16.msra.mxu1 %v5392_v25  ;;  %7027 = vmatprep.mubr.msk.bf16.mxu1 %vm7556_vm0, %v7555_v4  ;;  %v6252_v25 = vsel %vm6251_vm12, %v6246_v24, %v6248_v19 }
 0x273   : > { %6645 = vmatmul.mubr.msk.bf16.vlgmr.msra.gmra.mrb[0].mxu0 %vm175_vm5, %v6644_v27  ;;  %7031 = vmatprep.subr.bf16.mxu1 %v7555_v4  ;;  %v6264_v27 = vand.u32 %v6250_v8, %v7738_v26 }
 0x274   : > { %5395 = vmatpush1.bf16.msra.mxu0 %v5386_v29  ;;  %5426 = vmatprep.mubr.bf16.mxu0 %v7559_v23  ;;  %v6258_v29 = vand.u32 %v6252_v25, %v7738_v26  ;;  %v6351_v26 = vand.u32 127, %v154_v0 }
 0x275   : > { %5518 = vmatprep.subr.bf16.mxu0 %v5513_v30  ;;  %v6668_v30 = vld [vmem:[%s8614_s1 + $0xc0] sm:$0xf] }
 0x276   : > { %v6353_v31 = vadd.s32 256, %v6351_v26  ;;  %v6352_v32 = vadd.s32 128, %v6351_v26 }
 0x278   : > { %v8589_v33 = vmul.u32.u64.low 3123612579, %v6353_v31  ;;  %v8590_v34 = vmul.u32.u64.high 3123612579, %v6353_v31, %v8589_v33 }
 0x27d   : > { %7028 = vmatmul.mubr.msk.bf16.vlgmr.msra.gmra.mrb[0].mxu1 %vm175_vm5, %v6647_v36 }
 0x27e   : > { %7032 = vmatpush3.bf16.msra.mxu1 %v5516_v35  ;;  %7033 = vmatprep.mubr.msk.bf16.mxu1 %vm7556_vm0, %v7555_v4 }
 0x27f   : > { %6648 = vmatmul.mubr.msk.bf16.vlgmr.msra.gmra.mrb[0].mxu0 %vm175_vm5, %v6647_v36  ;;  %7037 = vmatprep.subr.bf16.mxu1 %v7555_v4  ;;  %v8592_v35 = vmul.u32.u64.low 3123612579, %v6351_v26  ;;  %v8593_v36 = vmul.u32.u64.high 3123612579, %v6351_v26, %v8592_v35 }
 0x280   : > { %5519 = vmatpush1.bf16.msra.mxu0 %v5510_v37  ;;  %5550 = vmatprep.mubr.bf16.mxu0 %v7559_v23  ;;  %v6382_v37 = vshrl.u32 %v8590_v34, 4 }
 0x281   : > { %5642 = vmatprep.subr.bf16.mxu0 %v5637_v38  ;;  %v6360_v38 = vshrl.u32 %v8593_v36, 4 }
 0x282   : > { %v6383_v39 = vmul.u32 22, %v6382_v37 }
 0x283   : > { %v6361_v9 = vmul.u32 22, %v6360_v38 }
 0x284   : > { %v6384_v40 = vsub.s32 %v6353_v31, %v6383_v39 }
 0x286   : > { %v6398_v43 = vadd.s32 22, %v6384_v40 }
 0x289   : > { %7034 = vmatmul.mubr.msk.bf16.vlgmr.msra.gmra.mrb[0].mxu1 %vm175_vm5, %v6650_v42 }
 0x28a   : > { %7038 = vmatpush3.bf16.msra.mxu1 %v5640_v41  ;;  %7039 = vmatprep.mubr.msk.bf16.mxu1 %vm7556_vm0, %v7555_v4  ;;  %v6362_v41 = vsub.s32 %v6351_v26, %v6361_v9 }
 0x28b   : > { %6651 = vmatmul.mubr.msk.bf16.vlgmr.msra.gmra.mrb[0].mxu0 %vm175_vm5, %v6650_v42  ;;  %7043 = vmatprep.subr.bf16.mxu1 %v7555_v4 }
 0x28c   : > { %5643 = vmatpush1.bf16.msra.mxu0 %v5634_v44  ;;  %5674 = vmatprep.mubr.bf16.mxu0 %v7559_v23  ;;  %vm6387_vm13 = vcmp.ne.s32.totalorder %v6362_v41, 0  ;;  %vm6390_vm14 = vcmp.lt.s32.totalorder %v6362_v41, 0  ;;  %v6396_v44 = vadd.s32 22, %v6362_v41 }
 0x28d   : > { %5766 = vmatprep.subr.bf16.mxu0 %v5761_v45  ;;  %vm6393_vm3 = vmand %vm6390_vm14, %vm6387_vm13 }
 0x28e   : > { %v6399_v47 = vsel %vm6393_vm3, %v6396_v44, %v6362_v41 }
 0x28f   : > { %vm6402_vm10 = vcmp.lt.s32.totalorder %v6399_v47, 16 }
 0x295   : > { %7040 = vmatmul.mubr.msk.bf16.vlgmr.msra.gmra.mrb[0].mxu1 %vm175_vm5, %v6653_v51 }
 0x296   : > { %7044 = vmatpush3.bf16.msra.mxu1 %v5764_v50  ;;  %7045 = vmatprep.mubr.msk.bf16.mxu1 %vm7556_vm0, %v7555_v4 }
 0x297   : > { %6654 = vmatmul.mubr.msk.bf16.vlgmr.msra.gmra.mrb[0].mxu0 %vm175_vm5, %v6653_v51  ;;  %7049 = vmatprep.subr.bf16.mxu1 %v7555_v4  ;;  %v6671_v51 = vsel %vm6402_vm10, 1.0, %v7555_v4 }
 0x298   : > { %5767 = vmatpush1.bf16.msra.mxu0 %v5758_v53  ;;  %5798 = vmatprep.mubr.bf16.mxu0 %v7559_v23 }
 0x299   : > { %5891 = vmatprep.subr.bf16.mxu0 %v5886_v54 }
 0x2a1   : > { %7046 = vmatmul.mubr.msk.bf16.vlgmr.msra.gmra.mrb[0].mxu1 %vm175_vm5, %v6656_v11 }
 0x2a2   : > { %7050 = vmatpush3.bf16.msra.mxu1 %v5889_v59  ;;  %7051 = vmatprep.mubr.msk.bf16.mxu1 %vm7556_vm0, %v7555_v4 }
 0x2a3   : > { %6657 = vmatmul.mubr.msk.bf16.vlgmr.msra.gmra.mrb[0].mxu0 %vm175_vm5, %v6656_v11  ;;  %7055 = vmatprep.subr.bf16.mxu1 %v7555_v4 }
 0x2a4   : > { %5892 = vmatpush1.bf16.msra.mxu0 %v5883_v60  ;;  %5923 = vmatprep.mubr.bf16.mxu0 %v7559_v23 }
 0x2a5   : > { %6016 = vmatprep.subr.bf16.mxu0 %v6011_v7 }
 0x2ad   : > { %7052 = vmatmul.mubr.msk.bf16.vlgmr.msra.gmra.mrb[0].mxu1 %vm175_vm5, %v6659_v2 }
 0x2ae   : > { %7056 = vmatpush3.bf16.msra.mxu1 %v6014_v1  ;;  %7057 = vmatprep.mubr.msk.bf16.mxu1 %vm7556_vm0, %v7555_v4 }
 0x2af   : > { %6660 = vmatmul.mubr.msk.bf16.vlgmr.msra.gmra.mrb[0].mxu0 %vm175_vm5, %v6659_v2  ;;  %7061 = vmatprep.subr.bf16.mxu1 %v7555_v4 }
 0x2b0   : > { %6017 = vmatpush1.bf16.msra.mxu0 %v6008_v3  ;;  %6048 = vmatprep.mubr.bf16.mxu0 %v7559_v23 }
 0x2b1   : > { %6141 = vmatprep.subr.bf16.mxu0 %v6136_v5 }
 0x2b9   : > { %7058 = vmatmul.mubr.msk.bf16.vlgmr.msra.gmra.mrb[0].mxu1 %vm175_vm5, %v6662_v13 }
 0x2ba   : > { %7062 = vmatpush3.bf16.msra.mxu1 %v6139_v15  ;;  %7063 = vmatprep.mubr.msk.bf16.mxu1 %vm7556_vm0, %v7555_v4 }
 0x2bb   : > { %6663 = vmatmul.mubr.msk.bf16.vlgmr.msra.gmra.mrb[0].mxu0 %vm175_vm5, %v6662_v13  ;;  %7067 = vmatprep.subr.bf16.mxu1 %v7555_v4 }
 0x2bc   : > { %6142 = vmatpush1.bf16.msra.mxu0 %v6133_v18  ;;  %6173 = vmatprep.mubr.bf16.mxu0 %v7559_v23 }
 0x2bd   : > { %6266 = vmatprep.subr.bf16.mxu0 %v6261_v21 }
 0x2c5   : > { %7064 = vmatmul.mubr.msk.bf16.vlgmr.msra.gmra.mrb[0].mxu1 %vm175_vm5, %v6665_v28 }
 0x2c6   : > { %7068 = vmatpush3.bf16.msra.mxu1 %v6264_v27  ;;  %7069 = vmatprep.mubr.msk.bf16.mxu1 %vm7556_vm0, %v7555_v4  ;;  %vm6389_vm0 = vcmp.ne.s32.totalorder %v6384_v40, 0 }
 0x2c7   : > { %6666 = vmatmul.mubr.msk.bf16.vlgmr.msra.gmra.mrb[0].mxu0 %vm175_vm5, %v6665_v28 }
 0x2c8   : > { %6267 = vmatpush1.bf16.msra.mxu0 %v6258_v29  ;;  %6298 = vmatprep.mubr.bf16.mxu0 %v7559_v23  ;;  %v8595_v12 = vmul.u32.u64.low 3123612579, %v6352_v32  ;;  %v8596_v23 = vmul.u32.u64.high 3123612579, %v6352_v32, %v8595_v12 }
 0x2ca   : > { %v6371_v14 = vshrl.u32 %v8596_v23, 4 }
 0x2cc   : > { %v6372_v0 = vmul.u32 22, %v6371_v14 }
 0x2ce   : > { %v6373_v42 = vsub.s32 %v6352_v32, %v6372_v0 }
 0x2d0   : > { %vm6388_vm15 = vcmp.ne.s32.totalorder %v6373_v42, 0  ;;  %vm6391_vm1 = vcmp.lt.s32.totalorder %v6373_v42, 0  ;;  %v6397_v45 = vadd.s32 22, %v6373_v42 }
 0x2d1   : > { %7070 = vmatmul.mubr.msk.bf16.vlgmr.msra.gmra.mrb[0].mxu1 %vm175_vm5, %v6668_v30  ;;  %vm6394_vm4 = vmand %vm6391_vm1, %vm6388_vm15 }
 0x2d2   : > { %v6400_v48 = vsel %vm6394_vm4, %v6397_v45, %v6373_v42 }
 0x2d3   : > { %6669 = vmatmul.mubr.msk.bf16.vlgmr.msra.gmra.mrb[0].mxu0 %vm175_vm5, %v6668_v30  ;;  %vm6392_vm5 = vcmp.lt.s32.totalorder %v6384_v40, 0  ;;  %vm6403_vm11 = vcmp.lt.s32.totalorder %v6400_v48, 16 }
 0x2d4   : > { %vm6395_vm2 = vmand %vm6392_vm5, %vm6389_vm0  ;;  %v6672_v53 = vsel %vm6403_vm11, 1.0, %v7555_v4 }
 0x2d5   : > { %v6401_v46 = vsel %vm6395_vm2, %v6398_v43, %v6384_v40 }
 0x2d6   : > { %vm6404_vm6 = vcmp.lt.s32.totalorder %v6401_v46, 16 }
 0x2d7   : > { %v6673_v50 = vsel %vm6404_vm6, 1.0, %v7555_v4 }
 0x3a4   : > { %v6341_v49 = vpop.f32.mrb[0].mxu1 }
 0x3a5   : > { %v7071_v52 = vpop.f32.mrb[1].mxu1  ;;  %v6413_v56 = vmul.f32 %v6673_v50, %v6341_v49 }
 0x3a6   : > { %v6300_v54 = vpop.f32.mrb[0].mxu0  ;;  %v6344_v55 = vpop.f32.mrb[2].mxu1 }
 0x3a7   : > { %v6411_v57 = vmul.f32 %v6671_v51, %v6300_v54  ;;  %v6302_v58 = vpop.f32.mrb[1].mxu0  ;;  %v7072_v59 = vpop.f32.mrb[3].mxu1  ;;  %v6416_v61 = vsel %vm6415_vm7, %v6413_v56, 0.0 }
 0x3a8   : > { %v6412_v11 = vmul.f32 %v6672_v53, %v6302_v58  ;;  %v6304_v16 = vpop.f32.mrb[2].mxu0 }
 0x3a9   : > { %v6305_v60 = vpop.f32.mrb[3].mxu0 }
 0x3aa   : > { %v6414_v7 = vadd.f32 %v6412_v11, %v6411_v57 }
 0x3ac   : > { %v6417_v6 = vadd.f32 %v6416_v61, %v6414_v7 }
 0x3ae   : > { %6418 = vadd.xlane.f32.xlu0 %v6417_v6 }
 0x43b   : > { %v6419_v62 = vpop.xlane.xlu0 %6418 }
 0x43c   : > { %v6421_v63 = vmul.f32 0.00390625, %v6419_v62 }
 0x43e   : > { %v6422_v1 = vsub.f32 %v6300_v54, %v6421_v63  ;;  %v6423_v2 = vsub.f32 %v6302_v58, %v6421_v63  ;;  %v6424_v4 = vsub.f32 %v6341_v49, %v6421_v63 }
 0x440   : > { %v6425_v17 = vmul.f32 %v6422_v1, %v6422_v1  ;;  %v6426_v3 = vmul.f32 %v6423_v2, %v6423_v2  ;;  %v6427_v5 = vmul.f32 %v6424_v4, %v6424_v4 }
 0x442   : > { %v6428_v22 = vmul.f32 %v6671_v51, %v6425_v17  ;;  %v6429_v8 = vmul.f32 %v6672_v53, %v6426_v3  ;;  %v6430_v10 = vmul.f32 %v6673_v50, %v6427_v5 }
 0x444   : > { %v6431_v19 = vadd.f32 %v6429_v8, %v6428_v22  ;;  %v6432_v15 = vsel %vm6415_vm7, %v6430_v10, 0.0 }
 0x446   : > { %v6433_v13 = vadd.f32 %v6432_v15, %v6431_v19 }
 0x448   : > { %6434 = vadd.xlane.f32.xlu1 %v6433_v13 }
 0x4d5   : > { %v6435_v20 = vpop.xlane.xlu1 %6434 }
 0x4d6   : > { %v6437_v18 = vmul.f32 0.00390625, %v6435_v20 }
 0x4d8   : > { %v6438_v21 = vadd.f32 1e-05, %v6437_v18 }
 0x4da   : > { %7544 = vrsqrt.f32 %v6438_v21 }
 0x4e4   : > { %v7545_v24 = vpop.eup %7544 }
 0x4e5   : > { %v6440_v25 = vmul.f32 %v7545_v24, %v6422_v1  ;;  %v6441_v27 = vmul.f32 %v7545_v24, %v6423_v2  ;;  %v6442_v28 = vmul.f32 %v7545_v24, %v6424_v4 }
 0x4e7   : > { %v6443_v29 = vmax.f32 %v6440_v25, 0.0  ;;  %v6444_v30 = vmax.f32 %v6441_v27, 0.0  ;;  %v6445_v26 = vmax.f32 %v6442_v28, 0.0 }
 0x4e9   : > { %v6679_v31 = vpack.c.bf16 %v6444_v30, %v6443_v29  ;;  %v6680_v32 = vpack.c.bf16 %v6445_v26, %v6445_v26 }
 0x4eb   : > { %6459 = vst [vmem:[%s143_s15] sm:$0xff] %v6679_v31  ;;  %6461 = vst.msk [vmem:[%s143_s15 + $0x8] sm:$0xf] %vm6460_vm8, %v6680_v32 }
 0x4ec PF: > { %s12_s9 = sadd.s32 1, %s7552_s9  }
 0x4ed   : > { %p9_p4 = scmp.ge.s32.totalorder %s12_s9, 4  }
 0x4ef   :  { %11 = sbr.rel (!%p9_p4) target bundleno = 1 (0x1), region = 106 }

// kernel: resnet9_forward.17
= control target key start
LH: loop header
LB: loop body
LE: loop exit
PB: predicated region body
PF: predicated region fallthrough
CT: control target
= control target key end

     0   :  { %s870_s9 = smov 0   ;;  %s935_s0 = inlined_call_operand.vmem [shape: bf16[2,64,30], index: 0, kind: input, shape index: {}]   ;;  %s936_s1 = inlined_call_operand.vmem [shape: bf16[4,32,64], index: 1, kind: input, shape index: {}]   ;;  %s937_s2 = inlined_call_operand.vmem [shape: bf16[2,32,20], index: 2, kind: output, shape index: {}]  }
   0x1 LB: > { %s671_s10 = sadd.s32 4294967295, %s849_s9   ;;  %p675_p0 = scmp.ge.s32.totalorder %s849_s9, 1  ;;  %s849_s9 = sphi %s870_s9, %s12_s9  }
   0x2   : > { %p112_p1 = scmp.lt.s32.totalorder %s849_s9, 3 }
   0x4   : > { %p113_p2 = pnand %p675_p0, %p112_p1 }
   0x5   : > { %p134_p3 = scmp.lt.s32.totalorder (!%p113_p2), %s671_s10, 1  ;;  %s851_s15 = smov (!%p113_p2), 127   ;;  %vm204_vm0 = vcmask (!%p113_p2), 523264   ;;  %v827_v2 = vld [vmem:[%s936_s1 + $0x10] sm:$0xff] (!%p113_p2)   ;;  %v829_v4 = vld [vmem:[%s936_s1 + $0x20] sm:$0xff] (!%p113_p2)   ;;  %v828_v14 = vld [vmem:[%s936_s1 + $0x18] sm:$0xff] (!%p113_p2)   ;;  %v501_v24 = vlaneseq (!%p113_p2) }
   0x6   : > { %116 = sbr.rel (%p113_p2) target bundleno = 709 (0x2c5), region = 28  ;;  %s852_s18 = smov (!%p113_p2), 123   ;;  %757 = vmatprep.mubr.msk.bf16.mxu1 (!%p113_p2), %vm204_vm0, %v827_v2  ;;  %781 = vmatprep.mubr.msk.bf16.mxu0 (!%p113_p2), %vm204_vm0, %v829_v4  ;;  %v831_v16 = vld [vmem:[%s936_s1] sm:$0xff] (!%p113_p2)   ;;  %v830_v17 = vld [vmem:[%s936_s1 + $0x28] sm:$0xff] (!%p113_p2)   ;;  %v833_v19 = vld [vmem:[%s936_s1 + $0x30] sm:$0xff] (!%p113_p2)   ;;  %v854_v40 = vmov (!%p113_p2), 0.0  }
   0x7   : > { %s853_s21 = smov (!%p113_p2), 122   ;;  %v832_v22 = vld [vmem:[%s936_s1 + $0x8] sm:$0xff] (!%p113_p2)   ;;  %v834_v23 = vld [vmem:[%s936_s1 + $0x38] sm:$0xff] (!%p113_p2)   ;;  %v502_v25 = vand.u32 (!%p113_p2), 127, %v501_v24  ;;  %vm526_vm5 = vcmask (!%p113_p2), 162816   ;;  %vm611_vm6 = vcmask (!%p113_p2), 158720  }
   0x9   : > { %v916_v26 = vmul.u32.u64.low (!%p113_p2), 3435973837, %v502_v25  ;;  %v917_v27 = vmul.u32.u64.high 3435973837, %v502_v25, %v916_v26 }
   0xb   : > { %v509_v28 = vshrl.u32 (!%p113_p2), %v917_v27, 2 }
   0xd   : > { %s939_s10 = smov (!%p134_p3, %s671_s10), 1  ;;  %v510_v29 = vmul.u32 5, %v509_v28 }
   0xe   : > { %s719_s11 = sshll.u32 %s939_s10, 5  ;;  %s720_s6 = sshll.u32 %s939_s10, 4 }
   0xf   : > { %s138_s14 = scalar_lea.vmem %s935_s0, %s719_s11  ;;  %v511_v30 = vsub.s32 %v502_v25, %v510_v29  ;;  %s143_s11 = scalar_lea.vmem %s937_s2, %s720_s6 }
  0x10   : > { %v823_v0 = vld [vmem:[%s138_s14] sm:$0xff]   ;;  %v824_v1 = vld [vmem:[%s138_s14 + $0x8] sm:$0xff]   ;;  %v825_v3 = vld [vmem:[%s138_s14 + $0x10] sm:$0xff]  }
  0x11   : > { %192 = vrot.lane.b32.xlu0 %v823_v0, %s851_s15  ;;  %194 = vrot.lane.b32.xlu1 %v824_v1, %s851_s15  ;;  %v826_v5 = vld [vmem:[%s138_s14 + $0x18] sm:$0xff]   ;;  %vm514_vm1 = vcmp.ne.s32.totalorder %v511_v30, 0  ;;  %vm515_vm2 = vcmp.lt.s32.totalorder %v511_v30, 0  ;;  %v517_v31 = vadd.s32 5, %v511_v30 }
  0x12   : > { %vm516_vm3 = vmand %vm515_vm2, %vm514_vm1 }
  0x13   : > { %v518_v32 = vsel %vm516_vm3, %v517_v31, %v511_v30 }
  0x14   : > { %vm519_vm4 = vcmp.lt.s32.totalorder %v518_v32, 4 }
  0x15   : > { %344 = vrot.lane.b32.xlu0 %v823_v0, %s852_s18  ;;  %346 = vrot.lane.b32.xlu1 %v824_v1, %s852_s18  ;;  %v712_v41 = vsel %vm519_vm4, 1.0, %v854_v40 }
  0x19   : > { %196 = vrot.lane.b32.xlu0 %v825_v3, %s851_s15  ;;  %348 = vrot.lane.b32.xlu1 %v825_v3, %s852_s18 }
  0x1d   : > { %198 = vrot.lane.b32.xlu0 %v826_v5, %s851_s15  ;;  %350 = vrot.lane.b32.xlu1 %v826_v5, %s852_s18 }
  0x21   : > { %430 = vrot.lane.b32.xlu0 %v823_v0, %s853_s21  ;;  %432 = vrot.lane.b32.xlu1 %v824_v1, %s853_s21 }
  0x25   : > { %434 = vrot.lane.b32.xlu0 %v825_v3, %s853_s21  ;;  %436 = vrot.lane.b32.xlu1 %v826_v5, %s853_s21 }
  0x83   : > { %v193_v6 = vpop.permute.xlu0 %192  ;;  %v195_v7 = vpop.permute.xlu1 %194 }
  0x84   : > { %749 = vmatprep.subr.bf16.mxu1 %v193_v6 }
  0x85   : > { %750 = vmatpush3.bf16.msra.mxu1 %v193_v6 }
  0x86   : > { %751 = vmatprep.subr.bf16.mxu1 %v195_v7 }
  0x87   : > { %v345_v8 = vpop.permute.xlu0 %344  ;;  %v347_v9 = vpop.permute.xlu1 %346 }
  0x88   : > { %773 = vmatprep.subr.bf16.mxu0 %v345_v8 }
  0x89   : > { %752 = vmatpush3.bf16.msra.mxu1 %v195_v7  ;;  %774 = vmatpush3.bf16.msra.mxu0 %v345_v8 }
  0x8a   : > { %775 = vmatprep.subr.bf16.mxu0 %v347_v9 }
  0x8b   : > { %v197_v10 = vpop.permute.xlu0 %196  ;;  %v349_v11 = vpop.permute.xlu1 %348 }
  0x8c   : > { %753 = vmatprep.subr.bf16.mxu1 %v197_v10 }
  0x8d   : > { %754 = vmatpush3.bf16.msra.mxu1 %v197_v10  ;;  %776 = vmatpush3.bf16.msra.mxu0 %v347_v9 }
  0x8e   : > { %777 = vmatprep.subr.bf16.mxu0 %v349_v11 }
  0x8f   : > { %v199_v12 = vpop.permute.xlu0 %198  ;;  %v351_v13 = vpop.permute.xlu1 %350 }
  0x90   : > { %755 = vmatprep.subr.bf16.mxu1 %v199_v12 }
  0x91   : > { %756 = vmatpush3.bf16.msra.mxu1 %v199_v12  ;;  %778 = vmatpush3.bf16.msra.mxu0 %v349_v11 }
  0x92   : > { %761 = vmatprep.subr.bf16.mxu1 %v823_v0  ;;  %779 = vmatprep.subr.bf16.mxu0 %v351_v13 }
  0x93   : > { %v431_v15 = vpop.permute.xlu0 %430  ;;  %v433_v18 = vpop.permute.xlu1 %432 }
  0x94   : > { %758 = vmatmul.mubr.msk.bf16.vlgmr.msra.gmra.mrb[0].mxu1 %vm204_vm0, %v828_v14 }
  0x95   : > { %762 = vmatpush3.bf16.msra.mxu1 %v823_v0  ;;  %780 = vmatpush3.bf16.msra.mxu0 %v351_v13 }
  0x96   : > { %763 = vmatprep.subr.bf16.mxu1 %v824_v1  ;;  %785 = vmatprep.subr.bf16.mxu0 %v431_v15 }
  0x97   : > { %769 = vmatprep.mubr.msk.bf16.mxu1 %vm204_vm0, %v831_v16  ;;  %v435_v20 = vpop.permute.xlu0 %434  ;;  %v437_v21 = vpop.permute.xlu1 %436 }
  0x98   : > { %782 = vmatmul.mubr.msk.bf16.vlgmr.msra.gmra.mrb[0].mxu0 %vm204_vm0, %v830_v17 }
  0x99   : > { %764 = vmatpush3.bf16.msra.mxu1 %v824_v1  ;;  %786 = vmatpush3.bf16.msra.mxu0 %v431_v15 }
  0x9a   : > { %765 = vmatprep.subr.bf16.mxu1 %v825_v3  ;;  %787 = vmatprep.subr.bf16.mxu0 %v433_v18 }
  0x9b   : > { %793 = vmatprep.mubr.msk.bf16.mxu0 %vm204_vm0, %v833_v19 }
  0x9d   : > { %766 = vmatpush3.bf16.msra.mxu1 %v825_v3  ;;  %788 = vmatpush3.bf16.msra.mxu0 %v433_v18 }
  0x9e   : > { %767 = vmatprep.subr.bf16.mxu1 %v826_v5  ;;  %789 = vmatprep.subr.bf16.mxu0 %v435_v20 }
  0xa1   : > { %768 = vmatpush3.bf16.msra.mxu1 %v826_v5  ;;  %790 = vmatpush3.bf16.msra.mxu0 %v435_v20 }
  0xa2   : > { %791 = vmatprep.subr.bf16.mxu0 %v437_v21 }
  0xa4   : > { %770 = vmatmul.mubr.msk.bf16.vlgmr.msra.gmra.mrb[0].mxu1 %vm204_vm0, %v832_v22 }
  0xa5   : > { %792 = vmatpush3.bf16.msra.mxu0 %v437_v21 }
  0xa8   : > { %794 = vmatmul.mubr.msk.bf16.vlgmr.msra.gmra.mrb[0].mxu0 %vm204_vm0, %v834_v23 }
 0x177   : > { %v771_v33 = vpop.f32.mrb[0].mxu1 }
 0x178   : > { %v314_v34 = vpop.f32.mrb[1].mxu1 }
 0x179   : > { %v772_v35 = vpop.f32.mrb[2].mxu1 }
 0x17a   : > { %v317_v36 = vpop.f32.mrb[3].mxu1 }
 0x17b   : > { %v795_v37 = vpop.f32.mrb[0].mxu0 }
 0x17c   : > { %v797_v38 = vadd.f32 %v795_v37, %v771_v33  ;;  %v482_v39 = vpop.f32.mrb[1].mxu0 }
 0x17d   : > { %v798_v42 = vadd.f32 %v482_v39, %v314_v34  ;;  %v796_v43 = vpop.f32.mrb[2].mxu0 }
 0x17e   : > { %v799_v44 = vadd.f32 %v796_v43, %v772_v35  ;;  %v485_v45 = vpop.f32.mrb[3].mxu0  ;;  %v524_v50 = vmul.f32 %v797_v38, %v712_v41 }
 0x17f   : > { %v800_v46 = vadd.f32 %v485_v45, %v317_v36  ;;  %v522_v47 = vmul.f32 %v798_v42, %v712_v41 }
 0x180   : > { %v533_v52 = vsel %vm526_vm5, %v524_v50, 0.0  ;;  %v525_v53 = vmul.f32 %v799_v44, %v712_v41 }
 0x181   : > { %v527_v48 = vsel %vm526_vm5, %v522_v47, 0.0  ;;  %v523_v49 = vmul.f32 %v800_v46, %v712_v41 }
 0x182   : > { %528 = vadd.xlane.f32.xlu0 %v527_v48  ;;  %v536_v54 = vsel %vm526_vm5, %v525_v53, 0.0 }
 0x183   : > { %v530_v51 = vsel %vm526_vm5, %v523_v49, 0.0 }
 0x184   : > { %531 = vadd.xlane.f32.xlu1 %v530_v51 }
 0x186   : > { %534 = vadd.xlane.f32.xlu0 %v533_v52 }
 0x18a   : > { %537 = vadd.xlane.f32.xlu0 %v536_v54 }
 0x20f   : > { %v529_v55 = vpop.xlane.xlu0 %528 }
 0x210   : > { %v543_v56 = vmul.f32 0.0625, %v529_v55 }
 0x211   : > { %v532_v57 = vpop.xlane.xlu1 %531 }
 0x212   : > { %v547_v58 = vsub.f32 %v798_v42, %v543_v56  ;;  %v544_v59 = vmul.f32 0.0625, %v532_v57 }
 0x213   : > { %v535_v60 = vpop.xlane.xlu0 %534 }
 0x214   : > { %v548_v61 = vsub.f32 %v800_v46, %v544_v59  ;;  %v545_v62 = vmul.f32 0.0625, %v535_v60  ;;  %v551_v63 = vmul.f32 %v547_v58, %v547_v58 }
 0x216   : > { %v549_v0 = vsub.f32 %v797_v38, %v545_v62  ;;  %v555_v1 = vmul.f32 %v712_v41, %v551_v63  ;;  %v552_v2 = vmul.f32 %v548_v61, %v548_v61 }
 0x217   : > { %v538_v3 = vpop.xlane.xlu0 %537 }
 0x218   : > { %v546_v4 = vmul.f32 0.0625, %v538_v3  ;;  %v559_v5 = vsel %vm526_vm5, %v555_v1, 0.0  ;;  %v556_v6 = vmul.f32 %v712_v41, %v552_v2  ;;  %v553_v7 = vmul.f32 %v549_v0, %v549_v0 }
 0x219   : > { %560 = vadd.xlane.f32.xlu1 %v559_v5 }
 0x21a   : > { %v550_v8 = vsub.f32 %v799_v44, %v546_v4  ;;  %v562_v9 = vsel %vm526_vm5, %v556_v6, 0.0  ;;  %v557_v10 = vmul.f32 %v712_v41, %v553_v7 }
 0x21b   : > { %563 = vadd.xlane.f32.xlu0 %v562_v9 }
 0x21c   : > { %v565_v11 = vsel %vm526_vm5, %v557_v10, 0.0  ;;  %v554_v12 = vmul.f32 %v550_v8, %v550_v8 }
 0x21d   : > { %566 = vadd.xlane.f32.xlu1 %v565_v11 }
 0x21e   : > { %v558_v13 = vmul.f32 %v712_v41, %v554_v12 }
 0x220   : > { %v568_v14 = vsel %vm526_vm5, %v558_v13, 0.0 }
 0x221   : > { %569 = vadd.xlane.f32.xlu0 %v568_v14 }
 0x2a6   : > { %v561_v15 = vpop.xlane.xlu1 %560 }
 0x2a7   : > { %v575_v16 = vmul.f32 0.0625, %v561_v15 }
 0x2a8   : > { %v564_v17 = vpop.xlane.xlu0 %563 }
 0x2a9   : > { %v579_v18 = vadd.f32 1e-05, %v575_v16  ;;  %v576_v19 = vmul.f32 0.0625, %v564_v17 }
 0x2aa   : > { %v567_v20 = vpop.xlane.xlu1 %566 }
 0x2ab   : > { %835 = vrsqrt.f32 %v579_v18  ;;  %v580_v21 = vadd.f32 1e-05, %v576_v19  ;;  %v577_v22 = vmul.f32 0.0625, %v567_v20 }
 0x2ad   : > { %837 = vrsqrt.f32 %v580_v21  ;;  %v581_v23 = vadd.f32 1e-05, %v577_v22 }
 0x2ae   : > { %v570_v24 = vpop.xlane.xlu0 %569 }
 0x2af   : > { %839 = vrsqrt.f32 %v581_v23  ;;  %v578_v25 = vmul.f32 0.0625, %v570_v24 }
 0x2b1   : > { %v582_v26 = vadd.f32 1e-05, %v578_v25 }
 0x2b3   : > { %841 = vrsqrt.f32 %v582_v26 }
 0x2b5   : > { %v836_v27 = vpop.eup %835 }
 0x2b6   : > { %v587_v28 = vmul.f32 %v836_v27, %v547_v58 }
 0x2b7   : > { %v838_v29 = vpop.eup %837 }
 0x2b8   : > { %v591_v30 = vmax.f32 %v587_v28, 0.0  ;;  %v588_v31 = vmul.f32 %v838_v29, %v548_v61 }
 0x2b9   : > { %v840_v32 = vpop.eup %839 }
 0x2ba   : > { %v721_v33 = vpack.c.bf16 %v591_v30, %v591_v30  ;;  %v592_v34 = vmax.f32 %v588_v31, 0.0  ;;  %v589_v35 = vmul.f32 %v840_v32, %v549_v0 }
 0x2bc   : > { %612 = vst.msk [vmem:[%s143_s11] sm:$0xf] %vm611_vm6, %v721_v33  ;;  %v722_v36 = vpack.c.bf16 %v592_v34, %v592_v34  ;;  %v593_v37 = vmax.f32 %v589_v35, 0.0 }
 0x2bd   : > { %v842_v38 = vpop.eup %841 }
 0x2be   : > { %613 = vst.msk [vmem:[%s143_s11 + $0x4] sm:$0xf] %vm611_vm6, %v722_v36  ;;  %v723_v39 = vpack.c.bf16 %v593_v37, %v593_v37  ;;  %v590_v40 = vmul.f32 %v842_v38, %v550_v8 }
 0x2c0   : > { %614 = vst.msk [vmem:[%s143_s11 + $0x8] sm:$0xf] %vm611_vm6, %v723_v39  ;;  %v594_v41 = vmax.f32 %v590_v40, 0.0 }
 0x2c2   : > { %v724_v42 = vpack.c.bf16 %v594_v41, %v594_v41 }
 0x2c4   : > { %615 = vst.msk [vmem:[%s143_s11 + $0xc] sm:$0xf] %vm611_vm6, %v724_v42 }
 0x2c5 PF: > { %s12_s9 = sadd.s32 1, %s849_s9  }
 0x2c6   : > { %p9_p4 = scmp.ge.s32.totalorder %s12_s9, 4  }
 0x2c8   :  { %11 = sbr.rel (!%p9_p4) target bundleno = 1 (0x1), region = 61 }

// kernel: resnet9_forward.27
= control target key start
LH: loop header
LB: loop body
LE: loop exit
PB: predicated region body
PF: predicated region fallthrough
CT: control target
= control target key end

     0   :  { %s1100_s9 = smov 0   ;;  %s1256_s0 = inlined_call_operand.vmem [shape: bf16[2,32,30], index: 0, kind: input, shape index: {}]   ;;  %s1257_s1 = inlined_call_operand.vmem [shape: bf16[4,64,32], index: 1, kind: input, shape index: {}]   ;;  %s1258_s2 = inlined_call_operand.vmem [shape: bf16[2,64,20], index: 2, kind: output, shape index: {}]  }
   0x1 LB: > { %s853_s10 = sadd.s32 4294967295, %s1079_s9   ;;  %p857_p0 = scmp.ge.s32.totalorder %s1079_s9, 1  ;;  %s1079_s9 = sphi %s1100_s9, %s12_s9  }
   0x2   : > { %p112_p1 = scmp.lt.s32.totalorder %s1079_s9, 3 }
   0x4   : > { %p113_p2 = pnand %p857_p0, %p112_p1 }
   0x5   : > { %p134_p3 = scmp.lt.s32.totalorder (!%p113_p2), %s853_s10, 1  ;;  %v1053_v0 = vld [vmem:[%s1257_s1 + $0x20] sm:$0xff] (!%p113_p2)   ;;  %vm202_vm0 = vcmask (!%p113_p2), 261120   ;;  %s1081_s19 = smov (!%p113_p2), 127   ;;  %v1054_v8 = vld [vmem:[%s1257_s1 + $0x28] sm:$0xff] (!%p113_p2)   ;;  %v1057_v9 = vld [vmem:[%s1257_s1 + $0x30] sm:$0xff] (!%p113_p2)   ;;  %v619_v24 = vlaneseq (!%p113_p2) }
   0x6   : > { %116 = sbr.rel (%p113_p2) target bundleno = 725 (0x2d5), region = 28  ;;  %969 = vmatprep.mubr.msk.bf16.mxu1 (!%p113_p2), %vm202_vm0, %v1053_v0  ;;  %v1055_v1 = vld [vmem:[%s1257_s1 + $0x40] sm:$0xff] (!%p113_p2)   ;;  %s1082_s20 = smov (!%p113_p2), 123   ;;  %v1056_v11 = vld [vmem:[%s1257_s1 + $0x48] sm:$0xff] (!%p113_p2)   ;;  %v1059_v12 = vld [vmem:[%s1257_s1 + $0x50] sm:$0xff] (!%p113_p2)   ;;  %v1084_v38 = vmov (!%p113_p2), 0.0  }
   0x7   : > { %993 = vmatprep.mubr.msk.bf16.mxu0 (!%p113_p2), %vm202_vm0, %v1055_v1  ;;  %s1083_s21 = smov (!%p113_p2), 122   ;;  %v1058_v14 = vld [vmem:[%s1257_s1 + $0x38] sm:$0xff] (!%p113_p2)   ;;  %v1061_v15 = vld [vmem:[%s1257_s1] sm:$0xff] (!%p113_p2)   ;;  %v1062_v18 = vld [vmem:[%s1257_s1 + $0x8] sm:$0xff] (!%p113_p2)   ;;  %v620_v25 = vand.u32 (!%p113_p2), 127, %v619_v24  ;;  %vm648_vm5 = vcmask (!%p113_p2), 162816  }
   0x8   : > { %v1060_v16 = vld [vmem:[%s1257_s1 + $0x58] sm:$0xff] (!%p113_p2)   ;;  %v1063_v17 = vld [vmem:[%s1257_s1 + $0x60] sm:$0xff] (!%p113_p2)   ;;  %v1065_v19 = vld [vmem:[%s1257_s1 + $0x10] sm:$0xff] (!%p113_p2)   ;;  %vm789_vm6 = vcmask (!%p113_p2), 158720  }
   0x9   : > { %v1064_v20 = vld [vmem:[%s1257_s1 + $0x68] sm:$0xff] (!%p113_p2)   ;;  %v1067_v21 = vld [vmem:[%s1257_s1 + $0x70] sm:$0xff] (!%p113_p2)   ;;  %v1066_v22 = vld [vmem:[%s1257_s1 + $0x18] sm:$0xff] (!%p113_p2)   ;;  %v1178_v26 = vmul.u32.u64.low (!%p113_p2), 3435973837, %v620_v25  ;;  %v1179_v27 = vmul.u32.u64.high 3435973837, %v620_v25, %v1178_v26 }
   0xa   : > { %v1068_v23 = vld [vmem:[%s1257_s1 + $0x78] sm:$0xff] (!%p113_p2)  }
   0xb   : > { %v627_v28 = vshrl.u32 (!%p113_p2), %v1179_v27, 2 }
   0xd   : > { %s1260_s10 = smov (!%p134_p3, %s853_s10), 1  ;;  %v628_v29 = vmul.u32 5, %v627_v28 }
   0xe   : > { %s931_s13 = sshll.u32 %s1260_s10, 4  ;;  %s932_s24 = sshll.u32 %s1260_s10, 5 }
   0xf   : > { %s138_s18 = scalar_lea.vmem %s1256_s0, %s931_s13  ;;  %v629_v30 = vsub.s32 %v620_v25, %v628_v29  ;;  %s143_s27 = scalar_lea.vmem %s1258_s2, %s932_s24 }
  0x10   : > { %v1051_v2 = vld [vmem:[%s138_s18] sm:$0xff]   ;;  %v1052_v3 = vld [vmem:[%s138_s18 + $0x8] sm:$0xff]  }
  0x11   : > { %196 = vrot.lane.b32.xlu0 %v1051_v2, %s1081_s19  ;;  %198 = vrot.lane.b32.xlu1 %v1052_v3, %s1081_s19  ;;  %vm632_vm1 = vcmp.ne.s32.totalorder %v629_v30, 0  ;;  %vm633_vm2 = vcmp.lt.s32.totalorder %v629_v30, 0  ;;  %v635_v31 = vadd.s32 5, %v629_v30 }
  0x12   : > { %vm634_vm3 = vmand %vm633_vm2, %vm632_vm1 }
  0x13   : > { %v636_v32 = vsel %vm634_vm3, %v635_v31, %v629_v30 }
  0x14   : > { %vm637_vm4 = vcmp.lt.s32.totalorder %v636_v32, 4 }
  0x15   : > { %408 = vrot.lane.b32.xlu0 %v1051_v2, %s1082_s20  ;;  %410 = vrot.lane.b32.xlu1 %v1052_v3, %s1082_s20  ;;  %v1182_v39 = vsel %vm637_vm4, 1.0, %v1084_v38 }
  0x19   : > { %528 = vrot.lane.b32.xlu0 %v1051_v2, %s1083_s21  ;;  %530 = vrot.lane.b32.xlu1 %v1052_v3, %s1083_s21 }
  0x83   : > { %v197_v4 = vpop.permute.xlu0 %196  ;;  %v199_v5 = vpop.permute.xlu1 %198 }
  0x84   : > { %965 = vmatprep.subr.bf16.mxu1 %v197_v4 }
  0x85   : > { %966 = vmatpush3.bf16.msra.mxu1 %v197_v4 }
  0x86   : > { %967 = vmatprep.subr.bf16.mxu1 %v199_v5 }
  0x87   : > { %v409_v6 = vpop.permute.xlu0 %408  ;;  %v411_v7 = vpop.permute.xlu1 %410 }
  0x88   : > { %989 = vmatprep.subr.bf16.mxu0 %v409_v6 }
  0x89   : > { %968 = vmatpush3.bf16.msra.mxu1 %v199_v5  ;;  %990 = vmatpush3.bf16.msra.mxu0 %v409_v6 }
  0x8a   : > { %991 = vmatprep.subr.bf16.mxu0 %v411_v7  ;;  %977 = vmatprep.subr.bf16.mxu1 %v1051_v2 }
  0x8b   : > { %v529_v10 = vpop.permute.xlu0 %528  ;;  %v531_v13 = vpop.permute.xlu1 %530 }
  0x8c   : > { %970 = vmatmul.mubr.msk.bf16.vlgmr.msra.gmra.mrb[0].mxu1 %vm202_vm0, %v1054_v8 }
  0x8d   : > { %992 = vmatpush3.bf16.msra.mxu0 %v411_v7  ;;  %978 = vmatpush3.bf16.msra.mxu1 %v1051_v2 }
  0x8e   : > { %1001 = vmatprep.subr.bf16.mxu0 %v529_v10  ;;  %973 = vmatprep.mubr.msk.bf16.mxu1 %vm202_vm0, %v1057_v9 }
  0x8f   : > { %979 = vmatprep.subr.bf16.mxu1 %v1052_v3 }
  0x90   : > { %994 = vmatmul.mubr.msk.bf16.vlgmr.msra.gmra.mrb[0].mxu0 %vm202_vm0, %v1056_v11 }
  0x91   : > { %1002 = vmatpush3.bf16.msra.mxu0 %v529_v10  ;;  %997 = vmatprep.mubr.msk.bf16.mxu0 %vm202_vm0, %v1059_v12 }
  0x92   : > { %1003 = vmatprep.subr.bf16.mxu0 %v531_v13  ;;  %980 = vmatpush3.bf16.msra.mxu1 %v1052_v3 }
  0x94   : > { %974 = vmatmul.mubr.msk.bf16.gmra.mrb[4].mxu1 %vm202_vm0, %v1058_v14 }
  0x95   : > { %1004 = vmatpush3.bf16.msra.mxu0 %v531_v13  ;;  %981 = vmatprep.mubr.msk.bf16.mxu1 %vm202_vm0, %v1061_v15 }
  0x98   : > { %998 = vmatmul.mubr.msk.bf16.gmra.mrb[4].mxu0 %vm202_vm0, %v1060_v16 }
  0x99   : > { %1005 = vmatprep.mubr.msk.bf16.mxu0 %vm202_vm0, %v1063_v17 }
  0x9c   : > { %982 = vmatmul.mubr.msk.bf16.vlgmr.msra.gmra.mrb[0].mxu1 %vm202_vm0, %v1062_v18 }
  0x9d   : > { %985 = vmatprep.mubr.msk.bf16.mxu1 %vm202_vm0, %v1065_v19 }
  0xa0   : > { %1006 = vmatmul.mubr.msk.bf16.vlgmr.msra.gmra.mrb[0].mxu0 %vm202_vm0, %v1064_v20 }
  0xa1   : > { %1009 = vmatprep.mubr.msk.bf16.mxu0 %vm202_vm0, %v1067_v21 }
  0xa4   : > { %986 = vmatmul.mubr.msk.bf16.gmra.mrb[4].mxu1 %vm202_vm0, %v1066_v22 }
  0xa8   : > { %1010 = vmatmul.mubr.msk.bf16.gmra.mrb[4].mxu0 %vm202_vm0, %v1068_v23 }
 0x16f   : > { %v983_v33 = vpop.f32.mrb[0].mxu1 }
 0x170   : > { %v348_v34 = vpop.f32.mrb[1].mxu1 }
 0x171   : > { %v984_v35 = vpop.f32.mrb[2].mxu1 }
 0x172   : > { %v351_v36 = vpop.f32.mrb[3].mxu1 }
 0x173   : > { %v1007_v37 = vpop.f32.mrb[0].mxu0 }
 0x174   : > { %v1013_v40 = vadd.f32 %v1007_v37, %v983_v33  ;;  %v580_v41 = vpop.f32.mrb[1].mxu0 }
 0x175   : > { %v1014_v42 = vadd.f32 %v580_v41, %v348_v34  ;;  %v1008_v43 = vpop.f32.mrb[2].mxu0 }
 0x176   : > { %v1015_v44 = vadd.f32 %v1008_v43, %v984_v35  ;;  %v583_v45 = vpop.f32.mrb[3].mxu0  ;;  %v642_v46 = vmul.f32 %v1013_v40, %v1182_v39 }
 0x177   : > { %v1016_v47 = vadd.f32 %v583_v45, %v351_v36  ;;  %v987_v48 = vpop.f32.mrb[4].mxu1  ;;  %v640_v51 = vmul.f32 %v1014_v42, %v1182_v39 }
 0x178   : > { %v364_v49 = vpop.f32.mrb[5].mxu1  ;;  %v655_v50 = vsel %vm648_vm5, %v642_v46, 0.0  ;;  %v643_v60 = vmul.f32 %v1015_v44, %v1182_v39 }
 0x179   : > { %v988_v52 = vpop.f32.mrb[6].mxu1  ;;  %656 = vadd.xlane.f32.xlu0 %v655_v50  ;;  %v641_v53 = vmul.f32 %v1016_v47, %v1182_v39  ;;  %v649_v59 = vsel %vm648_vm5, %v640_v51, 0.0 }
 0x17a   : > { %v367_v54 = vpop.f32.mrb[7].mxu1  ;;  %v658_v3 = vsel %vm648_vm5, %v643_v60, 0.0 }
 0x17b   : > { %v1011_v55 = vpop.f32.mrb[4].mxu0  ;;  %v652_v56 = vsel %vm648_vm5, %v641_v53, 0.0 }
 0x17c   : > { %v1017_v57 = vadd.f32 %v1011_v55, %v987_v48  ;;  %653 = vadd.xlane.f32.xlu1 %v652_v56  ;;  %v596_v58 = vpop.f32.mrb[5].mxu0 }
 0x17d   : > { %v1018_v61 = vadd.f32 %v596_v58, %v364_v49  ;;  %650 = vadd.xlane.f32.xlu0 %v649_v59  ;;  %v1012_v62 = vpop.f32.mrb[6].mxu0 }
 0x17e   : > { %v1019_v63 = vadd.f32 %v1012_v62, %v988_v52  ;;  %v599_v0 = vpop.f32.mrb[7].mxu0  ;;  %v646_v6 = vmul.f32 %v1017_v57, %v1182_v39 }
 0x17f   : > { %v1020_v1 = vadd.f32 %v599_v0, %v367_v54  ;;  %v644_v2 = vmul.f32 %v1018_v61, %v1182_v39 }
 0x180   : > { %v647_v8 = vmul.f32 %v1019_v63, %v1182_v39  ;;  %v667_v9 = vsel %vm648_vm5, %v646_v6, 0.0 }
 0x181   : > { %659 = vadd.xlane.f32.xlu0 %v658_v3  ;;  %v661_v4 = vsel %vm648_vm5, %v644_v2, 0.0  ;;  %v645_v5 = vmul.f32 %v1020_v1, %v1182_v39 }
 0x182   : > { %662 = vadd.xlane.f32.xlu1 %v661_v4  ;;  %v670_v10 = vsel %vm648_vm5, %v647_v8, 0.0 }
 0x183   : > { %v664_v7 = vsel %vm648_vm5, %v645_v5, 0.0 }
 0x185   : > { %665 = vadd.xlane.f32.xlu0 %v664_v7 }
 0x186   : > { %668 = vadd.xlane.f32.xlu1 %v667_v9 }
 0x189   : > { %671 = vadd.xlane.f32.xlu0 %v670_v10 }
 0x206   : > { %v657_v11 = vpop.xlane.xlu0 %656 }
 0x209   : > { %v654_v13 = vpop.xlane.xlu1 %653 }
 0x20a   : > { %v651_v12 = vpop.xlane.xlu0 %650 }
 0x20b   : > { %v673_v16 = vadd.f32 %v657_v11, %v651_v12 }
 0x20e   : > { %v660_v14 = vpop.xlane.xlu0 %659 }
 0x20f   : > { %v663_v15 = vpop.xlane.xlu1 %662  ;;  %v676_v19 = vadd.f32 %v660_v14, %v654_v13 }
 0x210   : > { %v674_v17 = vadd.f32 %v673_v16, %v663_v15 }
 0x212   : > { %v666_v18 = vpop.xlane.xlu0 %665 }
 0x213   : > { %v669_v20 = vpop.xlane.xlu1 %668  ;;  %v677_v22 = vadd.f32 %v676_v19, %v666_v18 }
 0x214   : > { %v675_v21 = vadd.f32 %v674_v17, %v669_v20 }
 0x216   : > { %v679_v23 = vmul.f32 0.015625, %v675_v21  ;;  %v672_v24 = vpop.xlane.xlu0 %671 }
 0x217   : > { %v678_v25 = vadd.f32 %v677_v22, %v672_v24 }
 0x218   : > { %v1200_v26 = vsub.f32 %v1014_v42, %v679_v23  ;;  %v1202_v27 = vsub.f32 %v1013_v40, %v679_v23  ;;  %v685_v31 = vsub.f32 %v1018_v61, %v679_v23  ;;  %v687_v42 = vsub.f32 %v1017_v57, %v679_v23 }
 0x219   : > { %v680_v28 = vmul.f32 0.015625, %v678_v25 }
 0x21a   : > { %v689_v29 = vmul.f32 %v1200_v26, %v1200_v26  ;;  %v691_v30 = vmul.f32 %v1202_v27, %v1202_v27  ;;  %v693_v41 = vmul.f32 %v685_v31, %v685_v31  ;;  %v695_v50 = vmul.f32 %v687_v42, %v687_v42 }
 0x21b   : > { %v1208_v32 = vsub.f32 %v1016_v47, %v680_v28  ;;  %v1210_v33 = vsub.f32 %v1015_v44, %v680_v28  ;;  %v1217_v37 = vsub.f32 %v1020_v1, %v680_v28  ;;  %v688_v47 = vsub.f32 %v1019_v63, %v680_v28 }
 0x21c   : > { %v697_v34 = vmul.f32 %v1182_v39, %v689_v29  ;;  %v699_v40 = vmul.f32 %v1182_v39, %v691_v30  ;;  %v701_v49 = vmul.f32 %v1182_v39, %v693_v41  ;;  %v703_v55 = vmul.f32 %v1182_v39, %v695_v50 }
 0x21d   : > { %v690_v35 = vmul.f32 %v1208_v32, %v1208_v32  ;;  %v692_v36 = vmul.f32 %v1210_v33, %v1210_v33  ;;  %v694_v46 = vmul.f32 %v1217_v37, %v1217_v37  ;;  %v696_v53 = vmul.f32 %v688_v47, %v688_v47 }
 0x21e   : > { %v705_v38 = vsel %vm648_vm5, %v697_v34, 0.0  ;;  %v711_v48 = vsel %vm648_vm5, %v699_v40, 0.0  ;;  %v717_v54 = vsel %vm648_vm5, %v701_v49, 0.0  ;;  %v723_v58 = vsel %vm648_vm5, %v703_v55, 0.0 }
 0x21f   : > { %706 = vadd.xlane.f32.xlu1 %v705_v38  ;;  %v698_v43 = vmul.f32 %v1182_v39, %v690_v35  ;;  %v700_v45 = vmul.f32 %v1182_v39, %v692_v36  ;;  %v702_v52 = vmul.f32 %v1182_v39, %v694_v46  ;;  %v704_v57 = vmul.f32 %v1182_v39, %v696_v53 }
 0x221   : > { %v708_v44 = vsel %vm648_vm5, %v698_v43, 0.0  ;;  %v714_v51 = vsel %vm648_vm5, %v700_v45, 0.0  ;;  %v720_v56 = vsel %vm648_vm5, %v702_v52, 0.0  ;;  %v726_v59 = vsel %vm648_vm5, %v704_v57, 0.0 }
 0x222   : > { %709 = vadd.xlane.f32.xlu0 %v708_v44 }
 0x223   : > { %712 = vadd.xlane.f32.xlu1 %v711_v48 }
 0x226   : > { %715 = vadd.xlane.f32.xlu0 %v714_v51 }
 0x227   : > { %718 = vadd.xlane.f32.xlu1 %v717_v54 }
 0x22a   : > { %721 = vadd.xlane.f32.xlu0 %v720_v56 }
 0x22b   : > { %724 = vadd.xlane.f32.xlu1 %v723_v58 }
 0x22e   : > { %727 = vadd.xlane.f32.xlu0 %v726_v59 }
 0x2ac   : > { %v707_v60 = vpop.xlane.xlu1 %706 }
 0x2af   : > { %v710_v61 = vpop.xlane.xlu0 %709 }
 0x2b0   : > { %v713_v62 = vpop.xlane.xlu1 %712 }
 0x2b1   : > { %v729_v1 = vadd.f32 %v713_v62, %v707_v60 }
 0x2b3   : > { %v716_v63 = vpop.xlane.xlu0 %715 }
 0x2b4   : > { %v719_v0 = vpop.xlane.xlu1 %718  ;;  %v732_v4 = vadd.f32 %v716_v63, %v710_v61 }
 0x2b5   : > { %v730_v2 = vadd.f32 %v729_v1, %v719_v0 }
 0x2b7   : > { %v722_v3 = vpop.xlane.xlu0 %721 }
 0x2b8   : > { %v725_v5 = vpop.xlane.xlu1 %724  ;;  %v733_v39 = vadd.f32 %v732_v4, %v722_v3 }
 0x2b9   : > { %v731_v6 = vadd.f32 %v730_v2, %v725_v5 }
 0x2bb   : > { %v735_v7 = vmul.f32 0.015625, %v731_v6  ;;  %v728_v8 = vpop.xlane.xlu0 %727 }
 0x2bc   : > { %v734_v9 = vadd.f32 %v733_v39, %v728_v8 }
 0x2bd   : > { %v737_v10 = vadd.f32 1e-05, %v735_v7 }
 0x2be   : > { %v736_v11 = vmul.f32 0.015625, %v734_v9 }
 0x2bf   : > { %1069 = vrsqrt.f32 %v737_v10 }
 0x2c0   : > { %v738_v12 = vadd.f32 1e-05, %v736_v11 }
 0x2c2   : > { %1071 = vrsqrt.f32 %v738_v12 }
 0x2c9   : > { %v1070_v13 = vpop.eup %1069 }
 0x2ca   : > { %v741_v14 = vmul.f32 %v1070_v13, %v1200_v26  ;;  %v743_v15 = vmul.f32 %v1070_v13, %v1202_v27  ;;  %v745_v16 = vmul.f32 %v1070_v13, %v685_v31  ;;  %v747_v17 = vmul.f32 %v1070_v13, %v687_v42 }
 0x2cc   : > { %v1072_v18 = vpop.eup %1071  ;;  %v749_v19 = vmax.f32 %v741_v14, 0.0  ;;  %v751_v20 = vmax.f32 %v743_v15, 0.0  ;;  %v753_v21 = vmax.f32 %v745_v16, 0.0  ;;  %v755_v22 = vmax.f32 %v747_v17, 0.0 }
 0x2cd   : > { %v742_v23 = vmul.f32 %v1072_v18, %v1208_v32  ;;  %v744_v24 = vmul.f32 %v1072_v18, %v1210_v33  ;;  %v746_v25 = vmul.f32 %v1072_v18, %v1217_v37  ;;  %v748_v26 = vmul.f32 %v1072_v18, %v688_v47 }
 0x2ce   : > { %v933_v27 = vpack.c.bf16 %v749_v19, %v749_v19  ;;  %v935_v28 = vpack.c.bf16 %v751_v20, %v751_v20  ;;  %v937_v29 = vpack.c.bf16 %v753_v21, %v753_v21  ;;  %v939_v30 = vpack.c.bf16 %v755_v22, %v755_v22 }
 0x2cf   : > { %v750_v31 = vmax.f32 %v742_v23, 0.0  ;;  %v752_v34 = vmax.f32 %v744_v24, 0.0  ;;  %v754_v35 = vmax.f32 %v746_v25, 0.0  ;;  %v756_v36 = vmax.f32 %v748_v26, 0.0 }
 0x2d0   : > { %790 = vst.msk [vmem:[%s143_s27] sm:$0xf] %vm789_vm6, %v933_v27  ;;  %792 = vst.msk [vmem:[%s143_s27 + $0x8] sm:$0xf] %vm789_vm6, %v935_v28 }
 0x2d1   : > { %794 = vst.msk [vmem:[%s143_s27 + $0x10] sm:$0xf] %vm789_vm6, %v937_v29  ;;  %796 = vst.msk [vmem:[%s143_s27 + $0x18] sm:$0xf] %vm789_vm6, %v939_v30  ;;  %v934_v32 = vpack.c.bf16 %v750_v31, %v750_v31  ;;  %v936_v33 = vpack.c.bf16 %v752_v34, %v752_v34  ;;  %v938_v37 = vpack.c.bf16 %v754_v35, %v754_v35 }
 0x2d2   : > { %v940_v38 = vpack.c.bf16 %v756_v36, %v756_v36 }
 0x2d3   : > { %791 = vst.msk [vmem:[%s143_s27 + $0x4] sm:$0xf] %vm789_vm6, %v934_v32  ;;  %793 = vst.msk [vmem:[%s143_s27 + $0xc] sm:$0xf] %vm789_vm6, %v936_v33 }
 0x2d4   : > { %795 = vst.msk [vmem:[%s143_s27 + $0x14] sm:$0xf] %vm789_vm6, %v938_v37  ;;  %797 = vst.msk [vmem:[%s143_s27 + $0x1c] sm:$0xf] %vm789_vm6, %v940_v38 }
 0x2d5 PF: > { %s12_s9 = sadd.s32 1, %s1079_s9  }
 0x2d6   : > { %p9_p4 = scmp.ge.s32.totalorder %s12_s9, 4  }
 0x2d8   :  { %11 = sbr.rel (!%p9_p4) target bundleno = 1 (0x1), region = 61 }

// kernel: resnet9_forward.18
= control target key start
LH: loop header
LB: loop body
LE: loop exit
PB: predicated region body
PF: predicated region fallthrough
CT: control target
= control target key end

     0   :  { %s2527_s12 = smov 0   ;;  %s2812_s0 = inlined_call_operand.vmem [shape: bf16[2,32,42], index: 0, kind: input, shape index: {}]   ;;  %s2813_s1 = inlined_call_operand.vmem [shape: bf16[9,32,32], index: 1, kind: input, shape index: {}]   ;;  %s2814_s2 = inlined_call_operand.vmem [shape: bf16[9,32,32], index: 2, kind: input, shape index: {}]   ;;  %s2815_s3 = inlined_call_operand.vmem [shape: bf16[2,32,24], index: 3, kind: output, shape index: {}]  }
   0x1 LB: > { %s1949_s13 = sadd.s32 4294967295, %s2490_s12   ;;  %p1953_p0 = scmp.ge.s32.totalorder %s2490_s12, 1  ;;  %s2490_s12 = sphi %s2527_s12, %s13_s12  }
   0x2   : > { %p137_p1 = scmp.lt.s32.totalorder %s2490_s12, 3 }
   0x4   : > { %p138_p2 = pnand %p1953_p0, %p137_p1 }
   0x5   : > { %p161_p3 = scmp.lt.s32.totalorder (!%p138_p2), %s1949_s13, 1  ;;  %v2426_v0 = vld [vmem:[%s2813_s1 + $0x10] sm:$0xff] (!%p138_p2)   ;;  %vm234_vm0 = vcmask (!%p138_p2), 261120   ;;  %s2492_s20 = smov (!%p138_p2), 127   ;;  %v2427_v5 = vld [vmem:[%s2813_s1 + $0x18] sm:$0xff] (!%p138_p2)   ;;  %v2428_v6 = vld [vmem:[%s2813_s1] sm:$0xff] (!%p138_p2)   ;;  %v174_v36 = vlaneseq (!%p138_p2) }
   0x6   : > { %141 = sbr.rel (%p138_p2) target bundleno = 1790 (0x6fe), region = 32  ;;  %2185 = vmatprep.mubr.msk.bf16.mxu0 (!%p138_p2), %vm234_vm0, %v2426_v0  ;;  %s2493_s21 = smov (!%p138_p2), 126   ;;  %v2429_v8 = vld [vmem:[%s2813_s1 + $0x8] sm:$0xff] (!%p138_p2)   ;;  %v2430_v9 = vld [vmem:[%s2813_s1 + $0x20] sm:$0xff] (!%p138_p2)   ;;  %v2432_v13 = vld [vmem:[%s2813_s1 + $0x30] sm:$0xff] (!%p138_p2)   ;;  %v2500_v45 = vmov (!%p138_p2), 0.0  }
   0x7   : > { %s2494_s22 = smov (!%p138_p2), 122   ;;  %s2495_s23 = smov (!%p138_p2), 121   ;;  %v2431_v12 = vld [vmem:[%s2813_s1 + $0x28] sm:$0xff] (!%p138_p2)   ;;  %v2433_v16 = vld [vmem:[%s2813_s1 + $0x38] sm:$0xff] (!%p138_p2)   ;;  %v2434_v17 = vld [vmem:[%s2813_s1 + $0x40] sm:$0xff] (!%p138_p2)   ;;  %v175_v37 = vand.u32 (!%p138_p2), 127, %v174_v36 }
   0x8   : > { %s2496_s24 = smov (!%p138_p2), 120   ;;  %s2497_s25 = smov (!%p138_p2), 116   ;;  %v2435_v20 = vld [vmem:[%s2813_s1 + $0x48] sm:$0xff] (!%p138_p2)   ;;  %v2436_v21 = vld [vmem:[%s2813_s1 + $0x50] sm:$0xff] (!%p138_p2)   ;;  %v2437_v24 = vld [vmem:[%s2813_s1 + $0x58] sm:$0xff] (!%p138_p2)   ;;  %vm921_vm5 = vcmask (!%p138_p2), 195584  }
   0x9   : > { %s2498_s26 = smov (!%p138_p2), 115   ;;  %s2499_s27 = smov (!%p138_p2), 114   ;;  %v2438_v25 = vld [vmem:[%s2813_s1 + $0x60] sm:$0xff] (!%p138_p2)   ;;  %v2439_v28 = vld [vmem:[%s2813_s1 + $0x68] sm:$0xff] (!%p138_p2)   ;;  %v2440_v29 = vld [vmem:[%s2813_s1 + $0x70] sm:$0xff] (!%p138_p2)   ;;  %vm1005_vm10 = vcmask (!%p138_p2), 23552  }
   0xa   : > { %v2441_v32 = vld [vmem:[%s2813_s1 + $0x78] sm:$0xff] (!%p138_p2)   ;;  %v2442_v33 = vld [vmem:[%s2813_s1 + $0x80] sm:$0xff] (!%p138_p2)   ;;  %v2443_v35 = vld [vmem:[%s2813_s1 + $0x88] sm:$0xff] (!%p138_p2)   ;;  %v2656_v38 = vmul.u32.u64.low (!%p138_p2), 2863311531, %v175_v37  ;;  %v2657_v39 = vmul.u32.u64.high 2863311531, %v175_v37, %v2656_v38  ;;  %s2501_s30 = smov (!%p138_p2), 1  }
   0xb   : > { %s2502_s4 = smov (!%p138_p2), 3   ;;  %vm1016_vm11 = vcmask (!%p138_p2), 7168   ;;  %vm991_vm13 = vcmask (!%p138_p2), 187392   ;;  %s2504_s5 = smov (!%p138_p2), 6   ;;  %vm1070_vm15 = vcmask (!%p138_p2), 244736  }
   0xc   : > { %v182_v40 = vshrl.u32 (!%p138_p2), %v2657_v39, 2  ;;  %s2505_s6 = smov (!%p138_p2), 24   ;;  %s2506_s7 = smov (!%p138_p2), 18  }
   0xd   : > { %s2817_s13 = smov (!%p161_p3, %s1949_s13), 1 }
   0xe   : > { %s2103_s16 = sshll.u32 %s2817_s13, 4  ;;  %v183_v41 = vmul.u32 6, %v182_v40 }
   0xf   : > { %s165_s19 = scalar_lea.vmem %s2812_s0, %s2103_s16  ;;  %s170_s18 = scalar_lea.vmem %s2815_s3, %s2103_s16 }
  0x10   : > { %v2547_v1 = vld [vmem:[%s165_s19] sm:$0xff]   ;;  %v2549_v2 = vld [vmem:[%s165_s19 + $0x8] sm:$0xff]   ;;  %v184_v42 = vsub.s32 %v175_v37, %v183_v41 }
  0x11   : > { %228 = vrot.lane.b32.xlu0 %v2547_v1, %s2492_s20  ;;  %372 = vrot.lane.b32.xlu1 %v2547_v1, %s2493_s21 }
  0x12   : > { %vm187_vm1 = vcmp.ne.s32.totalorder %v184_v42, 0  ;;  %vm188_vm2 = vcmp.lt.s32.totalorder %v184_v42, 0  ;;  %v190_v43 = vadd.s32 6, %v184_v42 }
  0x13   : > { %vm189_vm3 = vmand %vm188_vm2, %vm187_vm1  ;;  %vm1063_vm1 = vcmask 48128   ;;  %vm1075_vm2 = vcmask 293888  }
  0x14   : > { %v2660_v44 = vsel %vm189_vm3, %v190_v43, %v184_v42 }
  0x15   : > { %230 = vrot.lane.b32.xlu0 %v2549_v2, %s2492_s20  ;;  %374 = vrot.lane.b32.xlu1 %v2549_v2, %s2493_s21  ;;  %vm192_vm4 = vcmp.lt.s32.totalorder %v2660_v44, 4  ;;  %vm1000_vm6 = vcmp.eq.s32.totalorder %v2660_v44, 5  ;;  %vm984_vm8 = vcmp.eq.s32.totalorder %v2660_v44, 0 }
  0x16   : > { %v2663_v46 = vsel %vm192_vm4, 1.0, %v2500_v45  ;;  %vm1025_vm7 = vmpackc.low %vm1000_vm6, %vm1000_vm6 }
  0x17   : > { %vm1036_vm9 = vmpackc.low %vm984_vm8, %vm984_vm8 }
  0x19   : > { %452 = vrot.lane.b32.xlu0 %v2547_v1, %s2494_s22  ;;  %454 = vrot.lane.b32.xlu1 %v2549_v2, %s2494_s22 }
  0x1d   : > { %532 = vrot.lane.b32.xlu0 %v2547_v1, %s2495_s23  ;;  %534 = vrot.lane.b32.xlu1 %v2549_v2, %s2495_s23 }
  0x21   : > { %612 = vrot.lane.b32.xlu0 %v2547_v1, %s2496_s24  ;;  %614 = vrot.lane.b32.xlu1 %v2549_v2, %s2496_s24 }
  0x25   : > { %692 = vrot.lane.b32.xlu0 %v2547_v1, %s2497_s25  ;;  %694 = vrot.lane.b32.xlu1 %v2549_v2, %s2497_s25 }
  0x29   : > { %772 = vrot.lane.b32.xlu0 %v2547_v1, %s2498_s26  ;;  %774 = vrot.lane.b32.xlu1 %v2549_v2, %s2498_s26 }
  0x2d   : > { %852 = vrot.lane.b32.xlu0 %v2547_v1, %s2499_s27  ;;  %854 = vrot.lane.b32.xlu1 %v2549_v2, %s2499_s27 }
  0x83   : > { %v229_v3 = vpop.permute.xlu0 %228  ;;  %v373_v7 = vpop.permute.xlu1 %372 }
  0x84   : > { %2181 = vmatprep.subr.bf16.mxu0 %v229_v3 }
  0x85   : > { %2182 = vmatpush3.bf16.msra.mxu0 %v229_v3 }
  0x87   : > { %v231_v4 = vpop.permute.xlu0 %230  ;;  %v375_v10 = vpop.permute.xlu1 %374 }
  0x88   : > { %2183 = vmatprep.subr.bf16.mxu0 %v231_v4 }
  0x89   : > { %2184 = vmatpush3.bf16.msra.mxu0 %v231_v4 }
  0x8a   : > { %2189 = vmatprep.subr.bf16.mxu0 %v2547_v1 }
  0x8b   : > { %v453_v11 = vpop.permute.xlu0 %452  ;;  %v455_v14 = vpop.permute.xlu1 %454 }
  0x8c   : > { %2186 = vmatmul.mubr.msk.bf16.vlgmr.msra.gmra.mrb[0].mxu0 %vm234_vm0, %v2427_v5 }
  0x8d   : > { %2190 = vmatpush3.bf16.msra.mxu0 %v2547_v1  ;;  %2193 = vmatprep.mubr.msk.bf16.mxu0 %vm234_vm0, %v2428_v6 }
  0x8e   : > { %2191 = vmatprep.subr.bf16.mxu0 %v2549_v2 }
  0x8f   : > { %v533_v15 = vpop.permute.xlu0 %532  ;;  %v535_v18 = vpop.permute.xlu1 %534 }
  0x91   : > { %2192 = vmatpush3.bf16.msra.mxu0 %v2549_v2 }
  0x92   : > { %2197 = vmatprep.subr.bf16.mxu0 %v373_v7 }
  0x93   : > { %v613_v19 = vpop.permute.xlu0 %612  ;;  %v615_v22 = vpop.permute.xlu1 %614 }
  0x97   : > { %v693_v23 = vpop.permute.xlu0 %692  ;;  %v695_v26 = vpop.permute.xlu1 %694 }
  0x98   : > { %2194 = vmatmul.mubr.msk.bf16.vlgmr.msra.gmra.mrb[0].mxu0 %vm234_vm0, %v2429_v8 }
  0x99   : > { %2198 = vmatpush3.bf16.msra.mxu0 %v373_v7  ;;  %2201 = vmatprep.mubr.msk.bf16.mxu0 %vm234_vm0, %v2430_v9 }
  0x9a   : > { %2199 = vmatprep.subr.bf16.mxu0 %v375_v10 }
  0x9b   : > { %v773_v27 = vpop.permute.xlu0 %772  ;;  %v775_v30 = vpop.permute.xlu1 %774 }
  0x9d   : > { %2200 = vmatpush3.bf16.msra.mxu0 %v375_v10 }
  0x9e   : > { %2205 = vmatprep.subr.bf16.mxu0 %v453_v11 }
  0x9f   : > { %v853_v31 = vpop.permute.xlu0 %852  ;;  %v855_v34 = vpop.permute.xlu1 %854 }
  0xa4   : > { %2202 = vmatmul.mubr.msk.bf16.vlgmr.msra.gmra.mrb[0].mxu0 %vm234_vm0, %v2431_v12 }
  0xa5   : > { %2206 = vmatpush3.bf16.msra.mxu0 %v453_v11  ;;  %2209 = vmatprep.mubr.msk.bf16.mxu0 %vm234_vm0, %v2432_v13 }
  0xa6   : > { %2207 = vmatprep.subr.bf16.mxu0 %v455_v14 }
  0xa9   : > { %2208 = vmatpush3.bf16.msra.mxu0 %v455_v14 }
  0xaa   : > { %2213 = vmatprep.subr.bf16.mxu0 %v533_v15 }
  0xb0   : > { %2210 = vmatmul.mubr.msk.bf16.vlgmr.msra.gmra.mrb[0].mxu0 %vm234_vm0, %v2433_v16 }
  0xb1   : > { %2214 = vmatpush3.bf16.msra.mxu0 %v533_v15  ;;  %2217 = vmatprep.mubr.msk.bf16.mxu0 %vm234_vm0, %v2434_v17 }
  0xb2   : > { %2215 = vmatprep.subr.bf16.mxu0 %v535_v18 }
  0xb5   : > { %2216 = vmatpush3.bf16.msra.mxu0 %v535_v18 }
  0xb6   : > { %2221 = vmatprep.subr.bf16.mxu0 %v613_v19 }
  0xbc   : > { %2218 = vmatmul.mubr.msk.bf16.vlgmr.msra.gmra.mrb[0].mxu0 %vm234_vm0, %v2435_v20 }
  0xbd   : > { %2222 = vmatpush3.bf16.msra.mxu0 %v613_v19  ;;  %2225 = vmatprep.mubr.msk.bf16.mxu0 %vm234_vm0, %v2436_v21 }
  0xbe   : > { %2223 = vmatprep.subr.bf16.mxu0 %v615_v22 }
  0xc1   : > { %2224 = vmatpush3.bf16.msra.mxu0 %v615_v22 }
  0xc2   : > { %2229 = vmatprep.subr.bf16.mxu0 %v693_v23 }
  0xc8   : > { %2226 = vmatmul.mubr.msk.bf16.vlgmr.msra.gmra.mrb[0].mxu0 %vm234_vm0, %v2437_v24 }
  0xc9   : > { %2230 = vmatpush3.bf16.msra.mxu0 %v693_v23  ;;  %2233 = vmatprep.mubr.msk.bf16.mxu0 %vm234_vm0, %v2438_v25 }
  0xca   : > { %2231 = vmatprep.subr.bf16.mxu0 %v695_v26 }
  0xcd   : > { %2232 = vmatpush3.bf16.msra.mxu0 %v695_v26 }
  0xce   : > { %2237 = vmatprep.subr.bf16.mxu0 %v773_v27 }
  0xd4   : > { %2234 = vmatmul.mubr.msk.bf16.vlgmr.msra.gmra.mrb[0].mxu0 %vm234_vm0, %v2439_v28 }
  0xd5   : > { %2238 = vmatpush3.bf16.msra.mxu0 %v773_v27  ;;  %2241 = vmatprep.mubr.msk.bf16.mxu0 %vm234_vm0, %v2440_v29 }
  0xd6   : > { %2239 = vmatprep.subr.bf16.mxu0 %v775_v30 }
  0xd9   : > { %2240 = vmatpush3.bf16.msra.mxu0 %v775_v30 }
  0xda   : > { %2245 = vmatprep.subr.bf16.mxu0 %v853_v31 }
  0xe0   : > { %2242 = vmatmul.mubr.msk.bf16.vlgmr.msra.gmra.mrb[0].mxu0 %vm234_vm0, %v2441_v32 }
  0xe1   : > { %2246 = vmatpush3.bf16.msra.mxu0 %v853_v31  ;;  %2249 = vmatprep.mubr.msk.bf16.mxu0 %vm234_vm0, %v2442_v33 }
  0xe2   : > { %2247 = vmatprep.subr.bf16.mxu0 %v855_v34 }
  0xe5   : > { %2248 = vmatpush3.bf16.msra.mxu0 %v855_v34 }
  0xec   : > { %2250 = vmatmul.mubr.msk.bf16.vlgmr.msra.gmra.mrb[0].mxu0 %vm234_vm0, %v2443_v35 }
 0x1bf   : > { %v2251_v47 = vpop.f32.mrb[0].mxu0 }
 0x1c0   : > { %v898_v48 = vpop.f32.mrb[1].mxu0  ;;  %v919_v52 = vmul.f32 %v2251_v47, %v2663_v46 }
 0x1c1   : > { %v917_v49 = vmul.f32 %v2663_v46, %v898_v48  ;;  %v2252_v50 = vpop.f32.mrb[2].mxu0 }
 0x1c2   : > { %v901_v51 = vpop.f32.mrb[3].mxu0  ;;  %v920_v56 = vmul.f32 %v2252_v50, %v2663_v46  ;;  %v928_v57 = vsel %vm921_vm5, %v919_v52, 0.0 }
 0x1c3   : > { %v918_v53 = vmul.f32 %v2663_v46, %v901_v51  ;;  %v922_v54 = vsel %vm921_vm5, %v917_v49, 0.0 }
 0x1c4   : > { %923 = vadd.xlane.f32.xlu0 %v922_v54  ;;  %v931_v58 = vsel %vm921_vm5, %v920_v56, 0.0  ;;  %v2503_v54 = vmov 0  }
 0x1c5   : > { %v925_v55 = vsel %vm921_vm5, %v918_v53, 0.0 }
 0x1c6   : > { %926 = vadd.xlane.f32.xlu1 %v925_v55  ;;  %v1026_v55 = vsel %vm1025_vm7, 65537, %v2503_v54 }
 0x1c8   : > { %929 = vadd.xlane.f32.xlu0 %v928_v57 }
 0x1cc   : > { %932 = vadd.xlane.f32.xlu0 %v931_v58  ;;  %v1037_v58 = vsel %vm1036_vm9, 65537, %v2503_v54 }
 0x251   : > { %v924_v59 = vpop.xlane.xlu0 %923 }
 0x252   : > { %v934_v60 = vmul.f32 0.0625, %v924_v59 }
 0x253   : > { %v927_v61 = vpop.xlane.xlu1 %926 }
 0x254   : > { %v938_v62 = vsub.f32 %v898_v48, %v934_v60  ;;  %v935_v63 = vmul.f32 0.0625, %v927_v61 }
 0x255   : > { %v930_v0 = vpop.xlane.xlu0 %929 }
 0x256   : > { %v939_v3 = vsub.f32 %v901_v51, %v935_v63  ;;  %v936_v4 = vmul.f32 0.0625, %v930_v0  ;;  %v942_v5 = vmul.f32 %v938_v62, %v938_v62 }
 0x258   : > { %v940_v6 = vsub.f32 %v2251_v47, %v936_v4  ;;  %v946_v7 = vmul.f32 %v2663_v46, %v942_v5  ;;  %v943_v8 = vmul.f32 %v939_v3, %v939_v3 }
 0x259   : > { %v933_v9 = vpop.xlane.xlu0 %932 }
 0x25a   : > { %v937_v10 = vmul.f32 0.0625, %v933_v9  ;;  %v950_v11 = vsel %vm921_vm5, %v946_v7, 0.0  ;;  %v947_v12 = vmul.f32 %v2663_v46, %v943_v8  ;;  %v944_v13 = vmul.f32 %v940_v6, %v940_v6 }
 0x25b   : > { %951 = vadd.xlane.f32.xlu1 %v950_v11  ;;  %v2444_v11 = vld [vmem:[%s2814_s2 + $0x10] sm:$0xff]  }
 0x25c   : > { %v941_v14 = vsub.f32 %v2252_v50, %v937_v10  ;;  %v953_v15 = vsel %vm921_vm5, %v947_v12, 0.0  ;;  %v948_v16 = vmul.f32 %v2663_v46, %v944_v13  ;;  %v1028_v50 = vshrl.u32 %v174_v36, 7  ;;  %2257 = vmatprep.mubr.msk.bf16.mxu1 %vm234_vm0, %v2444_v11 }
 0x25d   : > { %954 = vadd.xlane.f32.xlu0 %v953_v15 }
 0x25e   : > { %v956_v17 = vsel %vm921_vm5, %v948_v16, 0.0  ;;  %v945_v18 = vmul.f32 %v941_v14, %v941_v14  ;;  %v1029_v52 = vsub.s32 0, %v1028_v50 }
 0x25f   : > { %957 = vadd.xlane.f32.xlu1 %v956_v17 }
 0x260   : > { %v949_v19 = vmul.f32 %v2663_v46, %v945_v18  ;;  %v1030_v57 = vrot.slane %v1026_v55, %v1029_v52  ;;  %v1041_v61 = vrot.slane %v1037_v58, %v1029_v52  ;;  %v2457_v52 = vld [vmem:[%s2814_s2 + $0x68] sm:$0xff]  }
 0x262   : > { %v959_v20 = vsel %vm921_vm5, %v949_v19, 0.0  ;;  %vm1031_vm12 = vcmp.ne.s16.totalorder %v1030_v57, 0  ;;  %vm1042_vm14 = vcmp.ne.s16.totalorder %v1041_v61, 0  ;;  %v2460_v57 = vld [vmem:[%s2814_s2 + $0x80] sm:$0xff]  }
 0x263   : > { %960 = vadd.xlane.f32.xlu0 %v959_v20 }
 0x2e8   : > { %v952_v21 = vpop.xlane.xlu1 %951 }
 0x2e9   : > { %v962_v22 = vmul.f32 0.0625, %v952_v21 }
 0x2ea   : > { %v955_v23 = vpop.xlane.xlu0 %954 }
 0x2eb   : > { %v966_v24 = vadd.f32 1e-05, %v962_v22  ;;  %v963_v25 = vmul.f32 0.0625, %v955_v23 }
 0x2ec   : > { %v958_v26 = vpop.xlane.xlu1 %957 }
 0x2ed   : > { %2464 = vrsqrt.f32 %v966_v24  ;;  %v967_v27 = vadd.f32 1e-05, %v963_v25  ;;  %v964_v28 = vmul.f32 0.0625, %v958_v26  ;;  %v2445_v26 = vld [vmem:[%s2814_s2 + $0x18] sm:$0xff]  }
 0x2ef   : > { %2466 = vrsqrt.f32 %v967_v27  ;;  %v968_v29 = vadd.f32 1e-05, %v964_v28  ;;  %v2446_v27 = vld [vmem:[%s2814_s2] sm:$0xff]  }
 0x2f0   : > { %v961_v30 = vpop.xlane.xlu0 %960 }
 0x2f1   : > { %2468 = vrsqrt.f32 %v968_v29  ;;  %v965_v31 = vmul.f32 0.0625, %v961_v30  ;;  %v2447_v29 = vld [vmem:[%s2814_s2 + $0x8] sm:$0xff]   ;;  %v2448_v30 = vld [vmem:[%s2814_s2 + $0x20] sm:$0xff]  }
 0x2f3   : > { %v969_v32 = vadd.f32 1e-05, %v965_v31 }
 0x2f5   : > { %2470 = vrsqrt.f32 %v969_v32 }
 0x2f7   : > { %v2465_v33 = vpop.eup %2464 }
 0x2f8   : > { %v974_v34 = vmul.f32 %v2465_v33, %v938_v62  ;;  %v2449_v33 = vld [vmem:[%s2814_s2 + $0x28] sm:$0xff]  }
 0x2f9   : > { %v2467_v35 = vpop.eup %2466 }
 0x2fa   : > { %v975_v37 = vmul.f32 %v2467_v35, %v939_v3  ;;  %v978_v39 = vmax.f32 %v974_v34, 0.0  ;;  %v2450_v34 = vld [vmem:[%s2814_s2 + $0x30] sm:$0xff]  }
 0x2fb   : > { %v2469_v38 = vpop.eup %2468 }
 0x2fc   : > { %v979_v40 = vmax.f32 %v975_v37, 0.0  ;;  %v976_v42 = vmul.f32 %v2469_v38, %v940_v6  ;;  %v2451_v38 = vld [vmem:[%s2814_s2 + $0x38] sm:$0xff]  }
 0x2fe   : > { %v982_v41 = vpack.c.bf16 %v979_v40, %v978_v39  ;;  %v980_v47 = vmax.f32 %v976_v42, 0.0  ;;  %v2452_v39 = vld [vmem:[%s2814_s2 + $0x40] sm:$0xff]   ;;  %v2453_v42 = vld [vmem:[%s2814_s2 + $0x48] sm:$0xff]  }
 0x2ff   : > { %v2471_v43 = vpop.eup %2470 }
 0x300   : > { %v977_v45 = vmul.f32 %v2471_v43, %v941_v14  ;;  %1012 = vrot.lane.b32.xlu0 %v982_v41, %s2501_s30  ;;  %v2454_v43 = vld [vmem:[%s2814_s2 + $0x50] sm:$0xff]  }
 0x302   : > { %v981_v48 = vmax.f32 %v977_v45, 0.0 }
 0x304   : > { %v983_v49 = vpack.c.bf16 %v981_v48, %v980_v47  ;;  %v2455_v48 = vld [vmem:[%s2814_s2 + $0x58] sm:$0xff]  }
 0x306   : > { %1014 = vrot.lane.b32.xlu0 %v983_v49, %s2501_s30  ;;  %1003 = vrot.lane.b32.xlu1 %v983_v49, %s2502_s4 }
 0x30a   : > { %1001 = vrot.lane.b32.xlu1 %v982_v41, %s2502_s4 }
 0x30e   : > { %987 = vrot.lane.b32.xlu1 %v982_v41, %s2492_s20 }
 0x312   : > { %989 = vrot.lane.b32.xlu1 %v983_v49, %s2492_s20 }
 0x372   : > { %v1013_v53 = vpop.permute.xlu0 %1012 }
 0x373   : > { %v1018_v6 = vsel %vm1016_vm11, %v982_v41, %v1013_v53  ;;  %v2458_v53 = vld [vmem:[%s2814_s2 + $0x70] sm:$0xff]  }
 0x378   : > { %v1004_v51 = vpop.permute.xlu1 %1003  ;;  %v1015_v59 = vpop.permute.xlu0 %1014 }
 0x379   : > { %v1021_v62 = vsel %vm1016_vm11, %v983_v49, %v1015_v59  ;;  %v1010_v36 = vsel %vm1005_vm10, %v983_v49, %v1004_v51  ;;  %v2461_v59 = vld [vmem:[%s2814_s2 + $0x88] sm:$0xff]  }
 0x37a   : > { %v1033_v44 = vsel %vm1031_vm12, %v1010_v36, %v1021_v62 }
 0x37c   : > { %v1002_v56 = vpop.permute.xlu1 %1001 }
 0x37d   : > { %v1007_v3 = vsel %vm1005_vm10, %v982_v41, %v1002_v56  ;;  %v2459_v56 = vld [vmem:[%s2814_s2 + $0x78] sm:$0xff]  }
 0x37e   : > { %v1032_v7 = vsel %vm1031_vm12, %v1007_v3, %v1018_v6 }
 0x380   : > { %v988_v60 = vpop.permute.xlu1 %987 }
 0x381   : > { %v994_v5 = vsel %vm991_vm13, %v988_v60, %v982_v41 }
 0x382   : > { %v1043_v8 = vsel %vm1042_vm14, %v994_v5, %v1032_v7 }
 0x384   : > { %v990_v63 = vpop.permute.xlu1 %989 }
 0x385   : > { %v998_v0 = vsel %vm991_vm13, %v990_v63, %v983_v49  ;;  %v2456_v49 = vld [vmem:[%s2814_s2 + $0x60] sm:$0xff]  }
 0x386   : > { %v1044_v4 = vsel %vm1042_vm14, %v998_v0, %v1033_v44 }
 0x387   : > { %1053 = vrot.lane.b32.xlu1 %v1044_v4, %s2504_s5  ;;  %1049 = vrot.lane.b32.xlu0 %v1044_v4, %s2494_s22 }
 0x38b   : > { %1051 = vrot.lane.b32.xlu1 %v1043_v8, %s2504_s5  ;;  %1047 = vrot.lane.b32.xlu0 %v1043_v8, %s2494_s22 }
 0x38f   : > { %1059 = vrot.lane.b32.xlu1 %v1043_v8, %s2505_s6  ;;  %1055 = vrot.lane.b32.xlu0 %v1043_v8, %s2506_s7 }
 0x393   : > { %1061 = vrot.lane.b32.xlu1 %v1044_v4, %s2505_s6  ;;  %1057 = vrot.lane.b32.xlu0 %v1044_v4, %s2506_s7 }
 0x3f9   : > { %v1054_v9 = vpop.permute.xlu1 %1053  ;;  %v1050_v10 = vpop.permute.xlu0 %1049 }
 0x3fa   : > { %v1069_v19 = vsel %vm1063_vm1, %v1050_v10, %v1054_v9 }
 0x3fd   : > { %v1052_v12 = vpop.permute.xlu1 %1051  ;;  %v1048_v13 = vpop.permute.xlu0 %1047 }
 0x3fe   : > { %v1066_v14 = vsel %vm1063_vm1, %v1048_v13, %v1052_v12 }
 0x401   : > { %v1060_v15 = vpop.permute.xlu1 %1059  ;;  %v1056_v16 = vpop.permute.xlu0 %1055 }
 0x402   : > { %v1072_v17 = vsel %vm1070_vm15, %v1066_v14, %v1056_v16 }
 0x403   : > { %v1077_v18 = vsel %vm1075_vm2, %v1072_v17, %v1060_v15 }
 0x404   : > { %1103 = vrot.lane.b32.xlu0 %v1077_v18, %s2492_s20 }
 0x405   : > { %v1062_v20 = vpop.permute.xlu1 %1061  ;;  %v1058_v21 = vpop.permute.xlu0 %1057 }
 0x406   : > { %v1074_v22 = vsel %vm1070_vm15, %v1069_v19, %v1058_v21 }
 0x407   : > { %v1080_v23 = vsel %vm1075_vm2, %v1074_v22, %v1062_v20 }
 0x408   : > { %1244 = vrot.lane.b32.xlu0 %v1077_v18, %s2493_s21  ;;  %1105 = vrot.lane.b32.xlu1 %v1080_v23, %s2492_s20 }
 0x40c   : > { %1324 = vrot.lane.b32.xlu0 %v1077_v18, %s2494_s22  ;;  %1246 = vrot.lane.b32.xlu1 %v1080_v23, %s2493_s21 }
 0x410   : > { %1404 = vrot.lane.b32.xlu0 %v1077_v18, %s2495_s23  ;;  %1326 = vrot.lane.b32.xlu1 %v1080_v23, %s2494_s22 }
 0x414   : > { %1484 = vrot.lane.b32.xlu0 %v1077_v18, %s2496_s24  ;;  %1406 = vrot.lane.b32.xlu1 %v1080_v23, %s2495_s23 }
 0x418   : > { %1564 = vrot.lane.b32.xlu0 %v1077_v18, %s2497_s25  ;;  %1486 = vrot.lane.b32.xlu1 %v1080_v23, %s2496_s24 }
 0x41c   : > { %1644 = vrot.lane.b32.xlu0 %v1077_v18, %s2498_s26  ;;  %1566 = vrot.lane.b32.xlu1 %v1080_v23, %s2497_s25 }
 0x420   : > { %1724 = vrot.lane.b32.xlu0 %v1077_v18, %s2499_s27  ;;  %1646 = vrot.lane.b32.xlu1 %v1080_v23, %s2498_s26 }
 0x424   : > { %1726 = vrot.lane.b32.xlu1 %v1080_v23, %s2499_s27 }
 0x476   : > { %v1104_v24 = vpop.permute.xlu0 %1103 }
 0x477   : > { %2253 = vmatprep.subr.bf16.mxu1 %v1104_v24 }
 0x478   : > { %2254 = vmatpush3.bf16.msra.mxu1 %v1104_v24 }
 0x47a   : > { %v1106_v25 = vpop.permute.xlu1 %1105  ;;  %v1245_v28 = vpop.permute.xlu0 %1244 }
 0x47b   : > { %2255 = vmatprep.subr.bf16.mxu1 %v1106_v25 }
 0x47c   : > { %2256 = vmatpush3.bf16.msra.mxu1 %v1106_v25 }
 0x47d   : > { %2261 = vmatprep.subr.bf16.mxu1 %v1077_v18 }
 0x47e   : > { %v1247_v31 = vpop.permute.xlu1 %1246  ;;  %v1325_v32 = vpop.permute.xlu0 %1324 }
 0x47f   : > { %2258 = vmatmul.mubr.msk.bf16.vlgmr.msra.gmra.mrb[0].mxu1 %vm234_vm0, %v2445_v26 }
 0x480   : > { %2262 = vmatpush3.bf16.msra.mxu1 %v1077_v18  ;;  %2265 = vmatprep.mubr.msk.bf16.mxu1 %vm234_vm0, %v2446_v27 }
 0x481   : > { %2263 = vmatprep.subr.bf16.mxu1 %v1080_v23 }
 0x482   : > { %v1327_v35 = vpop.permute.xlu1 %1326  ;;  %v1405_v37 = vpop.permute.xlu0 %1404 }
 0x484   : > { %2264 = vmatpush3.bf16.msra.mxu1 %v1080_v23 }
 0x485   : > { %2269 = vmatprep.subr.bf16.mxu1 %v1245_v28 }
 0x486   : > { %v1407_v40 = vpop.permute.xlu1 %1406  ;;  %v1485_v41 = vpop.permute.xlu0 %1484 }
 0x48a   : > { %v1487_v45 = vpop.permute.xlu1 %1486  ;;  %v1565_v47 = vpop.permute.xlu0 %1564 }
 0x48b   : > { %2266 = vmatmul.mubr.msk.bf16.vlgmr.msra.gmra.mrb[0].mxu1 %vm234_vm0, %v2447_v29 }
 0x48c   : > { %2270 = vmatpush3.bf16.msra.mxu1 %v1245_v28  ;;  %2273 = vmatprep.mubr.msk.bf16.mxu1 %vm234_vm0, %v2448_v30 }
 0x48d   : > { %2271 = vmatprep.subr.bf16.mxu1 %v1247_v31 }
 0x48e   : > { %v1567_v50 = vpop.permute.xlu1 %1566  ;;  %v1645_v51 = vpop.permute.xlu0 %1644 }
 0x490   : > { %2272 = vmatpush3.bf16.msra.mxu1 %v1247_v31 }
 0x491   : > { %2277 = vmatprep.subr.bf16.mxu1 %v1325_v32 }
 0x492   : > { %v1647_v54 = vpop.permute.xlu1 %1646  ;;  %v1725_v55 = vpop.permute.xlu0 %1724 }
 0x496   : > { %v1727_v58 = vpop.permute.xlu1 %1726 }
 0x497   : > { %2274 = vmatmul.mubr.msk.bf16.vlgmr.msra.gmra.mrb[0].mxu1 %vm234_vm0, %v2449_v33  ;;  %v1850_v33 = vunpack.c.h.bf16 %v2547_v1 }
 0x498   : > { %2278 = vmatpush3.bf16.msra.mxu1 %v1325_v32  ;;  %2281 = vmatprep.mubr.msk.bf16.mxu1 %vm234_vm0, %v2450_v34  ;;  %v1849_v32 = vunpack.c.l.bf16 %v2547_v1 }
 0x499   : > { %2279 = vmatprep.subr.bf16.mxu1 %v1327_v35 }
 0x49a   : > { %v2414_v34 = vpack.i.bf16 %v1850_v33, %v1849_v32 }
 0x49c   : > { %2280 = vmatpush3.bf16.msra.mxu1 %v1327_v35  ;;  %v1851_v35 = vunpack.c.l.bf16 %v2549_v2 }
 0x49d   : > { %2285 = vmatprep.subr.bf16.mxu1 %v1405_v37 }
 0x4a3   : > { %2282 = vmatmul.mubr.msk.bf16.vlgmr.msra.gmra.mrb[0].mxu1 %vm234_vm0, %v2451_v38 }
 0x4a4   : > { %2286 = vmatpush3.bf16.msra.mxu1 %v1405_v37  ;;  %2289 = vmatprep.mubr.msk.bf16.mxu1 %vm234_vm0, %v2452_v39  ;;  %v1852_v37 = vunpack.c.h.bf16 %v2549_v2 }
 0x4a5   : > { %2287 = vmatprep.subr.bf16.mxu1 %v1407_v40 }
 0x4a6   : > { %v2419_v38 = vpack.i.bf16 %v1852_v37, %v1851_v35 }
 0x4a8   : > { %2288 = vmatpush3.bf16.msra.mxu1 %v1407_v40 }
 0x4a9   : > { %2293 = vmatprep.subr.bf16.mxu1 %v1485_v41 }
 0x4af   : > { %2290 = vmatmul.mubr.msk.bf16.vlgmr.msra.gmra.mrb[0].mxu1 %vm234_vm0, %v2453_v42 }
 0x4b0   : > { %2294 = vmatpush3.bf16.msra.mxu1 %v1485_v41  ;;  %2297 = vmatprep.mubr.msk.bf16.mxu1 %vm234_vm0, %v2454_v43 }
 0x4b1   : > { %2295 = vmatprep.subr.bf16.mxu1 %v1487_v45 }
 0x4b4   : > { %2296 = vmatpush3.bf16.msra.mxu1 %v1487_v45 }
 0x4b5   : > { %2301 = vmatprep.subr.bf16.mxu1 %v1565_v47 }
 0x4bb   : > { %2298 = vmatmul.mubr.msk.bf16.vlgmr.msra.gmra.mrb[0].mxu1 %vm234_vm0, %v2455_v48 }
 0x4bc   : > { %2302 = vmatpush3.bf16.msra.mxu1 %v1565_v47  ;;  %2305 = vmatprep.mubr.msk.bf16.mxu1 %vm234_vm0, %v2456_v49 }
 0x4bd   : > { %2303 = vmatprep.subr.bf16.mxu1 %v1567_v50 }
 0x4c0   : > { %2304 = vmatpush3.bf16.msra.mxu1 %v1567_v50 }
 0x4c1   : > { %2309 = vmatprep.subr.bf16.mxu1 %v1645_v51 }
 0x4c7   : > { %2306 = vmatmul.mubr.msk.bf16.vlgmr.msra.gmra.mrb[0].mxu1 %vm234_vm0, %v2457_v52 }
 0x4c8   : > { %2310 = vmatpush3.bf16.msra.mxu1 %v1645_v51  ;;  %2313 = vmatprep.mubr.msk.bf16.mxu1 %vm234_vm0, %v2458_v53 }
 0x4c9   : > { %2311 = vmatprep.subr.bf16.mxu1 %v1647_v54 }
 0x4cc   : > { %2312 = vmatpush3.bf16.msra.mxu1 %v1647_v54 }
 0x4cd   : > { %2317 = vmatprep.subr.bf16.mxu1 %v1725_v55 }
 0x4d3   : > { %2314 = vmatmul.mubr.msk.bf16.vlgmr.msra.gmra.mrb[0].mxu1 %vm234_vm0, %v2459_v56 }
 0x4d4   : > { %2318 = vmatpush3.bf16.msra.mxu1 %v1725_v55  ;;  %2321 = vmatprep.mubr.msk.bf16.mxu1 %vm234_vm0, %v2460_v57 }
 0x4d5   : > { %2319 = vmatprep.subr.bf16.mxu1 %v1727_v58 }
 0x4d8   : > { %2320 = vmatpush3.bf16.msra.mxu1 %v1727_v58 }
 0x4df   : > { %2322 = vmatmul.mubr.msk.bf16.vlgmr.msra.gmra.mrb[0].mxu1 %vm234_vm0, %v2461_v59  ;;  %vm1889_vm0 = vcmask 191488  }
 0x5b2   : > { %v2323_v60 = vpop.f32.mrb[0].mxu1 }
 0x5b3   : > { %v1770_v61 = vpop.f32.mrb[1].mxu1  ;;  %v1791_v44 = vmul.f32 %v2323_v60, %v2663_v46 }
 0x5b4   : > { %v1789_v62 = vmul.f32 %v2663_v46, %v1770_v61  ;;  %v2324_v36 = vpop.f32.mrb[2].mxu1 }
 0x5b5   : > { %v1773_v63 = vpop.f32.mrb[3].mxu1  ;;  %v1792_v5 = vmul.f32 %v2324_v36, %v2663_v46  ;;  %v1799_v6 = vsel %vm921_vm5, %v1791_v44, 0.0 }
 0x5b6   : > { %v1790_v0 = vmul.f32 %v2663_v46, %v1773_v63  ;;  %v1793_v3 = vsel %vm921_vm5, %v1789_v62, 0.0 }
 0x5b7   : > { %1794 = vadd.xlane.f32.xlu0 %v1793_v3  ;;  %v1802_v7 = vsel %vm921_vm5, %v1792_v5, 0.0 }
 0x5b8   : > { %v1796_v4 = vsel %vm921_vm5, %v1790_v0, 0.0 }
 0x5b9   : > { %1797 = vadd.xlane.f32.xlu1 %v1796_v4 }
 0x5bb   : > { %1800 = vadd.xlane.f32.xlu0 %v1799_v6 }
 0x5bf   : > { %1803 = vadd.xlane.f32.xlu0 %v1802_v7 }
 0x644   : > { %v1795_v8 = vpop.xlane.xlu0 %1794 }
 0x645   : > { %v1805_v9 = vmul.f32 0.0625, %v1795_v8 }
 0x646   : > { %v1798_v10 = vpop.xlane.xlu1 %1797 }
 0x647   : > { %v1809_v12 = vsub.f32 %v1770_v61, %v1805_v9  ;;  %v1806_v13 = vmul.f32 0.0625, %v1798_v10 }
 0x648   : > { %v1801_v11 = vpop.xlane.xlu0 %1800 }
 0x649   : > { %v1807_v14 = vmul.f32 0.0625, %v1801_v11  ;;  %v1810_v17 = vsub.f32 %v1773_v63, %v1806_v13  ;;  %v1813_v20 = vmul.f32 %v1809_v12, %v1809_v12 }
 0x64b   : > { %v1811_v15 = vsub.f32 %v2323_v60, %v1807_v14  ;;  %v1817_v25 = vmul.f32 %v2663_v46, %v1813_v20  ;;  %v1814_v26 = vmul.f32 %v1810_v17, %v1810_v17 }
 0x64c   : > { %v1804_v16 = vpop.xlane.xlu0 %1803 }
 0x64d   : > { %v1808_v18 = vmul.f32 0.0625, %v1804_v16  ;;  %v1815_v19 = vmul.f32 %v1811_v15, %v1811_v15  ;;  %v1821_v29 = vsel %vm921_vm5, %v1817_v25, 0.0  ;;  %v1818_v30 = vmul.f32 %v2663_v46, %v1814_v26 }
 0x64f   : > { %v1812_v21 = vsub.f32 %v2324_v36, %v1808_v18  ;;  %v1819_v22 = vmul.f32 %v2663_v46, %v1815_v19  ;;  %v1824_v31 = vsel %vm921_vm5, %v1818_v30, 0.0 }
 0x651   : > { %v1827_v23 = vsel %vm921_vm5, %v1819_v22, 0.0  ;;  %v1816_v24 = vmul.f32 %v1812_v21, %v1812_v21 }
 0x652   : > { %1828 = vadd.xlane.f32.xlu1 %v1827_v23 }
 0x653   : > { %v1820_v27 = vmul.f32 %v2663_v46, %v1816_v24 }
 0x655   : > { %v1830_v28 = vsel %vm921_vm5, %v1820_v27, 0.0 }
 0x656   : > { %1831 = vadd.xlane.f32.xlu0 %v1830_v28  ;;  %1822 = vadd.xlane.f32.xlu1 %v1821_v29 }
 0x65a   : > { %1825 = vadd.xlane.f32.xlu0 %v1824_v31 }
 0x667   : > { %2415 = vrot.lane.b32.xlu1 %v2414_v34, %s2495_s23 }
 0x670   : > { %2420 = vrot.lane.b32.xlu0 %v2419_v38, %s2495_s23 }
 0x6df   : > { %v1829_v46 = vpop.xlane.xlu1 %1828 }
 0x6e0   : > { %v1835_v39 = vmul.f32 0.0625, %v1829_v46 }
 0x6e2   : > { %v1839_v40 = vadd.f32 1e-05, %v1835_v39 }
 0x6e3   : > { %v1832_v41 = vpop.xlane.xlu0 %1831  ;;  %v1823_v42 = vpop.xlane.xlu1 %1822 }
 0x6e4   : > { %2472 = vrsqrt.f32 %v1839_v40  ;;  %v1836_v43 = vmul.f32 0.0625, %v1832_v41  ;;  %v1833_v45 = vmul.f32 0.0625, %v1823_v42 }
 0x6e6   : > { %v1840_v1 = vadd.f32 1e-05, %v1836_v43  ;;  %v1837_v47 = vadd.f32 1e-05, %v1833_v45 }
 0x6e7   : > { %v1826_v48 = vpop.xlane.xlu0 %1825  ;;  %v2416_v53 = vpop.permute.xlu1 %2415 }
 0x6e8   : > { %2474 = vrsqrt.f32 %v1840_v1  ;;  %v1834_v49 = vmul.f32 0.0625, %v1826_v48 }
 0x6e9   : > { %2476 = vrsqrt.f32 %v1837_v47 }
 0x6ea   : > { %v1838_v50 = vadd.f32 1e-05, %v1834_v49 }
 0x6eb   : > { %v2421_v2 = vpop.permute.xlu0 %2420 }
 0x6ec   : > { %2478 = vrsqrt.f32 %v1838_v50 }
 0x6ee   : > { %v2473_v51 = vpop.eup %2472 }
 0x6ef   : > { %v1847_v52 = vmul.f32 %v2473_v51, %v1811_v15 }
 0x6f1   : > { %v2480_v54 = vadd.low.f32.bf16 %v1847_v52, %v2421_v2 }
 0x6f2   : > { %v2475_v55 = vpop.eup %2474 }
 0x6f3   : > { %v2477_v56 = vpop.eup %2476  ;;  %v1848_v57 = vmul.f32 %v2475_v55, %v1812_v21  ;;  %v2107_v58 = vpack.c.bf16 %v2480_v54, %v2480_v54 }
 0x6f4   : > { %v1845_v59 = vmul.f32 %v2477_v56, %v1809_v12 }
 0x6f5   : > { %v2481_v60 = vadd.high.f32.bf16 %v1848_v57, %v2421_v2  ;;  %1892 = vst.msk [vmem:[%s170_s18 + $0x8] sm:$0xf] %vm1889_vm0, %v2107_v58 }
 0x6f6   : > { %v2479_v61 = vpop.eup %2478  ;;  %v2482_v62 = vadd.low.f32.bf16 %v1845_v59, %v2416_v53 }
 0x6f7   : > { %v2108_v36 = vpack.c.bf16 %v2481_v60, %v2481_v60  ;;  %v1846_v63 = vmul.f32 %v2479_v61, %v1810_v17 }
 0x6f8   : > { %v2105_v44 = vpack.c.bf16 %v2482_v62, %v2482_v62 }
 0x6f9   : > { %1893 = vst.msk [vmem:[%s170_s18 + $0xc] sm:$0xf] %vm1889_vm0, %v2108_v36  ;;  %v2483_v0 = vadd.high.f32.bf16 %v1846_v63, %v2416_v53 }
 0x6fa   : > { %1890 = vst.msk [vmem:[%s170_s18] sm:$0xf] %vm1889_vm0, %v2105_v44 }
 0x6fb   : > { %v2106_v3 = vpack.c.bf16 %v2483_v0, %v2483_v0 }
 0x6fd   : > { %1891 = vst.msk [vmem:[%s170_s18 + $0x4] sm:$0xf] %vm1889_vm0, %v2106_v3 }
 0x6fe PF: > { %s13_s12 = sadd.s32 1, %s2490_s12  }
 0x6ff   : > { %p10_p4 = scmp.ge.s32.totalorder %s13_s12, 4  }
 0x701   :  { %12 = sbr.rel (!%p10_p4) target bundleno = 1 (0x1), region = 78 }

// kernel: resnet9_forward.28
= control target key start
LH: loop header
LB: loop body
LE: loop exit
PB: predicated region body
PF: predicated region fallthrough
CT: control target
= control target key end

     0   :  { %s757_s9 = smov 0   ;;  %s822_s0 = inlined_call_operand.vmem [shape: bf16[2,16,90], index: 0, kind: input, shape index: {}]   ;;  %s823_s1 = inlined_call_operand.vmem [shape: bf16[4,32,16], index: 1, kind: input, shape index: {}]   ;;  %s824_s2 = inlined_call_operand.vmem [shape: bf16[2,32,72], index: 2, kind: output, shape index: {}]  }
   0x1 LB: > { %s606_s10 = sadd.s32 4294967295, %s736_s9   ;;  %p610_p0 = scmp.ge.s32.totalorder %s736_s9, 1  ;;  %s736_s9 = sphi %s757_s9, %s12_s9  }
   0x2   : > { %p112_p1 = scmp.lt.s32.totalorder %s736_s9, 3 }
   0x4   : > { %p113_p2 = pnand %p610_p0, %p112_p1 }
   0x5   : > { %p134_p3 = scmp.lt.s32.totalorder (!%p113_p2), %s606_s10, 1  ;;  %v720_v0 = vld [vmem:[%s823_s1 + $0x10] sm:$0xff] (!%p113_p2)   ;;  %vm174_vm0 = vcmask (!%p113_p2), 130048   ;;  %v722_v1 = vld [vmem:[%s823_s1 + $0x20] sm:$0xff] (!%p113_p2)   ;;  %s738_s19 = smov (!%p113_p2), 127   ;;  %v721_v4 = vld [vmem:[%s823_s1 + $0x18] sm:$0xff] (!%p113_p2)   ;;  %v450_v12 = vlaneseq (!%p113_p2) }
   0x6   : > { %116 = sbr.rel (%p113_p2) target bundleno = 704 (0x2c0), region = 28  ;;  %671 = vmatprep.mubr.msk.bf16.mxu1 (!%p113_p2), %vm174_vm0, %v720_v0  ;;  %683 = vmatprep.mubr.msk.bf16.mxu0 (!%p113_p2), %vm174_vm0, %v722_v1  ;;  %s739_s20 = smov (!%p113_p2), 118   ;;  %v724_v5 = vld [vmem:[%s823_s1] sm:$0xff] (!%p113_p2)   ;;  %v723_v8 = vld [vmem:[%s823_s1 + $0x28] sm:$0xff] (!%p113_p2)   ;;  %v726_v9 = vld [vmem:[%s823_s1 + $0x30] sm:$0xff] (!%p113_p2)   ;;  %v741_v28 = vmov (!%p113_p2), 0.0  }
   0x7   : > { %s740_s21 = smov (!%p113_p2), 119   ;;  %v725_v10 = vld [vmem:[%s823_s1 + $0x8] sm:$0xff] (!%p113_p2)   ;;  %v727_v11 = vld [vmem:[%s823_s1 + $0x38] sm:$0xff] (!%p113_p2)   ;;  %v451_v13 = vand.u32 (!%p113_p2), 127, %v450_v12  ;;  %vm475_vm5 = vcmask (!%p113_p2), 588800   ;;  %vm546_vm6 = vcmask (!%p113_p2), 584704  }
   0x9   : > { %v803_v14 = vmul.u32.u64.low (!%p113_p2), 3817748708, %v451_v13  ;;  %v804_v15 = vmul.u32.u64.high 3817748708, %v451_v13, %v803_v14 }
   0xb   : > { %v458_v16 = vshrl.u32 (!%p113_p2), %v804_v15, 3 }
   0xd   : > { %s826_s10 = smov (!%p134_p3, %s606_s10), 1  ;;  %v459_v17 = vmul.u32 9, %v458_v16 }
   0xe   : > { %s651_s15 = sshll.u32 %s826_s10, 3  ;;  %s652_s6 = sshll.u32 %s826_s10, 4 }
   0xf   : > { %s138_s18 = scalar_lea.vmem %s822_s0, %s651_s15  ;;  %v460_v18 = vsub.s32 %v451_v13, %v459_v17  ;;  %s143_s11 = scalar_lea.vmem %s824_s2, %s652_s6 }
  0x10   : > { %v719_v2 = vld [vmem:[%s138_s18] sm:$0xff]  }
  0x11   : > { %171 = vrot.lane.b32.xlu0 %v719_v2, %s738_s19  ;;  %388 = vrot.lane.b32.xlu1 %v719_v2, %s739_s20  ;;  %vm463_vm1 = vcmp.ne.s32.totalorder %v460_v18, 0  ;;  %vm464_vm2 = vcmp.lt.s32.totalorder %v460_v18, 0  ;;  %v466_v19 = vadd.s32 9, %v460_v18 }
  0x12   : > { %vm465_vm3 = vmand %vm464_vm2, %vm463_vm1 }
  0x13   : > { %v467_v20 = vsel %vm465_vm3, %v466_v19, %v460_v18 }
  0x14   : > { %vm468_vm4 = vcmp.lt.s32.totalorder %v467_v20, 8 }
  0x15   : > { %311 = vrot.lane.b32.xlu0 %v719_v2, %s740_s21  ;;  %v644_v29 = vsel %vm468_vm4, 1.0, %v741_v28 }
  0x83   : > { %v172_v3 = vpop.permute.xlu0 %171  ;;  %v389_v7 = vpop.permute.xlu1 %388 }
  0x84   : > { %669 = vmatprep.subr.bf16.mxu1 %v172_v3 }
  0x85   : > { %670 = vmatpush3.bf16.msra.mxu1 %v172_v3 }
  0x86   : > { %675 = vmatprep.subr.bf16.mxu1 %v719_v2 }
  0x87   : > { %v312_v6 = vpop.permute.xlu0 %311 }
  0x88   : > { %672 = vmatmul.mubr.msk.bf16.vlgmr.msra.gmra.mrb[0].mxu1 %vm174_vm0, %v721_v4  ;;  %681 = vmatprep.subr.bf16.mxu0 %v312_v6 }
  0x89   : > { %682 = vmatpush3.bf16.msra.mxu0 %v312_v6  ;;  %676 = vmatpush3.bf16.msra.mxu1 %v719_v2 }
  0x8a   : > { %687 = vmatprep.subr.bf16.mxu0 %v389_v7  ;;  %677 = vmatprep.mubr.msk.bf16.mxu1 %vm174_vm0, %v724_v5 }
  0x8c   : > { %684 = vmatmul.mubr.msk.bf16.vlgmr.msra.gmra.mrb[0].mxu0 %vm174_vm0, %v723_v8 }
  0x8d   : > { %688 = vmatpush3.bf16.msra.mxu0 %v389_v7  ;;  %689 = vmatprep.mubr.msk.bf16.mxu0 %vm174_vm0, %v726_v9 }
  0x94   : > { %678 = vmatmul.mubr.msk.bf16.vlgmr.msra.gmra.mrb[0].mxu1 %vm174_vm0, %v725_v10 }
  0x98   : > { %690 = vmatmul.mubr.msk.bf16.vlgmr.msra.gmra.mrb[0].mxu0 %vm174_vm0, %v727_v11 }
 0x167   : > { %v679_v21 = vpop.f32.mrb[0].mxu1 }
 0x168   : > { %v281_v22 = vpop.f32.mrb[1].mxu1 }
 0x169   : > { %v680_v23 = vpop.f32.mrb[2].mxu1 }
 0x16a   : > { %v284_v24 = vpop.f32.mrb[3].mxu1 }
 0x16b   : > { %v691_v25 = vpop.f32.mrb[0].mxu0 }
 0x16c   : > { %v693_v26 = vadd.f32 %v691_v25, %v679_v21  ;;  %v431_v27 = vpop.f32.mrb[1].mxu0 }
 0x16d   : > { %v694_v30 = vadd.f32 %v431_v27, %v281_v22  ;;  %v692_v31 = vpop.f32.mrb[2].mxu0 }
 0x16e   : > { %v695_v32 = vadd.f32 %v692_v31, %v680_v23  ;;  %v434_v33 = vpop.f32.mrb[3].mxu0  ;;  %v473_v40 = vmul.f32 %v693_v26, %v644_v29 }
 0x16f   : > { %v696_v34 = vadd.f32 %v434_v33, %v284_v24  ;;  %v471_v35 = vmul.f32 %v694_v30, %v644_v29 }
 0x170   : > { %v474_v38 = vmul.f32 %v695_v32, %v644_v29  ;;  %v482_v42 = vsel %vm475_vm5, %v473_v40, 0.0 }
 0x171   : > { %v476_v36 = vsel %vm475_vm5, %v471_v35, 0.0  ;;  %v472_v37 = vmul.f32 %v696_v34, %v644_v29 }
 0x172   : > { %477 = vadd.xlane.f32.xlu1 %v476_v36  ;;  %v485_v41 = vsel %vm475_vm5, %v474_v38, 0.0 }
 0x173   : > { %v479_v39 = vsel %vm475_vm5, %v472_v37, 0.0 }
 0x174   : > { %480 = vadd.xlane.f32.xlu0 %v479_v39 }
 0x176   : > { %486 = vadd.xlane.f32.xlu1 %v485_v41 }
 0x178   : > { %483 = vadd.xlane.f32.xlu0 %v482_v42 }
 0x1ff   : > { %v478_v43 = vpop.xlane.xlu1 %477 }
 0x201   : > { %v481_v44 = vpop.xlane.xlu0 %480 }
 0x202   : > { %v488_v45 = vadd.f32 %v481_v44, %v478_v43 }
 0x203   : > { %v487_v48 = vpop.xlane.xlu1 %486 }
 0x205   : > { %v484_v46 = vpop.xlane.xlu0 %483 }
 0x206   : > { %v489_v47 = vadd.f32 %v488_v45, %v484_v46 }
 0x208   : > { %v490_v49 = vadd.f32 %v489_v47, %v487_v48 }
 0x20a   : > { %v491_v50 = vmul.f32 0.00390625, %v490_v49 }
 0x20c   : > { %v493_v51 = vsub.f32 %v696_v34, %v491_v50  ;;  %v492_v52 = vsub.f32 %v694_v30, %v491_v50  ;;  %v495_v53 = vsub.f32 %v695_v32, %v491_v50  ;;  %v494_v54 = vsub.f32 %v693_v26, %v491_v50 }
 0x20e   : > { %v497_v55 = vmul.f32 %v493_v51, %v493_v51  ;;  %v496_v56 = vmul.f32 %v492_v52, %v492_v52  ;;  %v499_v57 = vmul.f32 %v495_v53, %v495_v53  ;;  %v498_v58 = vmul.f32 %v494_v54, %v494_v54 }
 0x210   : > { %v501_v59 = vmul.f32 %v644_v29, %v497_v55  ;;  %v500_v60 = vmul.f32 %v644_v29, %v496_v56  ;;  %v503_v63 = vmul.f32 %v644_v29, %v499_v57  ;;  %v502_v0 = vmul.f32 %v644_v29, %v498_v58 }
 0x212   : > { %v507_v61 = vsel %vm475_vm5, %v501_v59, 0.0  ;;  %v504_v62 = vsel %vm475_vm5, %v500_v60, 0.0  ;;  %v513_v1 = vsel %vm475_vm5, %v503_v63, 0.0  ;;  %v510_v2 = vsel %vm475_vm5, %v502_v0, 0.0 }
 0x213   : > { %508 = vadd.xlane.f32.xlu1 %v507_v61  ;;  %505 = vadd.xlane.f32.xlu0 %v504_v62 }
 0x217   : > { %514 = vadd.xlane.f32.xlu1 %v513_v1  ;;  %511 = vadd.xlane.f32.xlu0 %v510_v2 }
 0x2a0   : > { %v509_v3 = vpop.xlane.xlu1 %508  ;;  %v506_v4 = vpop.xlane.xlu0 %505 }
 0x2a1   : > { %v516_v5 = vadd.f32 %v509_v3, %v506_v4 }
 0x2a4   : > { %v512_v6 = vpop.xlane.xlu0 %511  ;;  %v515_v8 = vpop.xlane.xlu1 %514 }
 0x2a5   : > { %v517_v7 = vadd.f32 %v516_v5, %v512_v6 }
 0x2a7   : > { %v518_v9 = vadd.f32 %v517_v7, %v515_v8 }
 0x2a9   : > { %v519_v10 = vmul.f32 0.00390625, %v518_v9 }
 0x2ab   : > { %v520_v11 = vadd.f32 1e-05, %v519_v10 }
 0x2ad   : > { %728 = vrsqrt.f32 %v520_v11 }
 0x2b7   : > { %v729_v12 = vpop.eup %728 }
 0x2b8   : > { %v522_v13 = vmul.f32 %v729_v12, %v492_v52  ;;  %v523_v14 = vmul.f32 %v729_v12, %v493_v51  ;;  %v524_v15 = vmul.f32 %v729_v12, %v494_v54  ;;  %v525_v16 = vmul.f32 %v729_v12, %v495_v53 }
 0x2ba   : > { %v526_v17 = vmax.f32 %v522_v13, 0.0  ;;  %v527_v18 = vmax.f32 %v523_v14, 0.0  ;;  %v528_v19 = vmax.f32 %v524_v15, 0.0  ;;  %v529_v20 = vmax.f32 %v525_v16, 0.0 }
 0x2bc   : > { %v653_v21 = vpack.c.bf16 %v526_v17, %v526_v17  ;;  %v654_v22 = vpack.c.bf16 %v527_v18, %v527_v18  ;;  %v655_v23 = vpack.c.bf16 %v528_v19, %v528_v19  ;;  %v656_v24 = vpack.c.bf16 %v529_v20, %v529_v20 }
 0x2be   : > { %547 = vst.msk [vmem:[%s143_s11] sm:$0xf] %vm546_vm6, %v653_v21  ;;  %548 = vst.msk [vmem:[%s143_s11 + $0x4] sm:$0xf] %vm546_vm6, %v654_v22 }
 0x2bf   : > { %549 = vst.msk [vmem:[%s143_s11 + $0x8] sm:$0xf] %vm546_vm6, %v655_v23  ;;  %550 = vst.msk [vmem:[%s143_s11 + $0xc] sm:$0xf] %vm546_vm6, %v656_v24 }
 0x2c0 PF: > { %s12_s9 = sadd.s32 1, %s736_s9  }
 0x2c1   : > { %p9_p4 = scmp.ge.s32.totalorder %s12_s9, 4  }
 0x2c3   :  { %11 = sbr.rel (!%p9_p4) target bundleno = 1 (0x1), region = 61 }

// kernel: resnet9_forward.29
= control target key start
LH: loop header
LB: loop body
LE: loop exit
PB: predicated region body
PF: predicated region fallthrough
CT: control target
= control target key end

     0   :  { %s6670_s9 = smov 0   ;;  %s7631_s0 = inlined_call_operand.vmem [shape: bf16[2,9,506], index: 0, kind: input, shape index: {}]   ;;  %s7632_s1 = inlined_call_operand.vmem [shape: bf16[49,3,9], index: 1, kind: input, shape index: {}]   ;;  %s7633_s2 = inlined_call_operand.vmem [shape: f32[2,3,352], index: 2, kind: output, shape index: {}]  }
   0x1 LB: > { %s5577_s10 = sadd.s32 4294967295, %s6604_s9   ;;  %p5581_p0 = scmp.ge.s32.totalorder %s6604_s9, 1  ;;  %s6604_s9 = sphi %s6670_s9, %s12_s9  }
   0x2   : > { %p112_p1 = scmp.lt.s32.totalorder %s6604_s9, 3 }
   0x4   : > { %p113_p2 = pnand %p5581_p0, %p112_p1 }
   0x5   : > { %p134_p3 = scmp.lt.s32.totalorder (!%p113_p2), %s5577_s10, 1  ;;  %v6606_v0 = vmov (!%p113_p2), 0.0   ;;  %vm6607_vm0 = vmmov (!%p113_p2), 0   ;;  %v6608_v3 = vmov (!%p113_p2), 0   ;;  %s6609_s15 = smov (!%p113_p2), 127   ;;  %vm178_vm1 = vcmask (!%p113_p2), 1043456  }
   0x6   : > { %116 = sbr.rel (%p113_p2) target bundleno = 948 (0x3b4), region = 28  ;;  %5842 = vmatprep.subr.bf16.mxu1 (!%p113_p2), %v6606_v0  ;;  %5844 = vmatprep.mubr.msk.bf16.mxu1 (!%p113_p2), %vm6607_vm0, %v6606_v0  ;;  %s6610_s16 = smov (!%p113_p2), 126   ;;  %vm171_vm2 = vcmask (!%p113_p2), 1039360   ;;  %vm179_vm3 = vcmask (!%p113_p2), 1044480   ;;  %v6627_v14 = vmov (!%p113_p2), 65535   ;;  %vm373_vm4 = vcmask (!%p113_p2), 1031168  }
   0x7   : > { %223 = vmatprep.mubr.bf16.mxu0 (!%p113_p2), %v6608_v3  ;;  %s6611_s17 = smov (!%p113_p2), 125   ;;  %s6612_s18 = smov (!%p113_p2), 124   ;;  %v180_v15 = vsel (!%p113_p2), %vm178_vm1, 4294967295, %v6627_v14  ;;  %v5585_v25 = vld [vmem:[%s7632_s1 + $0x2] sm:$0x3] (!%p113_p2)  ;;  %vm174_vm5 = vcmask (!%p113_p2), 72704  }
   0x8   : > { %s6613_s19 = smov (!%p113_p2), 123   ;;  %s6614_s20 = smov (!%p113_p2), 122   ;;  %v6780_v18 = vsel (!%p113_p2), %vm179_vm3, %v180_v15, 0  ;;  %vm480_vm6 = vcmask (!%p113_p2), 1022976   ;;  %v149_v36 = vld [vmem:[%s7632_s1] sm:$0x3] (!%p113_p2) }
   0x9   : > { %s6615_s21 = smov (!%p113_p2), 106   ;;  %s6616_s22 = smov (!%p113_p2), 105   ;;  %vm587_vm7 = vcmask (!%p113_p2), 1014784   ;;  %v5593_v45 = vld [vmem:[%s7632_s1 + $0x4] sm:$0x3] (!%p113_p2)  ;;  %vm694_vm8 = vcmask (!%p113_p2), 1006592  }
   0xa   : > { %s6617_s23 = smov (!%p113_p2), 104   ;;  %s6618_s24 = smov (!%p113_p2), 103   ;;  %v5596_v54 = vld [vmem:[%s7632_s1 + $0x6] sm:$0x3] (!%p113_p2)  ;;  %vm801_vm9 = vcmask (!%p113_p2), 998400   ;;  %vm908_vm10 = vcmask (!%p113_p2), 867328  }
   0xb   : > { %s6619_s25 = smov (!%p113_p2), 102   ;;  %s6620_s26 = smov (!%p113_p2), 101   ;;  %v5599_v63 = vld [vmem:[%s7632_s1 + $0x8] sm:$0x3] (!%p113_p2)  ;;  %v5602_v14 = vld [vmem:[%s7632_s1 + $0xa] sm:$0x3] (!%p113_p2) }
   0xc   : > { %s6621_s27 = smov (!%p113_p2), 100   ;;  %s6622_s28 = smov (!%p113_p2), 84   ;;  %vm1015_vm11 = vcmask (!%p113_p2), 859136   ;;  %vm1122_vm12 = vcmask (!%p113_p2), 850944   ;;  %vm1229_vm13 = vcmask (!%p113_p2), 842752   ;;  %vm1336_vm14 = vcmask (!%p113_p2), 834560  }
   0xd   : > { %s7635_s10 = smov (!%p134_p3, %s5577_s10), 1  ;;  %s6623_s29 = smov 83   ;;  %vm1443_vm15 = vcmask 826368   ;;  %vm1550_vm1 = vcmask 818176   ;;  %vm1789_vm3 = vcmask 678912  }
   0xe   : > { %s5743_s11 = sshll.u32 %s7635_s10, 5  ;;  %s6624_s30 = smov 82  }
   0xf   : > { %s6687_s14 = scalar_lea.vmem %s7631_s0, %s5743_s11  ;;  %s6625_s3 = smov 81  }
  0x10   : > { %v145_v1 = vld [vmem:[%s6687_s14] sm:$0xff]  ;;  %v147_v2 = vld [vmem:[%s6687_s14 + $0x10] sm:$0x11]  ;;  %v6699_v6 = vld [vmem:[%s6687_s14 + $0x8] ss:$16 sps:$4 sm:$0x1f]  }
  0x11   : > { %v6692_v4 = vcombine.high %v145_v1, %v147_v2  ;;  %v6694_v5 = vcombine.low %v145_v1, %v147_v2  ;;  %v1651_v7 = vld [vmem:[%s6687_s14 + $0x10] sm:$0x11]  ;;  %v6752_v10 = vld [vmem:[%s6687_s14 + $0x8] ss:$16 sps:$4 sm:$0x1f]   ;;  %s6626_s4 = smov 80   ;;  %v282_v26 = vand.u32 %v6699_v6, %v6780_v18 }
  0x12   : > { %v6745_v8 = vcombine.high %v145_v1, %v1651_v7  ;;  %v6749_v9 = vcombine.low %v145_v1, %v1651_v7  ;;  %v6757_v11 = vld [vmem:[%s6687_s14 + $0xc] ss:$16 sps:$4 sm:$0x1f]   ;;  %s6628_s5 = smov 79   ;;  %s6629_s8 = smov 78  }
  0x13   : > { %167 = vrot.lane.b32.xlu0 %v6692_v4, %s6609_s15  ;;  %165 = vrot.lane.b32.xlu1 %v6694_v5, %s6609_s15  ;;  %v279_v22 = vand.u32 %v6692_v4, %v6780_v18  ;;  %v276_v28 = vand.u32 %v6694_v5, %v6780_v18  ;;  %s6630_s13 = smov 62   ;;  %s6638_s11 = smov 39  }
  0x14   : > { %s6645_s6 = smov 17   ;;  %s6652_s7 = smov 120  }
  0x15   : > { %s6653_s12 = smov 119  }
  0x17   : > { %169 = vrot.lane.b32.xlu0 %v6699_v6, %s6609_s15  ;;  %369 = vrot.lane.b32.xlu1 %v6692_v4, %s6610_s16  ;;  %s6639_s15 = smov 38  }
  0x1b   : > { %371 = vrot.lane.b32.xlu0 %v6699_v6, %s6610_s16  ;;  %367 = vrot.lane.b32.xlu1 %v6694_v5, %s6610_s16  ;;  %s6654_s16 = smov 118  }
  0x1f   : > { %476 = vrot.lane.b32.xlu0 %v6692_v4, %s6611_s17  ;;  %478 = vrot.lane.b32.xlu1 %v6699_v6, %s6611_s17 }
  0x23   : > { %474 = vrot.lane.b32.xlu0 %v6694_v5, %s6611_s17  ;;  %583 = vrot.lane.b32.xlu1 %v6692_v4, %s6612_s18  ;;  %s6631_s17 = smov 61  }
  0x27   : > { %585 = vrot.lane.b32.xlu0 %v6699_v6, %s6612_s18  ;;  %581 = vrot.lane.b32.xlu1 %v6694_v5, %s6612_s18 }
  0x2b   : > { %690 = vrot.lane.b32.xlu0 %v6692_v4, %s6613_s19  ;;  %692 = vrot.lane.b32.xlu1 %v6699_v6, %s6613_s19 }
  0x2f   : > { %688 = vrot.lane.b32.xlu0 %v6694_v5, %s6613_s19  ;;  %797 = vrot.lane.b32.xlu1 %v6692_v4, %s6614_s20 }
  0x33   : > { %799 = vrot.lane.b32.xlu0 %v6699_v6, %s6614_s20  ;;  %795 = vrot.lane.b32.xlu1 %v6694_v5, %s6614_s20 }
  0x37   : > { %904 = vrot.lane.b32.xlu0 %v6692_v4, %s6615_s21  ;;  %906 = vrot.lane.b32.xlu1 %v6699_v6, %s6615_s21 }
  0x3b   : > { %902 = vrot.lane.b32.xlu0 %v6694_v5, %s6615_s21  ;;  %1011 = vrot.lane.b32.xlu1 %v6692_v4, %s6616_s22  ;;  %s6640_s21 = smov 37  }
  0x3f   : > { %1013 = vrot.lane.b32.xlu0 %v6699_v6, %s6616_s22  ;;  %1009 = vrot.lane.b32.xlu1 %v6694_v5, %s6616_s22 }
  0x43   : > { %1118 = vrot.lane.b32.xlu0 %v6692_v4, %s6617_s23  ;;  %1120 = vrot.lane.b32.xlu1 %v6699_v6, %s6617_s23 }
  0x47   : > { %1116 = vrot.lane.b32.xlu0 %v6694_v5, %s6617_s23  ;;  %1225 = vrot.lane.b32.xlu1 %v6692_v4, %s6618_s24  ;;  %s6632_s23 = smov 60  }
  0x4b   : > { %1227 = vrot.lane.b32.xlu0 %v6699_v6, %s6618_s24  ;;  %1223 = vrot.lane.b32.xlu1 %v6694_v5, %s6618_s24  ;;  %s6633_s24 = smov 59  }
  0x4f   : > { %1332 = vrot.lane.b32.xlu0 %v6692_v4, %s6619_s25  ;;  %1334 = vrot.lane.b32.xlu1 %v6699_v6, %s6619_s25 }
  0x53   : > { %1330 = vrot.lane.b32.xlu0 %v6694_v5, %s6619_s25  ;;  %1439 = vrot.lane.b32.xlu1 %v6692_v4, %s6620_s26 }
  0x57   : > { %1441 = vrot.lane.b32.xlu0 %v6699_v6, %s6620_s26  ;;  %1437 = vrot.lane.b32.xlu1 %v6694_v5, %s6620_s26 }
  0x5b   : > { %1546 = vrot.lane.b32.xlu0 %v6692_v4, %s6621_s27  ;;  %1548 = vrot.lane.b32.xlu1 %v6699_v6, %s6621_s27 }
  0x5f   : > { %1544 = vrot.lane.b32.xlu0 %v6694_v5, %s6621_s27  ;;  %1673 = vrot.lane.b32.xlu1 %v6745_v8, %s6622_s28  ;;  %s6634_s27 = smov 58  }
  0x63   : > { %1675 = vrot.lane.b32.xlu0 %v6752_v10, %s6622_s28  ;;  %1671 = vrot.lane.b32.xlu1 %v6749_v9, %s6622_s28 }
  0x67   : > { %1677 = vrot.lane.b32.xlu0 %v6757_v11, %s6622_s28  ;;  %1783 = vrot.lane.b32.xlu1 %v6745_v8, %s6623_s29  ;;  %s6643_s28 = smov 34  }
  0x6b   : > { %1785 = vrot.lane.b32.xlu0 %v6752_v10, %s6623_s29  ;;  %1781 = vrot.lane.b32.xlu1 %v6749_v9, %s6623_s29 }
  0x6f   : > { %1787 = vrot.lane.b32.xlu0 %v6757_v11, %s6623_s29  ;;  %1893 = vrot.lane.b32.xlu1 %v6745_v8, %s6624_s30 }
  0x73   : > { %1895 = vrot.lane.b32.xlu0 %v6752_v10, %s6624_s30  ;;  %1891 = vrot.lane.b32.xlu1 %v6749_v9, %s6624_s30 }
  0x77   : > { %1897 = vrot.lane.b32.xlu0 %v6757_v11, %s6624_s30  ;;  %2003 = vrot.lane.b32.xlu1 %v6745_v8, %s6625_s3  ;;  %s6635_s30 = smov 57  }
  0x7b   : > { %2005 = vrot.lane.b32.xlu0 %v6752_v10, %s6625_s3  ;;  %2001 = vrot.lane.b32.xlu1 %v6749_v9, %s6625_s3 }
  0x7f   : > { %2007 = vrot.lane.b32.xlu0 %v6757_v11, %s6625_s3  ;;  %2113 = vrot.lane.b32.xlu1 %v6745_v8, %s6626_s4  ;;  %s6644_s3 = smov 18  }
  0x83   : > { %2115 = vrot.lane.b32.xlu0 %v6752_v10, %s6626_s4  ;;  %2111 = vrot.lane.b32.xlu1 %v6749_v9, %s6626_s4 }
  0x85   : > { %v168_v12 = vpop.permute.xlu0 %167  ;;  %v166_v13 = vpop.permute.xlu1 %165 }
  0x86   : > { %v172_v16 = vsel %vm171_vm2, %v166_v13, %v168_v12 }
  0x87   : > { %2117 = vrot.lane.b32.xlu0 %v6757_v11, %s6626_s4  ;;  %2223 = vrot.lane.b32.xlu1 %v6745_v8, %s6628_s5  ;;  %v183_v24 = vand.u32 %v6780_v18, %v172_v16 }
  0x89   : > { %v170_v17 = vpop.permute.xlu0 %169  ;;  %v370_v23 = vpop.permute.xlu1 %369 }
  0x8a   : > { %v189_v19 = vand.u32 %v6780_v18, %v170_v17  ;;  %v173_v20 = vsel %vm171_vm2, %v168_v12, %v170_v17  ;;  %vm1679_vm2 = vcmask 687104  }
  0x8b   : > { %v186_v21 = vand.u32 %v6780_v18, %v173_v20  ;;  %2225 = vrot.lane.b32.xlu0 %v6752_v10, %s6628_s5  ;;  %2221 = vrot.lane.b32.xlu1 %v6749_v9, %s6628_s5 }
  0x8c   : > { %5843 = vmatpush3.bf16.msra.mxu1 %v189_v19 }
  0x8d   : > { %191 = vmatprep.subr.bf16.mxu0 %v186_v21  ;;  %5848 = vmatprep.subr.bf16.mxu1 %v6606_v0  ;;  %v372_v27 = vpop.permute.xlu0 %371  ;;  %v368_v31 = vpop.permute.xlu1 %367 }
  0x8e   : > { %192 = vmatpush1.bf16.msra.mxu0 %v183_v24  ;;  %v375_v29 = vsel %vm373_vm4, %v370_v23, %v372_v27  ;;  %v374_v33 = vsel %vm373_vm4, %v368_v31, %v370_v23  ;;  %v386_v35 = vand.u32 %v372_v27, %v6780_v18  ;;  %v5605_v24 = vld [vmem:[%s7632_s1 + $0xc] sm:$0x3]  ;;  %vm1899_vm4 = vcmask 670720  }
  0x8f   : > { %5845 = vmatmul.mubr.msk.bf16.vlgmr.msra.gmra.mrb[0].mxu1 %vm174_vm5, %v5585_v25  ;;  %284 = vmatprep.subr.bf16.mxu0 %v279_v22  ;;  %v383_v30 = vand.u32 %v375_v29, %v6780_v18  ;;  %v380_v38 = vand.u32 %v374_v33, %v6780_v18  ;;  %v5608_v33 = vld [vmem:[%s7632_s1 + $0xe] sm:$0x3] }
  0x90   : > { %5849 = vmatpush3.bf16.msra.mxu1 %v282_v26  ;;  %5850 = vmatprep.mubr.msk.bf16.mxu1 %vm6607_vm0, %v6606_v0 }
  0x91   : > { %5589 = vmatmul.mubr.msk.bf16.vlgmr.msra.gmra.mrb[0].mxu0 %vm174_vm5, %v5585_v25  ;;  %5854 = vmatprep.subr.bf16.mxu1 %v6606_v0  ;;  %v479_v32 = vpop.permute.xlu1 %478  ;;  %v477_v34 = vpop.permute.xlu0 %476 }
  0x92   : > { %285 = vmatpush1.bf16.msra.mxu0 %v276_v28  ;;  %316 = vmatprep.mubr.bf16.mxu0 %v6608_v3  ;;  %v482_v37 = vsel %vm480_vm6, %v477_v34, %v479_v32  ;;  %v493_v44 = vand.u32 %v479_v32, %v6780_v18 }
  0x93   : > { %388 = vmatprep.subr.bf16.mxu0 %v383_v30  ;;  %2227 = vrot.lane.b32.xlu0 %v6757_v11, %s6628_s5  ;;  %v490_v39 = vand.u32 %v482_v37, %v6780_v18  ;;  %s6636_s5 = smov 56  }
  0x94   : > { %2333 = vrot.lane.b32.xlu1 %v6745_v8, %s6629_s8 }
  0x95   : > { %v475_v40 = vpop.permute.xlu0 %474  ;;  %v584_v43 = vpop.permute.xlu1 %583 }
  0x96   : > { %v481_v42 = vsel %vm480_vm6, %v475_v40, %v477_v34  ;;  %vm2009_vm6 = vcmask 662528  }
  0x97   : > { %2335 = vrot.lane.b32.xlu0 %v6752_v10, %s6629_s8  ;;  %v487_v47 = vand.u32 %v481_v42, %v6780_v18  ;;  %v5611_v42 = vld [vmem:[%s7632_s1 + $0x10] sm:$0x3] }
  0x98   : > { %2331 = vrot.lane.b32.xlu1 %v6749_v9, %s6629_s8 }
  0x99   : > { %v586_v41 = vpop.permute.xlu0 %585  ;;  %v582_v49 = vpop.permute.xlu1 %581 }
  0x9a   : > { %v589_v46 = vsel %vm587_vm7, %v584_v43, %v586_v41  ;;  %v588_v51 = vsel %vm587_vm7, %v582_v49, %v584_v43  ;;  %v600_v53 = vand.u32 %v586_v41, %v6780_v18 }
  0x9b   : > { %5851 = vmatmul.mubr.msk.bf16.vlgmr.msra.gmra.mrb[0].mxu1 %vm174_vm5, %v149_v36  ;;  %2337 = vrot.lane.b32.xlu0 %v6757_v11, %s6629_s8  ;;  %v597_v48 = vand.u32 %v589_v46, %v6780_v18  ;;  %v594_v56 = vand.u32 %v588_v51, %v6780_v18  ;;  %s6637_s8 = smov 40   ;;  %v5614_v51 = vld [vmem:[%s7632_s1 + $0x12] sm:$0x3] }
  0x9c   : > { %5855 = vmatpush3.bf16.msra.mxu1 %v386_v35  ;;  %5856 = vmatprep.mubr.msk.bf16.mxu1 %vm6607_vm0, %v6606_v0 }
  0x9d   : > { %5591 = vmatmul.mubr.msk.bf16.vlgmr.msra.gmra.mrb[0].mxu0 %vm174_vm5, %v149_v36  ;;  %5860 = vmatprep.subr.bf16.mxu1 %v6606_v0  ;;  %v693_v50 = vpop.permute.xlu1 %692  ;;  %v691_v52 = vpop.permute.xlu0 %690 }
  0x9e   : > { %389 = vmatpush1.bf16.msra.mxu0 %v380_v38  ;;  %420 = vmatprep.mubr.bf16.mxu0 %v6608_v3  ;;  %v696_v55 = vsel %vm694_vm8, %v691_v52, %v693_v50  ;;  %v707_v62 = vand.u32 %v693_v50, %v6780_v18 }
  0x9f   : > { %495 = vmatprep.subr.bf16.mxu0 %v490_v39  ;;  %2443 = vrot.lane.b32.xlu1 %v6745_v8, %s6630_s13  ;;  %v704_v57 = vand.u32 %v696_v55, %v6780_v18 }
  0xa0   : > { %2445 = vrot.lane.b32.xlu0 %v6752_v10, %s6630_s13 }
  0xa1   : > { %v689_v58 = vpop.permute.xlu0 %688  ;;  %v798_v61 = vpop.permute.xlu1 %797 }
  0xa2   : > { %v695_v60 = vsel %vm694_vm8, %v689_v58, %v691_v52 }
  0xa3   : > { %2441 = vrot.lane.b32.xlu1 %v6749_v9, %s6630_s13  ;;  %v701_v2 = vand.u32 %v695_v60, %v6780_v18  ;;  %v5617_v60 = vld [vmem:[%s7632_s1 + $0x14] sm:$0x3] }
  0xa4   : > { %2447 = vrot.lane.b32.xlu0 %v6757_v11, %s6630_s13 }
  0xa5   : > { %v800_v59 = vpop.permute.xlu0 %799  ;;  %v796_v5 = vpop.permute.xlu1 %795 }
  0xa6   : > { %v803_v1 = vsel %vm801_vm9, %v798_v61, %v800_v59  ;;  %v802_v7 = vsel %vm801_vm9, %v796_v5, %v798_v61  ;;  %v814_v13 = vand.u32 %v800_v59, %v6780_v18 }
  0xa7   : > { %5857 = vmatmul.mubr.msk.bf16.vlgmr.msra.gmra.mrb[0].mxu1 %vm174_vm5, %v5593_v45  ;;  %2553 = vrot.lane.b32.xlu1 %v6745_v8, %s6631_s17  ;;  %v811_v4 = vand.u32 %v803_v1, %v6780_v18  ;;  %v808_v16 = vand.u32 %v802_v7, %v6780_v18  ;;  %v5620_v7 = vld [vmem:[%s7632_s1 + $0x16] sm:$0x3] }
  0xa8   : > { %5861 = vmatpush3.bf16.msra.mxu1 %v493_v44  ;;  %5862 = vmatprep.mubr.msk.bf16.mxu1 %vm6607_vm0, %v6606_v0 }
  0xa9   : > { %5594 = vmatmul.mubr.msk.bf16.vlgmr.msra.gmra.mrb[0].mxu0 %vm174_vm5, %v5593_v45  ;;  %5866 = vmatprep.subr.bf16.mxu1 %v6606_v0  ;;  %v907_v6 = vpop.permute.xlu1 %906  ;;  %v905_v12 = vpop.permute.xlu0 %904 }
  0xaa   : > { %496 = vmatpush1.bf16.msra.mxu0 %v487_v47  ;;  %527 = vmatprep.mubr.bf16.mxu0 %v6608_v3  ;;  %v910_v15 = vsel %vm908_vm10, %v905_v12, %v907_v6  ;;  %v921_v23 = vand.u32 %v907_v6, %v6780_v18 }
  0xab   : > { %602 = vmatprep.subr.bf16.mxu0 %v597_v48  ;;  %2555 = vrot.lane.b32.xlu0 %v6752_v10, %s6631_s17  ;;  %v918_v17 = vand.u32 %v910_v15, %v6780_v18 }
  0xac   : > { %2551 = vrot.lane.b32.xlu1 %v6749_v9, %s6631_s17 }
  0xad   : > { %v903_v19 = vpop.permute.xlu0 %902  ;;  %v1012_v22 = vpop.permute.xlu1 %1011 }
  0xae   : > { %v909_v21 = vsel %vm908_vm10, %v903_v19, %v905_v12  ;;  %vm2119_vm10 = vcmask 654336  }
  0xaf   : > { %2557 = vrot.lane.b32.xlu0 %v6757_v11, %s6631_s17  ;;  %v915_v26 = vand.u32 %v909_v21, %v6780_v18  ;;  %v5623_v21 = vld [vmem:[%s7632_s1 + $0x18] sm:$0x3] }
  0xb0   : > { %2663 = vrot.lane.b32.xlu1 %v6745_v8, %s6632_s23 }
  0xb1   : > { %v1014_v20 = vpop.permute.xlu0 %1013  ;;  %v1010_v28 = vpop.permute.xlu1 %1009 }
  0xb2   : > { %v1017_v25 = vsel %vm1015_vm11, %v1012_v22, %v1014_v20  ;;  %v1016_v30 = vsel %vm1015_vm11, %v1010_v28, %v1012_v22  ;;  %v1028_v32 = vand.u32 %v1014_v20, %v6780_v18  ;;  %vm2229_vm11 = vcmask 646144  }
  0xb3   : > { %5863 = vmatmul.mubr.msk.bf16.vlgmr.msra.gmra.mrb[0].mxu1 %vm174_vm5, %v5596_v54  ;;  %2665 = vrot.lane.b32.xlu0 %v6752_v10, %s6632_s23  ;;  %v1025_v27 = vand.u32 %v1017_v25, %v6780_v18  ;;  %v1022_v35 = vand.u32 %v1016_v30, %v6780_v18 }
  0xb4   : > { %5867 = vmatpush3.bf16.msra.mxu1 %v600_v53  ;;  %5868 = vmatprep.mubr.msk.bf16.mxu1 %vm6607_vm0, %v6606_v0 }
  0xb5   : > { %5597 = vmatmul.mubr.msk.bf16.vlgmr.msra.gmra.mrb[0].mxu0 %vm174_vm5, %v5596_v54  ;;  %5872 = vmatprep.subr.bf16.mxu1 %v6606_v0  ;;  %v1121_v29 = vpop.permute.xlu1 %1120  ;;  %v1119_v31 = vpop.permute.xlu0 %1118 }
  0xb6   : > { %603 = vmatpush1.bf16.msra.mxu0 %v594_v56  ;;  %634 = vmatprep.mubr.bf16.mxu0 %v6608_v3  ;;  %v1124_v34 = vsel %vm1122_vm12, %v1119_v31, %v1121_v29  ;;  %v1135_v41 = vand.u32 %v1121_v29, %v6780_v18 }
  0xb7   : > { %709 = vmatprep.subr.bf16.mxu0 %v704_v57  ;;  %2661 = vrot.lane.b32.xlu1 %v6749_v9, %s6632_s23  ;;  %v1132_v36 = vand.u32 %v1124_v34, %v6780_v18 }
  0xb8   : > { %2667 = vrot.lane.b32.xlu0 %v6757_v11, %s6632_s23 }
  0xb9   : > { %v1117_v37 = vpop.permute.xlu0 %1116  ;;  %v1226_v40 = vpop.permute.xlu1 %1225 }
  0xba   : > { %v1123_v39 = vsel %vm1122_vm12, %v1117_v37, %v1119_v31  ;;  %vm2339_vm12 = vcmask 637952  }
  0xbb   : > { %2773 = vrot.lane.b32.xlu1 %v6745_v8, %s6633_s24  ;;  %v1129_v44 = vand.u32 %v1123_v39, %v6780_v18 }
  0xbc   : > { %2775 = vrot.lane.b32.xlu0 %v6752_v10, %s6633_s24 }
  0xbd   : > { %v1228_v38 = vpop.permute.xlu0 %1227  ;;  %v1224_v46 = vpop.permute.xlu1 %1223 }
  0xbe   : > { %v1231_v43 = vsel %vm1229_vm13, %v1226_v40, %v1228_v38  ;;  %v1230_v48 = vsel %vm1229_vm13, %v1224_v46, %v1226_v40  ;;  %v1242_v50 = vand.u32 %v1228_v38, %v6780_v18  ;;  %vm2449_vm13 = vcmask 506880  }
  0xbf   : > { %5869 = vmatmul.mubr.msk.bf16.vlgmr.msra.gmra.mrb[0].mxu1 %vm174_vm5, %v5599_v63  ;;  %2771 = vrot.lane.b32.xlu1 %v6749_v9, %s6633_s24  ;;  %v1239_v45 = vand.u32 %v1231_v43, %v6780_v18  ;;  %v1236_v53 = vand.u32 %v1230_v48, %v6780_v18  ;;  %v5629_v43 = vld [vmem:[%s7632_s1 + $0x1c] sm:$0x3] }
  0xc0   : > { %5873 = vmatpush3.bf16.msra.mxu1 %v707_v62  ;;  %5874 = vmatprep.mubr.msk.bf16.mxu1 %vm6607_vm0, %v6606_v0 }
  0xc1   : > { %5600 = vmatmul.mubr.msk.bf16.vlgmr.msra.gmra.mrb[0].mxu0 %vm174_vm5, %v5599_v63  ;;  %5878 = vmatprep.subr.bf16.mxu1 %v6606_v0  ;;  %v1335_v47 = vpop.permute.xlu1 %1334  ;;  %v1333_v49 = vpop.permute.xlu0 %1332 }
  0xc2   : > { %710 = vmatpush1.bf16.msra.mxu0 %v701_v2  ;;  %741 = vmatprep.mubr.bf16.mxu0 %v6608_v3  ;;  %v1338_v52 = vsel %vm1336_vm14, %v1333_v49, %v1335_v47  ;;  %v1349_v59 = vand.u32 %v1335_v47, %v6780_v18 }
  0xc3   : > { %816 = vmatprep.subr.bf16.mxu0 %v811_v4  ;;  %2777 = vrot.lane.b32.xlu0 %v6757_v11, %s6633_s24  ;;  %v1346_v54 = vand.u32 %v1338_v52, %v6780_v18  ;;  %s6641_s24 = smov 36  }
  0xc4   : > { %2883 = vrot.lane.b32.xlu1 %v6745_v8, %s6634_s27 }
  0xc5   : > { %v1331_v55 = vpop.permute.xlu0 %1330  ;;  %v1440_v58 = vpop.permute.xlu1 %1439 }
  0xc6   : > { %v1337_v57 = vsel %vm1336_vm14, %v1331_v55, %v1333_v49  ;;  %vm2559_vm14 = vcmask 498688  }
  0xc7   : > { %2885 = vrot.lane.b32.xlu0 %v6752_v10, %s6634_s27  ;;  %v1343_v62 = vand.u32 %v1337_v57, %v6780_v18 }
  0xc8   : > { %2881 = vrot.lane.b32.xlu1 %v6749_v9, %s6634_s27 }
  0xc9   : > { %v1442_v56 = vpop.permute.xlu0 %1441  ;;  %v1438_v1 = vpop.permute.xlu1 %1437 }
  0xca   : > { %v1445_v61 = vsel %vm1443_vm15, %v1440_v58, %v1442_v56  ;;  %v1444_v4 = vsel %vm1443_vm15, %v1438_v1, %v1440_v58  ;;  %v1456_v6 = vand.u32 %v1442_v56, %v6780_v18  ;;  %vm2669_vm15 = vcmask 490496  }
  0xcb   : > { %5875 = vmatmul.mubr.msk.bf16.vlgmr.msra.gmra.mrb[0].mxu1 %vm174_vm5, %v5602_v14  ;;  %2887 = vrot.lane.b32.xlu0 %v6757_v11, %s6634_s27  ;;  %v1453_v63 = vand.u32 %v1445_v61, %v6780_v18  ;;  %s6642_s27 = smov 35  }
  0xcc   : > { %5879 = vmatpush3.bf16.msra.mxu1 %v814_v13  ;;  %5880 = vmatprep.mubr.msk.bf16.mxu1 %vm6607_vm0, %v6606_v0  ;;  %v1450_v13 = vand.u32 %v1444_v4, %v6780_v18 }
  0xcd   : > { %5603 = vmatmul.mubr.msk.bf16.vlgmr.msra.gmra.mrb[0].mxu0 %vm174_vm5, %v5602_v14  ;;  %5884 = vmatprep.subr.bf16.mxu1 %v6606_v0  ;;  %v1549_v2 = vpop.permute.xlu1 %1548  ;;  %v1547_v5 = vpop.permute.xlu0 %1546 }
  0xce   : > { %817 = vmatpush1.bf16.msra.mxu0 %v808_v16  ;;  %848 = vmatprep.mubr.bf16.mxu0 %v6608_v3  ;;  %v1552_v12 = vsel %vm1550_vm1, %v1547_v5, %v1549_v2  ;;  %v1563_v20 = vand.u32 %v1549_v2, %v6780_v18  ;;  %v5639_v2 = vld [vmem:[%s7632_s1 + $0x20] sm:$0x3] }
  0xcf   : > { %923 = vmatprep.subr.bf16.mxu0 %v918_v17  ;;  %2993 = vrot.lane.b32.xlu1 %v6745_v8, %s6635_s30  ;;  %v1560_v14 = vand.u32 %v1552_v12, %v6780_v18 }
  0xd0   : > { %2995 = vrot.lane.b32.xlu0 %v6752_v10, %s6635_s30 }
  0xd1   : > { %v1545_v15 = vpop.permute.xlu0 %1544  ;;  %v1674_v19 = vpop.permute.xlu1 %1673 }
  0xd2   : > { %v1551_v17 = vsel %vm1550_vm1, %v1545_v15, %v1547_v5  ;;  %vm2779_vm1 = vcmask 482304  }
  0xd3   : > { %2991 = vrot.lane.b32.xlu1 %v6749_v9, %s6635_s30 }
  0xd4   : > { %2997 = vrot.lane.b32.xlu0 %v6757_v11, %s6635_s30 }
  0xd5   : > { %v1676_v16 = vpop.permute.xlu0 %1675 }
  0xd6   : > { %v1681_v22 = vsel %vm1679_vm2, %v1674_v19, %v1676_v16 }
  0xd7   : > { %5881 = vmatmul.mubr.msk.bf16.vlgmr.msra.gmra.mrb[0].mxu1 %vm174_vm5, %v5605_v24  ;;  %3103 = vrot.lane.b32.xlu1 %v6745_v8, %s6636_s5 }
  0xd8   : > { %5885 = vmatpush3.bf16.msra.mxu1 %v921_v23  ;;  %5886 = vmatprep.mubr.msk.bf16.mxu1 %vm6607_vm0, %v6606_v0  ;;  %v1557_v23 = vand.u32 %v1551_v17, %v6780_v18 }
  0xd9   : > { %5606 = vmatmul.mubr.msk.bf16.vlgmr.msra.gmra.mrb[0].mxu0 %vm174_vm5, %v5605_v24  ;;  %5890 = vmatprep.subr.bf16.mxu1 %v6606_v0  ;;  %v1690_v24 = vand.u32 %v1681_v22, %v6780_v18  ;;  %v1678_v25 = vpop.permute.xlu0 %1677 }
  0xda   : > { %924 = vmatpush1.bf16.msra.mxu0 %v915_v26  ;;  %955 = vmatprep.mubr.bf16.mxu0 %v6608_v3  ;;  %v1672_v26 = vpop.permute.xlu1 %1671 }
  0xdb   : > { %1030 = vmatprep.subr.bf16.mxu0 %v1025_v27  ;;  %3105 = vrot.lane.b32.xlu0 %v6752_v10, %s6636_s5  ;;  %v1682_v27 = vsel %vm1679_vm2, %v1676_v16, %v1678_v25  ;;  %v1680_v29 = vsel %vm1679_vm2, %v1672_v26, %v1674_v19  ;;  %v5642_v19 = vld [vmem:[%s7632_s1 + $0x22] sm:$0x3]  ;;  %vm2889_vm2 = vcmask 474112  }
  0xdc   : > { %3101 = vrot.lane.b32.xlu1 %v6749_v9, %s6636_s5  ;;  %v1693_v31 = vand.u32 %v1682_v27, %v6780_v18  ;;  %v1687_v34 = vand.u32 %v1680_v29, %v6780_v18 }
  0xdd   : > { %v1786_v28 = vpop.permute.xlu0 %1785 }
  0xde   : > { %v1784_v30 = vpop.permute.xlu1 %1783 }
  0xdf   : > { %3107 = vrot.lane.b32.xlu0 %v6757_v11, %s6636_s5 }
  0xe0   : > { %3213 = vrot.lane.b32.xlu1 %v6745_v8, %s6637_s8 }
  0xe2   : > { %v1782_v37 = vpop.permute.xlu1 %1781 }
  0xe3   : > { %5887 = vmatmul.mubr.msk.bf16.vlgmr.msra.gmra.mrb[0].mxu1 %vm174_vm5, %v5608_v33  ;;  %3215 = vrot.lane.b32.xlu0 %v6752_v10, %s6637_s8  ;;  %v1790_v40 = vsel %vm1789_vm3, %v1782_v37, %v1784_v30 }
  0xe4   : > { %5891 = vmatpush3.bf16.msra.mxu1 %v1028_v32  ;;  %5892 = vmatprep.mubr.msk.bf16.mxu1 %vm6607_vm0, %v6606_v0  ;;  %v5626_v32 = vld [vmem:[%s7632_s1 + $0x1a] sm:$0x3] }
  0xe5   : > { %5609 = vmatmul.mubr.msk.bf16.vlgmr.msra.gmra.mrb[0].mxu0 %vm174_vm5, %v5608_v33  ;;  %5896 = vmatprep.subr.bf16.mxu1 %v6606_v0  ;;  %v1791_v33 = vsel %vm1789_vm3, %v1784_v30, %v1786_v28  ;;  %v5645_v30 = vld [vmem:[%s7632_s1 + $0x24] sm:$0x3] }
  0xe6   : > { %1031 = vmatpush1.bf16.msra.mxu0 %v1022_v35  ;;  %1062 = vmatprep.mubr.bf16.mxu0 %v6608_v3  ;;  %v1800_v35 = vand.u32 %v1791_v33, %v6780_v18 }
  0xe7   : > { %1137 = vmatprep.subr.bf16.mxu0 %v1132_v36  ;;  %3211 = vrot.lane.b32.xlu1 %v6749_v9, %s6637_s8  ;;  %v1788_v36 = vpop.permute.xlu0 %1787 }
  0xe8   : > { %3217 = vrot.lane.b32.xlu0 %v6757_v11, %s6637_s8  ;;  %v1792_v38 = vsel %vm1789_vm3, %v1786_v28, %v1788_v36  ;;  %vm2999_vm3 = vcmask 465920   ;;  %s6520_s8 = smul.u32 12, %s7635_s10 }
  0xea   : > { %s143_s13 = scalar_lea.vmem %s7633_s2, %s6520_s8 }
  0xeb   : > { %3323 = vrot.lane.b32.xlu1 %v6745_v8, %s6638_s11  ;;  %v1896_v39 = vpop.permute.xlu0 %1895 }
  0xec   : > { %3325 = vrot.lane.b32.xlu0 %v6752_v10, %s6638_s11 }
  0xef   : > { %5893 = vmatmul.mubr.msk.bf16.vlgmr.msra.gmra.mrb[0].mxu1 %vm174_vm5, %v5611_v42  ;;  %3321 = vrot.lane.b32.xlu1 %v6749_v9, %s6638_s11  ;;  %v1898_v47 = vpop.permute.xlu0 %1897 }
  0xf0   : > { %5897 = vmatpush3.bf16.msra.mxu1 %v1135_v41  ;;  %5898 = vmatprep.mubr.msk.bf16.mxu1 %vm6607_vm0, %v6606_v0  ;;  %v1894_v41 = vpop.permute.xlu1 %1893  ;;  %v1902_v49 = vsel %vm1899_vm4, %v1896_v39, %v1898_v47  ;;  %v7172_v47 = vld [vmem:[%s6687_s14 + $0x8] ss:$16 sps:$4 sm:$0x1f]  }
  0xf1   : > { %5612 = vmatmul.mubr.msk.bf16.vlgmr.msra.gmra.mrb[0].mxu0 %vm174_vm5, %v5611_v42  ;;  %5902 = vmatprep.subr.bf16.mxu1 %v6606_v0  ;;  %v1803_v42 = vand.u32 %v1792_v38, %v6780_v18 }
  0xf2   : > { %1138 = vmatpush1.bf16.msra.mxu0 %v1129_v44  ;;  %1169 = vmatprep.mubr.bf16.mxu0 %v6608_v3  ;;  %v1901_v44 = vsel %vm1899_vm4, %v1894_v41, %v1896_v39  ;;  %v6596_v39 = vld [vmem:[%s6687_s14 + $0x8] ss:$16 sps:$4 sm:$0x1f]  }
  0xf3   : > { %1244 = vmatprep.subr.bf16.mxu0 %v1239_v45  ;;  %3327 = vrot.lane.b32.xlu0 %v6757_v11, %s6638_s11  ;;  %v1797_v45 = vand.u32 %v1790_v40, %v6780_v18  ;;  %v1910_v46 = vand.u32 %v1901_v44, %v6780_v18  ;;  %s6646_s11 = smov 16  }
  0xf4   : > { %3433 = vrot.lane.b32.xlu1 %v6745_v8, %s6639_s15  ;;  %v1892_v48 = vpop.permute.xlu1 %1891 }
  0xf7   : > { %3435 = vrot.lane.b32.xlu0 %v6752_v10, %s6639_s15 }
  0xf8   : > { %3431 = vrot.lane.b32.xlu1 %v6749_v9, %s6639_s15  ;;  %v2004_v52 = vpop.permute.xlu1 %2003 }
  0xfb   : > { %5899 = vmatmul.mubr.msk.bf16.vlgmr.msra.gmra.mrb[0].mxu1 %vm174_vm5, %v5614_v51  ;;  %3437 = vrot.lane.b32.xlu0 %v6757_v11, %s6639_s15  ;;  %s6647_s15 = smov 15  }
  0xfc   : > { %5903 = vmatpush3.bf16.msra.mxu1 %v1242_v50  ;;  %5904 = vmatprep.mubr.msk.bf16.mxu1 %vm6607_vm0, %v6606_v0  ;;  %v2006_v50 = vpop.permute.xlu0 %2005 }
  0xfd   : > { %5615 = vmatmul.mubr.msk.bf16.vlgmr.msra.gmra.mrb[0].mxu0 %vm174_vm5, %v5614_v51  ;;  %5908 = vmatprep.subr.bf16.mxu1 %v6606_v0  ;;  %v1900_v51 = vsel %vm1899_vm4, %v1892_v48, %v1894_v41  ;;  %v2011_v55 = vsel %vm2009_vm6, %v2004_v52, %v2006_v50  ;;  %v5648_v41 = vld [vmem:[%s7632_s1 + $0x26] sm:$0x3]  ;;  %vm3109_vm4 = vcmask 457728  }
  0xfe   : > { %1245 = vmatpush1.bf16.msra.mxu0 %v1236_v53  ;;  %1276 = vmatprep.mubr.bf16.mxu0 %v6608_v3  ;;  %v1913_v53 = vand.u32 %v1902_v49, %v6780_v18  ;;  %v1907_v56 = vand.u32 %v1900_v51, %v6780_v18  ;;  %v2020_v57 = vand.u32 %v2011_v55, %v6780_v18  ;;  %v5651_v51 = vld [vmem:[%s7632_s1 + $0x28] sm:$0x3] }
  0xff   : > { %1351 = vmatprep.subr.bf16.mxu0 %v1346_v54  ;;  %3543 = vrot.lane.b32.xlu1 %v6745_v8, %s6640_s21  ;;  %v5636_v54 = vld [vmem:[%s7632_s1 + $0x1e] sm:$0x3] }
 0x100   : > { %3545 = vrot.lane.b32.xlu0 %v6752_v10, %s6640_s21  ;;  %v2008_v58 = vpop.permute.xlu0 %2007 }
 0x103   : > { %3541 = vrot.lane.b32.xlu1 %v6749_v9, %s6640_s21 }
 0x104   : > { %3547 = vrot.lane.b32.xlu0 %v6757_v11, %s6640_s21  ;;  %v2116_v61 = vpop.permute.xlu0 %2115  ;;  %s6648_s21 = smov 14  }
 0x107   : > { %5905 = vmatmul.mubr.msk.bf16.vlgmr.msra.gmra.mrb[0].mxu1 %vm174_vm5, %v5617_v60  ;;  %3653 = vrot.lane.b32.xlu1 %v6745_v8, %s6641_s24 }
 0x108   : > { %5909 = vmatpush3.bf16.msra.mxu1 %v1349_v59  ;;  %5910 = vmatprep.mubr.msk.bf16.mxu1 %vm6607_vm0, %v6606_v0  ;;  %v2002_v59 = vpop.permute.xlu1 %2001 }
 0x109   : > { %5618 = vmatmul.mubr.msk.bf16.vlgmr.msra.gmra.mrb[0].mxu0 %vm174_vm5, %v5617_v60  ;;  %5914 = vmatprep.subr.bf16.mxu1 %v6606_v0  ;;  %v2012_v60 = vsel %vm2009_vm6, %v2006_v50, %v2008_v58  ;;  %v7194_v58 = vld [vmem:[%s6687_s14 + $0x4] ss:$16 sps:$4 sm:$0x1f]  }
 0x10a   : > { %1352 = vmatpush1.bf16.msra.mxu0 %v1343_v62  ;;  %1383 = vmatprep.mubr.bf16.mxu0 %v6608_v3  ;;  %v2010_v62 = vsel %vm2009_vm6, %v2002_v59, %v2004_v52  ;;  %v2023_v1 = vand.u32 %v2012_v60, %v6780_v18  ;;  %vm3219_vm6 = vcmask 326656  }
 0x10b   : > { %1458 = vmatprep.subr.bf16.mxu0 %v1453_v63  ;;  %3655 = vrot.lane.b32.xlu0 %v6752_v10, %s6641_s24  ;;  %v2017_v5 = vand.u32 %v2010_v62, %v6780_v18 }
 0x10c   : > { %3651 = vrot.lane.b32.xlu1 %v6749_v9, %s6641_s24  ;;  %v2114_v63 = vpop.permute.xlu1 %2113 }
 0x10d   : > { %v2121_v4 = vsel %vm2119_vm10, %v2114_v63, %v2116_v61 }
 0x10f   : > { %3657 = vrot.lane.b32.xlu0 %v6757_v11, %s6641_s24  ;;  %s6649_s24 = smov 13  }
 0x110   : > { %3763 = vrot.lane.b32.xlu1 %v6745_v8, %s6642_s27  ;;  %v2112_v12 = vpop.permute.xlu1 %2111 }
 0x111   : > { %v2120_v15 = vsel %vm2119_vm10, %v2112_v12, %v2114_v63 }
 0x113   : > { %5911 = vmatmul.mubr.msk.bf16.vlgmr.msra.gmra.mrb[0].mxu1 %vm174_vm5, %v5620_v7  ;;  %3765 = vrot.lane.b32.xlu0 %v6752_v10, %s6642_s27 }
 0x114   : > { %5915 = vmatpush3.bf16.msra.mxu1 %v1456_v6  ;;  %5916 = vmatprep.mubr.msk.bf16.mxu1 %vm6607_vm0, %v6606_v0  ;;  %v2130_v6 = vand.u32 %v2121_v4, %v6780_v18  ;;  %v2224_v16 = vpop.permute.xlu1 %2223 }
 0x115   : > { %5621 = vmatmul.mubr.msk.bf16.vlgmr.msra.gmra.mrb[0].mxu0 %vm174_vm5, %v5620_v7  ;;  %5920 = vmatprep.subr.bf16.mxu1 %v6606_v0  ;;  %v2118_v7 = vpop.permute.xlu0 %2117 }
 0x116   : > { %1459 = vmatpush1.bf16.msra.mxu0 %v1450_v13  ;;  %1490 = vmatprep.mubr.bf16.mxu0 %v6608_v3  ;;  %v2122_v13 = vsel %vm2119_vm10, %v2116_v61, %v2118_v7  ;;  %vm3329_vm10 = vcmask 318464  }
 0x117   : > { %1565 = vmatprep.subr.bf16.mxu0 %v1560_v14  ;;  %3761 = vrot.lane.b32.xlu1 %v6749_v9, %s6642_s27  ;;  %v2133_v17 = vand.u32 %v2122_v13, %v6780_v18 }
 0x118   : > { %3767 = vrot.lane.b32.xlu0 %v6757_v11, %s6642_s27  ;;  %s6650_s27 = smov 12  }
 0x119   : > { %v2226_v14 = vpop.permute.xlu0 %2225 }
 0x11b   : > { %3873 = vrot.lane.b32.xlu1 %v6745_v8, %s6643_s28 }
 0x11c   : > { %3875 = vrot.lane.b32.xlu0 %v6752_v10, %s6643_s28 }
 0x11f   : > { %5917 = vmatmul.mubr.msk.bf16.vlgmr.msra.gmra.mrb[0].mxu1 %vm174_vm5, %v5623_v21  ;;  %3871 = vrot.lane.b32.xlu1 %v6749_v9, %s6643_s28 }
 0x120   : > { %5921 = vmatpush3.bf16.msra.mxu1 %v1563_v20  ;;  %5922 = vmatprep.mubr.msk.bf16.mxu1 %vm6607_vm0, %v6606_v0  ;;  %v2231_v20 = vsel %vm2229_vm11, %v2224_v16, %v2226_v14 }
 0x121   : > { %5624 = vmatmul.mubr.msk.bf16.vlgmr.msra.gmra.mrb[0].mxu0 %vm174_vm5, %v5623_v21  ;;  %5926 = vmatprep.subr.bf16.mxu1 %v6606_v0  ;;  %v2127_v21 = vand.u32 %v2120_v15, %v6780_v18  ;;  %v2240_v22 = vand.u32 %v2231_v20, %v6780_v18 }
 0x122   : > { %1566 = vmatpush1.bf16.msra.mxu0 %v1557_v23  ;;  %1597 = vmatprep.mubr.bf16.mxu0 %v6608_v3  ;;  %v2228_v23 = vpop.permute.xlu0 %2227 }
 0x123   : > { %1695 = vmatprep.subr.bf16.mxu0 %v1690_v24  ;;  %3877 = vrot.lane.b32.xlu0 %v6757_v11, %s6643_s28  ;;  %v2222_v24 = vpop.permute.xlu1 %2221  ;;  %v2232_v25 = vsel %vm2229_vm11, %v2226_v14, %v2228_v23 }
 0x124   : > { %3983 = vrot.lane.b32.xlu1 %v6745_v8, %s6644_s3  ;;  %v2230_v27 = vsel %vm2229_vm11, %v2222_v24, %v2224_v16  ;;  %v2243_v29 = vand.u32 %v2232_v25, %v6780_v18  ;;  %vm3439_vm11 = vcmask 310272  }
 0x126   : > { %v2336_v26 = vpop.permute.xlu0 %2335 }
 0x127   : > { %3985 = vrot.lane.b32.xlu0 %v6752_v10, %s6644_s3  ;;  %v2334_v28 = vpop.permute.xlu1 %2333 }
 0x128   : > { %3981 = vrot.lane.b32.xlu1 %v6749_v9, %s6644_s3 }
 0x12b   : > { %5923 = vmatmul.mubr.msk.bf16.vlgmr.msra.gmra.mrb[0].mxu1 %vm174_vm5, %v5626_v32  ;;  %3987 = vrot.lane.b32.xlu0 %v6757_v11, %s6644_s3 }
 0x12c   : > { %5927 = vmatpush3.bf16.msra.mxu1 %v1693_v31  ;;  %5928 = vmatprep.mubr.msk.bf16.mxu1 %vm6607_vm0, %v6606_v0  ;;  %v2341_v31 = vsel %vm2339_vm12, %v2334_v28, %v2336_v26 }
 0x12d   : > { %5627 = vmatmul.mubr.msk.bf16.vlgmr.msra.gmra.mrb[0].mxu0 %vm174_vm5, %v5626_v32  ;;  %5932 = vmatprep.subr.bf16.mxu1 %v6606_v0  ;;  %v2237_v32 = vand.u32 %v2230_v27, %v6780_v18  ;;  %v2350_v33 = vand.u32 %v2341_v31, %v6780_v18 }
 0x12e   : > { %1696 = vmatpush1.bf16.msra.mxu0 %v1687_v34  ;;  %1727 = vmatprep.mubr.bf16.mxu0 %v6608_v3  ;;  %v2332_v34 = vpop.permute.xlu1 %2331 }
 0x12f   : > { %1805 = vmatprep.subr.bf16.mxu0 %v1800_v35  ;;  %4093 = vrot.lane.b32.xlu1 %v6745_v8, %s6645_s6  ;;  %v2340_v37 = vsel %vm2339_vm12, %v2332_v34, %v2334_v28 }
 0x130   : > { %4095 = vrot.lane.b32.xlu0 %v6752_v10, %s6645_s6 }
 0x132   : > { %v2444_v38 = vpop.permute.xlu1 %2443 }
 0x133   : > { %4091 = vrot.lane.b32.xlu1 %v6749_v9, %s6645_s6 }
 0x134   : > { %4097 = vrot.lane.b32.xlu0 %v6757_v11, %s6645_s6 }
 0x136   : > { %v2442_v44 = vpop.permute.xlu1 %2441 }
 0x137   : > { %5929 = vmatmul.mubr.msk.bf16.vlgmr.msra.gmra.mrb[0].mxu1 %vm174_vm5, %v5629_v43  ;;  %4203 = vrot.lane.b32.xlu1 %v6745_v8, %s6646_s11  ;;  %v2450_v48 = vsel %vm2449_vm13, %v2442_v44, %v2444_v38 }
 0x138   : > { %5933 = vmatpush3.bf16.msra.mxu1 %v1803_v42  ;;  %5934 = vmatprep.mubr.msk.bf16.mxu1 %vm6607_vm0, %v6606_v0  ;;  %v2347_v42 = vand.u32 %v2340_v37, %v6780_v18 }
 0x139   : > { %5634 = vmatmul.mubr.msk.bf16.vlgmr.msra.gmra.mrb[0].mxu0 %vm174_vm5, %v5629_v43  ;;  %5938 = vmatprep.subr.bf16.mxu1 %v6606_v0 }
 0x13a   : > { %1806 = vmatpush1.bf16.msra.mxu0 %v1797_v45  ;;  %1837 = vmatprep.mubr.bf16.mxu0 %v6608_v3  ;;  %v6597_v45 = vld [vmem:[%s6687_s14 + $0xc] ss:$16 sps:$4 sm:$0x1f]   ;;  %v2554_v49 = vpop.permute.xlu1 %2553 }
 0x13b   : > { %1915 = vmatprep.subr.bf16.mxu0 %v1910_v46  ;;  %4205 = vrot.lane.b32.xlu0 %v6752_v10, %s6646_s11 }
 0x13c   : > { %4201 = vrot.lane.b32.xlu1 %v6749_v9, %s6646_s11 }
 0x13f   : > { %4207 = vrot.lane.b32.xlu0 %v6757_v11, %s6646_s11 }
 0x140   : > { %4313 = vrot.lane.b32.xlu1 %v6745_v8, %s6647_s15 }
 0x143   : > { %5935 = vmatmul.mubr.msk.bf16.vlgmr.msra.gmra.mrb[0].mxu1 %vm174_vm5, %v5636_v54  ;;  %4315 = vrot.lane.b32.xlu0 %v6752_v10, %s6647_s15 }
 0x144   : > { %5939 = vmatpush3.bf16.msra.mxu1 %v1913_v53  ;;  %5940 = vmatprep.mubr.msk.bf16.mxu1 %vm6607_vm0, %v6606_v0  ;;  %v2457_v53 = vand.u32 %v2450_v48, %v6780_v18  ;;  %v5666_v48 = vld [vmem:[%s7632_s1 + $0x32] sm:$0x3] }
 0x145   : > { %5637 = vmatmul.mubr.msk.bf16.vlgmr.msra.gmra.mrb[0].mxu0 %vm174_vm5, %v5636_v54  ;;  %5944 = vmatprep.subr.bf16.mxu1 %v6606_v0 }
 0x146   : > { %1916 = vmatpush1.bf16.msra.mxu0 %v1907_v56  ;;  %1947 = vmatprep.mubr.bf16.mxu0 %v6608_v3  ;;  %v2552_v56 = vpop.permute.xlu1 %2551 }
 0x147   : > { %2025 = vmatprep.subr.bf16.mxu0 %v2020_v57  ;;  %4311 = vrot.lane.b32.xlu1 %v6749_v9, %s6647_s15  ;;  %v7191_v57 = vld [vmem:[%s6687_s14 + $0xc] ss:$16 sps:$4 sm:$0x1f]   ;;  %v2560_v61 = vsel %vm2559_vm14, %v2552_v56, %v2554_v49 }
 0x148   : > { %4317 = vrot.lane.b32.xlu0 %v6757_v11, %s6647_s15  ;;  %v2567_v4 = vand.u32 %v2560_v61, %v6780_v18  ;;  %v5669_v61 = vld [vmem:[%s7632_s1 + $0x34] sm:$0x3] }
 0x14a   : > { %v2664_v62 = vpop.permute.xlu1 %2663 }
 0x14b   : > { %4423 = vrot.lane.b32.xlu1 %v6745_v8, %s6648_s21 }
 0x14c   : > { %4425 = vrot.lane.b32.xlu0 %v6752_v10, %s6648_s21 }
 0x14e   : > { %v2662_v7 = vpop.permute.xlu1 %2661 }
 0x14f   : > { %5941 = vmatmul.mubr.msk.bf16.vlgmr.msra.gmra.mrb[0].mxu1 %vm174_vm5, %v5639_v2  ;;  %4421 = vrot.lane.b32.xlu1 %v6749_v9, %s6648_s21  ;;  %v2670_v14 = vsel %vm2669_vm15, %v2662_v7, %v2664_v62  ;;  %v5672_v7 = vld [vmem:[%s7632_s1 + $0x36] sm:$0x3] }
 0x150   : > { %5945 = vmatpush3.bf16.msra.mxu1 %v2023_v1  ;;  %5946 = vmatprep.mubr.msk.bf16.mxu1 %vm6607_vm0, %v6606_v0  ;;  %v5654_v1 = vld [vmem:[%s7632_s1 + $0x2a] sm:$0x3]  ;;  %v2677_v20 = vand.u32 %v2670_v14, %v6780_v18 }
 0x151   : > { %5640 = vmatmul.mubr.msk.bf16.vlgmr.msra.gmra.mrb[0].mxu0 %vm174_vm5, %v5639_v2  ;;  %5950 = vmatprep.subr.bf16.mxu1 %v6606_v0 }
 0x152   : > { %2026 = vmatpush1.bf16.msra.mxu0 %v2017_v5  ;;  %2057 = vmatprep.mubr.bf16.mxu0 %v6608_v3  ;;  %v2774_v15 = vpop.permute.xlu1 %2773 }
 0x153   : > { %2135 = vmatprep.subr.bf16.mxu0 %v2130_v6  ;;  %4427 = vrot.lane.b32.xlu0 %v6757_v11, %s6648_s21 }
 0x154   : > { %4533 = vrot.lane.b32.xlu1 %v6745_v8, %s6649_s24 }
 0x156   : > { %v2772_v23 = vpop.permute.xlu1 %2771 }
 0x157   : > { %4535 = vrot.lane.b32.xlu0 %v6752_v10, %s6649_s24  ;;  %v2338_v10 = vpop.permute.xlu0 %2337 }
 0x158   : > { %4531 = vrot.lane.b32.xlu1 %v6749_v9, %s6649_s24  ;;  %v2342_v35 = vsel %vm2339_vm12, %v2336_v26, %v2338_v10  ;;  %v2780_v26 = vsel %vm2779_vm1, %v2772_v23, %v2774_v15  ;;  %v5675_v23 = vld [vmem:[%s7632_s1 + $0x38] sm:$0x3]  ;;  %vm3549_vm12 = vcmask 302080  }
 0x159   : > { %v2353_v40 = vand.u32 %v2342_v35, %v6780_v18  ;;  %v2787_v31 = vand.u32 %v2780_v26, %v6780_v18 }
 0x15a   : > { %v2884_v27 = vpop.permute.xlu1 %2883 }
 0x15b   : > { %5947 = vmatmul.mubr.msk.bf16.vlgmr.msra.gmra.mrb[0].mxu1 %vm174_vm5, %v5642_v19  ;;  %4537 = vrot.lane.b32.xlu0 %v6757_v11, %s6649_s24  ;;  %v2446_v36 = vpop.permute.xlu0 %2445 }
 0x15c   : > { %5951 = vmatpush3.bf16.msra.mxu1 %v2133_v17  ;;  %5952 = vmatprep.mubr.msk.bf16.mxu1 %vm6607_vm0, %v6606_v0  ;;  %v2451_v11 = vsel %vm2449_vm13, %v2444_v38, %v2446_v36  ;;  %v5657_v17 = vld [vmem:[%s7632_s1 + $0x2c] sm:$0x3] }
 0x15d   : > { %5643 = vmatmul.mubr.msk.bf16.vlgmr.msra.gmra.mrb[0].mxu0 %vm174_vm5, %v5642_v19  ;;  %5956 = vmatprep.subr.bf16.mxu1 %v6606_v0  ;;  %v2460_v43 = vand.u32 %v2451_v11, %v6780_v18 }
 0x15e   : > { %2136 = vmatpush1.bf16.msra.mxu0 %v2127_v21  ;;  %2167 = vmatprep.mubr.bf16.mxu0 %v6608_v3  ;;  %v2882_v10 = vpop.permute.xlu1 %2881 }
 0x15f   : > { %2245 = vmatprep.subr.bf16.mxu0 %v2240_v22  ;;  %4643 = vrot.lane.b32.xlu1 %v6745_v8, %s6650_s27  ;;  %v2448_v8 = vpop.permute.xlu0 %2447 }
 0x160   : > { %4645 = vrot.lane.b32.xlu0 %v6596_v39, %s6650_s27  ;;  %v2452_v46 = vsel %vm2449_vm13, %v2446_v36, %v2448_v8  ;;  %v2890_v36 = vsel %vm2889_vm2, %v2882_v10, %v2884_v27  ;;  %v5663_v39 = vld [vmem:[%s7632_s1 + $0x30] sm:$0x3]  ;;  %v5678_v10 = vld [vmem:[%s7632_s1 + $0x3a] sm:$0x3]  ;;  %vm3659_vm13 = vcmask 293888  }
 0x161   : > { %v2463_v50 = vand.u32 %v2452_v46, %v6780_v18 }
 0x162   : > { %v2994_v37 = vpop.permute.xlu1 %2993 }
 0x163   : > { %4641 = vrot.lane.b32.xlu1 %v6749_v9, %s6650_s27  ;;  %v2556_v9 = vpop.permute.xlu0 %2555 }
 0x164   : > { %4647 = vrot.lane.b32.xlu0 %v6597_v45, %s6650_s27  ;;  %v2561_v52 = vsel %vm2559_vm14, %v2554_v49, %v2556_v9 }
 0x165   : > { %v2570_v54 = vand.u32 %v2561_v52, %v6780_v18 }
 0x167   : > { %5953 = vmatmul.mubr.msk.bf16.vlgmr.msra.gmra.mrb[0].mxu1 %vm174_vm5, %v5645_v30  ;;  %4770 = vrot.lane.b32.xlu1 %v7172_v47, %s6612_s18  ;;  %v2558_v55 = vpop.permute.xlu0 %2557 }
 0x168   : > { %5957 = vmatpush3.bf16.msra.mxu1 %v2243_v29  ;;  %5958 = vmatprep.mubr.msk.bf16.mxu1 %vm6607_vm0, %v6606_v0  ;;  %v2562_v59 = vsel %vm2559_vm14, %v2556_v9, %v2558_v55  ;;  %v5660_v29 = vld [vmem:[%s7632_s1 + $0x2e] sm:$0x3]  ;;  %vm3769_vm14 = vcmask 285696  }
 0x169   : > { %5646 = vmatmul.mubr.msk.bf16.vlgmr.msra.gmra.mrb[0].mxu0 %vm174_vm5, %v5645_v30  ;;  %5962 = vmatprep.subr.bf16.mxu1 %v6606_v0  ;;  %v2573_v63 = vand.u32 %v2562_v59, %v6780_v18 }
 0x16a   : > { %2246 = vmatpush1.bf16.msra.mxu0 %v2237_v32  ;;  %2277 = vmatprep.mubr.bf16.mxu0 %v6608_v3 }
 0x16b   : > { %2355 = vmatprep.subr.bf16.mxu0 %v2350_v33  ;;  %v2666_v60 = vpop.permute.xlu0 %2665  ;;  %4772 = vrot.lane.b32.xlu0 %v7191_v57, %s6612_s18 }
 0x16c   : > { %4768 = vrot.lane.b32.xlu1 %v7194_v58, %s6612_s18  ;;  %v2671_v2 = vsel %vm2669_vm15, %v2664_v62, %v2666_v60 }
 0x16d   : > { %v2680_v5 = vand.u32 %v2671_v2, %v6780_v18 }
 0x16f   : > { %4876 = vrot.lane.b32.xlu0 %v7172_v47, %s6613_s19  ;;  %v2668_v6 = vpop.permute.xlu0 %2667 }
 0x170   : > { %4878 = vrot.lane.b32.xlu1 %v7191_v57, %s6613_s19  ;;  %v2672_v12 = vsel %vm2669_vm15, %v2666_v60, %v2668_v6  ;;  %vm3879_vm15 = vcmask 277504  }
 0x171   : > { %v2683_v16 = vand.u32 %v2672_v12, %v6780_v18 }
 0x173   : > { %5959 = vmatmul.mubr.msk.bf16.vlgmr.msra.gmra.mrb[0].mxu1 %vm174_vm5, %v5648_v41  ;;  %4874 = vrot.lane.b32.xlu0 %v7194_v58, %s6613_s19  ;;  %v2776_v13 = vpop.permute.xlu0 %2775  ;;  %s6651_s19 = smov 121  }
 0x174   : > { %5963 = vmatpush3.bf16.msra.mxu1 %v2353_v40  ;;  %5964 = vmatprep.mubr.msk.bf16.mxu1 %vm6607_vm0, %v6606_v0  ;;  %v2781_v19 = vsel %vm2779_vm1, %v2774_v15, %v2776_v13 }
 0x175   : > { %5649 = vmatmul.mubr.msk.bf16.vlgmr.msra.gmra.mrb[0].mxu0 %vm174_vm5, %v5648_v41  ;;  %5968 = vmatprep.subr.bf16.mxu1 %v6606_v0  ;;  %v2790_v21 = vand.u32 %v2781_v19, %v6780_v18  ;;  %v2897_v41 = vand.u32 %v2890_v36, %v6780_v18 }
 0x176   : > { %2356 = vmatpush1.bf16.msra.mxu0 %v2347_v42  ;;  %2387 = vmatprep.mubr.bf16.mxu0 %v6608_v3 }
 0x177   : > { %2465 = vmatprep.subr.bf16.mxu0 %v2460_v43  ;;  %4982 = vrot.lane.b32.xlu1 %v7172_v47, %s6614_s20  ;;  %v2778_v22 = vpop.permute.xlu0 %2777  ;;  %v2992_v43 = vpop.permute.xlu1 %2991 }
 0x178   : > { %4984 = vrot.lane.b32.xlu0 %v7191_v57, %s6614_s20  ;;  %v2782_v24 = vsel %vm2779_vm1, %v2776_v13, %v2778_v22  ;;  %v3000_v45 = vsel %vm2999_vm3, %v2992_v43, %v2994_v37  ;;  %v5681_v43 = vld [vmem:[%s7632_s1 + $0x3c] sm:$0x3]  ;;  %vm3989_vm1 = vcmask 146432  }
 0x179   : > { %v2793_v28 = vand.u32 %v2782_v24, %v6780_v18 }
 0x17b   : > { %4980 = vrot.lane.b32.xlu1 %v7194_v58, %s6614_s20  ;;  %v2886_v25 = vpop.permute.xlu0 %2885  ;;  %v3104_v46 = vpop.permute.xlu1 %3103 }
 0x17c   : > { %5088 = vrot.lane.b32.xlu0 %v7172_v47, %s6651_s19  ;;  %v2891_v30 = vsel %vm2889_vm2, %v2884_v27, %v2886_v25 }
 0x17d   : > { %v2900_v32 = vand.u32 %v2891_v30, %v6780_v18 }
 0x17f   : > { %5965 = vmatmul.mubr.msk.bf16.vlgmr.msra.gmra.mrb[0].mxu1 %vm174_vm5, %v5651_v51  ;;  %5090 = vrot.lane.b32.xlu1 %v7191_v57, %s6651_s19  ;;  %v2888_v33 = vpop.permute.xlu0 %2887 }
 0x180   : > { %5969 = vmatpush3.bf16.msra.mxu1 %v2463_v50  ;;  %5970 = vmatprep.mubr.msk.bf16.mxu1 %vm6607_vm0, %v6606_v0  ;;  %v2892_v34 = vsel %vm2889_vm2, %v2886_v25, %v2888_v33  ;;  %v3007_v50 = vand.u32 %v3000_v45, %v6780_v18  ;;  %vm4099_vm2 = vcmask 138240  }
 0x181   : > { %5652 = vmatmul.mubr.msk.bf16.vlgmr.msra.gmra.mrb[0].mxu0 %vm174_vm5, %v5651_v51  ;;  %5974 = vmatprep.subr.bf16.mxu1 %v6606_v0  ;;  %v2903_v38 = vand.u32 %v2892_v34, %v6780_v18 }
 0x182   : > { %2466 = vmatpush1.bf16.msra.mxu0 %v2457_v53  ;;  %2497 = vmatprep.mubr.bf16.mxu0 %v6608_v3  ;;  %v3102_v53 = vpop.permute.xlu1 %3101 }
 0x183   : > { %2575 = vmatprep.subr.bf16.mxu0 %v2570_v54  ;;  %5086 = vrot.lane.b32.xlu0 %v7194_v58, %s6651_s19  ;;  %v2996_v35 = vpop.permute.xlu0 %2995  ;;  %v3110_v56 = vsel %vm3109_vm4, %v3102_v53, %v3104_v46  ;;  %v5684_v53 = vld [vmem:[%s7632_s1 + $0x3e] sm:$0x3] }
 0x184   : > { %5195 = vrot.lane.b32.xlu1 %v7172_v47, %s6652_s7  ;;  %v3001_v40 = vsel %vm2999_vm3, %v2994_v37, %v2996_v35 }
 0x185   : > { %v3010_v11 = vand.u32 %v3001_v40, %v6780_v18 }
 0x186   : > { %v3214_v59 = vpop.permute.xlu1 %3213 }
 0x187   : > { %5197 = vrot.lane.b32.xlu0 %v7191_v57, %s6652_s7  ;;  %v2998_v42 = vpop.permute.xlu0 %2997 }
 0x188   : > { %5193 = vrot.lane.b32.xlu1 %v7194_v58, %s6652_s7  ;;  %v3002_v8 = vsel %vm2999_vm3, %v2996_v35, %v2998_v42  ;;  %vm4209_vm3 = vcmask 130048  }
 0x189   : > { %v3013_v9 = vand.u32 %v3002_v8, %v6780_v18 }
 0x18b   : > { %5971 = vmatmul.mubr.msk.bf16.vlgmr.msra.gmra.mrb[0].mxu1 %vm174_vm5, %v5654_v1  ;;  %v3106_v44 = vpop.permute.xlu0 %3105  ;;  %5302 = vrot.lane.b32.xlu0 %v7172_v47, %s6653_s12 }
 0x18c   : > { %5975 = vmatpush3.bf16.msra.mxu1 %v2573_v63  ;;  %5976 = vmatprep.mubr.msk.bf16.mxu1 %vm6607_vm0, %v6606_v0  ;;  %v3111_v49 = vsel %vm3109_vm4, %v3104_v46, %v3106_v44  ;;  %v3117_v63 = vand.u32 %v3110_v56, %v6780_v18 }
 0x18d   : > { %5655 = vmatmul.mubr.msk.bf16.vlgmr.msra.gmra.mrb[0].mxu0 %vm174_vm5, %v5654_v1  ;;  %5980 = vmatprep.subr.bf16.mxu1 %v6606_v0  ;;  %v3120_v51 = vand.u32 %v3111_v49, %v6780_v18 }
 0x18e   : > { %2576 = vmatpush1.bf16.msra.mxu0 %v2567_v4  ;;  %2607 = vmatprep.mubr.bf16.mxu0 %v6608_v3 }
 0x18f   : > { %2685 = vmatprep.subr.bf16.mxu0 %v2680_v5  ;;  %5304 = vrot.lane.b32.xlu1 %v7191_v57, %s6653_s12  ;;  %v3108_v52 = vpop.permute.xlu0 %3107 }
 0x190   : > { %5300 = vrot.lane.b32.xlu0 %v7194_v58, %s6653_s12  ;;  %v3112_v54 = vsel %vm3109_vm4, %v3106_v44, %v3108_v52  ;;  %vm4319_vm4 = vcmask 121856  }
 0x191   : > { %v3123_v60 = vand.u32 %v3112_v54, %v6780_v18 }
 0x193   : > { %v3216_v55 = vpop.permute.xlu0 %3215  ;;  %5409 = vrot.lane.b32.xlu1 %v7172_v47, %s6654_s16 }
 0x194   : > { %5411 = vrot.lane.b32.xlu0 %v7191_v57, %s6654_s16  ;;  %v3221_v62 = vsel %vm3219_vm6, %v3214_v59, %v3216_v55  ;;  %v3212_v57 = vpop.permute.xlu1 %3211 }
 0x195   : > { %v3230_v1 = vand.u32 %v3221_v62, %v6780_v18 }
 0x197   : > { %5977 = vmatmul.mubr.msk.bf16.vlgmr.msra.gmra.mrb[0].mxu1 %vm174_vm5, %v5657_v17  ;;  %5407 = vrot.lane.b32.xlu1 %v7194_v58, %s6654_s16  ;;  %v3218_v47 = vpop.permute.xlu0 %3217  ;;  %v3220_v58 = vsel %vm3219_vm6, %v3212_v57, %v3214_v59  ;;  %v5687_v57 = vld [vmem:[%s7632_s1 + $0x40] sm:$0x3] }
 0x198   : > { %5981 = vmatpush3.bf16.msra.mxu1 %v2683_v16  ;;  %5982 = vmatprep.mubr.msk.bf16.mxu1 %vm6607_vm0, %v6606_v0  ;;  %v3222_v2 = vsel %vm3219_vm6, %v3216_v55, %v3218_v47  ;;  %v3324_v5 = vpop.permute.xlu1 %3323  ;;  %v3227_v13 = vand.u32 %v3220_v58, %v6780_v18  ;;  %vm4429_vm6 = vcmask 113664  }
 0x199   : > { %5658 = vmatmul.mubr.msk.bf16.vlgmr.msra.gmra.mrb[0].mxu0 %vm174_vm5, %v5657_v17  ;;  %5986 = vmatprep.subr.bf16.mxu1 %v6606_v0  ;;  %v3233_v6 = vand.u32 %v3222_v2, %v6780_v18 }
 0x19a   : > { %2686 = vmatpush1.bf16.msra.mxu0 %v2677_v20  ;;  %2717 = vmatprep.mubr.bf16.mxu0 %v6608_v3 }
 0x19b   : > { %2795 = vmatprep.subr.bf16.mxu0 %v2790_v21  ;;  %v3326_v4 = vpop.permute.xlu0 %3325 }
 0x19c   : > { %v3331_v12 = vsel %vm3329_vm10, %v3324_v5, %v3326_v4  ;;  %v3322_v16 = vpop.permute.xlu1 %3321 }
 0x19d   : > { %v3340_v14 = vand.u32 %v3331_v12, %v6780_v18  ;;  %v3330_v20 = vsel %vm3329_vm10, %v3322_v16, %v3324_v5  ;;  %v5690_v16 = vld [vmem:[%s7632_s1 + $0x42] sm:$0x3] }
 0x19e   : > { %v3337_v25 = vand.u32 %v3330_v20, %v6780_v18 }
 0x19f   : > { %v3328_v15 = vpop.permute.xlu0 %3327 }
 0x1a0   : > { %v3332_v17 = vsel %vm3329_vm10, %v3326_v4, %v3328_v15  ;;  %v3434_v21 = vpop.permute.xlu1 %3433  ;;  %vm4539_vm10 = vcmask 105472  }
 0x1a1   : > { %v3343_v22 = vand.u32 %v3332_v17, %v6780_v18 }
 0x1a3   : > { %5983 = vmatmul.mubr.msk.bf16.vlgmr.msra.gmra.mrb[0].mxu1 %vm174_vm5, %v5660_v29  ;;  %v3436_v19 = vpop.permute.xlu0 %3435 }
 0x1a4   : > { %5987 = vmatpush3.bf16.msra.mxu1 %v2793_v28  ;;  %5988 = vmatprep.mubr.msk.bf16.mxu1 %vm6607_vm0, %v6606_v0  ;;  %v3441_v24 = vsel %vm3439_vm11, %v3434_v21, %v3436_v19  ;;  %v3432_v28 = vpop.permute.xlu1 %3431 }
 0x1a5   : > { %5661 = vmatmul.mubr.msk.bf16.vlgmr.msra.gmra.mrb[0].mxu0 %vm174_vm5, %v5660_v29  ;;  %5992 = vmatprep.subr.bf16.mxu1 %v6606_v0  ;;  %v3450_v26 = vand.u32 %v3441_v24, %v6780_v18 }
 0x1a6   : > { %2796 = vmatpush1.bf16.msra.mxu0 %v2787_v31  ;;  %2827 = vmatprep.mubr.bf16.mxu0 %v6608_v3  ;;  %v3440_v31 = vsel %vm3439_vm11, %v3432_v28, %v3434_v21  ;;  %v5693_v28 = vld [vmem:[%s7632_s1 + $0x44] sm:$0x3] }
 0x1a7   : > { %2905 = vmatprep.subr.bf16.mxu0 %v2900_v32  ;;  %v3438_v27 = vpop.permute.xlu0 %3437  ;;  %v3447_v35 = vand.u32 %v3440_v31, %v6780_v18 }
 0x1a8   : > { %v3442_v29 = vsel %vm3439_vm11, %v3436_v19, %v3438_v27  ;;  %v3544_v32 = vpop.permute.xlu1 %3543  ;;  %vm4649_vm11 = vcmask 97280  }
 0x1a9   : > { %v3453_v33 = vand.u32 %v3442_v29, %v6780_v18 }
 0x1ab   : > { %v3546_v30 = vpop.permute.xlu0 %3545 }
 0x1ac   : > { %v3551_v34 = vsel %vm3549_vm12, %v3544_v32, %v3546_v30 }
 0x1ad   : > { %v3560_v36 = vand.u32 %v3551_v34, %v6780_v18 }
 0x1af   : > { %5989 = vmatmul.mubr.msk.bf16.vlgmr.msra.gmra.mrb[0].mxu1 %vm174_vm5, %v5663_v39  ;;  %v3548_v37 = vpop.permute.xlu0 %3547 }
 0x1b0   : > { %5993 = vmatpush3.bf16.msra.mxu1 %v2903_v38  ;;  %5994 = vmatprep.mubr.msk.bf16.mxu1 %vm6607_vm0, %v6606_v0  ;;  %v3542_v38 = vpop.permute.xlu1 %3541 }
 0x1b1   : > { %5664 = vmatmul.mubr.msk.bf16.vlgmr.msra.gmra.mrb[0].mxu0 %vm174_vm5, %v5663_v39  ;;  %5998 = vmatprep.subr.bf16.mxu1 %v6606_v0  ;;  %v3552_v39 = vsel %vm3549_vm12, %v3546_v30, %v3548_v37 }
 0x1b2   : > { %2906 = vmatpush1.bf16.msra.mxu0 %v2897_v41  ;;  %2937 = vmatprep.mubr.bf16.mxu0 %v6608_v3  ;;  %v3550_v41 = vsel %vm3549_vm12, %v3542_v38, %v3544_v32  ;;  %v3563_v42 = vand.u32 %v3552_v39, %v6780_v18  ;;  %v5696_v38 = vld [vmem:[%s7632_s1 + $0x46] sm:$0x3]  ;;  %vm5413_vm12 = vcmask 965632  }
 0x1b3   : > { %3015 = vmatprep.subr.bf16.mxu0 %v3010_v11  ;;  %v3656_v40 = vpop.permute.xlu0 %3655  ;;  %v3557_v44 = vand.u32 %v3550_v41, %v6780_v18 }
 0x1b4   : > { %v3654_v11 = vpop.permute.xlu1 %3653 }
 0x1b5   : > { %v3661_v8 = vsel %vm3659_vm13, %v3654_v11, %v3656_v40 }
 0x1b6   : > { %v3670_v45 = vand.u32 %v3661_v8, %v6780_v18 }
 0x1b7   : > { %v3658_v46 = vpop.permute.xlu0 %3657 }
 0x1bb   : > { %5995 = vmatmul.mubr.msk.bf16.vlgmr.msra.gmra.mrb[0].mxu1 %vm174_vm5, %v5666_v48  ;;  %v3766_v49 = vpop.permute.xlu0 %3765 }
 0x1bc   : > { %5999 = vmatpush3.bf16.msra.mxu1 %v3013_v9  ;;  %6000 = vmatprep.mubr.msk.bf16.mxu1 %vm6607_vm0, %v6606_v0  ;;  %v3652_v9 = vpop.permute.xlu1 %3651 }
 0x1bd   : > { %5667 = vmatmul.mubr.msk.bf16.vlgmr.msra.gmra.mrb[0].mxu0 %vm174_vm5, %v5666_v48  ;;  %6004 = vmatprep.subr.bf16.mxu1 %v6606_v0  ;;  %v3662_v48 = vsel %vm3659_vm13, %v3656_v40, %v3658_v46 }
 0x1be   : > { %3016 = vmatpush1.bf16.msra.mxu0 %v3007_v50  ;;  %3047 = vmatprep.mubr.bf16.mxu0 %v6608_v3  ;;  %v3660_v50 = vsel %vm3659_vm13, %v3652_v9, %v3654_v11  ;;  %v3673_v52 = vand.u32 %v3662_v48, %v6780_v18  ;;  %v5699_v9 = vld [vmem:[%s7632_s1 + $0x48] sm:$0x3] }
 0x1bf   : > { %3125 = vmatprep.subr.bf16.mxu0 %v3120_v51  ;;  %v3667_v55 = vand.u32 %v3660_v50, %v6780_v18  ;;  %v3768_v59 = vpop.permute.xlu0 %3767 }
 0x1c0   : > { %v3764_v51 = vpop.permute.xlu1 %3763 }
 0x1c1   : > { %v3771_v54 = vsel %vm3769_vm14, %v3764_v51, %v3766_v49 }
 0x1c2   : > { %v3780_v56 = vand.u32 %v3771_v54, %v6780_v18 }
 0x1c3   : > { %v3876_v62 = vpop.permute.xlu0 %3875 }
 0x1c7   : > { %6001 = vmatmul.mubr.msk.bf16.vlgmr.msra.gmra.mrb[0].mxu1 %vm174_vm5, %v5669_v61  ;;  %v3878_v5 = vpop.permute.xlu0 %3877 }
 0x1c8   : > { %6005 = vmatpush3.bf16.msra.mxu1 %v3123_v60  ;;  %6006 = vmatprep.mubr.msk.bf16.mxu1 %vm6607_vm0, %v6606_v0  ;;  %v3762_v60 = vpop.permute.xlu1 %3761 }
 0x1c9   : > { %5670 = vmatmul.mubr.msk.bf16.vlgmr.msra.gmra.mrb[0].mxu0 %vm174_vm5, %v5669_v61  ;;  %6010 = vmatprep.subr.bf16.mxu1 %v6606_v0  ;;  %v3772_v61 = vsel %vm3769_vm14, %v3766_v49, %v3768_v59 }
 0x1ca   : > { %3126 = vmatpush1.bf16.msra.mxu0 %v3117_v63  ;;  %3157 = vmatprep.mubr.bf16.mxu0 %v6608_v3  ;;  %v3770_v63 = vsel %vm3769_vm14, %v3762_v60, %v3764_v51  ;;  %v3783_v47 = vand.u32 %v3772_v61, %v6780_v18  ;;  %v5702_v60 = vld [vmem:[%s7632_s1 + $0x4a] sm:$0x3] }
 0x1cb   : > { %3235 = vmatprep.subr.bf16.mxu0 %v3230_v1  ;;  %v3777_v4 = vand.u32 %v3770_v63, %v6780_v18  ;;  %v3986_v12 = vpop.permute.xlu0 %3985 }
 0x1cc   : > { %v3874_v1 = vpop.permute.xlu1 %3873 }
 0x1cd   : > { %v3881_v2 = vsel %vm3879_vm15, %v3874_v1, %v3876_v62 }
 0x1ce   : > { %v3890_v58 = vand.u32 %v3881_v2, %v6780_v18 }
 0x1cf   : > { %v3988_v21 = vpop.permute.xlu0 %3987 }
 0x1d3   : > { %6007 = vmatmul.mubr.msk.bf16.vlgmr.msra.gmra.mrb[0].mxu1 %vm174_vm5, %v5672_v7  ;;  %v4096_v24 = vpop.permute.xlu0 %4095 }
 0x1d4   : > { %6011 = vmatpush3.bf16.msra.mxu1 %v3233_v6  ;;  %6012 = vmatprep.mubr.msk.bf16.mxu1 %vm6607_vm0, %v6606_v0  ;;  %v3872_v6 = vpop.permute.xlu1 %3871 }
 0x1d5   : > { %5673 = vmatmul.mubr.msk.bf16.vlgmr.msra.gmra.mrb[0].mxu0 %vm174_vm5, %v5672_v7  ;;  %6016 = vmatprep.subr.bf16.mxu1 %v6606_v0  ;;  %v3882_v7 = vsel %vm3879_vm15, %v3876_v62, %v3878_v5 }
 0x1d6   : > { %3236 = vmatpush1.bf16.msra.mxu0 %v3227_v13  ;;  %3267 = vmatprep.mubr.bf16.mxu0 %v6608_v3  ;;  %v3880_v13 = vsel %vm3879_vm15, %v3872_v6, %v3874_v1  ;;  %v3893_v15 = vand.u32 %v3882_v7, %v6780_v18  ;;  %v5705_v6 = vld [vmem:[%s7632_s1 + $0x4c] sm:$0x3] }
 0x1d7   : > { %3345 = vmatprep.subr.bf16.mxu0 %v3340_v14  ;;  %v3887_v19 = vand.u32 %v3880_v13, %v6780_v18  ;;  %v4098_v32 = vpop.permute.xlu0 %4097 }
 0x1d8   : > { %v3984_v14 = vpop.permute.xlu1 %3983 }
 0x1d9   : > { %v3991_v17 = vsel %vm3989_vm1, %v3984_v14, %v3986_v12 }
 0x1da   : > { %v4000_v20 = vand.u32 %v3991_v17, %v6780_v18 }
 0x1db   : > { %v4206_v34 = vpop.permute.xlu0 %4205 }
 0x1df   : > { %6013 = vmatmul.mubr.msk.bf16.vlgmr.msra.gmra.mrb[0].mxu1 %vm174_vm5, %v5675_v23  ;;  %v4208_v11 = vpop.permute.xlu0 %4207 }
 0x1e0   : > { %6017 = vmatpush3.bf16.msra.mxu1 %v3343_v22  ;;  %6018 = vmatprep.mubr.msk.bf16.mxu1 %vm6607_vm0, %v6606_v0  ;;  %v3982_v22 = vpop.permute.xlu1 %3981 }
 0x1e1   : > { %5676 = vmatmul.mubr.msk.bf16.vlgmr.msra.gmra.mrb[0].mxu0 %vm174_vm5, %v5675_v23  ;;  %6022 = vmatprep.subr.bf16.mxu1 %v6606_v0  ;;  %v3992_v23 = vsel %vm3989_vm1, %v3986_v12, %v3988_v21 }
 0x1e2   : > { %3346 = vmatpush1.bf16.msra.mxu0 %v3337_v25  ;;  %3377 = vmatprep.mubr.bf16.mxu0 %v6608_v3  ;;  %v3990_v25 = vsel %vm3989_vm1, %v3982_v22, %v3984_v14  ;;  %v4003_v27 = vand.u32 %v3992_v23, %v6780_v18  ;;  %v5708_v22 = vld [vmem:[%s7632_s1 + $0x4e] sm:$0x3] }
 0x1e3   : > { %3455 = vmatprep.subr.bf16.mxu0 %v3450_v26  ;;  %v3997_v30 = vand.u32 %v3990_v25, %v6780_v18  ;;  %v4316_v8 = vpop.permute.xlu0 %4315 }
 0x1e4   : > { %v4094_v26 = vpop.permute.xlu1 %4093 }
 0x1e5   : > { %v4101_v29 = vsel %vm4099_vm2, %v4094_v26, %v4096_v24 }
 0x1e6   : > { %v4110_v31 = vand.u32 %v4101_v29, %v6780_v18 }
 0x1e7   : > { %v4318_v51 = vpop.permute.xlu0 %4317 }
 0x1eb   : > { %6019 = vmatmul.mubr.msk.bf16.vlgmr.msra.gmra.mrb[0].mxu1 %vm174_vm5, %v5678_v10  ;;  %v4426_v54 = vpop.permute.xlu0 %4425 }
 0x1ec   : > { %6023 = vmatpush3.bf16.msra.mxu1 %v3453_v33  ;;  %6024 = vmatprep.mubr.msk.bf16.mxu1 %vm6607_vm0, %v6606_v0  ;;  %v4092_v33 = vpop.permute.xlu1 %4091 }
 0x1ed   : > { %5679 = vmatmul.mubr.msk.bf16.vlgmr.msra.gmra.mrb[0].mxu0 %vm174_vm5, %v5678_v10  ;;  %6028 = vmatprep.subr.bf16.mxu1 %v6606_v0  ;;  %v4102_v10 = vsel %vm4099_vm2, %v4096_v24, %v4098_v32 }
 0x1ee   : > { %3456 = vmatpush1.bf16.msra.mxu0 %v3447_v35  ;;  %3487 = vmatprep.mubr.bf16.mxu0 %v6608_v3  ;;  %v4100_v35 = vsel %vm4099_vm2, %v4092_v33, %v4094_v26  ;;  %v4113_v37 = vand.u32 %v4102_v10, %v6780_v18  ;;  %v5711_v33 = vld [vmem:[%s7632_s1 + $0x50] sm:$0x3] }
 0x1ef   : > { %3565 = vmatprep.subr.bf16.mxu0 %v3560_v36  ;;  %v4107_v40 = vand.u32 %v4100_v35, %v6780_v18  ;;  %v4428_v1 = vpop.permute.xlu0 %4427 }
 0x1f0   : > { %v4204_v36 = vpop.permute.xlu1 %4203 }
 0x1f1   : > { %v4211_v39 = vsel %vm4209_vm3, %v4204_v36, %v4206_v34 }
 0x1f2   : > { %v4220_v41 = vand.u32 %v4211_v39, %v6780_v18 }
 0x1f3   : > { %v4536_v2 = vpop.permute.xlu0 %4535 }
 0x1f7   : > { %6025 = vmatmul.mubr.msk.bf16.vlgmr.msra.gmra.mrb[0].mxu1 %vm174_vm5, %v5681_v43  ;;  %v4538_v14 = vpop.permute.xlu0 %4537 }
 0x1f8   : > { %6029 = vmatpush3.bf16.msra.mxu1 %v3563_v42  ;;  %6030 = vmatprep.mubr.msk.bf16.mxu1 %vm6607_vm0, %v6606_v0  ;;  %v4202_v42 = vpop.permute.xlu1 %4201 }
 0x1f9   : > { %5682 = vmatmul.mubr.msk.bf16.vlgmr.msra.gmra.mrb[0].mxu0 %vm174_vm5, %v5681_v43  ;;  %6034 = vmatprep.subr.bf16.mxu1 %v6606_v0  ;;  %v4212_v43 = vsel %vm4209_vm3, %v4206_v34, %v4208_v11 }
 0x1fa   : > { %3566 = vmatpush1.bf16.msra.mxu0 %v3557_v44  ;;  %3597 = vmatprep.mubr.bf16.mxu0 %v6608_v3  ;;  %v4210_v44 = vsel %vm4209_vm3, %v4202_v42, %v4204_v36  ;;  %v4223_v46 = vand.u32 %v4212_v43, %v6780_v18 }
 0x1fb   : > { %3675 = vmatprep.subr.bf16.mxu0 %v3670_v45  ;;  %v4217_v49 = vand.u32 %v4210_v44, %v6780_v18  ;;  %v4646_v17 = vpop.permute.xlu0 %4645 }
 0x1fc   : > { %v4314_v45 = vpop.permute.xlu1 %4313 }
 0x1fd   : > { %v4321_v48 = vsel %vm4319_vm4, %v4314_v45, %v4316_v8 }
 0x1fe   : > { %v4330_v50 = vand.u32 %v4321_v48, %v6780_v18  ;;  %v5717_v48 = vld [vmem:[%s7632_s1 + $0x54] sm:$0x3] }
 0x1ff   : > { %v4648_v26 = vpop.permute.xlu0 %4647 }
 0x203   : > { %6031 = vmatmul.mubr.msk.bf16.vlgmr.msra.gmra.mrb[0].mxu1 %vm174_vm5, %v5684_v53  ;;  %v4773_v29 = vpop.permute.xlu0 %4772 }
 0x204   : > { %6035 = vmatpush3.bf16.msra.mxu1 %v3673_v52  ;;  %6036 = vmatprep.mubr.msk.bf16.mxu1 %vm6607_vm0, %v6606_v0  ;;  %v4312_v52 = vpop.permute.xlu1 %4311 }
 0x205   : > { %5685 = vmatmul.mubr.msk.bf16.vlgmr.msra.gmra.mrb[0].mxu0 %vm174_vm5, %v5684_v53  ;;  %6040 = vmatprep.subr.bf16.mxu1 %v6606_v0  ;;  %v4322_v53 = vsel %vm4319_vm4, %v4316_v8, %v4318_v51 }
 0x206   : > { %3676 = vmatpush1.bf16.msra.mxu0 %v3667_v55  ;;  %3707 = vmatprep.mubr.bf16.mxu0 %v6608_v3  ;;  %v4320_v55 = vsel %vm4319_vm4, %v4312_v52, %v4314_v45  ;;  %v4333_v59 = vand.u32 %v4322_v53, %v6780_v18 }
 0x207   : > { %3785 = vmatprep.subr.bf16.mxu0 %v3780_v56  ;;  %v4327_v62 = vand.u32 %v4320_v55, %v6780_v18  ;;  %v4877_v39 = vpop.permute.xlu0 %4876 }
 0x208   : > { %v4424_v56 = vpop.permute.xlu1 %4423 }
 0x209   : > { %v4431_v61 = vsel %vm4429_vm6, %v4424_v56, %v4426_v54 }
 0x20a   : > { %v4440_v63 = vand.u32 %v4431_v61, %v6780_v18 }
 0x20b   : > { %v4875_v8 = vpop.permute.xlu0 %4874 }
 0x20c   : > { %v4880_v45 = vsel %vm694_vm8, %v4875_v8, %v4877_v39 }
 0x20f   : > { %6037 = vmatmul.mubr.msk.bf16.vlgmr.msra.gmra.mrb[0].mxu1 %vm174_vm5, %v5687_v57  ;;  %v4985_v44 = vpop.permute.xlu0 %4984 }
 0x210   : > { %6041 = vmatpush3.bf16.msra.mxu1 %v3783_v47  ;;  %6042 = vmatprep.mubr.msk.bf16.mxu1 %vm6607_vm0, %v6606_v0  ;;  %v4422_v47 = vpop.permute.xlu1 %4421 }
 0x211   : > { %5688 = vmatmul.mubr.msk.bf16.vlgmr.msra.gmra.mrb[0].mxu0 %vm174_vm5, %v5687_v57  ;;  %6046 = vmatprep.subr.bf16.mxu1 %v6606_v0  ;;  %v4432_v57 = vsel %vm4429_vm6, %v4426_v54, %v4428_v1 }
 0x212   : > { %3786 = vmatpush1.bf16.msra.mxu0 %v3777_v4  ;;  %3817 = vmatprep.mubr.bf16.mxu0 %v6608_v3  ;;  %v4430_v4 = vsel %vm4429_vm6, %v4422_v47, %v4424_v56  ;;  %v4443_v5 = vand.u32 %v4432_v57, %v6780_v18  ;;  %v4998_v56 = vand.u32 %v4985_v44, %v6780_v18 }
 0x213   : > { %3895 = vmatprep.subr.bf16.mxu0 %v3890_v58  ;;  %v4437_v12 = vand.u32 %v4430_v4, %v6780_v18  ;;  %v5089_v55 = vpop.permute.xlu0 %5088  ;;  %v5726_v4 = vld [vmem:[%s7632_s1 + $0x58] sm:$0x3] }
 0x214   : > { %v4534_v58 = vpop.permute.xlu1 %4533 }
 0x215   : > { %v4541_v7 = vsel %vm4539_vm10, %v4534_v58, %v4536_v2 }
 0x216   : > { %v4550_v13 = vand.u32 %v4541_v7, %v6780_v18 }
 0x21b   : > { %6043 = vmatmul.mubr.msk.bf16.vlgmr.msra.gmra.mrb[0].mxu1 %vm174_vm5, %v5690_v16 }
 0x21c   : > { %6047 = vmatpush3.bf16.msra.mxu1 %v3893_v15  ;;  %6048 = vmatprep.mubr.msk.bf16.mxu1 %vm6607_vm0, %v6606_v0  ;;  %v4532_v15 = vpop.permute.xlu1 %4531 }
 0x21d   : > { %5691 = vmatmul.mubr.msk.bf16.vlgmr.msra.gmra.mrb[0].mxu0 %vm174_vm5, %v5690_v16  ;;  %6052 = vmatprep.subr.bf16.mxu1 %v6606_v0  ;;  %v4542_v16 = vsel %vm4539_vm10, %v4536_v2, %v4538_v14 }
 0x21e   : > { %3896 = vmatpush1.bf16.msra.mxu0 %v3887_v19  ;;  %3927 = vmatprep.mubr.bf16.mxu0 %v6608_v3  ;;  %v4540_v19 = vsel %vm4539_vm10, %v4532_v15, %v4534_v58  ;;  %v4553_v21 = vand.u32 %v4542_v16, %v6780_v18  ;;  %v5729_v16 = vld [vmem:[%s7632_s1 + $0x5a] sm:$0x3] }
 0x21f   : > { %4005 = vmatprep.subr.bf16.mxu0 %v4000_v20  ;;  %v4547_v24 = vand.u32 %v4540_v19, %v6780_v18 }
 0x220   : > { %v4644_v20 = vpop.permute.xlu1 %4643 }
 0x221   : > { %v4651_v23 = vsel %vm4649_vm11, %v4644_v20, %v4646_v17 }
 0x222   : > { %v4660_v25 = vand.u32 %v4651_v23, %v6780_v18 }
 0x227   : > { %6049 = vmatmul.mubr.msk.bf16.vlgmr.msra.gmra.mrb[0].mxu1 %vm174_vm5, %v5693_v28 }
 0x228   : > { %6053 = vmatpush3.bf16.msra.mxu1 %v4003_v27  ;;  %6054 = vmatprep.mubr.msk.bf16.mxu1 %vm6607_vm0, %v6606_v0  ;;  %v4642_v27 = vpop.permute.xlu1 %4641 }
 0x229   : > { %5694 = vmatmul.mubr.msk.bf16.vlgmr.msra.gmra.mrb[0].mxu0 %vm174_vm5, %v5693_v28  ;;  %6058 = vmatprep.subr.bf16.mxu1 %v6606_v0  ;;  %v4652_v28 = vsel %vm4649_vm11, %v4646_v17, %v4648_v26  ;;  %v5732_v26 = vld [vmem:[%s7632_s1 + $0x5c] sm:$0x3] }
 0x22a   : > { %4006 = vmatpush1.bf16.msra.mxu0 %v3997_v30  ;;  %4037 = vmatprep.mubr.bf16.mxu0 %v6608_v3  ;;  %v4650_v30 = vsel %vm4649_vm11, %v4642_v27, %v4644_v20  ;;  %v4663_v32 = vand.u32 %v4652_v28, %v6780_v18 }
 0x22b   : > { %4115 = vmatprep.subr.bf16.mxu0 %v4110_v31  ;;  %v4657_v34 = vand.u32 %v4650_v30, %v6780_v18 }
 0x22c   : > { %v4771_v31 = vpop.permute.xlu1 %4770 }
 0x22d   : > { %v4775_v10 = vsel %vm587_vm7, %v4771_v31, %v4773_v29 }
 0x22e   : > { %v4783_v35 = vand.u32 %v4775_v10, %v6780_v18 }
 0x230   : > { %v4769_v36 = vpop.permute.xlu1 %4768 }
 0x233   : > { %6055 = vmatmul.mubr.msk.bf16.vlgmr.msra.gmra.mrb[0].mxu1 %vm174_vm5, %v5696_v38 }
 0x234   : > { %6059 = vmatpush3.bf16.msra.mxu1 %v4113_v37  ;;  %6060 = vmatprep.mubr.msk.bf16.mxu1 %vm6607_vm0, %v6606_v0  ;;  %v4879_v37 = vpop.permute.xlu1 %4878 }
 0x235   : > { %5697 = vmatmul.mubr.msk.bf16.vlgmr.msra.gmra.mrb[0].mxu0 %vm174_vm5, %v5696_v38  ;;  %6064 = vmatprep.subr.bf16.mxu1 %v6606_v0  ;;  %v4774_v38 = vsel %vm587_vm7, %v4769_v36, %v4771_v31  ;;  %v4881_v11 = vsel %vm694_vm8, %v4877_v39, %v4879_v37  ;;  %vm5092_vm7 = vcmask 990208   ;;  %vm5199_vm8 = vcmask 982016  }
 0x236   : > { %4116 = vmatpush1.bf16.msra.mxu0 %v4107_v40  ;;  %4147 = vmatprep.mubr.bf16.mxu0 %v6608_v3  ;;  %v4786_v40 = vand.u32 %v4773_v29, %v6780_v18  ;;  %v4780_v42 = vand.u32 %v4774_v38, %v6780_v18  ;;  %v4889_v43 = vand.u32 %v4881_v11, %v6780_v18 }
 0x237   : > { %4225 = vmatprep.subr.bf16.mxu0 %v4220_v41  ;;  %v5714_v41 = vld [vmem:[%s7632_s1 + $0x52] sm:$0x3] }
 0x23f   : > { %6061 = vmatmul.mubr.msk.bf16.vlgmr.msra.gmra.mrb[0].mxu1 %vm174_vm5, %v5699_v9 }
 0x240   : > { %6065 = vmatpush3.bf16.msra.mxu1 %v4223_v46  ;;  %6066 = vmatprep.mubr.msk.bf16.mxu1 %vm6607_vm0, %v6606_v0  ;;  %v4983_v46 = vpop.permute.xlu1 %4982 }
 0x241   : > { %5700 = vmatmul.mubr.msk.bf16.vlgmr.msra.gmra.mrb[0].mxu0 %vm174_vm5, %v5699_v9  ;;  %6070 = vmatprep.subr.bf16.mxu1 %v6606_v0  ;;  %v4892_v9 = vand.u32 %v4879_v37, %v6780_v18 }
 0x242   : > { %4226 = vmatpush1.bf16.msra.mxu0 %v4217_v49  ;;  %4257 = vmatprep.mubr.bf16.mxu0 %v6608_v3  ;;  %v4987_v49 = vsel %vm801_vm9, %v4983_v46, %v4985_v44 }
 0x243   : > { %4335 = vmatprep.subr.bf16.mxu0 %v4330_v50  ;;  %v4886_v50 = vand.u32 %v4880_v45, %v6780_v18  ;;  %v4995_v51 = vand.u32 %v4987_v49, %v6780_v18 }
 0x244   : > { %v4981_v52 = vpop.permute.xlu1 %4980 }
 0x245   : > { %v4986_v54 = vsel %vm801_vm9, %v4981_v52, %v4983_v46  ;;  %vm5306_vm9 = vcmask 973824  }
 0x246   : > { %v4992_v61 = vand.u32 %v4986_v54, %v6780_v18 }
 0x248   : > { %v5091_v53 = vpop.permute.xlu1 %5090 }
 0x249   : > { %v5105_v2 = vand.u32 %v5091_v53, %v6780_v18 }
 0x24b   : > { %6067 = vmatmul.mubr.msk.bf16.vlgmr.msra.gmra.mrb[0].mxu1 %vm174_vm5, %v5702_v60 }
 0x24c   : > { %6071 = vmatpush3.bf16.msra.mxu1 %v4333_v59  ;;  %6072 = vmatprep.mubr.msk.bf16.mxu1 %vm6607_vm0, %v6606_v0  ;;  %v5723_v59 = vld [vmem:[%s7632_s1 + $0x56] sm:$0x3]  ;;  %v5196_v57 = vpop.permute.xlu1 %5195 }
 0x24d   : > { %5703 = vmatmul.mubr.msk.bf16.vlgmr.msra.gmra.mrb[0].mxu0 %vm174_vm5, %v5702_v60  ;;  %6076 = vmatprep.subr.bf16.mxu1 %v6606_v0  ;;  %v5094_v60 = vsel %vm5092_vm7, %v5089_v55, %v5091_v53 }
 0x24e   : > { %4336 = vmatpush1.bf16.msra.mxu0 %v4327_v62  ;;  %4367 = vmatprep.mubr.bf16.mxu0 %v6608_v3  ;;  %v5102_v62 = vand.u32 %v5094_v60, %v6780_v18 }
 0x24f   : > { %4445 = vmatprep.subr.bf16.mxu0 %v4440_v63  ;;  %v5087_v63 = vpop.permute.xlu0 %5086 }
 0x250   : > { %v5093_v47 = vsel %vm5092_vm7, %v5087_v63, %v5089_v55  ;;  %v5194_v7 = vpop.permute.xlu1 %5193 }
 0x253   : > { %v5198_v1 = vpop.permute.xlu0 %5197 }
 0x254   : > { %v5201_v58 = vsel %vm5199_vm8, %v5196_v57, %v5198_v1  ;;  %v5212_v15 = vand.u32 %v5198_v1, %v6780_v18 }
 0x257   : > { %6073 = vmatmul.mubr.msk.bf16.vlgmr.msra.gmra.mrb[0].mxu1 %vm174_vm5, %v5705_v6  ;;  %v5303_v14 = vpop.permute.xlu0 %5302 }
 0x258   : > { %6077 = vmatpush3.bf16.msra.mxu1 %v4443_v5  ;;  %6078 = vmatprep.mubr.msk.bf16.mxu1 %vm6607_vm0, %v6606_v0  ;;  %v5099_v5 = vand.u32 %v5093_v47, %v6780_v18 }
 0x259   : > { %5706 = vmatmul.mubr.msk.bf16.vlgmr.msra.gmra.mrb[0].mxu0 %vm174_vm5, %v5705_v6  ;;  %6082 = vmatprep.subr.bf16.mxu1 %v6606_v0  ;;  %v5209_v6 = vand.u32 %v5201_v58, %v6780_v18 }
 0x25a   : > { %4446 = vmatpush1.bf16.msra.mxu0 %v4437_v12  ;;  %4477 = vmatprep.mubr.bf16.mxu0 %v6608_v3  ;;  %v5305_v12 = vpop.permute.xlu1 %5304 }
 0x25b   : > { %4555 = vmatprep.subr.bf16.mxu0 %v4550_v13  ;;  %v5200_v13 = vsel %vm5199_vm8, %v5194_v7, %v5196_v57  ;;  %v5308_v17 = vsel %vm5306_vm9, %v5303_v14, %v5305_v12 }
 0x25c   : > { %v5206_v19 = vand.u32 %v5200_v13, %v6780_v18  ;;  %v5316_v20 = vand.u32 %v5308_v17, %v6780_v18 }
 0x263   : > { %6079 = vmatmul.mubr.msk.bf16.vlgmr.msra.gmra.mrb[0].mxu1 %vm174_vm5, %v5708_v22 }
 0x264   : > { %6083 = vmatpush3.bf16.msra.mxu1 %v4553_v21  ;;  %6084 = vmatprep.mubr.msk.bf16.mxu1 %vm6607_vm0, %v6606_v0  ;;  %v5301_v21 = vpop.permute.xlu0 %5300 }
 0x265   : > { %5709 = vmatmul.mubr.msk.bf16.vlgmr.msra.gmra.mrb[0].mxu0 %vm174_vm5, %v5708_v22  ;;  %6088 = vmatprep.subr.bf16.mxu1 %v6606_v0  ;;  %v5307_v23 = vsel %vm5306_vm9, %v5301_v21, %v5303_v14 }
 0x266   : > { %4556 = vmatpush1.bf16.msra.mxu0 %v4547_v24  ;;  %4587 = vmatprep.mubr.bf16.mxu0 %v6608_v3  ;;  %v5410_v24 = vpop.permute.xlu1 %5409  ;;  %v5313_v28 = vand.u32 %v5307_v23, %v6780_v18 }
 0x267   : > { %4665 = vmatprep.subr.bf16.mxu0 %v4660_v25  ;;  %v5319_v25 = vand.u32 %v5305_v12, %v6780_v18 }
 0x268   : > { %v5412_v22 = vpop.permute.xlu0 %5411 }
 0x269   : > { %v5415_v27 = vsel %vm5413_vm12, %v5410_v24, %v5412_v22 }
 0x26a   : > { %v5423_v29 = vand.u32 %v5415_v27, %v6780_v18  ;;  %v5408_v30 = vpop.permute.xlu1 %5407 }
 0x26b   : > { %v5414_v31 = vsel %vm5413_vm12, %v5408_v30, %v5410_v24 }
 0x26c   : > { %v5420_v10 = vand.u32 %v5414_v31, %v6780_v18 }
 0x26f   : > { %6085 = vmatmul.mubr.msk.bf16.vlgmr.msra.gmra.mrb[0].mxu1 %vm174_vm5, %v5711_v33 }
 0x270   : > { %6089 = vmatpush3.bf16.msra.mxu1 %v4663_v32  ;;  %6090 = vmatprep.mubr.msk.bf16.mxu1 %vm6607_vm0, %v6606_v0  ;;  %v5426_v32 = vand.u32 %v5412_v22, %v6780_v18 }
 0x271   : > { %5712 = vmatmul.mubr.msk.bf16.vlgmr.msra.gmra.mrb[0].mxu0 %vm174_vm5, %v5711_v33  ;;  %6094 = vmatprep.subr.bf16.mxu1 %v6606_v0  ;;  %v5735_v33 = vld [vmem:[%s7632_s1 + $0x5e] sm:$0x3] }
 0x272   : > { %4666 = vmatpush1.bf16.msra.mxu0 %v4657_v34  ;;  %4697 = vmatprep.mubr.bf16.mxu0 %v6608_v3  ;;  %v5738_v34 = vld [vmem:[%s7632_s1 + $0x60] sm:$0x3] }
 0x273   : > { %4788 = vmatprep.subr.bf16.mxu0 %v4783_v35 }
 0x27b   : > { %6091 = vmatmul.mubr.msk.bf16.vlgmr.msra.gmra.mrb[0].mxu1 %vm174_vm5, %v5714_v41 }
 0x27c   : > { %6095 = vmatpush3.bf16.msra.mxu1 %v4786_v40  ;;  %6096 = vmatprep.mubr.msk.bf16.mxu1 %vm6607_vm0, %v6606_v0 }
 0x27d   : > { %5715 = vmatmul.mubr.msk.bf16.vlgmr.msra.gmra.mrb[0].mxu0 %vm174_vm5, %v5714_v41  ;;  %6100 = vmatprep.subr.bf16.mxu1 %v6606_v0 }
 0x27e   : > { %4789 = vmatpush1.bf16.msra.mxu0 %v4780_v42  ;;  %4820 = vmatprep.mubr.bf16.mxu0 %v6608_v3 }
 0x27f   : > { %4894 = vmatprep.subr.bf16.mxu0 %v4889_v43 }
 0x287   : > { %6097 = vmatmul.mubr.msk.bf16.vlgmr.msra.gmra.mrb[0].mxu1 %vm174_vm5, %v5717_v48 }
 0x288   : > { %6101 = vmatpush3.bf16.msra.mxu1 %v4892_v9  ;;  %6102 = vmatprep.mubr.msk.bf16.mxu1 %vm6607_vm0, %v6606_v0 }
 0x289   : > { %5721 = vmatmul.mubr.msk.bf16.vlgmr.msra.gmra.mrb[0].mxu0 %vm174_vm5, %v5717_v48  ;;  %6106 = vmatprep.subr.bf16.mxu1 %v6606_v0 }
 0x28a   : > { %4895 = vmatpush1.bf16.msra.mxu0 %v4886_v50  ;;  %4926 = vmatprep.mubr.bf16.mxu0 %v6608_v3 }
 0x28b   : > { %5000 = vmatprep.subr.bf16.mxu0 %v4995_v51 }
 0x293   : > { %6103 = vmatmul.mubr.msk.bf16.vlgmr.msra.gmra.mrb[0].mxu1 %vm174_vm5, %v5723_v59 }
 0x294   : > { %6107 = vmatpush3.bf16.msra.mxu1 %v4998_v56  ;;  %6108 = vmatprep.mubr.msk.bf16.mxu1 %vm6607_vm0, %v6606_v0 }
 0x295   : > { %5724 = vmatmul.mubr.msk.bf16.vlgmr.msra.gmra.mrb[0].mxu0 %vm174_vm5, %v5723_v59  ;;  %6112 = vmatprep.subr.bf16.mxu1 %v6606_v0 }
 0x296   : > { %5001 = vmatpush1.bf16.msra.mxu0 %v4992_v61  ;;  %5032 = vmatprep.mubr.bf16.mxu0 %v6608_v3 }
 0x297   : > { %5107 = vmatprep.subr.bf16.mxu0 %v5102_v62 }
 0x29f   : > { %6109 = vmatmul.mubr.msk.bf16.vlgmr.msra.gmra.mrb[0].mxu1 %vm174_vm5, %v5726_v4 }
 0x2a0   : > { %6113 = vmatpush3.bf16.msra.mxu1 %v5105_v2  ;;  %6114 = vmatprep.mubr.msk.bf16.mxu1 %vm6607_vm0, %v6606_v0 }
 0x2a1   : > { %5727 = vmatmul.mubr.msk.bf16.vlgmr.msra.gmra.mrb[0].mxu0 %vm174_vm5, %v5726_v4  ;;  %6118 = vmatprep.subr.bf16.mxu1 %v6606_v0 }
 0x2a2   : > { %5108 = vmatpush1.bf16.msra.mxu0 %v5099_v5  ;;  %5139 = vmatprep.mubr.bf16.mxu0 %v6608_v3 }
 0x2a3   : > { %5214 = vmatprep.subr.bf16.mxu0 %v5209_v6 }
 0x2ab   : > { %6115 = vmatmul.mubr.msk.bf16.vlgmr.msra.gmra.mrb[0].mxu1 %vm174_vm5, %v5729_v16 }
 0x2ac   : > { %6119 = vmatpush3.bf16.msra.mxu1 %v5212_v15  ;;  %6120 = vmatprep.mubr.msk.bf16.mxu1 %vm6607_vm0, %v6606_v0 }
 0x2ad   : > { %5730 = vmatmul.mubr.msk.bf16.vlgmr.msra.gmra.mrb[0].mxu0 %vm174_vm5, %v5729_v16  ;;  %6124 = vmatprep.subr.bf16.mxu1 %v6606_v0 }
 0x2ae   : > { %5215 = vmatpush1.bf16.msra.mxu0 %v5206_v19  ;;  %5246 = vmatprep.mubr.bf16.mxu0 %v6608_v3 }
 0x2af   : > { %5321 = vmatprep.subr.bf16.mxu0 %v5316_v20 }
 0x2b7   : > { %6121 = vmatmul.mubr.msk.bf16.vlgmr.msra.gmra.mrb[0].mxu1 %vm174_vm5, %v5732_v26 }
 0x2b8   : > { %6125 = vmatpush3.bf16.msra.mxu1 %v5319_v25  ;;  %6126 = vmatprep.mubr.msk.bf16.mxu1 %vm6607_vm0, %v6606_v0 }
 0x2b9   : > { %5733 = vmatmul.mubr.msk.bf16.vlgmr.msra.gmra.mrb[0].mxu0 %vm174_vm5, %v5732_v26  ;;  %6130 = vmatprep.subr.bf16.mxu1 %v6606_v0 }
 0x2ba   : > { %5322 = vmatpush1.bf16.msra.mxu0 %v5313_v28  ;;  %5353 = vmatprep.mubr.bf16.mxu0 %v6608_v3 }
 0x2bb   : > { %5428 = vmatprep.subr.bf16.mxu0 %v5423_v29 }
 0x2c3   : > { %6127 = vmatmul.mubr.msk.bf16.vlgmr.msra.gmra.mrb[0].mxu1 %vm174_vm5, %v5735_v33 }
 0x2c4   : > { %6131 = vmatpush3.bf16.msra.mxu1 %v5426_v32  ;;  %6132 = vmatprep.mubr.msk.bf16.mxu1 %vm6607_vm0, %v6606_v0  ;;  %vm5520_vm0 = vcmask 780288  }
 0x2c5   : > { %5736 = vmatmul.mubr.msk.bf16.vlgmr.msra.gmra.mrb[0].mxu0 %vm174_vm5, %v5735_v33 }
 0x2c6   : > { %5429 = vmatpush1.bf16.msra.mxu0 %v5420_v10  ;;  %5460 = vmatprep.mubr.bf16.mxu0 %v6608_v3 }
 0x2cf   : > { %6133 = vmatmul.mubr.msk.bf16.vlgmr.msra.gmra.mrb[0].mxu1 %vm174_vm5, %v5738_v34 }
 0x2d1   : > { %5739 = vmatmul.mubr.msk.bf16.vlgmr.msra.gmra.mrb[0].mxu0 %vm174_vm5, %v5738_v34 }
 0x3a2   : > { %v5503_v18 = vpop.f32.mrb[0].mxu1 }
 0x3a3   : > { %6590 = vtanh.f32 %v5503_v18  ;;  %v6134_v35 = vpop.f32.mrb[1].mxu1 }
 0x3a4   : > { %v5462_v36 = vpop.f32.mrb[0].mxu0  ;;  %v5506_v37 = vpop.f32.mrb[2].mxu1 }
 0x3a5   : > { %6592 = vtanh.f32 %v5462_v36  ;;  %v5464_v0 = vpop.f32.mrb[1].mxu0  ;;  %v6135_v38 = vpop.f32.mrb[3].mxu1 }
 0x3a6   : > { %6594 = vtanh.f32 %v5464_v0  ;;  %v5466_v39 = vpop.f32.mrb[2].mxu0 }
 0x3a7   : > { %v5467_v3 = vpop.f32.mrb[3].mxu0 }
 0x3ad   : > { %v6591_v40 = vpop.eup %6590 }
 0x3ae   : > { %5521 = vst.msk [vmem:[%s143_s13 + $0x8] sm:$0x7] %vm5520_vm0, %v6591_v40 }
 0x3af   : > { %v6593_v41 = vpop.eup %6592 }
 0x3b0   : > { %v6595_v11 = vpop.eup %6594 }
 0x3b1   : > { %v5517_v42 = vcombine.low %v6593_v41, %v6595_v11 }
 0x3b3   : > { %5519 = vst [vmem:[%s143_s13] sm:$0x77] %v5517_v42 }
 0x3b4 PF: > { %s12_s9 = sadd.s32 1, %s6604_s9  }
 0x3b5   : > { %p9_p4 = scmp.ge.s32.totalorder %s12_s9, 4  }
 0x3b7   :  { %11 = sbr.rel (!%p9_p4) target bundleno = 1 (0x1), region = 106 }

</bundles_post_ra>
